<compile_context>
chip_gen: v5e
topology: v5e:2x2
jax: 0.10.0
libtpu: 0.0.40
codegen_flags: <defaults>
</compile_context>

<pallas_src>
import functools

import jax
import jax.numpy as jnp
from jax.experimental import pallas as pl
from jax.experimental.pallas import tpu as pltpu


def _round_up(x, m):
    return (x + m - 1) // m * m


_VMEM_LIMIT = 48 * 1024 * 1024      # explicit scoped-VMEM cap (safe on v5e/v6e/v7x)
_FULL_K_BUDGET = 20 * 1024 * 1024   # double-buffered per-step working-set budget


# ---------------------------------------------------------------------------
# Pallas matmul kernels: out = act(x @ w + b)
# ---------------------------------------------------------------------------
def _mm_bias_kernel(x_ref, w_ref, b_ref, o_ref, *, relu):
    """Single K step: no accumulator scratch, write the output tile directly."""
    r = jnp.dot(x_ref[...], w_ref[...], preferred_element_type=jnp.float32)
    r = r + b_ref[...]                       # (tm, tn) + (1, tn) broadcast
    if relu:
        r = jnp.maximum(r, 0.0)
    o_ref[...] = r.astype(o_ref.dtype)


def _mm_bias_acc_kernel(x_ref, w_ref, b_ref, o_ref, acc_ref, *, relu, nsteps):
    """Fallback when K is split across the last grid axis (f32 accumulator)."""
    k = pl.program_id(2)

    @pl.when(k == 0)
    def _():
        acc_ref[...] = jnp.zeros_like(acc_ref)

    acc_ref[...] += jnp.dot(x_ref[...], w_ref[...],
                            preferred_element_type=jnp.float32)

    @pl.when(k == nsteps - 1)
    def _():
        r = acc_ref[...] + b_ref[...]
        if relu:
            r = jnp.maximum(r, 0.0)
        o_ref[...] = r.astype(o_ref.dtype)


def _choose_tm(M):
    """Pick the M padding / tile: one big tile when small, 256-row tiles else."""
    Mp = _round_up(M, 8)
    if Mp <= 512:
        return Mp, Mp
    return _round_up(M, 256), 256


def matmul_bias_prepped(x, w, b, n_out, relu=False):
    """act(x @ w + b)[:, :n_out].

    x: (M, K) float32; w: (K, Np) bf16 with Np % 128 == 0 (prepped once);
    b: (1, Np) float32.  Returns (M, n_out) float32.
    """
    M, K = x.shape
    Kw, Np = w.shape
    assert K == Kw and Np % 128 == 0 and b.shape == (1, Np)

    Mp, tm = _choose_tm(M)
    tn = 512 if Np % 512 == 0 else (256 if Np % 256 == 0 else 128)

    xb = x.astype(jnp.bfloat16)
    if Mp != M:                               # skip the pad+copy when aligned
        xb = jnp.zeros((Mp, K), jnp.bfloat16).at[:M].set(xb)

    # Double-buffered per-step working set if the whole K axis is one block.
    full_k_bytes = 2 * 2 * (tm * K + K * tn + tn) + 4 * tm * tn

    if full_k_bytes <= _FULL_K_BUDGET:
        out = pl.pallas_call(
            functools.partial(_mm_bias_kernel, relu=relu),
            out_shape=jax.ShapeDtypeStruct((Mp, Np), jnp.float32),
            grid_spec=pltpu.PrefetchScalarGridSpec(
                num_scalar_prefetch=0,
                grid=(Mp // tm, Np // tn),
                in_specs=[
                    pl.BlockSpec((tm, K), lambda i, j: (i, 0)),
                    pl.BlockSpec((K, tn), lambda i, j: (0, j)),
                    pl.BlockSpec((1, tn), lambda i, j: (0, j)),
                ],
                out_specs=pl.BlockSpec((tm, tn), lambda i, j: (i, j)),
            ),
            compiler_params=pltpu.CompilerParams(
                dimension_semantics=("parallel", "parallel"),
                vmem_limit_bytes=_VMEM_LIMIT),
        )(xb, w, b)
    else:
        # Generic fallback (not hit at these shapes): split K into 512 chunks.
        tk = 512
        Kp = _round_up(K, tk)
        wq = w
        if Kp != K:
            xb = jnp.zeros((Mp, Kp), jnp.bfloat16).at[:, :K].set(xb)
            wq = jnp.zeros((Kp, Np), jnp.bfloat16).at[:K, :].set(w)
        nsteps = Kp // tk
        out = pl.pallas_call(
            functools.partial(_mm_bias_acc_kernel, relu=relu, nsteps=nsteps),
            out_shape=jax.ShapeDtypeStruct((Mp, Np), jnp.float32),
            grid_spec=pltpu.PrefetchScalarGridSpec(
                num_scalar_prefetch=0,
                grid=(Mp // tm, Np // tn, nsteps),
                in_specs=[
                    pl.BlockSpec((tm, tk), lambda i, j, k: (i, k)),
                    pl.BlockSpec((tk, tn), lambda i, j, k: (k, j)),
                    pl.BlockSpec((1, tn), lambda i, j, k: (0, j)),
                ],
                out_specs=pl.BlockSpec((tm, tn), lambda i, j, k: (i, j)),
                scratch_shapes=[pltpu.VMEM((tm, tn), jnp.float32)],
            ),
            compiler_params=pltpu.CompilerParams(
                dimension_semantics=("parallel", "parallel", "arbitrary"),
                vmem_limit_bytes=_VMEM_LIMIT),
        )(xb, wq, b)

    if Mp != M or n_out != Np:
        out = out[:M, :n_out]
    return out


# ---------------------------------------------------------------------------
# Conv (valid, stride 1) = NHWC im2col + Pallas matmul (+ fused bias + ReLU)
# ---------------------------------------------------------------------------
def conv2d_relu_nhwc(x, wmat, bmat, k, cout):
    """x: (N, H, W, Cin) f32; wmat: (k*k*Cin, Np) bf16; bmat: (1, Np) f32."""
    n, H, W, cin = x.shape
    oh, ow = H - k + 1, W - k + 1
    # Patch layout (kh, kw, cin) matches the prepped weight row order.
    cols = [x[:, i:i + oh, j:j + ow, :] for i in range(k) for j in range(k)]
    patches = jnp.concatenate(cols, axis=-1).reshape(n * oh * ow, k * k * cin)
    out = matmul_bias_prepped(patches, wmat, bmat, cout, relu=True)
    return out.reshape(n, oh, ow, cout)


def maxpool2_nhwc(x):
    """MaxPool2d(2): kernel 2, stride 2, floor mode.  NHWC layout."""
    n, h, w, c = x.shape
    h2, w2 = h // 2, w // 2
    x = x[:, :h2 * 2, :w2 * 2, :]
    return x.reshape(n, h2, 2, w2, 2, c).max(axis=(2, 4))


# ---------------------------------------------------------------------------
# Parameter construction (deterministic, mirrors the module __init__ shapes)
# ---------------------------------------------------------------------------
def compute_conv_output_size(Lin, kernel_size, stride=1, padding=0, dilation=1):
    return int((Lin + 2 * padding - dilation * (kernel_size - 1) - 1) // stride + 1)


def init_params(key, ncha, size, taskcla):
    """Torch-layout parameters (conv: (Cout,Cin,kh,kw), fc rows in CHW order)."""
    k1, k3, k5 = size // 8, size // 10, 2
    s = compute_conv_output_size(size, k1) // 2
    s = compute_conv_output_size(s, k3) // 2
    s = compute_conv_output_size(s, k5) // 2
    fc_in = s * s * 256

    keys = jax.random.split(key, 6 + len(taskcla))

    def w(kk, shape, fan_in):
        return (jax.random.normal(kk, shape, jnp.float32)
                / jnp.sqrt(float(fan_in))).astype(jnp.float32)

    params = {
        "conv1_w": w(keys[0], (64, ncha, k1, k1), ncha * k1 * k1),
        "conv1_b": 0.01 * jnp.ones((64,), jnp.float32),
        "conv3_w": w(keys[1], (128, 64, k3, k3), 64 * k3 * k3),
        "conv3_b": 0.01 * jnp.ones((128,), jnp.float32),
        "conv5_w": w(keys[2], (256, 128, k5, k5), 128 * k5 * k5),
        "conv5_b": 0.01 * jnp.ones((256,), jnp.float32),
        "fc1_w": w(keys[3], (fc_in, 2048), fc_in),   # rows in torch (C,H,W) flatten order
        "fc1_b": 0.01 * jnp.ones((2048,), jnp.float32),
        "fc2_w": w(keys[4], (2048, 2048), 2048),
        "fc2_b": 0.01 * jnp.ones((2048,), jnp.float32),
        "last_w": [w(keys[5 + i], (2048, n), 2048) for i, (_, n) in enumerate(taskcla)],
        "last_b": [0.01 * jnp.ones((n,), jnp.float32) for _, n in taskcla],
    }
    return params


def prepare_weights(params, ncha, size):
    """One-time prep: matmul layout, lane-aligned N padding, bf16 cast."""
    k1, k3, k5 = size // 8, size // 10, 2
    s = compute_conv_output_size(size, k1) // 2
    s = compute_conv_output_size(s, k3) // 2
    s = compute_conv_output_size(s, k5) // 2

    def pad_nb(wm, b):
        K, N = wm.shape
        Np = _round_up(N, 128)
        wp = wm.astype(jnp.bfloat16)
        if Np != N:
            wp = jnp.zeros((K, Np), jnp.bfloat16).at[:, :N].set(wp)
        bp = jnp.zeros((1, Np), jnp.float32).at[0, :N].set(b)
        return wp, bp

    def prep_conv(wc, b):
        cout, cin, kh, kw = wc.shape
        # (Cout,Cin,kh,kw) -> rows in (kh,kw,Cin) order to match NHWC patches.
        wm = wc.transpose(2, 3, 1, 0).reshape(kh * kw * cin, cout)
        return pad_nb(wm, b)

    # fc1: permute rows from torch (C, H, W) flatten order to NHWC (H, W, C).
    fc1_w = params["fc1_w"].reshape(256, s, s, 2048)
    fc1_w = fc1_w.transpose(1, 2, 0, 3).reshape(s * s * 256, 2048)

    weights = {}
    weights["conv1_w"], weights["conv1_b"] = prep_conv(params["conv1_w"], params["conv1_b"])
    weights["conv3_w"], weights["conv3_b"] = prep_conv(params["conv3_w"], params["conv3_b"])
    weights["conv5_w"], weights["conv5_b"] = prep_conv(params["conv5_w"], params["conv5_b"])
    weights["fc1_w"], weights["fc1_b"] = pad_nb(fc1_w, params["fc1_b"])
    weights["fc2_w"], weights["fc2_b"] = pad_nb(params["fc2_w"], params["fc2_b"])
    lw, lb = [], []
    for wt, bt in zip(params["last_w"], params["last_b"]):
        wp, bp = pad_nb(wt, bt)
        lw.append(wp)
        lb.append(bp)
    weights["last_w"] = lw
    weights["last_b"] = lb
    return weights


# ---------------------------------------------------------------------------
# Forward pass (matches Alexnet.forward with sample=False, eval-mode dropout)
# ---------------------------------------------------------------------------
def make_forward(ncha, size, taskcla):
    k1, k3, k5 = size // 8, size // 10, 2

    def forward(weights, t, x):
        # x: (N, Cin, H, W) torch NCHW -> NHWC once; stays NHWC until flatten.
        h = x.transpose(0, 2, 3, 1)
        h = conv2d_relu_nhwc(h, weights["conv1_w"], weights["conv1_b"], k1, 64)
        h = maxpool2_nhwc(h)                                   # drop1: identity
        h = conv2d_relu_nhwc(h, weights["conv3_w"], weights["conv3_b"], k3, 128)
        h = maxpool2_nhwc(h)                                   # drop1: identity
        h = conv2d_relu_nhwc(h, weights["conv5_w"], weights["conv5_b"], k5, 256)
        h = maxpool2_nhwc(h)                                   # drop2: identity
        h = h.reshape(x.shape[0], -1)              # NHWC flatten (fc1 rows pre-permuted)
        h = matmul_bias_prepped(h, weights["fc1_w"], weights["fc1_b"], 2048, relu=True)
        h = matmul_bias_prepped(h, weights["fc2_w"], weights["fc2_b"], 2048, relu=True)
        n_out = taskcla[t][1]
        return matmul_bias_prepped(h, weights["last_w"][t], weights["last_b"][t],
                                   n_out, relu=False)

    return jax.jit(forward, static_argnums=(1,))


if __name__ == "__main__":
    ncha, size = 3, 32                      # inputsize = (3, 32, 32)
    taskcla = [(0, 5), (1, 7)]
    batch = 2

    key = jax.random.PRNGKey(0)
    kx, kp = jax.random.split(key)
    x = jax.random.normal(kx, (batch, ncha, size, size), jnp.float32)

    params = init_params(kp, ncha, size, taskcla)
    weights = prepare_weights(params, ncha, size)   # one-time weight prep
    forward = make_forward(ncha, size, taskcla)

    out = forward(weights, 0, x)
    out = jax.block_until_ready(out)
    assert out.shape == (batch, taskcla[0][1]), out.shape
    assert bool(jnp.all(jnp.isfinite(out)))
    print("KERNEL_OK")
</pallas_src>

<mosaic_0001>
module attributes {stable_mosaic.version = 11 : i64} {
  func.func @_mm_bias_kernel(%arg0: i32, %arg1: i32, %arg2: memref<256x48xbf16, #tpu.memory_space<vmem>>, %arg3: memref<48x128xbf16, #tpu.memory_space<vmem>>, %arg4: memref<1x128xf32, #tpu.memory_space<vmem>>, %arg5: memref<256x128xf32, #tpu.memory_space<vmem>>) attributes {dimension_semantics = [#tpu.dimension_semantics<parallel>, #tpu.dimension_semantics<parallel>], iteration_bounds = array<i64: 7, 1>, scalar_prefetch = 0 : i64, scratch_operands = 0 : i64, tpu.core_type = #tpu.core_type<tc>, window_params = [{transform_indices = @transform_0, window_bounds = array<i64: 256, 48>}, {transform_indices = @transform_1, window_bounds = array<i64: 48, 128>}, {transform_indices = @transform_2, window_bounds = array<i64: 1, 128>}, {transform_indices = @transform_3, window_bounds = array<i64: 256, 128>}]} {
    %c0 = arith.constant 0 : index
    %c0_0 = arith.constant 0 : index
    %0 = vector.load %arg2[%c0, %c0_0] : memref<256x48xbf16, #tpu.memory_space<vmem>>, vector<256x48xbf16>
    %c0_1 = arith.constant 0 : index
    %c0_2 = arith.constant 0 : index
    %1 = vector.load %arg3[%c0_1, %c0_2] : memref<48x128xbf16, #tpu.memory_space<vmem>>, vector<48x128xbf16>
    %cst = arith.constant dense<0.000000e+00> : vector<256x128xf32>
    %2 = tpu.matmul %0, %1, %cst {dimension_numbers = #tpu.dot_dimension_numbers<[1], [0], [0], [1], [0, 0, 1, 1], [], []>} : vector<256x48xbf16>, vector<48x128xbf16>, vector<256x128xf32> -> vector<256x128xf32>
    %c0_3 = arith.constant 0 : index
    %c0_4 = arith.constant 0 : index
    %3 = vector.load %arg4[%c0_3, %c0_4] : memref<1x128xf32, #tpu.memory_space<vmem>>, vector<1x128xf32>
    %4 = vector.broadcast %3 : vector<1x128xf32> to vector<256x128xf32>
    %5 = arith.addf %2, %4 : vector<256x128xf32>
    %cst_5 = arith.constant 0.000000e+00 : f32
    %6 = vector.broadcast %cst_5 : f32 to vector<256x128xf32>
    %7 = arith.maximumf %5, %6 : vector<256x128xf32>
    %c0_6 = arith.constant 0 : index
    %c0_7 = arith.constant 0 : index
    %8 = vector.load %arg5[%c0_6, %c0_7] : memref<256x128xf32, #tpu.memory_space<vmem>>, vector<256x128xf32>
    tpu.vector_store %arg5[%c0_6, %c0_7], %7 {strides = array<i32>} : memref<256x128xf32, #tpu.memory_space<vmem>>, vector<256x128xf32>,
    return
  }
  func.func @transform_0(%arg0: i32, %arg1: i32) -> (i32, i32) {
    %c0_i32 = arith.constant 0 : i32
    %c0_i32_0 = arith.constant 0 : i32
    return %arg0, %c0_i32 : i32, i32
  }
  func.func @transform_1(%arg0: i32, %arg1: i32) -> (i32, i32) {
    %c0_i32 = arith.constant 0 : i32
    %c0_i32_0 = arith.constant 0 : i32
    return %c0_i32, %arg1 : i32, i32
  }
  func.func @transform_2(%arg0: i32, %arg1: i32) -> (i32, i32) {
    %c0_i32 = arith.constant 0 : i32
    %c0_i32_0 = arith.constant 0 : i32
    return %c0_i32, %arg1 : i32, i32
  }
  func.func @transform_3(%arg0: i32, %arg1: i32) -> (i32, i32) {
    %c0_i32 = arith.constant 0 : i32
    return %arg0, %arg1 : i32, i32
  }
}

module attributes {stable_mosaic.version = 11 : i64} {
  func.func @_mm_bias_kernel(%arg0: i32, %arg1: i32, %arg2: memref<288x576xbf16, #tpu.memory_space<vmem>>, %arg3: memref<576x128xbf16, #tpu.memory_space<vmem>>, %arg4: memref<1x128xf32, #tpu.memory_space<vmem>>, %arg5: memref<288x128xf32, #tpu.memory_space<vmem>>) attributes {dimension_semantics = [#tpu.dimension_semantics<parallel>, #tpu.dimension_semantics<parallel>], iteration_bounds = array<i64: 1, 1>, scalar_prefetch = 0 : i64, scratch_operands = 0 : i64, tpu.core_type = #tpu.core_type<tc>, window_params = [{transform_indices = @transform_0, window_bounds = array<i64: 288, 576>}, {transform_indices = @transform_1, window_bounds = array<i64: 576, 128>}, {transform_indices = @transform_2, window_bounds = array<i64: 1, 128>}, {transform_indices = @transform_3, window_bounds = array<i64: 288, 128>}]} {
    %c0 = arith.constant 0 : index
    %c0_0 = arith.constant 0 : index
    %0 = vector.load %arg2[%c0, %c0_0] : memref<288x576xbf16, #tpu.memory_space<vmem>>, vector<288x576xbf16>
    %c0_1 = arith.constant 0 : index
    %c0_2 = arith.constant 0 : index
    %1 = vector.load %arg3[%c0_1, %c0_2] : memref<576x128xbf16, #tpu.memory_space<vmem>>, vector<576x128xbf16>
    %cst = arith.constant dense<0.000000e+00> : vector<288x128xf32>
    %2 = tpu.matmul %0, %1, %cst {dimension_numbers = #tpu.dot_dimension_numbers<[1], [0], [0], [1], [0, 0, 1, 1], [], []>} : vector<288x576xbf16>, vector<576x128xbf16>, vector<288x128xf32> -> vector<288x128xf32>
    %c0_3 = arith.constant 0 : index
    %c0_4 = arith.constant 0 : index
    %3 = vector.load %arg4[%c0_3, %c0_4] : memref<1x128xf32, #tpu.memory_space<vmem>>, vector<1x128xf32>
    %4 = vector.broadcast %3 : vector<1x128xf32> to vector<288x128xf32>
    %5 = arith.addf %2, %4 : vector<288x128xf32>
    %cst_5 = arith.constant 0.000000e+00 : f32
    %6 = vector.broadcast %cst_5 : f32 to vector<288x128xf32>
    %7 = arith.maximumf %5, %6 : vector<288x128xf32>
    %c0_6 = arith.constant 0 : index
    %c0_7 = arith.constant 0 : index
    %8 = vector.load %arg5[%c0_6, %c0_7] : memref<288x128xf32, #tpu.memory_space<vmem>>, vector<288x128xf32>
    tpu.vector_store %arg5[%c0_6, %c0_7], %7 {strides = array<i32>} : memref<288x128xf32, #tpu.memory_space<vmem>>, vector<288x128xf32>,
    return
  }
  func.func @transform_0(%arg0: i32, %arg1: i32) -> (i32, i32) {
    %c0_i32 = arith.constant 0 : i32
    %c0_i32_0 = arith.constant 0 : i32
    return %arg0, %c0_i32 : i32, i32
  }
  func.func @transform_1(%arg0: i32, %arg1: i32) -> (i32, i32) {
    %c0_i32 = arith.constant 0 : i32
    %c0_i32_0 = arith.constant 0 : i32
    return %c0_i32, %arg1 : i32, i32
  }
  func.func @transform_2(%arg0: i32, %arg1: i32) -> (i32, i32) {
    %c0_i32 = arith.constant 0 : i32
    %c0_i32_0 = arith.constant 0 : i32
    return %c0_i32, %arg1 : i32, i32
  }
  func.func @transform_3(%arg0: i32, %arg1: i32) -> (i32, i32) {
    %c0_i32 = arith.constant 0 : i32
    return %arg0, %arg1 : i32, i32
  }
}

module attributes {stable_mosaic.version = 11 : i64} {
  func.func @_mm_bias_kernel(%arg0: i32, %arg1: i32, %arg2: memref<56x512xbf16, #tpu.memory_space<vmem>>, %arg3: memref<512x256xbf16, #tpu.memory_space<vmem>>, %arg4: memref<1x256xf32, #tpu.memory_space<vmem>>, %arg5: memref<56x256xf32, #tpu.memory_space<vmem>>) attributes {dimension_semantics = [#tpu.dimension_semantics<parallel>, #tpu.dimension_semantics<parallel>], iteration_bounds = array<i64: 1, 1>, scalar_prefetch = 0 : i64, scratch_operands = 0 : i64, tpu.core_type = #tpu.core_type<tc>, window_params = [{transform_indices = @transform_0, window_bounds = array<i64: 56, 512>}, {transform_indices = @transform_1, window_bounds = array<i64: 512, 256>}, {transform_indices = @transform_2, window_bounds = array<i64: 1, 256>}, {transform_indices = @transform_3, window_bounds = array<i64: 56, 256>}]} {
    %c0 = arith.constant 0 : index
    %c0_0 = arith.constant 0 : index
    %0 = vector.load %arg2[%c0, %c0_0] : memref<56x512xbf16, #tpu.memory_space<vmem>>, vector<56x512xbf16>
    %c0_1 = arith.constant 0 : index
    %c0_2 = arith.constant 0 : index
    %1 = vector.load %arg3[%c0_1, %c0_2] : memref<512x256xbf16, #tpu.memory_space<vmem>>, vector<512x256xbf16>
    %cst = arith.constant dense<0.000000e+00> : vector<56x256xf32>
    %2 = tpu.matmul %0, %1, %cst {dimension_numbers = #tpu.dot_dimension_numbers<[1], [0], [0], [1], [0, 0, 1, 1], [], []>} : vector<56x512xbf16>, vector<512x256xbf16>, vector<56x256xf32> -> vector<56x256xf32>
    %c0_3 = arith.constant 0 : index
    %c0_4 = arith.constant 0 : index
    %3 = vector.load %arg4[%c0_3, %c0_4] : memref<1x256xf32, #tpu.memory_space<vmem>>, vector<1x256xf32>
    %4 = vector.broadcast %3 : vector<1x256xf32> to vector<56x256xf32>
    %5 = arith.addf %2, %4 : vector<56x256xf32>
    %cst_5 = arith.constant 0.000000e+00 : f32
    %6 = vector.broadcast %cst_5 : f32 to vector<56x256xf32>
    %7 = arith.maximumf %5, %6 : vector<56x256xf32>
    %c0_6 = arith.constant 0 : index
    %c0_7 = arith.constant 0 : index
    %8 = vector.load %arg5[%c0_6, %c0_7] : memref<56x256xf32, #tpu.memory_space<vmem>>, vector<56x256xf32>
    tpu.vector_store %arg5[%c0_6, %c0_7], %7 {strides = array<i32>} : memref<56x256xf32, #tpu.memory_space<vmem>>, vector<56x256xf32>,
    return
  }
  func.func @transform_0(%arg0: i32, %arg1: i32) -> (i32, i32) {
    %c0_i32 = arith.constant 0 : i32
    %c0_i32_0 = arith.constant 0 : i32
    return %arg0, %c0_i32 : i32, i32
  }
  func.func @transform_1(%arg0: i32, %arg1: i32) -> (i32, i32) {
    %c0_i32 = arith.constant 0 : i32
    %c0_i32_0 = arith.constant 0 : i32
    return %c0_i32, %arg1 : i32, i32
  }
  func.func @transform_2(%arg0: i32, %arg1: i32) -> (i32, i32) {
    %c0_i32 = arith.constant 0 : i32
    %c0_i32_0 = arith.constant 0 : i32
    return %c0_i32, %arg1 : i32, i32
  }
  func.func @transform_3(%arg0: i32, %arg1: i32) -> (i32, i32) {
    %c0_i32 = arith.constant 0 : i32
    return %arg0, %arg1 : i32, i32
  }
}

module attributes {stable_mosaic.version = 11 : i64} {
  func.func @_mm_bias_kernel(%arg0: i32, %arg1: i32, %arg2: memref<8x1024xbf16, #tpu.memory_space<vmem>>, %arg3: memref<1024x512xbf16, #tpu.memory_space<vmem>>, %arg4: memref<1x512xf32, #tpu.memory_space<vmem>>, %arg5: memref<8x512xf32, #tpu.memory_space<vmem>>) attributes {dimension_semantics = [#tpu.dimension_semantics<parallel>, #tpu.dimension_semantics<parallel>], iteration_bounds = array<i64: 1, 4>, scalar_prefetch = 0 : i64, scratch_operands = 0 : i64, tpu.core_type = #tpu.core_type<tc>, window_params = [{transform_indices = @transform_0, window_bounds = array<i64: 8, 1024>}, {transform_indices = @transform_1, window_bounds = array<i64: 1024, 512>}, {transform_indices = @transform_2, window_bounds = array<i64: 1, 512>}, {transform_indices = @transform_3, window_bounds = array<i64: 8, 512>}]} {
    %c0 = arith.constant 0 : index
    %c0_0 = arith.constant 0 : index
    %0 = vector.load %arg2[%c0, %c0_0] : memref<8x1024xbf16, #tpu.memory_space<vmem>>, vector<8x1024xbf16>
    %c0_1 = arith.constant 0 : index
    %c0_2 = arith.constant 0 : index
    %1 = vector.load %arg3[%c0_1, %c0_2] : memref<1024x512xbf16, #tpu.memory_space<vmem>>, vector<1024x512xbf16>
    %cst = arith.constant dense<0.000000e+00> : vector<8x512xf32>
    %2 = tpu.matmul %0, %1, %cst {dimension_numbers = #tpu.dot_dimension_numbers<[1], [0], [0], [1], [0, 0, 1, 1], [], []>} : vector<8x1024xbf16>, vector<1024x512xbf16>, vector<8x512xf32> -> vector<8x512xf32>
    %c0_3 = arith.constant 0 : index
    %c0_4 = arith.constant 0 : index
    %3 = vector.load %arg4[%c0_3, %c0_4] : memref<1x512xf32, #tpu.memory_space<vmem>>, vector<1x512xf32>
    %4 = vector.broadcast %3 : vector<1x512xf32> to vector<8x512xf32>
    %5 = arith.addf %2, %4 : vector<8x512xf32>
    %cst_5 = arith.constant 0.000000e+00 : f32
    %6 = vector.broadcast %cst_5 : f32 to vector<8x512xf32>
    %7 = arith.maximumf %5, %6 : vector<8x512xf32>
    %c0_6 = arith.constant 0 : index
    %c0_7 = arith.constant 0 : index
    %8 = vector.load %arg5[%c0_6, %c0_7] : memref<8x512xf32, #tpu.memory_space<vmem>>, vector<8x512xf32>
    tpu.vector_store %arg5[%c0_6, %c0_7], %7 {strides = array<i32>} : memref<8x512xf32, #tpu.memory_space<vmem>>, vector<8x512xf32>,
    return
  }
  func.func @transform_0(%arg0: i32, %arg1: i32) -> (i32, i32) {
    %c0_i32 = arith.constant 0 : i32
    %c0_i32_0 = arith.constant 0 : i32
    return %arg0, %c0_i32 : i32, i32
  }
  func.func @transform_1(%arg0: i32, %arg1: i32) -> (i32, i32) {
    %c0_i32 = arith.constant 0 : i32
    %c0_i32_0 = arith.constant 0 : i32
    return %c0_i32, %arg1 : i32, i32
  }
  func.func @transform_2(%arg0: i32, %arg1: i32) -> (i32, i32) {
    %c0_i32 = arith.constant 0 : i32
    %c0_i32_0 = arith.constant 0 : i32
    return %c0_i32, %arg1 : i32, i32
  }
  func.func @transform_3(%arg0: i32, %arg1: i32) -> (i32, i32) {
    %c0_i32 = arith.constant 0 : i32
    return %arg0, %arg1 : i32, i32
  }
}

module attributes {stable_mosaic.version = 11 : i64} {
  func.func @_mm_bias_kernel(%arg0: i32, %arg1: i32, %arg2: memref<8x2048xbf16, #tpu.memory_space<vmem>>, %arg3: memref<2048x512xbf16, #tpu.memory_space<vmem>>, %arg4: memref<1x512xf32, #tpu.memory_space<vmem>>, %arg5: memref<8x512xf32, #tpu.memory_space<vmem>>) attributes {dimension_semantics = [#tpu.dimension_semantics<parallel>, #tpu.dimension_semantics<parallel>], iteration_bounds = array<i64: 1, 4>, scalar_prefetch = 0 : i64, scratch_operands = 0 : i64, tpu.core_type = #tpu.core_type<tc>, window_params = [{transform_indices = @transform_0, window_bounds = array<i64: 8, 2048>}, {transform_indices = @transform_1, window_bounds = array<i64: 2048, 512>}, {transform_indices = @transform_2, window_bounds = array<i64: 1, 512>}, {transform_indices = @transform_3, window_bounds = array<i64: 8, 512>}]} {
    %c0 = arith.constant 0 : index
    %c0_0 = arith.constant 0 : index
    %0 = vector.load %arg2[%c0, %c0_0] : memref<8x2048xbf16, #tpu.memory_space<vmem>>, vector<8x2048xbf16>
    %c0_1 = arith.constant 0 : index
    %c0_2 = arith.constant 0 : index
    %1 = vector.load %arg3[%c0_1, %c0_2] : memref<2048x512xbf16, #tpu.memory_space<vmem>>, vector<2048x512xbf16>
    %cst = arith.constant dense<0.000000e+00> : vector<8x512xf32>
    %2 = tpu.matmul %0, %1, %cst {dimension_numbers = #tpu.dot_dimension_numbers<[1], [0], [0], [1], [0, 0, 1, 1], [], []>} : vector<8x2048xbf16>, vector<2048x512xbf16>, vector<8x512xf32> -> vector<8x512xf32>
    %c0_3 = arith.constant 0 : index
    %c0_4 = arith.constant 0 : index
    %3 = vector.load %arg4[%c0_3, %c0_4] : memref<1x512xf32, #tpu.memory_space<vmem>>, vector<1x512xf32>
    %4 = vector.broadcast %3 : vector<1x512xf32> to vector<8x512xf32>
    %5 = arith.addf %2, %4 : vector<8x512xf32>
    %cst_5 = arith.constant 0.000000e+00 : f32
    %6 = vector.broadcast %cst_5 : f32 to vector<8x512xf32>
    %7 = arith.maximumf %5, %6 : vector<8x512xf32>
    %c0_6 = arith.constant 0 : index
    %c0_7 = arith.constant 0 : index
    %8 = vector.load %arg5[%c0_6, %c0_7] : memref<8x512xf32, #tpu.memory_space<vmem>>, vector<8x512xf32>
    tpu.vector_store %arg5[%c0_6, %c0_7], %7 {strides = array<i32>} : memref<8x512xf32, #tpu.memory_space<vmem>>, vector<8x512xf32>,
    return
  }
  func.func @transform_0(%arg0: i32, %arg1: i32) -> (i32, i32) {
    %c0_i32 = arith.constant 0 : i32
    %c0_i32_0 = arith.constant 0 : i32
    return %arg0, %c0_i32 : i32, i32
  }
  func.func @transform_1(%arg0: i32, %arg1: i32) -> (i32, i32) {
    %c0_i32 = arith.constant 0 : i32
    %c0_i32_0 = arith.constant 0 : i32
    return %c0_i32, %arg1 : i32, i32
  }
  func.func @transform_2(%arg0: i32, %arg1: i32) -> (i32, i32) {
    %c0_i32 = arith.constant 0 : i32
    %c0_i32_0 = arith.constant 0 : i32
    return %c0_i32, %arg1 : i32, i32
  }
  func.func @transform_3(%arg0: i32, %arg1: i32) -> (i32, i32) {
    %c0_i32 = arith.constant 0 : i32
    return %arg0, %arg1 : i32, i32
  }
}

module attributes {stable_mosaic.version = 11 : i64} {
  func.func @_mm_bias_kernel(%arg0: i32, %arg1: i32, %arg2: memref<8x2048xbf16, #tpu.memory_space<vmem>>, %arg3: memref<2048x128xbf16, #tpu.memory_space<vmem>>, %arg4: memref<1x128xf32, #tpu.memory_space<vmem>>, %arg5: memref<8x128xf32, #tpu.memory_space<vmem>>) attributes {dimension_semantics = [#tpu.dimension_semantics<parallel>, #tpu.dimension_semantics<parallel>], iteration_bounds = array<i64: 1, 1>, scalar_prefetch = 0 : i64, scratch_operands = 0 : i64, tpu.core_type = #tpu.core_type<tc>, window_params = [{transform_indices = @transform_0, window_bounds = array<i64: 8, 2048>}, {transform_indices = @transform_1, window_bounds = array<i64: 2048, 128>}, {transform_indices = @transform_2, window_bounds = array<i64: 1, 128>}, {transform_indices = @transform_3, window_bounds = array<i64: 8, 128>}]} {
    %c0 = arith.constant 0 : index
    %c0_0 = arith.constant 0 : index
    %0 = vector.load %arg2[%c0, %c0_0] : memref<8x2048xbf16, #tpu.memory_space<vmem>>, vector<8x2048xbf16>
    %c0_1 = arith.constant 0 : index
    %c0_2 = arith.constant 0 : index
    %1 = vector.load %arg3[%c0_1, %c0_2] : memref<2048x128xbf16, #tpu.memory_space<vmem>>, vector<2048x128xbf16>
    %cst = arith.constant dense<0.000000e+00> : vector<8x128xf32>
    %2 = tpu.matmul %0, %1, %cst {dimension_numbers = #tpu.dot_dimension_numbers<[1], [0], [0], [1], [0, 0, 1, 1], [], []>} : vector<8x2048xbf16>, vector<2048x128xbf16>, vector<8x128xf32> -> vector<8x128xf32>
    %c0_3 = arith.constant 0 : index
    %c0_4 = arith.constant 0 : index
    %3 = vector.load %arg4[%c0_3, %c0_4] : memref<1x128xf32, #tpu.memory_space<vmem>>, vector<1x128xf32>
    %4 = vector.broadcast %3 : vector<1x128xf32> to vector<8x128xf32>
    %5 = arith.addf %2, %4 : vector<8x128xf32>
    %c0_5 = arith.constant 0 : index
    %c0_6 = arith.constant 0 : index
    %6 = vector.load %arg5[%c0_5, %c0_6] : memref<8x128xf32, #tpu.memory_space<vmem>>, vector<8x128xf32>
    tpu.vector_store %arg5[%c0_5, %c0_6], %5 {strides = array<i32>} : memref<8x128xf32, #tpu.memory_space<vmem>>, vector<8x128xf32>,
    return
  }
  func.func @transform_0(%arg0: i32, %arg1: i32) -> (i32, i32) {
    %c0_i32 = arith.constant 0 : i32
    %c0_i32_0 = arith.constant 0 : i32
    return %arg0, %c0_i32 : i32, i32
  }
  func.func @transform_1(%arg0: i32, %arg1: i32) -> (i32, i32) {
    %c0_i32 = arith.constant 0 : i32
    %c0_i32_0 = arith.constant 0 : i32
    return %c0_i32, %arg1 : i32, i32
  }
  func.func @transform_2(%arg0: i32, %arg1: i32) -> (i32, i32) {
    %c0_i32 = arith.constant 0 : i32
    %c0_i32_0 = arith.constant 0 : i32
    return %c0_i32, %arg1 : i32, i32
  }
  func.func @transform_3(%arg0: i32, %arg1: i32) -> (i32, i32) {
    %c0_i32 = arith.constant 0 : i32
    return %arg0, %arg1 : i32, i32
  }
}

</mosaic_0001>

<bundles_post_ra>
// kernel: forward.6
= control target key start
LH: loop header
LB: loop body
LE: loop exit
PB: predicated region body
PF: predicated region fallthrough
CT: control target
= control target key end

     0   :  { %8 = vsyncpa [#allocation3], 0  ;;  %s1152_s0 = inlined_call_operand.vmem [shape: bf16[1792,48], index: 0, kind: input, shape index: {}]   ;;  %s1153_s1 = inlined_call_operand.hbm [shape: bf16[48,128], index: 1, kind: input, shape index: {}]   ;;  %s1154_s2 = inlined_call_operand.hbm [shape: f32[1,128], index: 2, kind: input, shape index: {}]   ;;  %s1155_s3 = inlined_call_operand.vmem [shape: f32[1792,128], index: 3, kind: output, shape index: {}]  }
   0x1   :  { %9 = vsyncpa [#allocation5], 0  ;;  %s981_s12 = smov 0   ;;  %s983_s13 = smov 0  }
   0x2   :  { %s985_s14 = smov 0  }
   0x3 LB: > { %s682_s15 = sadd.s32 4294967295, %s955_s14   ;;  %s27_s16 = sadd.s32 1, %s951_s13  ;;  %s955_s14 = sphi %s985_s14, %s15_s14   ;;  %s951_s13 = sphi %s983_s13, %s1159_s13   ;;  %s947_s12 = sphi %s981_s12, %s1158_s12  }
   0x4   : > { %p29_p0 = scmp.ge.s32.totalorder %s27_s16, 7  ;;  %p684_p1 = scmp.ge.s32.totalorder %s955_s14, 1 }
   0x5   : > { %p138_p2 = scmp.lt.s32.totalorder %s955_s14, 8  ;;  %p1006_p4 = scmp.eq.s32.totalorder %s682_s15, 0 }
   0x6   : > { %s1161_s16 = smov (%p29_p0, %s27_s16), 0  ;;  %s151_s21 = sshll.u32 %s1153_s1, 4  ;;  %s152_s21 = int_to_ptr.hbm [resolvable:$true] %s151_s21 }
   0x7   : > { %p1002_p3 = pnand %p684_p1, %p138_p2  ;;  %s957_s22 = smov [#allocation2]  }
   0x8   : > { %s153_s23 = sshll.u32 %s957_s22, 4  ;;  %s167_s26 = sshll.u32 %s1154_s2, 4  ;;  %s154_s23 = int_to_ptr.vmem [resolvable:$true] %s153_s23  ;;  %s168_s26 = int_to_ptr.hbm [resolvable:$true] %s167_s26 }
   0x9   : > { %p825_p5 = pneg %p1002_p3  ;;  %s958_s27 = smov 64  }
   0xa   : > { %s959_s28 = smov 4   ;;  %s960_s29 = smov [#allocation4]  }
   0xb   : > { %p826_p6 = pnand %p1006_p4, %p825_p5  ;;  %s169_s30 = sshll.u32 %s960_s29, 4  ;;  %s170_s30 = int_to_ptr.vmem [resolvable:$true] %s169_s30 }
   0xc   : > { %191 = sbr.rel (%p1002_p3) target bundleno = 227 (0xe3), region = 32 }
   0xd   : > { %828 = dma.hbm_to_vmem [thread:$0]  (!%p826_p6), %s152_s21, 384, %s154_s23, [#allocation3], %s958_s27, %s958_s27, %s959_s28  }
   0xe   : > { %831 = dma.hbm_to_vmem [thread:$0]  (!%p826_p6), %s168_s26, 16, %s170_s30, [#allocation5]  }
  0x11   : > { %938 = dma.done.wait (%p1006_p4), [#allocation3], 384  }
  0x12   : > { %940 = vsyncadd (%p1006_p4), [#allocation3], 4294966912 }
  0x13   : > { %942 = dma.done.wait (%p1006_p4), [#allocation5], 16  }
  0x14   : > { %944 = vsyncadd (%p1006_p4), [#allocation5], 4294967280  ;;  %s691_s4 = sshll.u32 %s947_s12, 5  ;;  %v807_v0 = vld [vmem:[#allocation2 + $0x10] sm:$0xff]  ;;  %v806_v1 = vld [vmem:[#allocation2 + $0x8] sm:$0xff]  ;;  %vm380_vm0 = vcmask 392192  }
  0x15   : > { %p225_p7 = scmp.lt.s32.totalorder %s691_s4, 223  ;;  %434 = vmatpush.bf16.msra.mxu0 %v807_v0  ;;  %808 = vmatpush.bf16.msra.mxu1 %v807_v0  ;;  %v805_v2 = vld [vmem:[#allocation2] sm:$0xff]  ;;  %v1071_v19 = vld [vmem:[#allocation4] ss:$0 sm:$0xff] }
  0x16   : > { %809 = vmatpush.bf16.msra.mxu2 %v807_v0  ;;  %810 = vmatpush.bf16.msra.mxu3 %v807_v0 }
  0x17   : > { %s1163_s4 = smov (!%p225_p7, %s691_s4), 223 }
  0x18   : > { %s692_s5 = sshll.u32 %s1163_s4, 2  ;;  %s694_s9 = sshll.u32 %s1163_s4, 3 }
  0x19   : > { %435 = vmatpush.bf16.msra.mxu0 %v806_v1  ;;  %811 = vmatpush.bf16.msra.mxu1 %v806_v1  ;;  %s1037_s8 = scalar_lea.vmem %s1152_s0, %s692_s5  ;;  %s1079_s12 = scalar_lea.vmem %s1155_s3, %s694_s9 }
  0x1a   : > { %812 = vmatpush.bf16.msra.mxu2 %v806_v1  ;;  %813 = vmatpush.bf16.msra.mxu3 %v806_v1  ;;  %v789_v3 = vld [vmem:[%s1037_s8] sm:$0xff]  ;;  %v790_v7 = vld [vmem:[%s1037_s8 + $0x8] sm:$0xff]  ;;  %v791_v11 = vld [vmem:[%s1037_s8 + $0x10] sm:$0xff] }
  0x1b   : > { %v793_v4 = vld [vmem:[%s1037_s8 + $0x20] sm:$0xff]  ;;  %v794_v8 = vld [vmem:[%s1037_s8 + $0x28] sm:$0xff]  ;;  %v795_v12 = vld [vmem:[%s1037_s8 + $0x30] sm:$0xff] }
  0x1c   : > { %v797_v5 = vld [vmem:[%s1037_s8 + $0x40] sm:$0xff]  ;;  %v798_v9 = vld [vmem:[%s1037_s8 + $0x48] sm:$0xff]  ;;  %v799_v13 = vld [vmem:[%s1037_s8 + $0x50] sm:$0xff] }
  0x1d   : > { %436 = vmatpush.bf16.msra.mxu0 %v805_v2  ;;  %814 = vmatpush.bf16.msra.mxu1 %v805_v2  ;;  %v801_v6 = vld [vmem:[%s1037_s8 + $0x60] sm:$0xff]  ;;  %v802_v10 = vld [vmem:[%s1037_s8 + $0x68] sm:$0xff]  ;;  %v803_v14 = vld [vmem:[%s1037_s8 + $0x70] sm:$0xff] }
  0x1e   : > { %815 = vmatpush.bf16.msra.mxu2 %v805_v2  ;;  %816 = vmatpush.bf16.msra.mxu3 %v805_v2  ;;  %v792_v15 = vld [vmem:[%s1037_s8 + $0x18] sm:$0xff] }
  0x1f   : > { %v796_v16 = vld [vmem:[%s1037_s8 + $0x38] sm:$0xff] }
  0x20   : > { %771 = vmatmul.msk.bf16.vlgmr.msra.gmra.mxu0 %vm380_vm0, %v789_v3  ;;  %775 = vmatmul.msk.bf16.vlgmr.msra.gmra.mxu1 %vm380_vm0, %v793_v4  ;;  %v800_v17 = vld [vmem:[%s1037_s8 + $0x58] sm:$0xff] }
  0x21   : > { %779 = vmatmul.msk.bf16.vlgmr.msra.gmra.mxu2 %vm380_vm0, %v797_v5  ;;  %783 = vmatmul.msk.bf16.vlgmr.msra.gmra.mxu3 %vm380_vm0, %v801_v6  ;;  %v804_v18 = vld [vmem:[%s1037_s8 + $0x78] sm:$0xff] }
  0x30   : > { %772 = vmatmul.msk.bf16.gmra.mxu0 %vm380_vm0, %v790_v7  ;;  %776 = vmatmul.msk.bf16.gmra.mxu1 %vm380_vm0, %v794_v8 }
  0x31   : > { %780 = vmatmul.msk.bf16.gmra.mxu2 %vm380_vm0, %v798_v9  ;;  %784 = vmatmul.msk.bf16.gmra.mxu3 %vm380_vm0, %v802_v10 }
  0x40   : > { %773 = vmatmul.msk.bf16.gmra.mxu0 %vm380_vm0, %v791_v11  ;;  %777 = vmatmul.msk.bf16.gmra.mxu1 %vm380_vm0, %v795_v12 }
  0x41   : > { %781 = vmatmul.msk.bf16.gmra.mxu2 %vm380_vm0, %v799_v13  ;;  %785 = vmatmul.msk.bf16.gmra.mxu3 %vm380_vm0, %v803_v14 }
  0x50   : > { %774 = vmatmul.msk.bf16.gmra.mxu0 %vm380_vm0, %v792_v15  ;;  %778 = vmatmul.msk.bf16.gmra.mxu1 %vm380_vm0, %v796_v16 }
  0x51   : > { %782 = vmatmul.msk.bf16.gmra.mxu2 %vm380_vm0, %v800_v17  ;;  %786 = vmatmul.msk.bf16.gmra.mxu3 %vm380_vm0, %v804_v18 }
  0x9d   : > { %v438_v20 = vpop.f32.mrf.mxu0  ;;  %v458_v21 = vpop.f32.mrf.mxu1 }
  0x9e   : > { %v439_v22 = vadd.f32 %v1071_v19, %v438_v20  ;;  %v459_v23 = vadd.f32 %v1071_v19, %v458_v21 }
  0xa0   : > { %v518_v24 = vmax.f32 %v439_v22, 0.0  ;;  %v526_v25 = vmax.f32 %v459_v23, 0.0 }
  0xa2   : > { %550 = vst [vmem:[%s1079_s12] sm:$0xff] %v518_v24 }
  0xa3   : > { %558 = vst [vmem:[%s1079_s12 + $0x40] sm:$0xff] %v526_v25 }
  0xa4   : > { %v478_v26 = vpop.f32.mrf.mxu2  ;;  %v498_v27 = vpop.f32.mrf.mxu3 }
  0xa5   : > { %v479_v28 = vadd.f32 %v1071_v19, %v478_v26  ;;  %v499_v29 = vadd.f32 %v1071_v19, %v498_v27  ;;  %v440_v30 = vpop.f32.mrf.mxu0  ;;  %v460_v31 = vpop.f32.mrf.mxu1 }
  0xa6   : > { %v441_v32 = vadd.f32 %v1071_v19, %v440_v30  ;;  %v461_v33 = vadd.f32 %v1071_v19, %v460_v31 }
  0xa7   : > { %v534_v34 = vmax.f32 %v479_v28, 0.0  ;;  %v542_v35 = vmax.f32 %v499_v29, 0.0 }
  0xa8   : > { %v519_v36 = vmax.f32 %v441_v32, 0.0  ;;  %v527_v37 = vmax.f32 %v461_v33, 0.0 }
  0xa9   : > { %566 = vst [vmem:[%s1079_s12 + $0x80] sm:$0xff] %v534_v34 }
  0xaa   : > { %574 = vst [vmem:[%s1079_s12 + $0xc0] sm:$0xff] %v542_v35 }
  0xab   : > { %551 = vst [vmem:[%s1079_s12 + $0x8] sm:$0xff] %v519_v36 }
  0xac   : > { %559 = vst [vmem:[%s1079_s12 + $0x48] sm:$0xff] %v527_v37  ;;  %v480_v38 = vpop.f32.mrf.mxu2  ;;  %v500_v39 = vpop.f32.mrf.mxu3 }
  0xad   : > { %v481_v40 = vadd.f32 %v1071_v19, %v480_v38  ;;  %v501_v41 = vadd.f32 %v1071_v19, %v500_v39  ;;  %v443_v42 = vpop.f32.mrf.mxu0  ;;  %v463_v43 = vpop.f32.mrf.mxu1 }
  0xae   : > { %v444_v44 = vadd.f32 %v1071_v19, %v443_v42  ;;  %v464_v45 = vadd.f32 %v1071_v19, %v463_v43 }
  0xaf   : > { %v535_v46 = vmax.f32 %v481_v40, 0.0  ;;  %v543_v47 = vmax.f32 %v501_v41, 0.0 }
  0xb0   : > { %v520_v48 = vmax.f32 %v444_v44, 0.0  ;;  %v528_v49 = vmax.f32 %v464_v45, 0.0 }
  0xb1   : > { %567 = vst [vmem:[%s1079_s12 + $0x88] sm:$0xff] %v535_v46 }
  0xb2   : > { %575 = vst [vmem:[%s1079_s12 + $0xc8] sm:$0xff] %v543_v47 }
  0xb3   : > { %552 = vst [vmem:[%s1079_s12 + $0x10] sm:$0xff] %v520_v48 }
  0xb4   : > { %560 = vst [vmem:[%s1079_s12 + $0x50] sm:$0xff] %v528_v49  ;;  %v483_v50 = vpop.f32.mrf.mxu2  ;;  %v503_v51 = vpop.f32.mrf.mxu3 }
  0xb5   : > { %v484_v52 = vadd.f32 %v1071_v19, %v483_v50  ;;  %v504_v53 = vadd.f32 %v1071_v19, %v503_v51  ;;  %v445_v54 = vpop.f32.mrf.mxu0  ;;  %v465_v55 = vpop.f32.mrf.mxu1 }
  0xb6   : > { %v446_v56 = vadd.f32 %v1071_v19, %v445_v54  ;;  %v466_v57 = vadd.f32 %v1071_v19, %v465_v55 }
  0xb7   : > { %v536_v58 = vmax.f32 %v484_v52, 0.0  ;;  %v544_v59 = vmax.f32 %v504_v53, 0.0 }
  0xb8   : > { %v521_v60 = vmax.f32 %v446_v56, 0.0  ;;  %v529_v61 = vmax.f32 %v466_v57, 0.0 }
  0xb9   : > { %568 = vst [vmem:[%s1079_s12 + $0x90] sm:$0xff] %v536_v58 }
  0xba   : > { %576 = vst [vmem:[%s1079_s12 + $0xd0] sm:$0xff] %v544_v59 }
  0xbb   : > { %553 = vst [vmem:[%s1079_s12 + $0x18] sm:$0xff] %v521_v60 }
  0xbc   : > { %561 = vst [vmem:[%s1079_s12 + $0x58] sm:$0xff] %v529_v61  ;;  %v485_v62 = vpop.f32.mrf.mxu2  ;;  %v505_v63 = vpop.f32.mrf.mxu3 }
  0xbd   : > { %v486_v0 = vadd.f32 %v1071_v19, %v485_v62  ;;  %v506_v1 = vadd.f32 %v1071_v19, %v505_v63  ;;  %v448_v2 = vpop.f32.mrf.mxu0  ;;  %v468_v3 = vpop.f32.mrf.mxu1 }
  0xbe   : > { %v449_v4 = vadd.f32 %v1071_v19, %v448_v2  ;;  %v469_v5 = vadd.f32 %v1071_v19, %v468_v3 }
  0xbf   : > { %v537_v6 = vmax.f32 %v486_v0, 0.0  ;;  %v545_v7 = vmax.f32 %v506_v1, 0.0 }
  0xc0   : > { %v522_v8 = vmax.f32 %v449_v4, 0.0  ;;  %v530_v9 = vmax.f32 %v469_v5, 0.0 }
  0xc1   : > { %569 = vst [vmem:[%s1079_s12 + $0x98] sm:$0xff] %v537_v6 }
  0xc2   : > { %577 = vst [vmem:[%s1079_s12 + $0xd8] sm:$0xff] %v545_v7 }
  0xc3   : > { %554 = vst [vmem:[%s1079_s12 + $0x20] sm:$0xff] %v522_v8 }
  0xc4   : > { %562 = vst [vmem:[%s1079_s12 + $0x60] sm:$0xff] %v530_v9  ;;  %v488_v10 = vpop.f32.mrf.mxu2  ;;  %v508_v11 = vpop.f32.mrf.mxu3 }
  0xc5   : > { %v489_v12 = vadd.f32 %v1071_v19, %v488_v10  ;;  %v509_v13 = vadd.f32 %v1071_v19, %v508_v11  ;;  %v450_v14 = vpop.f32.mrf.mxu0  ;;  %v470_v15 = vpop.f32.mrf.mxu1 }
  0xc6   : > { %v451_v16 = vadd.f32 %v1071_v19, %v450_v14  ;;  %v471_v17 = vadd.f32 %v1071_v19, %v470_v15 }
  0xc7   : > { %v538_v18 = vmax.f32 %v489_v12, 0.0  ;;  %v546_v20 = vmax.f32 %v509_v13, 0.0 }
  0xc8   : > { %v523_v21 = vmax.f32 %v451_v16, 0.0  ;;  %v531_v22 = vmax.f32 %v471_v17, 0.0 }
  0xc9   : > { %570 = vst [vmem:[%s1079_s12 + $0xa0] sm:$0xff] %v538_v18 }
  0xca   : > { %578 = vst [vmem:[%s1079_s12 + $0xe0] sm:$0xff] %v546_v20 }
  0xcb   : > { %555 = vst [vmem:[%s1079_s12 + $0x28] sm:$0xff] %v523_v21 }
  0xcc   : > { %563 = vst [vmem:[%s1079_s12 + $0x68] sm:$0xff] %v531_v22  ;;  %v490_v23 = vpop.f32.mrf.mxu2  ;;  %v510_v24 = vpop.f32.mrf.mxu3 }
  0xcd   : > { %v491_v25 = vadd.f32 %v1071_v19, %v490_v23  ;;  %v511_v26 = vadd.f32 %v1071_v19, %v510_v24  ;;  %v453_v27 = vpop.f32.mrf.mxu0  ;;  %v473_v28 = vpop.f32.mrf.mxu1 }
  0xce   : > { %v454_v29 = vadd.f32 %v1071_v19, %v453_v27  ;;  %v474_v30 = vadd.f32 %v1071_v19, %v473_v28 }
  0xcf   : > { %v539_v31 = vmax.f32 %v491_v25, 0.0  ;;  %v547_v32 = vmax.f32 %v511_v26, 0.0 }
  0xd0   : > { %v524_v33 = vmax.f32 %v454_v29, 0.0  ;;  %v532_v34 = vmax.f32 %v474_v30, 0.0 }
  0xd1   : > { %571 = vst [vmem:[%s1079_s12 + $0xa8] sm:$0xff] %v539_v31 }
  0xd2   : > { %579 = vst [vmem:[%s1079_s12 + $0xe8] sm:$0xff] %v547_v32 }
  0xd3   : > { %556 = vst [vmem:[%s1079_s12 + $0x30] sm:$0xff] %v524_v33 }
  0xd4   : > { %564 = vst [vmem:[%s1079_s12 + $0x70] sm:$0xff] %v532_v34  ;;  %v493_v35 = vpop.f32.mrf.mxu2  ;;  %v513_v36 = vpop.f32.mrf.mxu3 }
  0xd5   : > { %v494_v37 = vadd.f32 %v1071_v19, %v493_v35  ;;  %v514_v38 = vadd.f32 %v1071_v19, %v513_v36  ;;  %v455_v39 = vpop.f32.mrf.mxu0  ;;  %v475_v40 = vpop.f32.mrf.mxu1 }
  0xd6   : > { %v456_v41 = vadd.f32 %v1071_v19, %v455_v39  ;;  %v476_v42 = vadd.f32 %v1071_v19, %v475_v40 }
  0xd7   : > { %v540_v43 = vmax.f32 %v494_v37, 0.0  ;;  %v548_v44 = vmax.f32 %v514_v38, 0.0 }
  0xd8   : > { %v525_v45 = vmax.f32 %v456_v41, 0.0  ;;  %v533_v46 = vmax.f32 %v476_v42, 0.0 }
  0xd9   : > { %572 = vst [vmem:[%s1079_s12 + $0xb0] sm:$0xff] %v540_v43 }
  0xda   : > { %580 = vst [vmem:[%s1079_s12 + $0xf0] sm:$0xff] %v548_v44 }
  0xdb   : > { %557 = vst [vmem:[%s1079_s12 + $0x38] sm:$0xff] %v525_v45 }
  0xdc   : > { %565 = vst [vmem:[%s1079_s12 + $0x78] sm:$0xff] %v533_v46  ;;  %v495_v47 = vpop.f32.mrf.mxu2  ;;  %v515_v48 = vpop.f32.mrf.mxu3 }
  0xdd   : > { %v496_v49 = vadd.f32 %v1071_v19, %v495_v47  ;;  %v516_v50 = vadd.f32 %v1071_v19, %v515_v48 }
  0xdf   : > { %v541_v51 = vmax.f32 %v496_v49, 0.0  ;;  %v549_v52 = vmax.f32 %v516_v50, 0.0 }
  0xe1   : > { %573 = vst [vmem:[%s1079_s12 + $0xb8] sm:$0xff] %v541_v51 }
  0xe2   : > { %581 = vst [vmem:[%s1079_s12 + $0xf8] sm:$0xff] %v549_v52 }
  0xe3 PF: > { %s15_s14 = sadd.s32 1, %s955_s14   ;;  %s1158_s12 = smov %s951_s13 }
  0xe4   : > { %p12_p8 = scmp.ge.s32.totalorder %s15_s14, 9   ;;  %s1159_s13 = smov %s1161_s16 }
  0xe6   :  { %14 = sbr.rel (!%p12_p8) target bundleno = 3 (0x3), region = 73 }
  0xeb   :  { %610 = vsyncpa [#allocation3], 1 }
  0xec   :  { %612 = vsyncpa [#allocation3 + $0x1], 1 }
  0xed   :  { %613 = vsyncpa [#allocation5], 1 }

// kernel: forward.7
= control target key start
LH: loop header
LB: loop body
LE: loop exit
PB: predicated region body
PF: predicated region fallthrough
CT: control target
= control target key end

     0   :  { %8 = vsyncpa [#allocation3], 0  ;;  %s3145_s0 = inlined_call_operand.vmem [shape: bf16[288,576], index: 0, kind: input, shape index: {}]   ;;  %s3146_s1 = inlined_call_operand.hbm [shape: bf16[576,128], index: 1, kind: input, shape index: {}]   ;;  %s3147_s2 = inlined_call_operand.hbm [shape: f32[1,128], index: 2, kind: input, shape index: {}]   ;;  %s3148_s3 = inlined_call_operand.vmem [shape: f32[288,128], index: 3, kind: output, shape index: {}]  }
   0x1   :  { %s16_s14 = sshll.u32 %s3146_s1, 4  ;;  %s17_s14 = int_to_ptr.hbm [resolvable:$true] %s16_s14 }
   0x2   :  { %9 = vsyncpa [#allocation5], 0  ;;  %s2253_s15 = smov [#allocation2]   ;;  %s30_s19 = sshll.u32 %s3147_s2, 4  ;;  %s31_s19 = int_to_ptr.hbm [resolvable:$true] %s30_s19 }
   0x3   :  { %s18_s16 = sshll.u32 %s2253_s15, 4  ;;  %s2254_s20 = smov 64   ;;  %s19_s16 = int_to_ptr.vmem [resolvable:$true] %s18_s16 }
   0x4   :  { %s2255_s21 = smov 4   ;;  %s2256_s22 = smov [#allocation4]  }
   0x5   :  { %24 = dma.hbm_to_vmem [thread:$0]  %s17_s14, 4608, %s19_s16, [#allocation3], %s2254_s20, %s2254_s20, %s2255_s21  }
   0x6   :  { %s32_s23 = sshll.u32 %s2256_s22, 4  ;;  %s33_s23 = int_to_ptr.vmem [resolvable:$true] %s32_s23 }
   0x7   :  { %35 = dma.hbm_to_vmem [thread:$0]  %s31_s19, 16, %s33_s23, [#allocation5]  }
   0x8   :  { %2249 = dma.done.wait [#allocation3], 4608  }
   0x9   :  { %2250 = vsyncadd [#allocation3], 4294962688 }
   0xa   :  { %2251 = dma.done.wait [#allocation5], 16  }
   0xb   :  { %2252 = vsyncadd [#allocation5], 4294967280  ;;  %v2142_v0 = vld [vmem:[#allocation2 + $0x38] sm:$0xff]  ;;  %v2141_v1 = vld [vmem:[#allocation2 + $0x30] sm:$0xff]  ;;  %vm895_vm0 = vcmask 523264  }
   0xc   :  { %2171 = vmatpush.bf16.msra.mxu1 %v2142_v0  ;;  %2172 = vmatpush.bf16.msra.mxu2 %v2142_v0  ;;  %v2140_v2 = vld [vmem:[#allocation2 + $0x28] sm:$0xff]  ;;  %v2139_v3 = vld [vmem:[#allocation2 + $0x20] sm:$0xff]  ;;  %v2138_v4 = vld [vmem:[#allocation2 + $0x18] sm:$0xff] }
   0xd   :  { %950 = vmatpush.bf16.msra.mxu0 %v2142_v0  ;;  %2173 = vmatpush.bf16.msra.mxu3 %v2142_v0  ;;  %v2137_v5 = vld [vmem:[#allocation2 + $0x10] sm:$0xff]  ;;  %v2136_v6 = vld [vmem:[#allocation2 + $0x8] sm:$0xff]  ;;  %v2135_v7 = vld [vmem:[#allocation2] sm:$0xff] }
   0xe   :  { %v1625_v8 = vld [vmem:[%s3145_s0 + $0xc8] sm:$0xf]  ;;  %v2072_v9 = vld [vmem:[%s3145_s0 + $0xd8] sm:$0xf0]  ;;  %v1725_v10 = vld [vmem:[%s3145_s0 + $0x190] sm:$0xf] }
   0xf   :  { %v2097_v11 = vld [vmem:[%s3145_s0 + $0x1a0] sm:$0xf0]  ;;  %v2158_v12 = vld [vmem:[#allocation2 + $0xb8] sm:$0xff]  ;;  %v1525_v13 = vld [vmem:[%s3145_s0] sm:$0xf]  ;;  %v1626_v17 = vor.u32 %v2072_v9, %v1625_v8 }
  0x10   :  { %2174 = vmatpush.bf16.msra.mxu1 %v2141_v1  ;;  %2175 = vmatpush.bf16.msra.mxu2 %v2141_v1  ;;  %v2047_v14 = vld [vmem:[%s3145_s0 + $0x10] sm:$0xf0]  ;;  %v2150_v15 = vld [vmem:[#allocation2 + $0x78] sm:$0xff]  ;;  %v1726_v18 = vor.u32 %v2097_v11, %v1725_v10  ;;  %v2122_v21 = vld [vmem:[%s3145_s0 + $0x268] sm:$0xf0] }
  0x11   :  { %951 = vmatpush.bf16.msra.mxu0 %v2141_v1  ;;  %2176 = vmatpush.bf16.msra.mxu3 %v2141_v1  ;;  %v2170_v16 = vld [vmem:[#allocation2 + $0x118] sm:$0xff]  ;;  %v1526_v19 = vor.u32 %v2047_v14, %v1525_v13  ;;  %v2157_v22 = vld [vmem:[#allocation2 + $0xb0] sm:$0xff]  ;;  %v2156_v27 = vld [vmem:[#allocation2 + $0xa8] sm:$0xff] }
  0x12   :  { %v1825_v20 = vld [vmem:[%s3145_s0 + $0x258] sm:$0xf]  ;;  %v2149_v23 = vld [vmem:[#allocation2 + $0x70] sm:$0xff]  ;;  %v2148_v28 = vld [vmem:[#allocation2 + $0x68] sm:$0xff] }
  0x13   :  { %v2169_v24 = vld [vmem:[#allocation2 + $0x110] sm:$0xff]  ;;  %v1826_v25 = vor.u32 %v2122_v21, %v1825_v20  ;;  %v2166_v26 = vld [vmem:[#allocation2 + $0xf8] sm:$0xff]  ;;  %v2155_v30 = vld [vmem:[#allocation2 + $0xa0] sm:$0xff] }
  0x14   :  { %2177 = vmatpush.bf16.msra.mxu1 %v2140_v2  ;;  %2178 = vmatpush.bf16.msra.mxu2 %v2140_v2  ;;  %v2165_v29 = vld [vmem:[#allocation2 + $0xf0] sm:$0xff]  ;;  %v2147_v31 = vld [vmem:[#allocation2 + $0x60] sm:$0xff]  ;;  %v1745_v34 = vld [vmem:[%s3145_s0 + $0x1b8] sm:$0xf] }
  0x15   :  { %952 = vmatpush.bf16.msra.mxu0 %v2140_v2  ;;  %2179 = vmatpush.bf16.msra.mxu3 %v2140_v2  ;;  %v1645_v32 = vld [vmem:[%s3145_s0 + $0xf0] sm:$0xf]  ;;  %v2077_v33 = vld [vmem:[%s3145_s0 + $0x100] sm:$0xf0]  ;;  %v2102_v35 = vld [vmem:[%s3145_s0 + $0x1c8] sm:$0xf0] }
  0x16   :  { %v2164_v36 = vld [vmem:[#allocation2 + $0xe8] sm:$0xff]  ;;  %v2052_v38 = vld [vmem:[%s3145_s0 + $0x38] sm:$0xf0]  ;;  %v1646_v41 = vor.u32 %v2077_v33, %v1645_v32  ;;  %v1746_v42 = vor.u32 %v2102_v35, %v1745_v34  ;;  %v1845_v44 = vld [vmem:[%s3145_s0 + $0x280] sm:$0xf] }
  0x17   :  { %v1545_v37 = vld [vmem:[%s3145_s0 + $0x28] sm:$0xf]  ;;  %v2154_v39 = vld [vmem:[#allocation2 + $0x98] sm:$0xff]  ;;  %v2127_v45 = vld [vmem:[%s3145_s0 + $0x290] sm:$0xf0] }
  0x18   :  { %2180 = vmatpush.bf16.msra.mxu1 %v2139_v3  ;;  %2181 = vmatpush.bf16.msra.mxu2 %v2139_v3  ;;  %v2146_v40 = vld [vmem:[#allocation2 + $0x58] sm:$0xff]  ;;  %v1546_v43 = vor.u32 %v2052_v38, %v1545_v37  ;;  %v1846_v46 = vor.u32 %v2127_v45, %v1845_v44  ;;  %v2153_v47 = vld [vmem:[#allocation2 + $0x90] sm:$0xff]  ;;  %v2168_v48 = vld [vmem:[#allocation2 + $0x108] sm:$0xff] }
  0x19   :  { %953 = vmatpush.bf16.msra.mxu0 %v2139_v3  ;;  %2182 = vmatpush.bf16.msra.mxu3 %v2139_v3  ;;  %v2163_v49 = vld [vmem:[#allocation2 + $0xe0] sm:$0xff]  ;;  %v2145_v50 = vld [vmem:[#allocation2 + $0x50] sm:$0xff]  ;;  %v2152_v51 = vld [vmem:[#allocation2 + $0x88] sm:$0xff] }
  0x1a   :  { %v2162_v52 = vld [vmem:[#allocation2 + $0xd8] sm:$0xff]  ;;  %v2082_v54 = vld [vmem:[%s3145_s0 + $0x128] sm:$0xf0]  ;;  %v1765_v55 = vld [vmem:[%s3145_s0 + $0x1e0] sm:$0xf] }
  0x1b   :  { %v1665_v53 = vld [vmem:[%s3145_s0 + $0x118] sm:$0xf]  ;;  %v2107_v56 = vld [vmem:[%s3145_s0 + $0x1f0] sm:$0xf0]  ;;  %v1565_v58 = vld [vmem:[%s3145_s0 + $0x50] sm:$0xf] }
  0x1c   :  { %2183 = vmatpush.bf16.msra.mxu1 %v2138_v4  ;;  %2184 = vmatpush.bf16.msra.mxu2 %v2138_v4  ;;  %v2161_v57 = vld [vmem:[#allocation2 + $0xd0] sm:$0xff]  ;;  %v2057_v59 = vld [vmem:[%s3145_s0 + $0x60] sm:$0xf0]  ;;  %v1666_v60 = vor.u32 %v2082_v54, %v1665_v53  ;;  %v1766_v61 = vor.u32 %v2107_v56, %v1765_v55  ;;  %v1865_v63 = vld [vmem:[%s3145_s0 + $0x2a8] sm:$0xf] }
  0x1d   :  { %954 = vmatpush.bf16.msra.mxu0 %v2138_v4  ;;  %2185 = vmatpush.bf16.msra.mxu3 %v2138_v4  ;;  %v1566_v62 = vor.u32 %v2057_v59, %v1565_v58  ;;  %v2132_v0 = vld [vmem:[%s3145_s0 + $0x2b8] sm:$0xf0]  ;;  %v2144_v2 = vld [vmem:[#allocation2 + $0x48] sm:$0xff]  ;;  %v2151_v4 = vld [vmem:[#allocation2 + $0x80] sm:$0xff] }
  0x1e   :  { %v1866_v1 = vor.u32 %v2132_v0, %v1865_v63  ;;  %v2160_v3 = vld [vmem:[#allocation2 + $0xc8] sm:$0xff]  ;;  %v1685_v8 = vld [vmem:[%s3145_s0 + $0x140] sm:$0xf]  ;;  %v2087_v9 = vld [vmem:[%s3145_s0 + $0x150] sm:$0xf0] }
  0x1f   :  { %v1785_v10 = vld [vmem:[%s3145_s0 + $0x208] sm:$0xf]  ;;  %v2112_v11 = vld [vmem:[%s3145_s0 + $0x218] sm:$0xf0]  ;;  %v2062_v13 = vld [vmem:[%s3145_s0 + $0x88] sm:$0xf0]  ;;  %v1686_v14 = vor.u32 %v2087_v9, %v1685_v8 }
  0x20   :  { %2186 = vmatpush.bf16.msra.mxu1 %v2137_v5  ;;  %2187 = vmatpush.bf16.msra.mxu2 %v2137_v5  ;;  %v1705_v20 = vld [vmem:[%s3145_s0 + $0x168] sm:$0xf]  ;;  %v2092_v21 = vld [vmem:[%s3145_s0 + $0x178] sm:$0xf0]  ;;  %v2045_v32 = vld [vmem:[%s3145_s0 + $0x4] sm:$0xf] }
  0x21   :  { %955 = vmatpush.bf16.msra.mxu0 %v2137_v5  ;;  %2188 = vmatpush.bf16.msra.mxu3 %v2137_v5  ;;  %v2167_v5 = vld [vmem:[#allocation2 + $0x100] sm:$0xff]  ;;  %v1527_v33 = vld [vmem:[%s3145_s0 + $0x14] sm:$0xf0]  ;;  %v1533_v34 = vld [vmem:[%s3145_s0 + $0x8] sm:$0xf] }
  0x22   :  { %v2048_v35 = vld [vmem:[%s3145_s0 + $0x18] sm:$0xf0]  ;;  %v2049_v37 = vld [vmem:[%s3145_s0 + $0x20] sm:$0xf0]  ;;  %v1530_v38 = vor.u32 %v2045_v32, %v1527_v33  ;;  %v2050_v44 = vld [vmem:[%s3145_s0 + $0x2c] sm:$0xf] }
  0x23   :  { %v1547_v45 = vld [vmem:[%s3145_s0 + $0x3c] sm:$0xf0]  ;;  %v2061_v53 = vld [vmem:[%s3145_s0 + $0x84] sm:$0xf]  ;;  %v1595_v54 = vld [vmem:[%s3145_s0 + $0x94] sm:$0xf0] }
  0x24   :  { %2189 = vmatpush.bf16.msra.mxu1 %v2136_v6  ;;  %2190 = vmatpush.bf16.msra.mxu2 %v2136_v6  ;;  %v1598_v55 = vor.u32 %v2061_v53, %v1595_v54  ;;  %v2055_v56 = vld [vmem:[%s3145_s0 + $0x54] sm:$0xf]  ;;  %v1573_v58 = vld [vmem:[%s3145_s0 + $0x58] sm:$0xf]  ;;  %v2058_v59 = vld [vmem:[%s3145_s0 + $0x68] sm:$0xf0] }
  0x25   :  { %956 = vmatpush.bf16.msra.mxu0 %v2136_v6  ;;  %2191 = vmatpush.bf16.msra.mxu3 %v2136_v6  ;;  %v2143_v6 = vld [vmem:[#allocation2 + $0x40] sm:$0xff]  ;;  %v1574_v63 = vor.u32 %v2058_v59, %v1573_v58  ;;  %v1601_v8 = vld [vmem:[%s3145_s0 + $0x88] sm:$0xf]  ;;  %v2064_v9 = vld [vmem:[%s3145_s0 + $0x98] sm:$0xf0] }
  0x26   :  { %v2076_v33 = vld [vmem:[%s3145_s0 + $0xfc] sm:$0xf]  ;;  %v2081_v53 = vld [vmem:[%s3145_s0 + $0x124] sm:$0xf]  ;;  %v1675_v54 = vld [vmem:[%s3145_s0 + $0x134] sm:$0xf0] }
  0x28   :  { %2192 = vmatpush.bf16.msra.mxu1 %v2135_v7  ;;  %2193 = vmatpush.bf16.msra.mxu2 %v2135_v7 }
  0x29   :  { %957 = vmatpush.bf16.msra.mxu0 %v2135_v7  ;;  %2194 = vmatpush.bf16.msra.mxu3 %v2135_v7  ;;  %v2159_v7 = vld [vmem:[#allocation2 + $0xc0] sm:$0xff] }
  0x2b   :  { %983 = vmatmul.bf16.vlgmr.msra.gmra.mxu1 %v1626_v17  ;;  %1008 = vmatmul.bf16.vlgmr.msra.gmra.mxu2 %v1726_v18  ;;  %v2046_v17 = vld [vmem:[%s3145_s0 + $0xc] sm:$0xf]  ;;  %v1535_v18 = vld [vmem:[%s3145_s0 + $0x1c] sm:$0xf0] }
  0x2c   :  { %1148 = vmatpush.bf16.msrb.mxu2 %v2158_v12  ;;  %1049 = vmatpush.bf16.msrb.mxu1 %v2150_v15  ;;  %v1585_v12 = vld [vmem:[%s3145_s0 + $0x78] sm:$0xf]  ;;  %v1786_v15 = vor.u32 %v2112_v11, %v1785_v10 }
  0x2d   :  { %1350 = vmatpush.bf16.msrb.mxu0 %v2170_v16  ;;  %1033 = vmatmul.bf16.vlgmr.msra.gmra.mxu3 %v1826_v25  ;;  %v1586_v16 = vor.u32 %v2062_v13, %v1585_v12  ;;  %v2067_v25 = vld [vmem:[%s3145_s0 + $0xb0] sm:$0xf0]  ;;  %v1602_v13 = vor.u32 %v2064_v9, %v1601_v8  ;;  %v2086_v9 = vld [vmem:[%s3145_s0 + $0x14c] sm:$0xf] }
  0x2e   :  { %958 = vmatmul.bf16.vlgmr.msra.gmra.mxu0 %v1526_v19  ;;  %1247 = vmatpush.bf16.msrb.mxu3 %v2166_v26  ;;  %v1538_v19 = vor.u32 %v2046_v17, %v1535_v18  ;;  %v1706_v26 = vor.u32 %v2092_v21, %v1705_v20 }
  0x30   :  { %1149 = vmatpush.bf16.msrb.mxu2 %v2157_v22  ;;  %1050 = vmatpush.bf16.msrb.mxu1 %v2149_v23  ;;  %v1805_v22 = vld [vmem:[%s3145_s0 + $0x230] sm:$0xf]  ;;  %v2117_v23 = vld [vmem:[%s3145_s0 + $0x240] sm:$0xf0] }
  0x31   :  { %1351 = vmatpush.bf16.msrb.mxu0 %v2169_v24  ;;  %v1605_v24 = vld [vmem:[%s3145_s0 + $0xa0] sm:$0xf] }
  0x32   :  { %1248 = vmatpush.bf16.msrb.mxu3 %v2165_v29  ;;  %v2051_v29 = vld [vmem:[%s3145_s0 + $0x34] sm:$0xf] }
  0x34   :  { %1150 = vmatpush.bf16.msrb.mxu2 %v2156_v27  ;;  %1051 = vmatpush.bf16.msrb.mxu1 %v2148_v28  ;;  %v1806_v27 = vor.u32 %v2117_v23, %v1805_v22  ;;  %v1606_v28 = vor.u32 %v2067_v25, %v1605_v24  ;;  %v2065_v22 = vld [vmem:[%s3145_s0 + $0xa4] sm:$0xf]  ;;  %v1607_v23 = vld [vmem:[%s3145_s0 + $0xb4] sm:$0xf0]  ;;  %v1613_v24 = vld [vmem:[%s3145_s0 + $0xa8] sm:$0xf] }
  0x35   :  { %1352 = vmatpush.bf16.msrb.mxu0 %v2168_v48  ;;  %v1561_v48 = vld [vmem:[%s3145_s0 + $0x38] sm:$0xf]  ;;  %v2068_v25 = vld [vmem:[%s3145_s0 + $0xb8] sm:$0xf0] }
  0x36   :  { %1249 = vmatpush.bf16.msrb.mxu3 %v2164_v36  ;;  %v1541_v36 = vld [vmem:[%s3145_s0 + $0x10] sm:$0xf] }
  0x38   :  { %1151 = vmatpush.bf16.msrb.mxu2 %v2155_v30  ;;  %1052 = vmatpush.bf16.msrb.mxu1 %v2147_v31  ;;  %v1555_v30 = vld [vmem:[%s3145_s0 + $0x44] sm:$0xf0] }
  0x39   :  { %1353 = vmatpush.bf16.msrb.mxu0 %v2167_v5  ;;  %v1558_v31 = vor.u32 %v2051_v29, %v1555_v30  ;;  %v1587_v5 = vld [vmem:[%s3145_s0 + $0x8c] sm:$0xf0]  ;;  %v1610_v29 = vor.u32 %v2065_v22, %v1607_v23  ;;  %v1614_v30 = vor.u32 %v2068_v25, %v1613_v24  ;;  %v2080_v24 = vld [vmem:[%s3145_s0 + $0x11c] sm:$0xf] }
  0x3a   :  { %1250 = vmatpush.bf16.msrb.mxu3 %v2163_v49  ;;  %v2054_v49 = vld [vmem:[%s3145_s0 + $0x48] sm:$0xf0]  ;;  %v1667_v25 = vld [vmem:[%s3145_s0 + $0x12c] sm:$0xf0] }
  0x3b   :  { %988 = vmatmul.bf16.gmra.mxu1 %v1646_v41  ;;  %1013 = vmatmul.bf16.gmra.mxu2 %v1746_v42  ;;  %v2056_v41 = vld [vmem:[%s3145_s0 + $0x5c] sm:$0xf]  ;;  %v1575_v42 = vld [vmem:[%s3145_s0 + $0x6c] sm:$0xf0] }
  0x3c   :  { %1152 = vmatpush.bf16.msrb.mxu2 %v2154_v39  ;;  %1053 = vmatpush.bf16.msrb.mxu1 %v2146_v40  ;;  %v1534_v39 = vor.u32 %v2048_v35, %v1533_v34  ;;  %v1542_v40 = vor.u32 %v2049_v37, %v1541_v36  ;;  %v1655_v34 = vld [vmem:[%s3145_s0 + $0x10c] sm:$0xf0] }
  0x3d   :  { %1038 = vmatmul.bf16.gmra.mxu3 %v1846_v46  ;;  %v1553_v46 = vld [vmem:[%s3145_s0 + $0x30] sm:$0xf]  ;;  %v1658_v37 = vor.u32 %v2076_v33, %v1655_v34  ;;  %v1670_v33 = vor.u32 %v2080_v24, %v1667_v25 }
  0x3e   :  { %963 = vmatmul.bf16.gmra.mxu0 %v1546_v43  ;;  %1251 = vmatpush.bf16.msrb.mxu3 %v2162_v52  ;;  %v1578_v43 = vor.u32 %v2056_v41, %v1575_v42  ;;  %v1562_v52 = vor.u32 %v2054_v49, %v1561_v48  ;;  %v2070_v42 = vld [vmem:[%s3145_s0 + $0xcc] sm:$0xf] }
  0x40   :  { %1153 = vmatpush.bf16.msrb.mxu2 %v2153_v47  ;;  %1054 = vmatpush.bf16.msrb.mxu1 %v2145_v50  ;;  %v2053_v47 = vld [vmem:[%s3145_s0 + $0x40] sm:$0xf0]  ;;  %v1550_v50 = vor.u32 %v2050_v44, %v1547_v45  ;;  %v1633_v44 = vld [vmem:[%s3145_s0 + $0xd0] sm:$0xf] }
  0x41   :  { %v2073_v45 = vld [vmem:[%s3145_s0 + $0xe0] sm:$0xf0] }
  0x42   :  { %1252 = vmatpush.bf16.msrb.mxu3 %v2161_v57  ;;  %v1567_v57 = vld [vmem:[%s3145_s0 + $0x64] sm:$0xf0] }
  0x44   :  { %1154 = vmatpush.bf16.msrb.mxu2 %v2152_v51  ;;  %1055 = vmatpush.bf16.msrb.mxu1 %v2144_v2  ;;  %v1554_v51 = vor.u32 %v2053_v47, %v1553_v46  ;;  %v1615_v2 = vld [vmem:[%s3145_s0 + $0xbc] sm:$0xf0]  ;;  %v1641_v46 = vld [vmem:[%s3145_s0 + $0xd8] sm:$0xf]  ;;  %v2074_v47 = vld [vmem:[%s3145_s0 + $0xe8] sm:$0xf0] }
  0x46   :  { %1253 = vmatpush.bf16.msrb.mxu3 %v2160_v3 }
  0x48   :  { %1155 = vmatpush.bf16.msrb.mxu2 %v2151_v4  ;;  %1056 = vmatpush.bf16.msrb.mxu1 %v2143_v6  ;;  %v2060_v4 = vld [vmem:[%s3145_s0 + $0x7c] sm:$0xf]  ;;  %v1593_v6 = vld [vmem:[%s3145_s0 + $0x80] sm:$0xf] }
  0x49   :  { %v1590_v10 = vor.u32 %v2060_v4, %v1587_v5 }
  0x4a   :  { %1254 = vmatpush.bf16.msrb.mxu3 %v2159_v7  ;;  %v2063_v7 = vld [vmem:[%s3145_s0 + $0x90] sm:$0xf0] }
  0x4b   :  { %993 = vmatmul.bf16.gmra.mxu1 %v1666_v60  ;;  %1018 = vmatmul.bf16.gmra.mxu2 %v1766_v61  ;;  %v1581_v60 = vld [vmem:[%s3145_s0 + $0x60] sm:$0xf]  ;;  %v2059_v61 = vld [vmem:[%s3145_s0 + $0x70] sm:$0xf0]  ;;  %v1594_v11 = vor.u32 %v2063_v7, %v1593_v6 }
  0x4c   :  { %v1582_v0 = vor.u32 %v2059_v61, %v1581_v60 }
  0x4d   :  { %1043 = vmatmul.bf16.gmra.mxu3 %v1866_v1  ;;  %v2066_v1 = vld [vmem:[%s3145_s0 + $0xac] sm:$0xf] }
  0x4e   :  { %968 = vmatmul.bf16.gmra.mxu0 %v1566_v62  ;;  %v1570_v62 = vor.u32 %v2055_v56, %v1567_v57  ;;  %v1618_v3 = vor.u32 %v2066_v1, %v1615_v2  ;;  %v1678_v57 = vor.u32 %v2081_v53, %v1675_v54  ;;  %v2078_v1 = vld [vmem:[%s3145_s0 + $0x108] sm:$0xf0]  ;;  %v1661_v2 = vld [vmem:[%s3145_s0 + $0x100] sm:$0xf]  ;;  %v2085_v54 = vld [vmem:[%s3145_s0 + $0x144] sm:$0xf] }
  0x5b   :  { %998 = vmatmul.bf16.gmra.mxu1 %v1686_v14  ;;  %1023 = vmatmul.bf16.gmra.mxu2 %v1786_v15  ;;  %v2071_v14 = vld [vmem:[%s3145_s0 + $0xd4] sm:$0xf]  ;;  %v1635_v15 = vld [vmem:[%s3145_s0 + $0xe4] sm:$0xf0] }
  0x5c   :  { %v1638_v17 = vor.u32 %v2071_v14, %v1635_v15 }
  0x5d   :  { %1255 = vmatmul.bf16.vlgmr.msrb.gmra.mxu3 %v1538_v19 }
  0x5e   :  { %973 = vmatmul.bf16.gmra.mxu0 %v1586_v16 }
  0x6b   :  { %1003 = vmatmul.bf16.gmra.mxu1 %v1706_v26  ;;  %1028 = vmatmul.bf16.gmra.mxu2 %v1806_v27  ;;  %v1621_v26 = vld [vmem:[%s3145_s0 + $0xb0] sm:$0xf]  ;;  %v2069_v27 = vld [vmem:[%s3145_s0 + $0xc0] sm:$0xf0] }
  0x6c   :  { %v1622_v32 = vor.u32 %v2069_v27, %v1621_v26  ;;  %v1673_v26 = vld [vmem:[%s3145_s0 + $0x120] sm:$0xf]  ;;  %v2083_v27 = vld [vmem:[%s3145_s0 + $0x130] sm:$0xf0] }
  0x6d   :  { %1260 = vmatmul.bf16.gmra.mxu3 %v1558_v31  ;;  %v1674_v34 = vor.u32 %v2083_v27, %v1673_v26 }
  0x6e   :  { %978 = vmatmul.bf16.gmra.mxu0 %v1606_v28 }
  0x7b   :  { %1057 = vmatmul.bf16.vlgmr.msrb.gmra.mxu1 %v1530_v38  ;;  %1156 = vmatmul.bf16.vlgmr.msrb.gmra.mxu2 %v1534_v39 }
  0x7d   :  { %1265 = vmatmul.bf16.gmra.mxu3 %v1578_v43  ;;  %v1627_v43 = vld [vmem:[%s3145_s0 + $0xdc] sm:$0xf0] }
  0x7e   :  { %2027 = vmatmul.msk.bf16.vlgmr.msrb.gmra.mxu0 %vm895_vm0, %v1542_v40  ;;  %v1630_v49 = vor.u32 %v2070_v42, %v1627_v43  ;;  %v2091_v43 = vld [vmem:[%s3145_s0 + $0x174] sm:$0xf] }
  0x8b   :  { %1062 = vmatmul.bf16.gmra.mxu1 %v1550_v50  ;;  %1161 = vmatmul.bf16.gmra.mxu2 %v1554_v51  ;;  %v1634_v50 = vor.u32 %v2073_v45, %v1633_v44  ;;  %v1715_v44 = vld [vmem:[%s3145_s0 + $0x184] sm:$0xf0] }
  0x8d   :  { %1270 = vmatmul.bf16.gmra.mxu3 %v1598_v55 }
  0x8e   :  { %2028 = vmatmul.msk.bf16.gmra.mxu0 %vm895_vm0, %v1562_v52  ;;  %v1642_v52 = vor.u32 %v2074_v47, %v1641_v46  ;;  %v1718_v47 = vor.u32 %v2091_v43, %v1715_v44 }
  0x9b   :  { %1067 = vmatmul.bf16.gmra.mxu1 %v1570_v62  ;;  %1166 = vmatmul.bf16.gmra.mxu2 %v1574_v63  ;;  %v2075_v62 = vld [vmem:[%s3145_s0 + $0xf4] sm:$0xf]  ;;  %v1647_v63 = vld [vmem:[%s3145_s0 + $0x104] sm:$0xf0] }
  0x9c   :  { %v1650_v5 = vor.u32 %v2075_v62, %v1647_v63  ;;  %v1693_v62 = vld [vmem:[%s3145_s0 + $0x148] sm:$0xf]  ;;  %v2088_v63 = vld [vmem:[%s3145_s0 + $0x158] sm:$0xf0] }
  0x9d   :  { %1275 = vmatmul.bf16.gmra.mxu3 %v1618_v3  ;;  %v2079_v3 = vld [vmem:[%s3145_s0 + $0x110] sm:$0xf0] }
  0x9e   :  { %2029 = vmatmul.msk.bf16.gmra.mxu0 %vm895_vm0, %v1582_v0  ;;  %v1653_v0 = vld [vmem:[%s3145_s0 + $0xf8] sm:$0xf]  ;;  %v1662_v8 = vor.u32 %v2079_v3, %v1661_v2 }
  0x9f   :  { %v1654_v6 = vor.u32 %v2078_v1, %v1653_v0  ;;  %v1701_v0 = vld [vmem:[%s3145_s0 + $0x150] sm:$0xf]  ;;  %v2089_v1 = vld [vmem:[%s3145_s0 + $0x160] sm:$0xf0] }
  0xa8   :  { %v2496_v12 = vpop.f32.mrf.mxu1 }
  0xab   :  { %v2504_v16 = vpop.f32.mrf.mxu0  ;;  %1072 = vmatmul.bf16.gmra.mxu1 %v1590_v10  ;;  %1171 = vmatmul.bf16.gmra.mxu2 %v1594_v11  ;;  %v1695_v10 = vld [vmem:[%s3145_s0 + $0x15c] sm:$0xf0] }
  0xac   :  { %v1698_v14 = vor.u32 %v2086_v9, %v1695_v10  ;;  %v2096_v9 = vld [vmem:[%s3145_s0 + $0x19c] sm:$0xf]  ;;  %v1735_v10 = vld [vmem:[%s3145_s0 + $0x1ac] sm:$0xf0] }
  0xad   :  { %1280 = vmatmul.bf16.gmra.mxu3 %v1638_v17  ;;  %v1738_v27 = vor.u32 %v2096_v9, %v1735_v10 }
  0xae   :  { %2030 = vmatmul.msk.bf16.gmra.mxu0 %vm895_vm0, %v1602_v13  ;;  %v2507_v18 = vpop.f32.mrf.mxu2 }
  0xb0   :  { %v2509_v19 = vpop.f32.mrf.mxu1  ;;  %v2513_v21 = vpop.f32.mrf.mxu3 }
  0xb3   :  { %v2511_v20 = vpop.f32.mrf.mxu0 }
  0xb6   :  { %v2533_v28 = vpop.f32.mrf.mxu2 }
  0xb8   :  { %v2535_v31 = vpop.f32.mrf.mxu1  ;;  %v2545_v36 = vpop.f32.mrf.mxu3 }
  0xbb   :  { %v2543_v35 = vpop.f32.mrf.mxu0  ;;  %1077 = vmatmul.bf16.gmra.mxu1 %v1610_v29  ;;  %1176 = vmatmul.bf16.gmra.mxu2 %v1614_v30  ;;  %v1681_v29 = vld [vmem:[%s3145_s0 + $0x128] sm:$0xf]  ;;  %v2084_v30 = vld [vmem:[%s3145_s0 + $0x138] sm:$0xf0] }
  0xbc   :  { %v1682_v42 = vor.u32 %v2084_v30, %v1681_v29 }
  0xbd   :  { %1285 = vmatmul.bf16.gmra.mxu3 %v1658_v37 }
  0xbe   :  { %2031 = vmatmul.msk.bf16.gmra.mxu0 %vm895_vm0, %v1622_v32  ;;  %v2548_v38 = vpop.f32.mrf.mxu2 }
  0xc0   :  { %v2550_v39 = vpop.f32.mrf.mxu1  ;;  %v2554_v41 = vpop.f32.mrf.mxu3 }
  0xc3   :  { %v2552_v40 = vpop.f32.mrf.mxu0 }
  0xc6   :  { %v2574_v48 = vpop.f32.mrf.mxu2 }
  0xc8   :  { %v2576_v51 = vpop.f32.mrf.mxu1  ;;  %v2586_v56 = vpop.f32.mrf.mxu3 }
  0xcb   :  { %v2584_v55 = vpop.f32.mrf.mxu0  ;;  %1082 = vmatmul.bf16.gmra.mxu1 %v1630_v49  ;;  %1181 = vmatmul.bf16.gmra.mxu2 %v1634_v50 }
  0xcd   :  { %1290 = vmatmul.bf16.gmra.mxu3 %v1678_v57  ;;  %v1687_v57 = vld [vmem:[%s3145_s0 + $0x154] sm:$0xf0] }
  0xce   :  { %2032 = vmatmul.msk.bf16.gmra.mxu0 %vm895_vm0, %v1642_v52  ;;  %v2589_v58 = vpop.f32.mrf.mxu2  ;;  %v1690_v3 = vor.u32 %v2085_v54, %v1687_v57  ;;  %v1707_v57 = vld [vmem:[%s3145_s0 + $0x17c] sm:$0xf0] }
  0xd0   :  { %v2591_v59 = vpop.f32.mrf.mxu1  ;;  %v2595_v61 = vpop.f32.mrf.mxu3 }
  0xd3   :  { %v2593_v60 = vpop.f32.mrf.mxu0 }
  0xd6   :  { %v2615_v4 = vpop.f32.mrf.mxu2 }
  0xd8   :  { %v2617_v7 = vpop.f32.mrf.mxu1  ;;  %v2627_v13 = vpop.f32.mrf.mxu3 }
  0xdb   :  { %v2625_v11 = vpop.f32.mrf.mxu0  ;;  %1087 = vmatmul.bf16.gmra.mxu1 %v1650_v5  ;;  %1186 = vmatmul.bf16.gmra.mxu2 %v1654_v6  ;;  %v1694_v5 = vor.u32 %v2088_v63, %v1693_v62  ;;  %v1713_v62 = vld [vmem:[%s3145_s0 + $0x170] sm:$0xf] }
  0xdd   :  { %1295 = vmatmul.bf16.gmra.mxu3 %v1698_v14  ;;  %v2701_v14 = vld [vmem:[#allocation4] ss:$0 sm:$0xff] }
  0xde   :  { %2033 = vmatmul.msk.bf16.gmra.mxu0 %vm895_vm0, %v1662_v8  ;;  %v2630_v15 = vpop.f32.mrf.mxu2  ;;  %v1702_v8 = vor.u32 %v2089_v1, %v1701_v0  ;;  %v960_v26 = vadd.f32 %v2701_v14, %v2504_v16  ;;  %v2090_v16 = vld [vmem:[%s3145_s0 + $0x16c] sm:$0xf] }
  0xdf   :  { %v2094_v1 = vld [vmem:[%s3145_s0 + $0x188] sm:$0xf0] }
  0xe0   :  { %v2632_v17 = vpop.f32.mrf.mxu1  ;;  %v1256_v23 = vpop.f32.mrf.mxu3 }
  0xe3   :  { %v2634_v22 = vpop.f32.mrf.mxu0 }
  0xe6   :  { %v2654_v32 = vpop.f32.mrf.mxu2 }
  0xe8   :  { %v2656_v37 = vpop.f32.mrf.mxu1  ;;  %v1258_v46 = vpop.f32.mrf.mxu3 }
  0xeb   :  { %v2664_v45 = vpop.f32.mrf.mxu0  ;;  %1092 = vmatmul.bf16.gmra.mxu1 %v1670_v33  ;;  %1191 = vmatmul.bf16.gmra.mxu2 %v1674_v34 }
  0xed   :  { %1300 = vmatmul.bf16.gmra.mxu3 %v1718_v47  ;;  %v962_v47 = vadd.f32 %v2701_v14, %v2511_v20  ;;  %v1721_v20 = vld [vmem:[%s3145_s0 + $0x178] sm:$0xf] }
  0xee   :  { %2034 = vmatmul.msk.bf16.gmra.mxu0 %vm895_vm0, %v1682_v42  ;;  %v2667_v49 = vpop.f32.mrf.mxu2  ;;  %v1722_v10 = vor.u32 %v2094_v1, %v1721_v20  ;;  %v1727_v20 = vld [vmem:[%s3145_s0 + $0x1a4] sm:$0xf0]  ;;  %v1733_v1 = vld [vmem:[%s3145_s0 + $0x198] sm:$0xf] }
  0xf0   :  { %v2669_v50 = vpop.f32.mrf.mxu1  ;;  %v2673_v53 = vpop.f32.mrf.mxu3 }
  0xf3   :  { %v2671_v52 = vpop.f32.mrf.mxu0 }
  0xf6   :  { %v2693_v2 = vpop.f32.mrf.mxu2 }
  0xf8   :  { %v1058_v6 = vpop.f32.mrf.mxu1  ;;  %v2703_v25 = vpop.f32.mrf.mxu3 }
  0xf9   :  { %v1059_v29 = vadd.f32 %v1058_v6, %v960_v26  ;;  %v1710_v6 = vor.u32 %v2090_v16, %v1707_v57  ;;  %v1755_v26 = vld [vmem:[%s3145_s0 + $0x1d4] sm:$0xf0] }
  0xfb   :  { %v1355_v24 = vpop.f32.mrf.mxu0  ;;  %1097 = vmatmul.bf16.gmra.mxu1 %v1690_v3  ;;  %1196 = vmatmul.bf16.gmra.mxu2 %v1694_v5 }
  0xfd   :  { %1305 = vmatmul.bf16.gmra.mxu3 %v1738_v27 }
  0xfe   :  { %2035 = vmatmul.msk.bf16.gmra.mxu0 %vm895_vm0, %v1702_v8  ;;  %v1157_v30 = vpop.f32.mrf.mxu2 }
  0xff   :  { %v1158_v33 = vadd.f32 %v1157_v30, %v1059_v29 }
 0x100   :  { %v1060_v34 = vpop.f32.mrf.mxu1  ;;  %v2708_v44 = vpop.f32.mrf.mxu3 }
 0x101   :  { %v1257_v42 = vadd.f32 %v1256_v23, %v1158_v33  ;;  %v2093_v23 = vld [vmem:[%s3145_s0 + $0x180] sm:$0xf0]  ;;  %v1061_v0 = vadd.f32 %v1060_v34, %v962_v47  ;;  %v965_v33 = vadd.f32 %v2701_v14, %v2543_v35 }
 0x102   :  { %v1714_v8 = vor.u32 %v2093_v23, %v1713_v62 }
 0x103   :  { %v1357_v43 = vpop.f32.mrf.mxu0  ;;  %v1356_v54 = vadd.f32 %v1355_v24, %v1257_v42  ;;  %v2101_v24 = vld [vmem:[%s3145_s0 + $0x1c4] sm:$0xf] }
 0x104   :  { %v1758_v42 = vor.u32 %v2101_v24, %v1755_v26 }
 0x105   :  { %v1445_v63 = vmax.f32 %v1356_v54, 0.0 }
 0x106   :  { %v1159_v3 = vpop.f32.mrf.mxu2 }
 0x107   :  { %1481 = vst [vmem:[%s3148_s3] sm:$0xff] %v1445_v63  ;;  %v1160_v5 = vadd.f32 %v1159_v3, %v1061_v0  ;;  %v2095_v0 = vld [vmem:[%s3145_s0 + $0x194] sm:$0xf] }
 0x108   :  { %v1063_v9 = vpop.f32.mrf.mxu1  ;;  %v2739_v30 = vpop.f32.mrf.mxu3 }
 0x109   :  { %v1259_v27 = vadd.f32 %v1258_v46, %v1160_v5  ;;  %v1064_v54 = vadd.f32 %v1063_v9, %v965_v33  ;;  %v1775_v33 = vld [vmem:[%s3145_s0 + $0x1fc] sm:$0xf0] }
 0x10b   :  { %v1360_v29 = vpop.f32.mrf.mxu0  ;;  %v1358_v34 = vadd.f32 %v1357_v43, %v1259_v27  ;;  %1102 = vmatmul.bf16.gmra.mxu1 %v1710_v6  ;;  %1201 = vmatmul.bf16.gmra.mxu2 %v1714_v8  ;;  %v967_v43 = vadd.f32 %v2701_v14, %v2552_v40  ;;  %v1741_v40 = vld [vmem:[%s3145_s0 + $0x1a0] sm:$0xf]  ;;  %v2099_v6 = vld [vmem:[%s3145_s0 + $0x1b0] sm:$0xf0] }
 0x10c   :  { %v1742_v27 = vor.u32 %v2099_v6, %v1741_v40 }
 0x10d   :  { %v1446_v47 = vmax.f32 %v1358_v34, 0.0  ;;  %1310 = vmatmul.bf16.gmra.mxu3 %v1758_v42 }
 0x10e   :  { %2036 = vmatmul.msk.bf16.gmra.mxu0 %vm895_vm0, %v1722_v10  ;;  %v1162_v16 = vpop.f32.mrf.mxu2  ;;  %v1730_v10 = vor.u32 %v2095_v0, %v1727_v20 }
 0x10f   :  { %1482 = vst [vmem:[%s3148_s3 + $0x8] sm:$0xff] %v1446_v47  ;;  %v1163_v46 = vadd.f32 %v1162_v16, %v1064_v54  ;;  %v970_v54 = vadd.f32 %v2701_v14, %v2584_v55 }
 0x110   :  { %v1065_v57 = vpop.f32.mrf.mxu1  ;;  %v2748_v35 = vpop.f32.mrf.mxu3 }
 0x111   :  { %v1262_v62 = vadd.f32 %v2673_v53, %v1163_v46  ;;  %v2098_v53 = vld [vmem:[%s3145_s0 + $0x1a8] sm:$0xf0]  ;;  %v1066_v5 = vadd.f32 %v1065_v57, %v967_v43 }
 0x112   :  { %v1734_v24 = vor.u32 %v2098_v53, %v1733_v1  ;;  %v2100_v53 = vld [vmem:[%s3145_s0 + $0x1bc] sm:$0xf] }
 0x113   :  { %v1362_v23 = vpop.f32.mrf.mxu0  ;;  %v1361_v63 = vadd.f32 %v1360_v29, %v1262_v62  ;;  %v2106_v29 = vld [vmem:[%s3145_s0 + $0x1ec] sm:$0xf] }
 0x114   :  { %v1778_v46 = vor.u32 %v2106_v29, %v1775_v33  ;;  %v2111_v33 = vld [vmem:[%s3145_s0 + $0x214] sm:$0xf] }
 0x115   :  { %v1447_v3 = vmax.f32 %v1361_v63, 0.0 }
 0x116   :  { %v1164_v8 = vpop.f32.mrf.mxu2 }
 0x117   :  { %1483 = vst [vmem:[%s3148_s3 + $0x10] sm:$0xff] %v1447_v3  ;;  %v1165_v9 = vadd.f32 %v1164_v8, %v1066_v5  ;;  %v1747_v3 = vld [vmem:[%s3145_s0 + $0x1cc] sm:$0xf0]  ;;  %v1753_v5 = vld [vmem:[%s3145_s0 + $0x1c0] sm:$0xf] }
 0x118   :  { %v1068_v26 = vpop.f32.mrf.mxu1  ;;  %v2780_v47 = vpop.f32.mrf.mxu3  ;;  %v2104_v8 = vld [vmem:[%s3145_s0 + $0x1d8] sm:$0xf0] }
 0x119   :  { %v1264_v34 = vadd.f32 %v2703_v25, %v1165_v9  ;;  %v1069_v62 = vadd.f32 %v1068_v26, %v970_v54 }
 0x11b   :  { %v1365_v42 = vpop.f32.mrf.mxu0  ;;  %v1363_v16 = vadd.f32 %v1362_v23, %v1264_v34  ;;  %1107 = vmatmul.bf16.gmra.mxu1 %v1730_v10  ;;  %1206 = vmatmul.bf16.gmra.mxu2 %v1734_v24  ;;  %v972_v23 = vadd.f32 %v2701_v14, %v2593_v60  ;;  %v1761_v60 = vld [vmem:[%s3145_s0 + $0x1c8] sm:$0xf]  ;;  %v1750_v24 = vor.u32 %v2100_v53, %v1747_v3  ;;  %v2105_v3 = vld [vmem:[%s3145_s0 + $0x1e4] sm:$0xf] }
 0x11c   :  { %v1762_v29 = vor.u32 %v2104_v8, %v1761_v60  ;;  %v1795_v34 = vld [vmem:[%s3145_s0 + $0x224] sm:$0xf0]  ;;  %v2109_v60 = vld [vmem:[%s3145_s0 + $0x200] sm:$0xf0] }
 0x11d   :  { %v1448_v57 = vmax.f32 %v1363_v16, 0.0  ;;  %1315 = vmatmul.bf16.gmra.mxu3 %v1778_v46  ;;  %v975_v46 = vadd.f32 %v2701_v14, %v2625_v11 }
 0x11e   :  { %2037 = vmatmul.msk.bf16.gmra.mxu0 %vm895_vm0, %v1742_v27  ;;  %v1167_v43 = vpop.f32.mrf.mxu2 }
 0x11f   :  { %1484 = vst [vmem:[%s3148_s3 + $0x18] sm:$0xff] %v1448_v57  ;;  %v1168_v25 = vadd.f32 %v1167_v43, %v1069_v62  ;;  %v1798_v62 = vor.u32 %v2111_v33, %v1795_v34  ;;  %v1815_v33 = vld [vmem:[%s3145_s0 + $0x24c] sm:$0xf0] }
 0x120   :  { %v1070_v63 = vpop.f32.mrf.mxu1  ;;  %v2789_v55 = vpop.f32.mrf.mxu3 }
 0x121   :  { %v1267_v0 = vadd.f32 %v2708_v44, %v1168_v25  ;;  %v2103_v44 = vld [vmem:[%s3145_s0 + $0x1d0] sm:$0xf0]  ;;  %v1071_v6 = vadd.f32 %v1070_v63, %v972_v23 }
 0x122   :  { %v1754_v26 = vor.u32 %v2103_v44, %v1753_v5  ;;  %v1767_v5 = vld [vmem:[%s3145_s0 + $0x1f4] sm:$0xf0]  ;;  %v1773_v44 = vld [vmem:[%s3145_s0 + $0x1e8] sm:$0xf] }
 0x123   :  { %v1367_v20 = vpop.f32.mrf.mxu0  ;;  %v1366_v1 = vadd.f32 %v1365_v42, %v1267_v0 }
 0x125   :  { %v1449_v40 = vmax.f32 %v1366_v1, 0.0 }
 0x126   :  { %v1169_v9 = vpop.f32.mrf.mxu2 }
 0x127   :  { %1485 = vst [vmem:[%s3148_s3 + $0x20] sm:$0xff] %v1449_v40  ;;  %v1170_v10 = vadd.f32 %v1169_v9, %v1071_v6 }
 0x128   :  { %v1073_v27 = vpop.f32.mrf.mxu1  ;;  %v2821_v16 = vpop.f32.mrf.mxu3 }
 0x129   :  { %v1269_v42 = vadd.f32 %v2739_v30, %v1170_v10  ;;  %v1074_v25 = vadd.f32 %v1073_v27, %v975_v46  ;;  %v1770_v10 = vor.u32 %v2105_v3, %v1767_v5  ;;  %v980_v46 = vadd.f32 %v2701_v14, %v2664_v45  ;;  %v1787_v3 = vld [vmem:[%s3145_s0 + $0x21c] sm:$0xf0]  ;;  %v1793_v5 = vld [vmem:[%s3145_s0 + $0x210] sm:$0xf] }
 0x12b   :  { %v1370_v54 = vpop.f32.mrf.mxu0  ;;  %v1368_v57 = vadd.f32 %v1367_v20, %v1269_v42  ;;  %1112 = vmatmul.bf16.gmra.mxu1 %v1750_v24  ;;  %1211 = vmatmul.bf16.gmra.mxu2 %v1754_v26  ;;  %v977_v20 = vadd.f32 %v2701_v14, %v2634_v22  ;;  %v1781_v22 = vld [vmem:[%s3145_s0 + $0x1f0] sm:$0xf] }
 0x12c   :  { %v1782_v27 = vor.u32 %v2109_v60, %v1781_v22 }
 0x12d   :  { %v1450_v43 = vmax.f32 %v1368_v57, 0.0  ;;  %1320 = vmatmul.bf16.gmra.mxu3 %v1798_v62 }
 0x12e   :  { %2038 = vmatmul.msk.bf16.gmra.mxu0 %vm895_vm0, %v1762_v29  ;;  %v1172_v63 = vpop.f32.mrf.mxu2  ;;  %v2116_v29 = vld [vmem:[%s3145_s0 + $0x23c] sm:$0xf] }
 0x12f   :  { %1486 = vst [vmem:[%s3148_s3 + $0x28] sm:$0xff] %v1450_v43  ;;  %v1173_v30 = vadd.f32 %v1172_v63, %v1074_v25  ;;  %v1818_v62 = vor.u32 %v2116_v29, %v1815_v33 }
 0x130   :  { %v1075_v0 = vpop.f32.mrf.mxu1  ;;  %v2830_v11 = vpop.f32.mrf.mxu3 }
 0x131   :  { %v1272_v23 = vadd.f32 %v2748_v35, %v1173_v30  ;;  %v2108_v35 = vld [vmem:[%s3145_s0 + $0x1f8] sm:$0xf0]  ;;  %v1076_v6 = vadd.f32 %v1075_v0, %v977_v20 }
 0x132   :  { %v1774_v24 = vor.u32 %v2108_v35, %v1773_v44 }
 0x133   :  { %v1372_v1 = vpop.f32.mrf.mxu0  ;;  %v1371_v53 = vadd.f32 %v1370_v54, %v1272_v23 }
 0x135   :  { %v1451_v40 = vmax.f32 %v1371_v53, 0.0  ;;  %v2110_v53 = vld [vmem:[%s3145_s0 + $0x20c] sm:$0xf] }
 0x136   :  { %v1174_v8 = vpop.f32.mrf.mxu2  ;;  %v1790_v60 = vor.u32 %v2110_v53, %v1787_v3 }
 0x137   :  { %1487 = vst [vmem:[%s3148_s3 + $0x30] sm:$0xff] %v1451_v40  ;;  %v1175_v9 = vadd.f32 %v1174_v8, %v1076_v6  ;;  %v2114_v40 = vld [vmem:[%s3145_s0 + $0x228] sm:$0xf0] }
 0x138   :  { %v1078_v26 = vpop.f32.mrf.mxu1  ;;  %v2862_v54 = vpop.f32.mrf.mxu3 }
 0x139   :  { %v1274_v34 = vadd.f32 %v2780_v47, %v1175_v9  ;;  %v1079_v25 = vadd.f32 %v1078_v26, %v980_v46  ;;  %v1835_v26 = vld [vmem:[%s3145_s0 + $0x274] sm:$0xf0] }
 0x13b   :  { %v1375_v42 = vpop.f32.mrf.mxu0  ;;  %v1373_v57 = vadd.f32 %v1372_v1, %v1274_v34  ;;  %1117 = vmatmul.bf16.gmra.mxu1 %v1770_v10  ;;  %1216 = vmatmul.bf16.gmra.mxu2 %v1774_v24  ;;  %v982_v1 = vadd.f32 %v2701_v14, %v2671_v52  ;;  %v1801_v52 = vld [vmem:[%s3145_s0 + $0x218] sm:$0xf]  ;;  %v2121_v24 = vld [vmem:[%s3145_s0 + $0x264] sm:$0xf]  ;;  %v985_v34 = vadd.f32 %v2701_v14, %v2496_v12 }
 0x13c   :  { %v1802_v10 = vor.u32 %v2114_v40, %v1801_v52  ;;  %v1838_v46 = vor.u32 %v2121_v24, %v1835_v26  ;;  %v990_v24 = vadd.f32 %v2701_v14, %v2535_v31 }
 0x13d   :  { %v1452_v43 = vmax.f32 %v1373_v57, 0.0  ;;  %1325 = vmatmul.bf16.gmra.mxu3 %v1818_v62 }
 0x13e   :  { %2039 = vmatmul.msk.bf16.gmra.mxu0 %vm895_vm0, %v1782_v27  ;;  %v1177_v63 = vpop.f32.mrf.mxu2 }
 0x13f   :  { %1488 = vst [vmem:[%s3148_s3 + $0x38] sm:$0xff] %v1452_v43  ;;  %v1178_v47 = vadd.f32 %v1177_v63, %v1079_v25 }
 0x140   :  { %v1080_v30 = vpop.f32.mrf.mxu1  ;;  %v2871_v45 = vpop.f32.mrf.mxu3 }
 0x141   :  { %v1277_v0 = vadd.f32 %v2789_v55, %v1178_v47  ;;  %v2113_v55 = vld [vmem:[%s3145_s0 + $0x220] sm:$0xf0]  ;;  %v1081_v35 = vadd.f32 %v1080_v30, %v982_v1  ;;  %v987_v30 = vadd.f32 %v2701_v14, %v2509_v19  ;;  %v1807_v1 = vld [vmem:[%s3145_s0 + $0x244] sm:$0xf0]  ;;  %v1821_v19 = vld [vmem:[%s3145_s0 + $0x240] sm:$0xf] }
 0x142   :  { %v1794_v8 = vor.u32 %v2113_v55, %v1793_v5  ;;  %v2119_v5 = vld [vmem:[%s3145_s0 + $0x250] sm:$0xf0] }
 0x143   :  { %v1377_v23 = vpop.f32.mrf.mxu0  ;;  %v1376_v20 = vadd.f32 %v1375_v42, %v1277_v0 }
 0x145   :  { %v1453_v44 = vmax.f32 %v1376_v20, 0.0  ;;  %v1813_v20 = vld [vmem:[%s3145_s0 + $0x238] sm:$0xf] }
 0x146   :  { %v1179_v6 = vpop.f32.mrf.mxu2 }
 0x147   :  { %1489 = vst [vmem:[%s3148_s3 + $0x40] sm:$0xff] %v1453_v44  ;;  %v1180_v22 = vadd.f32 %v1179_v6, %v1081_v35  ;;  %v1822_v6 = vor.u32 %v2119_v5, %v1821_v19  ;;  %v2131_v5 = vld [vmem:[%s3145_s0 + $0x2b4] sm:$0xf] }
 0x148   :  { %v1083_v9 = vpop.f32.mrf.mxu1  ;;  %v2903_v33 = vpop.f32.mrf.mxu3 }
 0x149   :  { %v1279_v27 = vadd.f32 %v2821_v16, %v1180_v22  ;;  %v1084_v62 = vadd.f32 %v1083_v9, %v985_v34  ;;  %v2126_v22 = vld [vmem:[%s3145_s0 + $0x28c] sm:$0xf] }
 0x14b   :  { %v1380_v29 = vpop.f32.mrf.mxu0  ;;  %v1378_v42 = vadd.f32 %v1377_v23, %v1279_v27  ;;  %1122 = vmatmul.bf16.gmra.mxu1 %v1790_v60  ;;  %1221 = vmatmul.bf16.gmra.mxu2 %v1794_v8  ;;  %v2115_v23 = vld [vmem:[%s3145_s0 + $0x234] sm:$0xf]  ;;  %v1855_v60 = vld [vmem:[%s3145_s0 + $0x29c] sm:$0xf0] }
 0x14c   :  { %v1810_v35 = vor.u32 %v2115_v23, %v1807_v1  ;;  %v1858_v27 = vor.u32 %v2126_v22, %v1855_v60  ;;  %v2124_v23 = vld [vmem:[%s3145_s0 + $0x278] sm:$0xf0] }
 0x14d   :  { %v1454_v57 = vmax.f32 %v1378_v42, 0.0  ;;  %1330 = vmatmul.bf16.gmra.mxu3 %v1838_v46 }
 0x14e   :  { %2040 = vmatmul.msk.bf16.gmra.mxu0 %vm895_vm0, %v1802_v10  ;;  %v1182_v43 = vpop.f32.mrf.mxu2 }
 0x14f   :  { %1490 = vst [vmem:[%s3148_s3 + $0x48] sm:$0xff] %v1454_v57  ;;  %v1183_v16 = vadd.f32 %v1182_v43, %v1084_v62  ;;  %v992_v43 = vadd.f32 %v2701_v14, %v2550_v39  ;;  %v1841_v39 = vld [vmem:[%s3145_s0 + $0x268] sm:$0xf] }
 0x150   :  { %v1085_v25 = vpop.f32.mrf.mxu1  ;;  %v2912_v12 = vpop.f32.mrf.mxu3  ;;  %v1842_v19 = vor.u32 %v2124_v23, %v1841_v39 }
 0x151   :  { %v1282_v63 = vadd.f32 %v2830_v11, %v1183_v16  ;;  %v2118_v11 = vld [vmem:[%s3145_s0 + $0x248] sm:$0xf0]  ;;  %v1086_v3 = vadd.f32 %v1085_v25, %v987_v30  ;;  %v2120_v25 = vld [vmem:[%s3145_s0 + $0x25c] sm:$0xf] }
 0x152   :  { %v1814_v52 = vor.u32 %v2118_v11, %v1813_v20 }
 0x153   :  { %v1382_v47 = vpop.f32.mrf.mxu0  ;;  %v1381_v0 = vadd.f32 %v1380_v29, %v1282_v63  ;;  %v1827_v63 = vld [vmem:[%s3145_s0 + $0x26c] sm:$0xf0] }
 0x154   :  { %v1830_v11 = vor.u32 %v2120_v25, %v1827_v63 }
 0x155   :  { %v1455_v53 = vmax.f32 %v1381_v0, 0.0 }
 0x156   :  { %v1184_v55 = vpop.f32.mrf.mxu2 }
 0x157   :  { %1491 = vst [vmem:[%s3148_s3 + $0x50] sm:$0xff] %v1455_v53  ;;  %v1185_v44 = vadd.f32 %v1184_v55, %v1086_v3  ;;  %v1875_v55 = vld [vmem:[%s3145_s0 + $0x2c4] sm:$0xf0] }
 0x158   :  { %v1088_v40 = vpop.f32.mrf.mxu1  ;;  %v2944_v10 = vpop.f32.mrf.mxu3  ;;  %v1878_v22 = vor.u32 %v2131_v5, %v1875_v55 }
 0x159   :  { %v1284_v8 = vadd.f32 %v2862_v54, %v1185_v44  ;;  %v1089_v34 = vadd.f32 %v1088_v40, %v990_v24  ;;  %v995_v40 = vadd.f32 %v2701_v14, %v2576_v51 }
 0x15b   :  { %v1385_v9 = vpop.f32.mrf.mxu0  ;;  %v1383_v26 = vadd.f32 %v1382_v47, %v1284_v8  ;;  %1127 = vmatmul.bf16.gmra.mxu1 %v1810_v35  ;;  %1226 = vmatmul.bf16.gmra.mxu2 %v1814_v52  ;;  %v1833_v47 = vld [vmem:[%s3145_s0 + $0x260] sm:$0xf] }
 0x15d   :  { %v1456_v29 = vmax.f32 %v1383_v26, 0.0  ;;  %1335 = vmatmul.bf16.gmra.mxu3 %v1858_v27 }
 0x15e   :  { %2041 = vmatmul.msk.bf16.gmra.mxu0 %vm895_vm0, %v1822_v6  ;;  %v1187_v42 = vpop.f32.mrf.mxu2 }
 0x15f   :  { %1492 = vst [vmem:[%s3148_s3 + $0x58] sm:$0xff] %v1456_v29  ;;  %v1188_v54 = vadd.f32 %v1187_v42, %v1089_v34  ;;  %v997_v29 = vadd.f32 %v2701_v14, %v2591_v59  ;;  %v2125_v42 = vld [vmem:[%s3145_s0 + $0x284] sm:$0xf]  ;;  %v1861_v59 = vld [vmem:[%s3145_s0 + $0x290] sm:$0xf] }
 0x160   :  { %v1090_v46 = vpop.f32.mrf.mxu1  ;;  %v2953_v31 = vpop.f32.mrf.mxu3 }
 0x161   :  { %v1287_v57 = vadd.f32 %v2871_v45, %v1188_v54  ;;  %v2123_v45 = vld [vmem:[%s3145_s0 + $0x270] sm:$0xf0]  ;;  %v1091_v0 = vadd.f32 %v1090_v46, %v992_v43  ;;  %v1847_v54 = vld [vmem:[%s3145_s0 + $0x294] sm:$0xf0]  ;;  %v1853_v46 = vld [vmem:[%s3145_s0 + $0x288] sm:$0xf] }
 0x162   :  { %v1834_v53 = vor.u32 %v2123_v45, %v1833_v47  ;;  %v2129_v43 = vld [vmem:[%s3145_s0 + $0x2a0] sm:$0xf0]  ;;  %v1850_v63 = vor.u32 %v2125_v42, %v1847_v54 }
 0x163   :  { %v1387_v62 = vpop.f32.mrf.mxu0  ;;  %v1386_v16 = vadd.f32 %v1385_v9, %v1287_v57 }
 0x165   :  { %v1457_v30 = vmax.f32 %v1386_v16, 0.0 }
 0x166   :  { %v1189_v1 = vpop.f32.mrf.mxu2 }
 0x167   :  { %1493 = vst [vmem:[%s3148_s3 + $0x60] sm:$0xff] %v1457_v30  ;;  %v1190_v20 = vadd.f32 %v1189_v1, %v1091_v0  ;;  %v1862_v30 = vor.u32 %v2129_v43, %v1861_v59  ;;  %v1000_v1 = vadd.f32 %v2701_v14, %v2617_v7  ;;  %v1002_v7 = vadd.f32 %v2701_v14, %v2632_v17  ;;  %v1881_v17 = vld [vmem:[%s3145_s0 + $0x2b8] sm:$0xf] }
 0x168   :  { %v1093_v3 = vpop.f32.mrf.mxu1  ;;  %v2985_v52 = vpop.f32.mrf.mxu3 }
 0x169   :  { %v1289_v44 = vadd.f32 %v2903_v33, %v1190_v20  ;;  %v1094_v8 = vadd.f32 %v1093_v3, %v995_v40  ;;  %v2130_v40 = vld [vmem:[%s3145_s0 + $0x2ac] sm:$0xf] }
 0x16b   :  { %v1390_v35 = vpop.f32.mrf.mxu0  ;;  %v1388_v6 = vadd.f32 %v1387_v62, %v1289_v44  ;;  %1132 = vmatmul.bf16.gmra.mxu1 %v1830_v11  ;;  %1231 = vmatmul.bf16.gmra.mxu2 %v1834_v53 }
 0x16d   :  { %v1458_v60 = vmax.f32 %v1388_v6, 0.0  ;;  %1340 = vmatmul.bf16.gmra.mxu3 %v1878_v22  ;;  %v1867_v6 = vld [vmem:[%s3145_s0 + $0x2bc] sm:$0xf0]  ;;  %v1873_v22 = vld [vmem:[%s3145_s0 + $0x2b0] sm:$0xf] }
 0x16e   :  { %2042 = vmatmul.msk.bf16.gmra.mxu0 %vm895_vm0, %v1842_v19  ;;  %v1192_v9 = vpop.f32.mrf.mxu2 }
 0x16f   :  { %1494 = vst [vmem:[%s3148_s3 + $0x68] sm:$0xff] %v1458_v60  ;;  %v1193_v33 = vadd.f32 %v1192_v9, %v1094_v8  ;;  %v2134_v9 = vld [vmem:[%s3145_s0 + $0x2c8] sm:$0xf0] }
 0x170   :  { %v1095_v24 = vpop.f32.mrf.mxu1  ;;  %v2994_v51 = vpop.f32.mrf.mxu3 }
 0x171   :  { %v1292_v26 = vadd.f32 %v2912_v12, %v1193_v33  ;;  %v2128_v12 = vld [vmem:[%s3145_s0 + $0x298] sm:$0xf0]  ;;  %v1096_v62 = vadd.f32 %v1095_v24, %v997_v29 }
 0x172   :  { %v1854_v47 = vor.u32 %v2128_v12, %v1853_v46  ;;  %v1005_v46 = vadd.f32 %v2701_v14, %v2656_v37  ;;  %v1007_v37 = vadd.f32 %v2701_v14, %v2669_v50 }
 0x173   :  { %v1392_v27 = vpop.f32.mrf.mxu0  ;;  %v1391_v34 = vadd.f32 %v1390_v35, %v1292_v26  ;;  %v1870_v26 = vor.u32 %v2130_v40, %v1867_v6 }
 0x175   :  { %v1459_v57 = vmax.f32 %v1391_v34, 0.0  ;;  %v1882_v34 = vor.u32 %v2134_v9, %v1881_v17 }
 0x176   :  { %v1194_v16 = vpop.f32.mrf.mxu2 }
 0x177   :  { %1495 = vst [vmem:[%s3148_s3 + $0x70] sm:$0xff] %v1459_v57  ;;  %v1195_v25 = vadd.f32 %v1194_v16, %v1096_v62 }
 0x178   :  { %v1098_v45 = vpop.f32.mrf.mxu1  ;;  %v1303_v23 = vpop.f32.mrf.mxu3 }
 0x179   :  { %v1294_v0 = vadd.f32 %v2944_v10, %v1195_v25  ;;  %v1099_v53 = vadd.f32 %v1098_v45, %v1000_v1 }
 0x17b   :  { %v1395_v39 = vpop.f32.mrf.mxu0  ;;  %v1393_v20 = vadd.f32 %v1392_v27, %v1294_v0  ;;  %1137 = vmatmul.bf16.gmra.mxu1 %v1850_v63  ;;  %1236 = vmatmul.bf16.gmra.mxu2 %v1854_v47 }
 0x17d   :  { %v1460_v11 = vmax.f32 %v1393_v20, 0.0 }
 0x17e   :  { %2043 = vmatmul.msk.bf16.gmra.mxu0 %vm895_vm0, %v1862_v30  ;;  %v1197_v3 = vpop.f32.mrf.mxu2 }
 0x17f   :  { %1496 = vst [vmem:[%s3148_s3 + $0x78] sm:$0xff] %v1460_v11  ;;  %v1198_v19 = vadd.f32 %v1197_v3, %v1099_v53 }
 0x180   :  { %v1100_v5 = vpop.f32.mrf.mxu1  ;;  %v1306_v44 = vpop.f32.mrf.mxu3 }
 0x181   :  { %v1297_v10 = vadd.f32 %v2953_v31, %v1198_v19  ;;  %v2133_v31 = vld [vmem:[%s3145_s0 + $0x2c0] sm:$0xf0]  ;;  %v1101_v8 = vadd.f32 %v1100_v5, %v1002_v7 }
 0x182   :  { %v1874_v27 = vor.u32 %v2133_v31, %v1873_v22 }
 0x183   :  { %v1397_v55 = vpop.f32.mrf.mxu0  ;;  %v1396_v35 = vadd.f32 %v1395_v39, %v1297_v10 }
 0x185   :  { %v1461_v60 = vmax.f32 %v1396_v35, 0.0 }
 0x186   :  { %v1199_v33 = vpop.f32.mrf.mxu2 }
 0x187   :  { %1497 = vst [vmem:[%s3148_s3 + $0x80] sm:$0xff] %v1461_v60  ;;  %v1200_v24 = vadd.f32 %v1199_v33, %v1101_v8 }
 0x188   :  { %v1103_v29 = vpop.f32.mrf.mxu1  ;;  %v1308_v57 = vpop.f32.mrf.mxu3 }
 0x189   :  { %v1299_v42 = vadd.f32 %v2985_v52, %v1200_v24  ;;  %v1104_v59 = vadd.f32 %v1103_v29, %v1005_v46  ;;  %v1017_v46 = vadd.f32 %v2701_v14, %v2574_v48 }
 0x18b   :  { %v1400_v54 = vpop.f32.mrf.mxu0  ;;  %v1398_v12 = vadd.f32 %v1397_v55, %v1299_v42  ;;  %1142 = vmatmul.bf16.gmra.mxu1 %v1870_v26  ;;  %1241 = vmatmul.bf16.gmra.mxu2 %v1874_v27 }
 0x18d   :  { %v1462_v62 = vmax.f32 %v1398_v12, 0.0 }
 0x18e   :  { %2044 = vmatmul.msk.bf16.gmra.mxu0 %vm895_vm0, %v1882_v34  ;;  %v1202_v43 = vpop.f32.mrf.mxu2 }
 0x18f   :  { %1498 = vst [vmem:[%s3148_s3 + $0x88] sm:$0xff] %v1462_v62  ;;  %v1203_v16 = vadd.f32 %v1202_v43, %v1104_v59 }
 0x190   :  { %v1105_v25 = vpop.f32.mrf.mxu1  ;;  %v1311_v39 = vpop.f32.mrf.mxu3 }
 0x191   :  { %v1302_v52 = vadd.f32 %v2994_v51, %v1203_v16  ;;  %v1106_v30 = vadd.f32 %v1105_v25, %v1007_v37  ;;  %v1010_v51 = vadd.f32 %v2701_v14, %v2507_v18 }
 0x193   :  { %v1402_v63 = vpop.f32.mrf.mxu0  ;;  %v1401_v47 = vadd.f32 %v1400_v54, %v1302_v52 }
 0x195   :  { %v1463_v45 = vmax.f32 %v1401_v47, 0.0 }
 0x196   :  { %v1204_v0 = vpop.f32.mrf.mxu2 }
 0x197   :  { %1499 = vst [vmem:[%s3148_s3 + $0x90] sm:$0xff] %v1463_v45  ;;  %v1205_v1 = vadd.f32 %v1204_v0, %v1106_v30 }
 0x198   :  { %v1108_v20 = vpop.f32.mrf.mxu1  ;;  %v1313_v7 = vpop.f32.mrf.mxu3 }
 0x199   :  { %v1304_v11 = vadd.f32 %v1303_v23, %v1205_v1  ;;  %v1109_v5 = vadd.f32 %v1108_v20, %v1010_v51  ;;  %v1012_v23 = vadd.f32 %v2701_v14, %v2533_v28 }
 0x19b   :  { %v1405_v53 = vpop.f32.mrf.mxu0  ;;  %v1403_v3 = vadd.f32 %v1402_v63, %v1304_v11  ;;  %v1020_v63 = vadd.f32 %v2701_v14, %v2589_v58  ;;  %v1022_v11 = vadd.f32 %v2701_v14, %v2615_v4 }
 0x19d   :  { %v1464_v19 = vmax.f32 %v1403_v3, 0.0 }
 0x19e   :  { %v1207_v50 = vpop.f32.mrf.mxu2 }
 0x19f   :  { %1500 = vst [vmem:[%s3148_s3 + $0x98] sm:$0xff] %v1464_v19  ;;  %v1208_v10 = vadd.f32 %v1207_v50, %v1109_v5 }
 0x1a0   :  { %v1110_v55 = vpop.f32.mrf.mxu1  ;;  %v1316_v33 = vpop.f32.mrf.mxu3 }
 0x1a1   :  { %v1307_v35 = vadd.f32 %v1306_v44, %v1208_v10  ;;  %v1111_v31 = vadd.f32 %v1110_v55, %v1012_v23  ;;  %v1015_v44 = vadd.f32 %v2701_v14, %v2548_v38 }
 0x1a3   :  { %v1407_v40 = vpop.f32.mrf.mxu0  ;;  %v1406_v6 = vadd.f32 %v1405_v53, %v1307_v35 }
 0x1a5   :  { %v1465_v22 = vmax.f32 %v1406_v6, 0.0 }
 0x1a6   :  { %v1209_v18 = vpop.f32.mrf.mxu2 }
 0x1a7   :  { %1501 = vst [vmem:[%s3148_s3 + $0xa0] sm:$0xff] %v1465_v22  ;;  %v1210_v60 = vadd.f32 %v1209_v18, %v1111_v31 }
 0x1a8   :  { %v1113_v8 = vpop.f32.mrf.mxu1 }
 0x1a9   :  { %v1309_v17 = vadd.f32 %v1308_v57, %v1210_v60  ;;  %v1114_v27 = vadd.f32 %v1113_v8, %v1015_v44  ;;  %v1318_v57 = vpop.f32.mrf.mxu3  ;;  %v1027_v8 = vadd.f32 %v2701_v14, %v2654_v32 }
 0x1ab   :  { %v1410_v9 = vpop.f32.mrf.mxu0  ;;  %v1408_v24 = vadd.f32 %v1407_v40, %v1309_v17 }
 0x1ad   :  { %v1466_v26 = vmax.f32 %v1408_v24, 0.0 }
 0x1ae   :  { %v1212_v28 = vpop.f32.mrf.mxu2 }
 0x1af   :  { %1502 = vst [vmem:[%s3148_s3 + $0xa8] sm:$0xff] %v1466_v26  ;;  %v1213_v29 = vadd.f32 %v1212_v28, %v1114_v27  ;;  %v1030_v28 = vadd.f32 %v2701_v14, %v2667_v49 }
 0x1b0   :  { %v1115_v34 = vpop.f32.mrf.mxu1 }
 0x1b1   :  { %v1312_v42 = vadd.f32 %v1311_v39, %v1213_v29  ;;  %v1116_v59 = vadd.f32 %v1115_v34, %v1017_v46  ;;  %v1321_v30 = vpop.f32.mrf.mxu3 }
 0x1b3   :  { %v1412_v54 = vpop.f32.mrf.mxu0  ;;  %v1411_v12 = vadd.f32 %v1410_v9, %v1312_v42 }
 0x1b5   :  { %v1467_v62 = vmax.f32 %v1411_v12, 0.0 }
 0x1b6   :  { %v1214_v38 = vpop.f32.mrf.mxu2 }
 0x1b7   :  { %1503 = vst [vmem:[%s3148_s3 + $0xb0] sm:$0xff] %v1467_v62  ;;  %v1215_v43 = vadd.f32 %v1214_v38, %v1116_v59  ;;  %v1032_v59 = vadd.f32 %v2701_v14, %v2693_v2 }
 0x1b8   :  { %v1118_v16 = vpop.f32.mrf.mxu1 }
 0x1b9   :  { %v1314_v25 = vadd.f32 %v1313_v7, %v1215_v43  ;;  %v1119_v45 = vadd.f32 %v1118_v16, %v1020_v63  ;;  %v1323_v50 = vpop.f32.mrf.mxu3  ;;  %v1025_v7 = vadd.f32 %v2701_v14, %v2630_v15 }
 0x1bb   :  { %v1415_v52 = vpop.f32.mrf.mxu0  ;;  %v1413_v37 = vadd.f32 %v1412_v54, %v1314_v25 }
 0x1bd   :  { %v1468_v47 = vmax.f32 %v1413_v37, 0.0 }
 0x1be   :  { %v1217_v48 = vpop.f32.mrf.mxu2 }
 0x1bf   :  { %1504 = vst [vmem:[%s3148_s3 + $0xb8] sm:$0xff] %v1468_v47  ;;  %v1218_v0 = vadd.f32 %v1217_v48, %v1119_v45  ;;  %v1035_v45 = vadd.f32 %v2701_v14, %v2513_v21 }
 0x1c0   :  { %v1120_v39 = vpop.f32.mrf.mxu1 }
 0x1c1   :  { %v1317_v1 = vadd.f32 %v1316_v33, %v1218_v0  ;;  %v1121_v3 = vadd.f32 %v1120_v39, %v1022_v11  ;;  %v1326_v60 = vpop.f32.mrf.mxu3 }
 0x1c3   :  { %v1417_v20 = vpop.f32.mrf.mxu0  ;;  %v1416_v53 = vadd.f32 %v1415_v52, %v1317_v1 }
 0x1c5   :  { %v1469_v51 = vmax.f32 %v1416_v53, 0.0 }
 0x1c6   :  { %v1219_v58 = vpop.f32.mrf.mxu2 }
 0x1c7   :  { %1505 = vst [vmem:[%s3148_s3 + $0xc0] sm:$0xff] %v1469_v51  ;;  %v1220_v19 = vadd.f32 %v1219_v58, %v1121_v3  ;;  %v1037_v51 = vadd.f32 %v2701_v14, %v2545_v36 }
 0x1c8   :  { %v1123_v5 = vpop.f32.mrf.mxu1 }
 0x1c9   :  { %v1319_v10 = vadd.f32 %v1318_v57, %v1220_v19  ;;  %v1124_v23 = vadd.f32 %v1123_v5, %v1025_v7  ;;  %v1328_v34 = vpop.f32.mrf.mxu3  ;;  %v1040_v7 = vadd.f32 %v2701_v14, %v2554_v41 }
 0x1cb   :  { %v1420_v55 = vpop.f32.mrf.mxu0  ;;  %v1418_v35 = vadd.f32 %v1417_v20, %v1319_v10 }
 0x1cd   :  { %v1470_v40 = vmax.f32 %v1418_v35, 0.0 }
 0x1ce   :  { %v1222_v4 = vpop.f32.mrf.mxu2 }
 0x1cf   :  { %1506 = vst [vmem:[%s3148_s3 + $0xc8] sm:$0xff] %v1470_v40  ;;  %v1223_v6 = vadd.f32 %v1222_v4, %v1124_v23 }
 0x1d0   :  { %v1125_v22 = vpop.f32.mrf.mxu1 }
 0x1d1   :  { %v1322_v31 = vadd.f32 %v1321_v30, %v1223_v6  ;;  %v1126_v33 = vadd.f32 %v1125_v22, %v1027_v8  ;;  %v1331_v25 = vpop.f32.mrf.mxu3 }
 0x1d3   :  { %v1422_v18 = vpop.f32.mrf.mxu0  ;;  %v1421_v17 = vadd.f32 %v1420_v55, %v1322_v31 }
 0x1d5   :  { %v1471_v9 = vmax.f32 %v1421_v17, 0.0 }
 0x1d6   :  { %v1224_v15 = vpop.f32.mrf.mxu2 }
 0x1d7   :  { %1507 = vst [vmem:[%s3148_s3 + $0xd0] sm:$0xff] %v1471_v9  ;;  %v1225_v44 = vadd.f32 %v1224_v15, %v1126_v33 }
 0x1d8   :  { %v1128_v24 = vpop.f32.mrf.mxu1 }
 0x1d9   :  { %v1324_v26 = vadd.f32 %v1323_v50, %v1225_v44  ;;  %v1129_v54 = vadd.f32 %v1128_v24, %v1030_v28  ;;  %v1333_v20 = vpop.f32.mrf.mxu3 }
 0x1db   :  { %v1425_v27 = vpop.f32.mrf.mxu0  ;;  %v1423_v29 = vadd.f32 %v1422_v18, %v1324_v26  ;;  %v1042_v18 = vadd.f32 %v2701_v14, %v2586_v56  ;;  %v1045_v26 = vadd.f32 %v2701_v14, %v2595_v61 }
 0x1dd   :  { %v1472_v42 = vmax.f32 %v1423_v29, 0.0 }
 0x1de   :  { %v1227_v32 = vpop.f32.mrf.mxu2 }
 0x1df   :  { %1508 = vst [vmem:[%s3148_s3 + $0xd8] sm:$0xff] %v1472_v42  ;;  %v1228_v46 = vadd.f32 %v1227_v32, %v1129_v54 }
 0x1e0   :  { %v1130_v12 = vpop.f32.mrf.mxu1 }
 0x1e1   :  { %v1327_v57 = vadd.f32 %v1326_v60, %v1228_v46  ;;  %v1131_v16 = vadd.f32 %v1130_v12, %v1032_v59  ;;  %v1336_v55 = vpop.f32.mrf.mxu3  ;;  %v2200_v12 = vld [vmem:[#allocation4] ss:$0 sm:$0xff] }
 0x1e3   :  { %v1427_v62 = vpop.f32.mrf.mxu0  ;;  %v1426_v38 = vadd.f32 %v1425_v27, %v1327_v57  ;;  %v1047_v57 = vadd.f32 %v2200_v12, %v2627_v13 }
 0x1e5   :  { %v1473_v43 = vmax.f32 %v1426_v38, 0.0 }
 0x1e6   :  { %v1229_v49 = vpop.f32.mrf.mxu2 }
 0x1e7   :  { %1509 = vst [vmem:[%s3148_s3 + $0xe0] sm:$0xff] %v1473_v43  ;;  %v1230_v52 = vadd.f32 %v1229_v49, %v1131_v16 }
 0x1e8   :  { %v1133_v63 = vpop.f32.mrf.mxu1 }
 0x1e9   :  { %v1329_v37 = vadd.f32 %v1328_v34, %v1230_v52  ;;  %v1134_v0 = vadd.f32 %v1133_v63, %v1035_v45  ;;  %v1338_v8 = vpop.f32.mrf.mxu3 }
 0x1eb   :  { %v1430_v47 = vpop.f32.mrf.mxu0  ;;  %v1428_v48 = vadd.f32 %v1427_v62, %v1329_v37 }
 0x1ed   :  { %v1474_v30 = vmax.f32 %v1428_v48, 0.0 }
 0x1ee   :  { %v1232_v2 = vpop.f32.mrf.mxu2 }
 0x1ef   :  { %1510 = vst [vmem:[%s3148_s3 + $0xe8] sm:$0xff] %v1474_v30  ;;  %v1233_v39 = vadd.f32 %v1232_v2, %v1134_v0 }
 0x1f0   :  { %v1135_v1 = vpop.f32.mrf.mxu1 }
 0x1f1   :  { %v1332_v11 = vadd.f32 %v1331_v25, %v1233_v39  ;;  %v1136_v19 = vadd.f32 %v1135_v1, %v1037_v51  ;;  %v1341_v56 = vpop.f32.mrf.mxu3 }
 0x1f3   :  { %v1432_v53 = vpop.f32.mrf.mxu0  ;;  %v1431_v3 = vadd.f32 %v1430_v47, %v1332_v11 }
 0x1f5   :  { %v1475_v58 = vmax.f32 %v1431_v3, 0.0 }
 0x1f6   :  { %v1234_v21 = vpop.f32.mrf.mxu2 }
 0x1f7   :  { %1511 = vst [vmem:[%s3148_s3 + $0xf0] sm:$0xff] %v1475_v58  ;;  %v1235_v5 = vadd.f32 %v1234_v21, %v1136_v19 }
 0x1f8   :  { %v1138_v50 = vpop.f32.mrf.mxu1 }
 0x1f9   :  { %v1334_v10 = vadd.f32 %v1333_v20, %v1235_v5  ;;  %v1139_v4 = vadd.f32 %v1138_v50, %v1040_v7  ;;  %v1343_v43 = vpop.f32.mrf.mxu3 }
 0x1fb   :  { %v1433_v35 = vadd.f32 %v1432_v53, %v1334_v10  ;;  %v1435_v40 = vpop.f32.mrf.mxu0 }
 0x1fd   :  { %v1476_v23 = vmax.f32 %v1433_v35, 0.0 }
 0x1fe   :  { %v1237_v36 = vpop.f32.mrf.mxu2 }
 0x1ff   :  { %1512 = vst [vmem:[%s3148_s3 + $0xf8] sm:$0xff] %v1476_v23  ;;  %v1238_v6 = vadd.f32 %v1237_v36, %v1139_v4 }
 0x200   :  { %v1140_v22 = vpop.f32.mrf.mxu1 }
 0x201   :  { %v1337_v31 = vadd.f32 %v1336_v55, %v1238_v6  ;;  %v1141_v9 = vadd.f32 %v1140_v22, %v1042_v18 }
 0x203   :  { %v1436_v60 = vadd.f32 %v1435_v40, %v1337_v31  ;;  %v1437_v41 = vpop.f32.mrf.mxu0 }
 0x205   :  { %v1477_v17 = vmax.f32 %v1436_v60, 0.0 }
 0x206   :  { %v1239_v33 = vpop.f32.mrf.mxu2 }
 0x207   :  { %1513 = vst [vmem:[%s3148_s3 + $0x100] sm:$0xff] %v1477_v17  ;;  %v1240_v15 = vadd.f32 %v1239_v33, %v1141_v9 }
 0x208   :  { %v1143_v44 = vpop.f32.mrf.mxu1 }
 0x209   :  { %v1339_v24 = vadd.f32 %v1338_v8, %v1240_v15  ;;  %v1144_v29 = vadd.f32 %v1143_v44, %v1045_v26 }
 0x20b   :  { %v1438_v27 = vadd.f32 %v1437_v41, %v1339_v24  ;;  %v1440_v54 = vpop.f32.mrf.mxu0 }
 0x20d   :  { %v1478_v28 = vmax.f32 %v1438_v27, 0.0 }
 0x20e   :  { %v1242_v34 = vpop.f32.mrf.mxu2 }
 0x20f   :  { %1514 = vst [vmem:[%s3148_s3 + $0x108] sm:$0xff] %v1478_v28  ;;  %v1243_v42 = vadd.f32 %v1242_v34, %v1144_v29 }
 0x210   :  { %v1145_v46 = vpop.f32.mrf.mxu1 }
 0x211   :  { %v1342_v32 = vadd.f32 %v1341_v56, %v1243_v42  ;;  %v1146_v38 = vadd.f32 %v1145_v46, %v1047_v57 }
 0x213   :  { %v1441_v62 = vadd.f32 %v1440_v54, %v1342_v32  ;;  %v1442_v49 = vpop.f32.mrf.mxu0 }
 0x215   :  { %v1479_v59 = vmax.f32 %v1441_v62, 0.0 }
 0x216   :  { %v1244_v61 = vpop.f32.mrf.mxu2 }
 0x217   :  { %1515 = vst [vmem:[%s3148_s3 + $0x110] sm:$0xff] %v1479_v59  ;;  %v1245_v14 = vadd.f32 %v1244_v61, %v1146_v38 }
 0x219   :  { %v1344_v16 = vadd.f32 %v1343_v43, %v1245_v14 }
 0x21b   :  { %v1443_v25 = vadd.f32 %v1442_v49, %v1344_v16 }
 0x21d   :  { %v1480_v52 = vmax.f32 %v1443_v25, 0.0 }
 0x21f   :  { %1516 = vst [vmem:[%s3148_s3 + $0x118] sm:$0xff] %v1480_v52 }
 0x220   :  { %1521 = vsyncpa [#allocation3], 1 }
 0x221   :  { %1522 = vsyncpa [#allocation5], 1 }

// kernel: forward.8
= control target key start
LH: loop header
LB: loop body
LE: loop exit
PB: predicated region body
PF: predicated region fallthrough
CT: control target
= control target key end

     0   :  { %s1691_s1 = inlined_call_operand.vmem [shape: bf16[512,256], index: 1, kind: input, shape index: {}]   ;;  %s1692_s0 = inlined_call_operand.vmem [shape: bf16[56,512], index: 0, kind: input, shape index: {}]   ;;  %s1693_s2 = inlined_call_operand.vmem [shape: f32[1,256], index: 2, kind: input, shape index: {}]   ;;  %s1694_s3 = inlined_call_operand.vmem [shape: f32[56,256], index: 3, kind: output, shape index: {}]  }
   0x1   :  { %v854_v0 = vld [vmem:[%s1691_s1 + $0x70] sm:$0xf]  ;;  %v1079_v1 = vld [vmem:[%s1691_s1 + $0x74] sm:$0xf0]  ;;  %v846_v11 = vld [vmem:[%s1691_s1 + $0x60] sm:$0xf] }
   0x2   :  { %v918_v2 = vld [vmem:[%s1691_s1 + $0xf0] sm:$0xf]  ;;  %v855_v3 = vor.u32 %v1079_v1, %v854_v0  ;;  %v1095_v4 = vld [vmem:[%s1691_s1 + $0xf4] sm:$0xf0]  ;;  %v1077_v13 = vld [vmem:[%s1691_s1 + $0x64] sm:$0xf0] }
   0x3   :  { %v982_v5 = vld [vmem:[%s1691_s1 + $0x170] sm:$0xf]  ;;  %v1111_v6 = vld [vmem:[%s1691_s1 + $0x174] sm:$0xf0]  ;;  %v919_v7 = vor.u32 %v1095_v4, %v918_v2  ;;  %v910_v14 = vld [vmem:[%s1691_s1 + $0xe0] sm:$0xf]  ;;  %v847_v16 = vor.u32 %v1077_v13, %v846_v11 }
   0x4   :  { %v983_v8 = vor.u32 %v1111_v6, %v982_v5  ;;  %v1046_v9 = vld [vmem:[%s1691_s1 + $0x1f0] sm:$0xf]  ;;  %v1127_v10 = vld [vmem:[%s1691_s1 + $0x1f4] sm:$0xf0]  ;;  %492 = vmatpush.bf16.msra.mxu0 %v855_v3  ;;  %v1093_v15 = vld [vmem:[%s1691_s1 + $0xe4] sm:$0xf0] }
   0x5   :  { %v1047_v12 = vor.u32 %v1127_v10, %v1046_v9  ;;  %520 = vmatpush.bf16.msra.mxu1 %v919_v7  ;;  %v911_v17 = vor.u32 %v1093_v15, %v910_v14  ;;  %v974_v18 = vld [vmem:[%s1691_s1 + $0x160] sm:$0xf]  ;;  %v1109_v19 = vld [vmem:[%s1691_s1 + $0x164] sm:$0xf0]  ;;  %v838_v23 = vld [vmem:[%s1691_s1 + $0x50] sm:$0xf] }
   0x6   :  { %548 = vmatpush.bf16.msra.mxu2 %v983_v8  ;;  %v1038_v20 = vld [vmem:[%s1691_s1 + $0x1e0] sm:$0xf]  ;;  %v975_v21 = vor.u32 %v1109_v19, %v974_v18  ;;  %v1125_v22 = vld [vmem:[%s1691_s1 + $0x1e4] sm:$0xf0]  ;;  %v1075_v24 = vld [vmem:[%s1691_s1 + $0x54] sm:$0xf0] }
   0x7   :  { %576 = vmatpush.bf16.msra.mxu3 %v1047_v12  ;;  %v1039_v25 = vor.u32 %v1125_v22, %v1038_v20  ;;  %v902_v26 = vld [vmem:[%s1691_s1 + $0xd0] sm:$0xf]  ;;  %v1091_v27 = vld [vmem:[%s1691_s1 + $0xd4] sm:$0xf0]  ;;  %v839_v29 = vor.u32 %v1075_v24, %v838_v23  ;;  %v830_v35 = vld [vmem:[%s1691_s1 + $0x40] sm:$0xf] }
   0x8   :  { %v966_v28 = vld [vmem:[%s1691_s1 + $0x150] sm:$0xf]  ;;  %493 = vmatpush.bf16.msra.mxu0 %v847_v16  ;;  %v1107_v30 = vld [vmem:[%s1691_s1 + $0x154] sm:$0xf0]  ;;  %v903_v33 = vor.u32 %v1091_v27, %v902_v26  ;;  %v1073_v36 = vld [vmem:[%s1691_s1 + $0x44] sm:$0xf0] }
   0x9   :  { %v1030_v31 = vld [vmem:[%s1691_s1 + $0x1d0] sm:$0xf]  ;;  %v1123_v32 = vld [vmem:[%s1691_s1 + $0x1d4] sm:$0xf0]  ;;  %521 = vmatpush.bf16.msra.mxu1 %v911_v17  ;;  %v967_v34 = vor.u32 %v1107_v30, %v966_v28  ;;  %v894_v37 = vld [vmem:[%s1691_s1 + $0xc0] sm:$0xf]  ;;  %v831_v44 = vor.u32 %v1073_v36, %v830_v35 }
   0xa   :  { %549 = vmatpush.bf16.msra.mxu2 %v975_v21  ;;  %v1031_v38 = vor.u32 %v1123_v32, %v1030_v31  ;;  %v1089_v39 = vld [vmem:[%s1691_s1 + $0xc4] sm:$0xf0]  ;;  %v958_v40 = vld [vmem:[%s1691_s1 + $0x140] sm:$0xf]  ;;  %v822_v47 = vld [vmem:[%s1691_s1 + $0x30] sm:$0xf] }
   0xb   :  { %577 = vmatpush.bf16.msra.mxu3 %v1039_v25  ;;  %v1105_v41 = vld [vmem:[%s1691_s1 + $0x144] sm:$0xf0]  ;;  %v1022_v42 = vld [vmem:[%s1691_s1 + $0x1c0] sm:$0xf]  ;;  %v895_v45 = vor.u32 %v1089_v39, %v894_v37  ;;  %v1071_v48 = vld [vmem:[%s1691_s1 + $0x34] sm:$0xf0] }
   0xc   :  { %v1121_v43 = vld [vmem:[%s1691_s1 + $0x1c4] sm:$0xf0]  ;;  %494 = vmatpush.bf16.msra.mxu0 %v839_v29  ;;  %v959_v46 = vor.u32 %v1105_v41, %v958_v40  ;;  %v886_v49 = vld [vmem:[%s1691_s1 + $0xb0] sm:$0xf]  ;;  %v1087_v51 = vld [vmem:[%s1691_s1 + $0xb4] sm:$0xf0]  ;;  %v823_v56 = vor.u32 %v1071_v48, %v822_v47 }
   0xd   :  { %522 = vmatpush.bf16.msra.mxu1 %v903_v33  ;;  %v1023_v50 = vor.u32 %v1121_v43, %v1022_v42  ;;  %v950_v52 = vld [vmem:[%s1691_s1 + $0x130] sm:$0xf]  ;;  %v1103_v53 = vld [vmem:[%s1691_s1 + $0x134] sm:$0xf0]  ;;  %v887_v57 = vor.u32 %v1087_v51, %v886_v49  ;;  %v814_v59 = vld [vmem:[%s1691_s1 + $0x20] sm:$0xf] }
   0xe   :  { %550 = vmatpush.bf16.msra.mxu2 %v967_v34  ;;  %v1014_v54 = vld [vmem:[%s1691_s1 + $0x1b0] sm:$0xf]  ;;  %v1119_v55 = vld [vmem:[%s1691_s1 + $0x1b4] sm:$0xf0]  ;;  %v951_v58 = vor.u32 %v1103_v53, %v950_v52  ;;  %v1069_v60 = vld [vmem:[%s1691_s1 + $0x24] sm:$0xf0] }
   0xf   :  { %578 = vmatpush.bf16.msra.mxu3 %v1031_v38  ;;  %v878_v61 = vld [vmem:[%s1691_s1 + $0xa0] sm:$0xf]  ;;  %v1015_v62 = vor.u32 %v1119_v55, %v1014_v54  ;;  %v1085_v63 = vld [vmem:[%s1691_s1 + $0xa4] sm:$0xf0]  ;;  %v815_v4 = vor.u32 %v1069_v60, %v814_v59  ;;  %v806_v7 = vld [vmem:[%s1691_s1 + $0x10] sm:$0xf] }
  0x10   :  { %495 = vmatpush.bf16.msra.mxu0 %v831_v44  ;;  %v942_v0 = vld [vmem:[%s1691_s1 + $0x120] sm:$0xf]  ;;  %v1101_v1 = vld [vmem:[%s1691_s1 + $0x124] sm:$0xf0]  ;;  %v879_v5 = vor.u32 %v1085_v63, %v878_v61  ;;  %v1067_v8 = vld [vmem:[%s1691_s1 + $0x14] sm:$0xf0] }
  0x11   :  { %523 = vmatpush.bf16.msra.mxu1 %v895_v45  ;;  %v1006_v2 = vld [vmem:[%s1691_s1 + $0x1a0] sm:$0xf]  ;;  %v1117_v3 = vld [vmem:[%s1691_s1 + $0x1a4] sm:$0xf0]  ;;  %v943_v6 = vor.u32 %v1101_v1, %v942_v0  ;;  %v870_v9 = vld [vmem:[%s1691_s1 + $0x90] sm:$0xf]  ;;  %v807_v17 = vor.u32 %v1067_v8, %v806_v7 }
  0x12   :  { %551 = vmatpush.bf16.msra.mxu2 %v959_v46  ;;  %v1007_v10 = vor.u32 %v1117_v3, %v1006_v2  ;;  %v1083_v11 = vld [vmem:[%s1691_s1 + $0x94] sm:$0xf0]  ;;  %v934_v12 = vld [vmem:[%s1691_s1 + $0x110] sm:$0xf]  ;;  %v798_v16 = vld [vmem:[%s1691_s1] sm:$0xf] }
  0x13   :  { %579 = vmatpush.bf16.msra.mxu3 %v1023_v50  ;;  %v1099_v13 = vld [vmem:[%s1691_s1 + $0x114] sm:$0xf0]  ;;  %v998_v14 = vld [vmem:[%s1691_s1 + $0x190] sm:$0xf]  ;;  %v1065_v18 = vld [vmem:[%s1691_s1 + $0x4] sm:$0xf0]  ;;  %v871_v21 = vor.u32 %v1083_v11, %v870_v9 }
  0x14   :  { %496 = vmatpush.bf16.msra.mxu0 %v823_v56  ;;  %v1115_v15 = vld [vmem:[%s1691_s1 + $0x194] sm:$0xf0]  ;;  %v862_v19 = vld [vmem:[%s1691_s1 + $0x80] sm:$0xf]  ;;  %v1081_v20 = vld [vmem:[%s1691_s1 + $0x84] sm:$0xf0]  ;;  %v935_v22 = vor.u32 %v1099_v13, %v934_v12  ;;  %v799_v34 = vor.u32 %v1065_v18, %v798_v16 }
  0x15   :  { %524 = vmatpush.bf16.msra.mxu1 %v887_v57  ;;  %v926_v23 = vld [vmem:[%s1691_s1 + $0x100] sm:$0xf]  ;;  %v1097_v24 = vld [vmem:[%s1691_s1 + $0x104] sm:$0xf0]  ;;  %v999_v26 = vor.u32 %v1115_v15, %v998_v14  ;;  %v1054_v29 = vld [vmem:[%s1692_s0 + $0xc] sm:$0xf0]  ;;  %v863_v38 = vor.u32 %v1081_v20, %v862_v19 }
  0x16   :  { %552 = vmatpush.bf16.msra.mxu2 %v951_v58  ;;  %v990_v25 = vld [vmem:[%s1691_s1 + $0x180] sm:$0xf]  ;;  %v1113_v27 = vld [vmem:[%s1691_s1 + $0x184] sm:$0xf0]  ;;  %v1052_v30 = vld [vmem:[%s1692_s0 + $0x4] sm:$0xf]  ;;  %v927_v39 = vor.u32 %v1097_v24, %v926_v23 }
  0x17   :  { %580 = vmatpush.bf16.msra.mxu3 %v1015_v62  ;;  %v750_v28 = vld [vmem:[%s1692_s0] sm:$0xf]  ;;  %v752_v31 = vld [vmem:[%s1692_s0 + $0x10] sm:$0xf0]  ;;  %v984_v33 = vld [vmem:[%s1691_s1 + $0x178] sm:$0xf0]  ;;  %v991_v43 = vor.u32 %v1113_v27, %v990_v25 }
  0x18   :  { %497 = vmatpush.bf16.msra.mxu0 %v815_v4  ;;  %v1110_v32 = vld [vmem:[%s1691_s1 + $0x174] sm:$0xf]  ;;  %v758_v35 = vld [vmem:[%s1692_s0 + $0x8] sm:$0xf]  ;;  %v1048_v37 = vld [vmem:[%s1691_s1 + $0x1f8] sm:$0xf0]  ;;  %v1385_v48 = vor.u32 %v1054_v29, %v750_v28  ;;  %v1396_v53 = vor.u32 %v1052_v30, %v752_v31 }
  0x19   :  { %525 = vmatpush.bf16.msra.mxu1 %v879_v5  ;;  %v1126_v36 = vld [vmem:[%s1691_s1 + $0x1f4] sm:$0xf]  ;;  %v1055_v40 = vld [vmem:[%s1692_s0 + $0x14] sm:$0xf0]  ;;  %v1053_v41 = vld [vmem:[%s1692_s0 + $0xc] sm:$0xf]  ;;  %v987_v44 = vor.u32 %v1110_v32, %v984_v33 }
  0x1a   :  { %553 = vmatpush.bf16.msra.mxu2 %v943_v6  ;;  %v760_v42 = vld [vmem:[%s1692_s0 + $0x18] sm:$0xf0]  ;;  %v1078_v45 = vld [vmem:[%s1691_s1 + $0x74] sm:$0xf]  ;;  %v1051_v49 = vor.u32 %v1126_v36, %v1048_v37  ;;  %v1108_v51 = vld [vmem:[%s1691_s1 + $0x164] sm:$0xf]  ;;  %v1398_v54 = vor.u32 %v1055_v40, %v758_v35 }
  0x1b   :  { %581 = vmatpush.bf16.msra.mxu3 %v1007_v10  ;;  %v856_v46 = vld [vmem:[%s1691_s1 + $0x78] sm:$0xf0]  ;;  %v1094_v47 = vld [vmem:[%s1691_s1 + $0xf4] sm:$0xf]  ;;  %v976_v52 = vld [vmem:[%s1691_s1 + $0x168] sm:$0xf0]  ;;  %v1406_v57 = vor.u32 %v1053_v41, %v760_v42 }
  0x1c   :  { %498 = vmatpush.bf16.msra.mxu0 %v807_v17  ;;  %v920_v50 = vld [vmem:[%s1691_s1 + $0xf8] sm:$0xf0]  ;;  %v1124_v55 = vld [vmem:[%s1691_s1 + $0x1e4] sm:$0xf]  ;;  %v1040_v56 = vld [vmem:[%s1691_s1 + $0x1e8] sm:$0xf0]  ;;  %v859_v58 = vor.u32 %v1078_v45, %v856_v46  ;;  %v979_v60 = vor.u32 %v1108_v51, %v976_v52 }
  0x1d   :  { %526 = vmatpush.bf16.msra.mxu1 %v871_v21  ;;  %v923_v59 = vor.u32 %v1094_v47, %v920_v50  ;;  %v1076_v61 = vld [vmem:[%s1691_s1 + $0x64] sm:$0xf]  ;;  %v848_v62 = vld [vmem:[%s1691_s1 + $0x68] sm:$0xf0]  ;;  %v1043_v0 = vor.u32 %v1124_v55, %v1040_v56  ;;  %v1106_v2 = vld [vmem:[%s1691_s1 + $0x154] sm:$0xf] }
  0x1e   :  { %554 = vmatpush.bf16.msra.mxu2 %v935_v22  ;;  %v1092_v63 = vld [vmem:[%s1691_s1 + $0xe4] sm:$0xf]  ;;  %v912_v1 = vld [vmem:[%s1691_s1 + $0xe8] sm:$0xf0]  ;;  %v968_v3 = vld [vmem:[%s1691_s1 + $0x158] sm:$0xf0]  ;;  %v851_v6 = vor.u32 %v1076_v61, %v848_v62 }
  0x1f   :  { %582 = vmatpush.bf16.msra.mxu3 %v999_v26  ;;  %v1122_v4 = vld [vmem:[%s1691_s1 + $0x1d4] sm:$0xf]  ;;  %v1032_v5 = vld [vmem:[%s1691_s1 + $0x1d8] sm:$0xf0]  ;;  %v915_v7 = vor.u32 %v1092_v63, %v912_v1  ;;  %v971_v8 = vor.u32 %v1106_v2, %v968_v3  ;;  %v1104_v14 = vld [vmem:[%s1691_s1 + $0x144] sm:$0xf] }
  0x20   :  { %499 = vmatpush.bf16.msra.mxu0 %v799_v34  ;;  %v1074_v9 = vld [vmem:[%s1691_s1 + $0x54] sm:$0xf]  ;;  %v840_v10 = vld [vmem:[%s1691_s1 + $0x58] sm:$0xf0]  ;;  %v1035_v12 = vor.u32 %v1122_v4, %v1032_v5  ;;  %v960_v15 = vld [vmem:[%s1691_s1 + $0x148] sm:$0xf0] }
  0x21   :  { %527 = vmatpush.bf16.msra.mxu1 %v863_v38  ;;  %v1090_v11 = vld [vmem:[%s1691_s1 + $0xd4] sm:$0xf]  ;;  %v904_v13 = vld [vmem:[%s1691_s1 + $0xd8] sm:$0xf0]  ;;  %v1120_v16 = vld [vmem:[%s1691_s1 + $0x1c4] sm:$0xf]  ;;  %v843_v18 = vor.u32 %v1074_v9, %v840_v10  ;;  %v963_v22 = vor.u32 %v1104_v14, %v960_v15 }
  0x22   :  { %555 = vmatpush.bf16.msra.mxu2 %v927_v39  ;;  %v1024_v17 = vld [vmem:[%s1691_s1 + $0x1c8] sm:$0xf0]  ;;  %v766_v19 = vld [vmem:[%s1692_s0 + $0x20] sm:$0xf]  ;;  %v1058_v20 = vld [vmem:[%s1692_s0 + $0x2c] sm:$0xf0]  ;;  %v907_v21 = vor.u32 %v1090_v11, %v904_v13 }
  0x23   :  { %583 = vmatpush.bf16.msra.mxu3 %v991_v43  ;;  %500 = vmatmul.bf16.vlgmr.msra.gmra.mxu0 %v1385_v48  ;;  %v1072_v23 = vld [vmem:[%s1691_s1 + $0x44] sm:$0xf]  ;;  %v832_v24 = vld [vmem:[%s1691_s1 + $0x48] sm:$0xf0]  ;;  %v768_v27 = vld [vmem:[%s1692_s0 + $0x30] sm:$0xf0]  ;;  %v1027_v28 = vor.u32 %v1120_v16, %v1024_v17 }
  0x24   :  { %528 = vmatmul.bf16.vlgmr.msra.gmra.mxu1 %v1396_v53  ;;  %604 = vmatpush.bf16.msrb.mxu0 %v859_v58  ;;  %v1088_v25 = vld [vmem:[%s1691_s1 + $0xc4] sm:$0xf]  ;;  %v896_v29 = vld [vmem:[%s1691_s1 + $0xc8] sm:$0xf0]  ;;  %v1102_v30 = vld [vmem:[%s1691_s1 + $0x134] sm:$0xf]  ;;  %v835_v38 = vor.u32 %v1072_v23, %v832_v24 }
  0x25   :  { %556 = vmatmul.bf16.vlgmr.msra.gmra.mxu2 %v1398_v54  ;;  %632 = vmatpush.bf16.msrb.mxu1 %v923_v59  ;;  %v1056_v26 = vld [vmem:[%s1692_s0 + $0x24] sm:$0xf]  ;;  %v952_v31 = vld [vmem:[%s1691_s1 + $0x138] sm:$0xf0]  ;;  %v774_v32 = vld [vmem:[%s1692_s0 + $0x28] sm:$0xf]  ;;  %v899_v39 = vor.u32 %v1088_v25, %v896_v29 }
  0x26   :  { %660 = vmatpush.bf16.msrb.mxu2 %v987_v44  ;;  %584 = vmatmul.bf16.vlgmr.msra.gmra.mxu3 %v1406_v57  ;;  %v1118_v33 = vld [vmem:[%s1691_s1 + $0x1b4] sm:$0xf]  ;;  %v1016_v34 = vld [vmem:[%s1691_s1 + $0x1b8] sm:$0xf0]  ;;  %v1059_v35 = vld [vmem:[%s1692_s0 + $0x34] sm:$0xf0]  ;;  %v955_v40 = vor.u32 %v1102_v30, %v952_v31  ;;  %v1517_v44 = vor.u32 %v1058_v20, %v766_v19  ;;  %v1528_v50 = vor.u32 %v1056_v26, %v768_v27 }
  0x27   :  { %688 = vmatpush.bf16.msrb.mxu3 %v1051_v49  ;;  %v1057_v36 = vld [vmem:[%s1692_s0 + $0x2c] sm:$0xf]  ;;  %v776_v37 = vld [vmem:[%s1692_s0 + $0x38] sm:$0xf0]  ;;  %v1070_v41 = vld [vmem:[%s1691_s1 + $0x34] sm:$0xf]  ;;  %v1019_v45 = vor.u32 %v1118_v33, %v1016_v34  ;;  %v1530_v51 = vor.u32 %v1059_v35, %v774_v32 }
  0x28   :  { %605 = vmatpush.bf16.msrb.mxu0 %v851_v6  ;;  %v824_v42 = vld [vmem:[%s1691_s1 + $0x38] sm:$0xf0]  ;;  %v1086_v43 = vld [vmem:[%s1691_s1 + $0xb4] sm:$0xf]  ;;  %v1100_v47 = vld [vmem:[%s1691_s1 + $0x124] sm:$0xf]  ;;  %v1538_v56 = vor.u32 %v1057_v36, %v776_v37 }
  0x29   :  { %633 = vmatpush.bf16.msrb.mxu1 %v915_v7  ;;  %v888_v46 = vld [vmem:[%s1691_s1 + $0xb8] sm:$0xf0]  ;;  %v944_v49 = vld [vmem:[%s1691_s1 + $0x128] sm:$0xf0]  ;;  %v1116_v52 = vld [vmem:[%s1691_s1 + $0x1a4] sm:$0xf]  ;;  %v827_v58 = vor.u32 %v1070_v41, %v824_v42 }
  0x2a   :  { %661 = vmatpush.bf16.msrb.mxu2 %v979_v60  ;;  %v1008_v55 = vld [vmem:[%s1691_s1 + $0x1a8] sm:$0xf0]  ;;  %v891_v59 = vor.u32 %v1086_v43, %v888_v46  ;;  %v947_v60 = vor.u32 %v1100_v47, %v944_v49  ;;  %v1068_v61 = vld [vmem:[%s1691_s1 + $0x24] sm:$0xf]  ;;  %v1098_v3 = vld [vmem:[%s1691_s1 + $0x114] sm:$0xf] }
  0x2b   :  { %689 = vmatpush.bf16.msrb.mxu3 %v1043_v0  ;;  %v816_v62 = vld [vmem:[%s1691_s1 + $0x28] sm:$0xf0]  ;;  %v1011_v63 = vor.u32 %v1116_v52, %v1008_v55  ;;  %v1084_v0 = vld [vmem:[%s1691_s1 + $0xa4] sm:$0xf]  ;;  %v936_v4 = vld [vmem:[%s1691_s1 + $0x118] sm:$0xf0] }
  0x2c   :  { %606 = vmatpush.bf16.msrb.mxu0 %v843_v18  ;;  %v880_v1 = vld [vmem:[%s1691_s1 + $0xa8] sm:$0xf0]  ;;  %v819_v2 = vor.u32 %v1068_v61, %v816_v62  ;;  %v1114_v5 = vld [vmem:[%s1691_s1 + $0x194] sm:$0xf]  ;;  %v939_v7 = vor.u32 %v1098_v3, %v936_v4  ;;  %v808_v10 = vld [vmem:[%s1691_s1 + $0x18] sm:$0xf0] }
  0x2d   :  { %634 = vmatpush.bf16.msrb.mxu1 %v907_v21  ;;  %v883_v6 = vor.u32 %v1084_v0, %v880_v1  ;;  %v1066_v9 = vld [vmem:[%s1691_s1 + $0x14] sm:$0xf]  ;;  %v872_v13 = vld [vmem:[%s1691_s1 + $0x98] sm:$0xf0]  ;;  %v1096_v14 = vld [vmem:[%s1691_s1 + $0x104] sm:$0xf] }
  0x2e   :  { %662 = vmatpush.bf16.msrb.mxu2 %v971_v8  ;;  %v1000_v8 = vld [vmem:[%s1691_s1 + $0x198] sm:$0xf0]  ;;  %v928_v15 = vld [vmem:[%s1691_s1 + $0x108] sm:$0xf0]  ;;  %v1112_v16 = vld [vmem:[%s1691_s1 + $0x184] sm:$0xf]  ;;  %v811_v18 = vor.u32 %v1066_v9, %v808_v10 }
  0x2f   :  { %690 = vmatpush.bf16.msrb.mxu3 %v1035_v12  ;;  %v1003_v11 = vor.u32 %v1114_v5, %v1000_v8  ;;  %v1082_v12 = vld [vmem:[%s1691_s1 + $0x94] sm:$0xf]  ;;  %v992_v17 = vld [vmem:[%s1691_s1 + $0x188] sm:$0xf0]  ;;  %v931_v20 = vor.u32 %v1096_v14, %v928_v15  ;;  %v1064_v21 = vld [vmem:[%s1691_s1 + $0x4] sm:$0xf] }
  0x30   :  { %607 = vmatpush.bf16.msrb.mxu0 %v835_v38  ;;  %v875_v19 = vor.u32 %v1082_v12, %v872_v13  ;;  %v995_v23 = vor.u32 %v1112_v16, %v992_v17  ;;  %v1080_v24 = vld [vmem:[%s1691_s1 + $0x84] sm:$0xf]  ;;  %v864_v25 = vld [vmem:[%s1691_s1 + $0x88] sm:$0xf0]  ;;  %v782_v26 = vld [vmem:[%s1692_s0 + $0x40] sm:$0xf] }
  0x31   :  { %635 = vmatpush.bf16.msrb.mxu1 %v899_v39  ;;  %v1062_v27 = vld [vmem:[%s1692_s0 + $0x4c] sm:$0xf0]  ;;  %v784_v29 = vld [vmem:[%s1692_s0 + $0x50] sm:$0xf0]  ;;  %v790_v30 = vld [vmem:[%s1692_s0 + $0x48] sm:$0xf]  ;;  %v867_v35 = vor.u32 %v1080_v24, %v864_v25 }
  0x32   :  { %663 = vmatpush.bf16.msrb.mxu2 %v963_v22  ;;  %v800_v22 = vld [vmem:[%s1691_s1 + $0x8] sm:$0xf0]  ;;  %v1063_v31 = vld [vmem:[%s1692_s0 + $0x54] sm:$0xf0]  ;;  %v792_v34 = vld [vmem:[%s1692_s0 + $0x58] sm:$0xf0]  ;;  %v783_v36 = vor.u32 %v1062_v27, %v782_v26 }
  0x33   :  { %691 = vmatpush.bf16.msrb.mxu3 %v1027_v28  ;;  %505 = vmatmul.bf16.gmra.mxu0 %v1517_v44  ;;  %v1060_v28 = vld [vmem:[%s1692_s0 + $0x44] sm:$0xf]  ;;  %v803_v32 = vor.u32 %v1064_v21, %v800_v22  ;;  %v1061_v33 = vld [vmem:[%s1692_s0 + $0x4c] sm:$0xf]  ;;  %v791_v38 = vor.u32 %v1063_v31, %v790_v30 }
  0x34   :  { %533 = vmatmul.bf16.gmra.mxu1 %v1528_v50  ;;  %608 = vmatpush.bf16.msrb.mxu0 %v827_v58  ;;  %v787_v37 = vor.u32 %v1060_v28, %v784_v29  ;;  %v795_v39 = vor.u32 %v1061_v33, %v792_v34  ;;  %v27_v41 = vld [vmem:[%s1692_s0 + $0x68] sm:$0xff] }
  0x35   :  { %561 = vmatmul.bf16.gmra.mxu2 %v1530_v51  ;;  %636 = vmatpush.bf16.msrb.mxu1 %v891_v59  ;;  %v139_v46 = vunpack.c.h.b16 %v27_v41 }
  0x36   :  { %664 = vmatpush.bf16.msrb.mxu2 %v955_v40  ;;  %589 = vmatmul.bf16.gmra.mxu3 %v1538_v56  ;;  %v26_v40 = vld [vmem:[%s1692_s0 + $0x60] sm:$0xff] }
  0x37   :  { %692 = vmatpush.bf16.msrb.mxu3 %v1019_v45  ;;  %v136_v42 = vunpack.c.l.b16 %v26_v40  ;;  %v137_v43 = vunpack.c.h.b16 %v26_v40  ;;  %v138_v45 = vunpack.c.l.b16 %v27_v41  ;;  %v155_v55 = vpack.c.b16 %v139_v46, %v139_v46 }
  0x38   :  { %609 = vmatpush.bf16.msrb.mxu0 %v819_v2 }
  0x39   :  { %637 = vmatpush.bf16.msrb.mxu1 %v883_v6  ;;  %v152_v47 = vpack.c.b16 %v136_v42, %v136_v42  ;;  %v153_v49 = vpack.c.b16 %v137_v43, %v137_v43  ;;  %v154_v52 = vpack.c.b16 %v138_v45, %v138_v45 }
  0x3a   :  { %665 = vmatpush.bf16.msrb.mxu2 %v947_v60 }
  0x3b   :  { %693 = vmatpush.bf16.msrb.mxu3 %v1011_v63 }
  0x3c   :  { %610 = vmatpush.bf16.msrb.mxu0 %v811_v18 }
  0x3d   :  { %638 = vmatpush.bf16.msrb.mxu1 %v875_v19 }
  0x3e   :  { %666 = vmatpush.bf16.msrb.mxu2 %v939_v7 }
  0x3f   :  { %694 = vmatpush.bf16.msrb.mxu3 %v1003_v11 }
  0x40   :  { %611 = vmatpush.bf16.msrb.mxu0 %v803_v32 }
  0x41   :  { %639 = vmatpush.bf16.msrb.mxu1 %v867_v35 }
  0x42   :  { %667 = vmatpush.bf16.msrb.mxu2 %v931_v20 }
  0x43   :  { %695 = vmatpush.bf16.msrb.mxu3 %v995_v23  ;;  %510 = vmatmul.bf16.gmra.mxu0 %v783_v36 }
  0x44   :  { %538 = vmatmul.bf16.gmra.mxu1 %v787_v37 }
  0x45   :  { %566 = vmatmul.bf16.gmra.mxu2 %v791_v38 }
  0x46   :  { %594 = vmatmul.bf16.gmra.mxu3 %v795_v39 }
  0x53   :  { %515 = vmatmul.bf16.gmra.mxu0 %v152_v47 }
  0x54   :  { %543 = vmatmul.bf16.gmra.mxu1 %v153_v49 }
  0x55   :  { %571 = vmatmul.bf16.gmra.mxu2 %v154_v52 }
  0x56   :  { %599 = vmatmul.bf16.gmra.mxu3 %v155_v55 }
  0x63   :  { %612 = vmatmul.bf16.vlgmr.msrb.gmra.mxu0 %v1385_v48  ;;  %v1645_v48 = vld [vmem:[%s1693_s2] sm:$0x3] }
  0x64   :  { %640 = vmatmul.bf16.vlgmr.msrb.gmra.mxu1 %v1396_v53  ;;  %v94_v53 = vperm.slane %v1645_v48, 0 }
  0x65   :  { %668 = vmatmul.bf16.vlgmr.msrb.gmra.mxu2 %v1398_v54 }
  0x66   :  { %696 = vmatmul.bf16.vlgmr.msrb.gmra.mxu3 %v1406_v57 }
  0x73   :  { %617 = vmatmul.bf16.gmra.mxu0 %v1517_v44 }
  0x74   :  { %645 = vmatmul.bf16.gmra.mxu1 %v1528_v50 }
  0x75   :  { %673 = vmatmul.bf16.gmra.mxu2 %v1530_v51 }
  0x76   :  { %701 = vmatmul.bf16.gmra.mxu3 %v1538_v56 }
  0x83   :  { %622 = vmatmul.bf16.gmra.mxu0 %v783_v36 }
  0x84   :  { %650 = vmatmul.bf16.gmra.mxu1 %v787_v37 }
  0x85   :  { %678 = vmatmul.bf16.gmra.mxu2 %v791_v38 }
  0x86   :  { %706 = vmatmul.bf16.gmra.mxu3 %v795_v39 }
  0x93   :  { %627 = vmatmul.bf16.gmra.mxu0 %v152_v47 }
  0x94   :  { %655 = vmatmul.bf16.gmra.mxu1 %v153_v49 }
  0x95   :  { %683 = vmatmul.bf16.gmra.mxu2 %v154_v52 }
  0x96   :  { %711 = vmatmul.bf16.gmra.mxu3 %v155_v55 }
  0xa0   :  { %v501_v54 = vpop.f32.mrf.mxu0 }
  0xa1   :  { %v502_v57 = vadd.f32 %v501_v54, %v94_v53  ;;  %v529_v44 = vpop.f32.mrf.mxu1 }
  0xa3   :  { %v530_v50 = vadd.f32 %v529_v44, %v502_v57 }
  0xa8   :  { %v557_v51 = vpop.f32.mrf.mxu2  ;;  %v503_v59 = vpop.f32.mrf.mxu0 }
  0xa9   :  { %v558_v56 = vadd.f32 %v557_v51, %v530_v50  ;;  %v585_v58 = vpop.f32.mrf.mxu3  ;;  %v531_v60 = vpop.f32.mrf.mxu1  ;;  %v504_v62 = vadd.f32 %v503_v59, %v94_v53  ;;  %v95_v50 = vperm.slane %v1645_v48, 1 }
  0xab   :  { %v586_v61 = vadd.f32 %v585_v58, %v558_v56  ;;  %v532_v0 = vadd.f32 %v531_v60, %v504_v62 }
  0xad   :  { %v716_v63 = vmax.f32 %v586_v61, 0.0 }
  0xaf   :  { %730 = vst [vmem:[%s1694_s3] sm:$0xff] %v716_v63 }
  0xb0   :  { %v559_v1 = vpop.f32.mrf.mxu2  ;;  %v506_v4 = vpop.f32.mrf.mxu0 }
  0xb1   :  { %v560_v2 = vadd.f32 %v559_v1, %v532_v0  ;;  %v587_v3 = vpop.f32.mrf.mxu3  ;;  %v507_v5 = vadd.f32 %v506_v4, %v94_v53  ;;  %v534_v6 = vpop.f32.mrf.mxu1 }
  0xb3   :  { %v588_v7 = vadd.f32 %v587_v3, %v560_v2  ;;  %v535_v9 = vadd.f32 %v534_v6, %v507_v5 }
  0xb5   :  { %v718_v8 = vmax.f32 %v588_v7, 0.0 }
  0xb7   :  { %732 = vst [vmem:[%s1694_s3 + $0x10] sm:$0xff] %v718_v8 }
  0xb8   :  { %v562_v10 = vpop.f32.mrf.mxu2  ;;  %v508_v13 = vpop.f32.mrf.mxu0 }
  0xb9   :  { %v563_v11 = vadd.f32 %v562_v10, %v535_v9  ;;  %v590_v12 = vpop.f32.mrf.mxu3  ;;  %v536_v14 = vpop.f32.mrf.mxu1  ;;  %v509_v16 = vadd.f32 %v508_v13, %v94_v53 }
  0xbb   :  { %v591_v15 = vadd.f32 %v590_v12, %v563_v11  ;;  %v537_v18 = vadd.f32 %v536_v14, %v509_v16 }
  0xbd   :  { %v720_v17 = vmax.f32 %v591_v15, 0.0 }
  0xbf   :  { %734 = vst [vmem:[%s1694_s3 + $0x20] sm:$0xff] %v720_v17 }
  0xc0   :  { %v564_v19 = vpop.f32.mrf.mxu2  ;;  %v511_v22 = vpop.f32.mrf.mxu0 }
  0xc1   :  { %v565_v20 = vadd.f32 %v564_v19, %v537_v18  ;;  %v592_v21 = vpop.f32.mrf.mxu3  ;;  %v512_v23 = vadd.f32 %v511_v22, %v94_v53  ;;  %v539_v24 = vpop.f32.mrf.mxu1 }
  0xc3   :  { %v593_v25 = vadd.f32 %v592_v21, %v565_v20  ;;  %v540_v27 = vadd.f32 %v539_v24, %v512_v23 }
  0xc5   :  { %v722_v26 = vmax.f32 %v593_v25, 0.0 }
  0xc7   :  { %736 = vst [vmem:[%s1694_s3 + $0x30] sm:$0xff] %v722_v26 }
  0xc8   :  { %v567_v28 = vpop.f32.mrf.mxu2  ;;  %v513_v31 = vpop.f32.mrf.mxu0 }
  0xc9   :  { %v568_v29 = vadd.f32 %v567_v28, %v540_v27  ;;  %v595_v30 = vpop.f32.mrf.mxu3  ;;  %v541_v32 = vpop.f32.mrf.mxu1  ;;  %v514_v34 = vadd.f32 %v513_v31, %v94_v53 }
  0xcb   :  { %v596_v33 = vadd.f32 %v595_v30, %v568_v29  ;;  %v542_v36 = vadd.f32 %v541_v32, %v514_v34 }
  0xcd   :  { %v724_v35 = vmax.f32 %v596_v33, 0.0 }
  0xcf   :  { %738 = vst [vmem:[%s1694_s3 + $0x40] sm:$0xff] %v724_v35 }
  0xd0   :  { %v569_v37 = vpop.f32.mrf.mxu2  ;;  %v516_v40 = vpop.f32.mrf.mxu0 }
  0xd1   :  { %v570_v38 = vadd.f32 %v569_v37, %v542_v36  ;;  %v597_v39 = vpop.f32.mrf.mxu3  ;;  %v517_v41 = vadd.f32 %v516_v40, %v94_v53  ;;  %v544_v42 = vpop.f32.mrf.mxu1 }
  0xd3   :  { %v598_v43 = vadd.f32 %v597_v39, %v570_v38  ;;  %v545_v46 = vadd.f32 %v544_v42, %v517_v41 }
  0xd5   :  { %v726_v45 = vmax.f32 %v598_v43, 0.0 }
  0xd7   :  { %740 = vst [vmem:[%s1694_s3 + $0x50] sm:$0xff] %v726_v45 }
  0xd8   :  { %v572_v47 = vpop.f32.mrf.mxu2  ;;  %v518_v55 = vpop.f32.mrf.mxu0 }
  0xd9   :  { %v573_v49 = vadd.f32 %v572_v47, %v545_v46  ;;  %v600_v52 = vpop.f32.mrf.mxu3  ;;  %v546_v54 = vpop.f32.mrf.mxu1 }
  0xdb   :  { %v601_v57 = vadd.f32 %v600_v52, %v573_v49 }
  0xdd   :  { %v728_v44 = vmax.f32 %v601_v57, 0.0 }
  0xdf   :  { %742 = vst [vmem:[%s1694_s3 + $0x60] sm:$0xff] %v728_v44 }
  0xe0   :  { %v574_v53 = vpop.f32.mrf.mxu2  ;;  %v613_v56 = vpop.f32.mrf.mxu0 }
  0xe1   :  { %v602_v51 = vpop.f32.mrf.mxu3  ;;  %v614_v58 = vadd.f32 %v613_v56, %v95_v50  ;;  %v641_v59 = vpop.f32.mrf.mxu1 }
  0xe3   :  { %v642_v60 = vadd.f32 %v641_v59, %v614_v58 }
  0xe8   :  { %v669_v61 = vpop.f32.mrf.mxu2  ;;  %v615_v0 = vpop.f32.mrf.mxu0 }
  0xe9   :  { %v670_v62 = vadd.f32 %v669_v61, %v642_v60  ;;  %v697_v63 = vpop.f32.mrf.mxu3  ;;  %v643_v1 = vpop.f32.mrf.mxu1  ;;  %v616_v3 = vadd.f32 %v615_v0, %v95_v50 }
  0xeb   :  { %v698_v2 = vadd.f32 %v697_v63, %v670_v62  ;;  %v644_v48 = vadd.f32 %v643_v1, %v616_v3 }
  0xed   :  { %v717_v4 = vmax.f32 %v698_v2, 0.0 }
  0xef   :  { %731 = vst [vmem:[%s1694_s3 + $0x8] sm:$0xff] %v717_v4 }
  0xf0   :  { %v671_v5 = vpop.f32.mrf.mxu2  ;;  %v618_v8 = vpop.f32.mrf.mxu0 }
  0xf1   :  { %v672_v6 = vadd.f32 %v671_v5, %v644_v48  ;;  %v699_v7 = vpop.f32.mrf.mxu3  ;;  %v619_v9 = vadd.f32 %v618_v8, %v95_v50  ;;  %v646_v10 = vpop.f32.mrf.mxu1 }
  0xf3   :  { %v700_v11 = vadd.f32 %v699_v7, %v672_v6  ;;  %v647_v13 = vadd.f32 %v646_v10, %v619_v9 }
  0xf5   :  { %v719_v12 = vmax.f32 %v700_v11, 0.0 }
  0xf7   :  { %733 = vst [vmem:[%s1694_s3 + $0x18] sm:$0xff] %v719_v12 }
  0xf8   :  { %v674_v14 = vpop.f32.mrf.mxu2  ;;  %v620_v17 = vpop.f32.mrf.mxu0 }
  0xf9   :  { %v675_v15 = vadd.f32 %v674_v14, %v647_v13  ;;  %v702_v16 = vpop.f32.mrf.mxu3  ;;  %v648_v18 = vpop.f32.mrf.mxu1  ;;  %v621_v20 = vadd.f32 %v620_v17, %v95_v50 }
  0xfb   :  { %v703_v19 = vadd.f32 %v702_v16, %v675_v15  ;;  %v649_v22 = vadd.f32 %v648_v18, %v621_v20 }
  0xfd   :  { %v721_v21 = vmax.f32 %v703_v19, 0.0 }
  0xff   :  { %735 = vst [vmem:[%s1694_s3 + $0x28] sm:$0xff] %v721_v21 }
 0x100   :  { %v676_v23 = vpop.f32.mrf.mxu2  ;;  %v623_v26 = vpop.f32.mrf.mxu0 }
 0x101   :  { %v677_v24 = vadd.f32 %v676_v23, %v649_v22  ;;  %v704_v25 = vpop.f32.mrf.mxu3  ;;  %v624_v27 = vadd.f32 %v623_v26, %v95_v50  ;;  %v651_v28 = vpop.f32.mrf.mxu1 }
 0x103   :  { %v705_v29 = vadd.f32 %v704_v25, %v677_v24  ;;  %v652_v31 = vadd.f32 %v651_v28, %v624_v27 }
 0x105   :  { %v723_v30 = vmax.f32 %v705_v29, 0.0 }
 0x107   :  { %737 = vst [vmem:[%s1694_s3 + $0x38] sm:$0xff] %v723_v30 }
 0x108   :  { %v679_v32 = vpop.f32.mrf.mxu2  ;;  %v625_v35 = vpop.f32.mrf.mxu0 }
 0x109   :  { %v680_v33 = vadd.f32 %v679_v32, %v652_v31  ;;  %v707_v34 = vpop.f32.mrf.mxu3  ;;  %v653_v36 = vpop.f32.mrf.mxu1  ;;  %v626_v38 = vadd.f32 %v625_v35, %v95_v50 }
 0x10b   :  { %v708_v37 = vadd.f32 %v707_v34, %v680_v33  ;;  %v654_v40 = vadd.f32 %v653_v36, %v626_v38 }
 0x10d   :  { %v725_v39 = vmax.f32 %v708_v37, 0.0 }
 0x10f   :  { %739 = vst [vmem:[%s1694_s3 + $0x48] sm:$0xff] %v725_v39 }
 0x110   :  { %v681_v41 = vpop.f32.mrf.mxu2  ;;  %v628_v45 = vpop.f32.mrf.mxu0 }
 0x111   :  { %v682_v42 = vadd.f32 %v681_v41, %v654_v40  ;;  %v709_v43 = vpop.f32.mrf.mxu3  ;;  %v629_v46 = vadd.f32 %v628_v45, %v95_v50  ;;  %v656_v47 = vpop.f32.mrf.mxu1 }
 0x113   :  { %v710_v49 = vadd.f32 %v709_v43, %v682_v42  ;;  %v657_v55 = vadd.f32 %v656_v47, %v629_v46 }
 0x115   :  { %v727_v52 = vmax.f32 %v710_v49, 0.0 }
 0x117   :  { %741 = vst [vmem:[%s1694_s3 + $0x58] sm:$0xff] %v727_v52 }
 0x118   :  { %v684_v54 = vpop.f32.mrf.mxu2  ;;  %v630_v53 = vpop.f32.mrf.mxu0 }
 0x119   :  { %v685_v57 = vadd.f32 %v684_v54, %v657_v55  ;;  %v712_v44 = vpop.f32.mrf.mxu3  ;;  %v658_v51 = vpop.f32.mrf.mxu1 }
 0x11b   :  { %v713_v56 = vadd.f32 %v712_v44, %v685_v57 }
 0x11d   :  { %v729_v58 = vmax.f32 %v713_v56, 0.0 }
 0x11f   :  { %743 = vst [vmem:[%s1694_s3 + $0x68] sm:$0xff] %v729_v58 }
 0x120   :  { %v686_v50 = vpop.f32.mrf.mxu2 }
 0x121   :  { %v714_v59 = vpop.f32.mrf.mxu3 }

// kernel: forward.9
= control target key start
LH: loop header
LB: loop body
LE: loop exit
PB: predicated region body
PF: predicated region fallthrough
CT: control target
= control target key end

     0   :  { %s4273_s12 = smov 0   ;;  %s4275_s13 = smov 0   ;;  %s5469_s0 = inlined_call_operand.vmem [shape: bf16[8,1024], index: 0, kind: input, shape index: {}]   ;;  %s5470_s1 = inlined_call_operand.vmem [shape: bf16[1024,2048], index: 1, kind: input, shape index: {}]   ;;  %s5471_s2 = inlined_call_operand.vmem [shape: f32[1,2048], index: 2, kind: input, shape index: {}]   ;;  %s5472_s3 = inlined_call_operand.vmem [shape: f32[8,2048], index: 3, kind: output, shape index: {}]  }
   0x1   :  { %s4277_s14 = smov 0   ;;  %s4279_s15 = smov 0  }
   0x2   :  { %s4281_s16 = smov 0  }
   0x3 LB: > { %s22_s17 = sadd.s32 1, %s4247_s15  ;;  %p65_p1 = scmp.ne.s32.totalorder %s4239_s13, %s4235_s12  ;;  %s4251_s16 = sphi %s4281_s16, %s13_s16   ;;  %s4247_s15 = sphi %s4279_s15, %s5477_s15   ;;  %s4243_s14 = sphi %s4277_s14, %s5476_s14   ;;  %s4239_s13 = sphi %s4275_s13, %s5475_s13   ;;  %s4235_s12 = sphi %s4273_s12, %s5474_s12  }
   0x4   : > { %p23_p0 = scmp.ge.s32.totalorder %s22_s17, 4  ;;  %p66_p2 = scmp.eq.s32.totalorder %s4251_s16, 0 }
   0x5   : > { %s58_s19 = sadd.s32 1, %s4239_s13  ;;  %p2881_p5 = scmp.ge.s32.totalorder %s4251_s16, 4 }
   0x6   : > { %s5479_s17 = smov (%p23_p0, %s22_s17), 0  ;;  %p67_p3 = por %p66_p2, %p65_p1 }
   0x7   : > { %s55_s18 = ssub.s32 %s4247_s15, %s5479_s17  ;;  %153 = sbr.rel (%p2881_p5) target bundleno = 272 (0x110), region = 20 }
   0x8   : > { %p56_p4 = scmp.eq.s32.totalorder %s55_s18, 0 }
   0xa   : > { %s4308_s20 = scalar_select %p56_p4, %s4239_s13, %s58_s19  }
   0xc   : > { %156 = sbr.rel (!%p67_p3) target bundleno = 272 (0x110), region = 24  ;;  %s158_s21 = sand.u32 (%p67_p3), 1, %s4239_s13  }
   0xd   : > { %s3916_s22 = sshll.u32 (%p67_p3), %s4247_s15, 4  ;;  %s2882_s23 = sshll.u32 (%p67_p3), %s158_s21, 11 }
   0xe   : > { %s4316_s26 = scalar_lea.vmem (%p67_p3), %s5470_s1, %s3916_s22  ;;  %s4321_s27 = scalar_lea.vmem (%p67_p3), [#allocation2], %s2882_s23 }
   0xf   : > { %v176_v0 = vld [vmem:[%s4316_s26] sm:$0xff] (%p67_p3)  ;;  %v178_v1 = vld [vmem:[%s4316_s26 + $0x8] sm:$0xff] (%p67_p3) }
  0x10   : > { %v180_v2 = vld [vmem:[%s4316_s26 + $0x40] sm:$0xff] (%p67_p3)  ;;  %177 = vst [vmem:[%s4321_s27] sm:$0xff] (%p67_p3), %v176_v0  ;;  %v182_v3 = vld [vmem:[%s4316_s26 + $0x48] sm:$0xff] (%p67_p3) }
  0x11   : > { %179 = vst [vmem:[%s4321_s27 + $0x8] sm:$0xff] %v178_v1  ;;  %v184_v4 = vld [vmem:[%s4316_s26 + $0x80] sm:$0xff]  ;;  %v186_v5 = vld [vmem:[%s4316_s26 + $0x88] sm:$0xff] }
  0x12   : > { %181 = vst [vmem:[%s4321_s27 + $0x10] sm:$0xff] %v180_v2  ;;  %v188_v6 = vld [vmem:[%s4316_s26 + $0xc0] sm:$0xff]  ;;  %v190_v7 = vld [vmem:[%s4316_s26 + $0xc8] sm:$0xff] }
  0x13   : > { %183 = vst [vmem:[%s4321_s27 + $0x18] sm:$0xff] %v182_v3  ;;  %v192_v8 = vld [vmem:[%s4316_s26 + $0x100] sm:$0xff]  ;;  %v194_v9 = vld [vmem:[%s4316_s26 + $0x108] sm:$0xff] }
  0x14   : > { %185 = vst [vmem:[%s4321_s27 + $0x20] sm:$0xff] %v184_v4  ;;  %v196_v10 = vld [vmem:[%s4316_s26 + $0x140] sm:$0xff]  ;;  %v198_v11 = vld [vmem:[%s4316_s26 + $0x148] sm:$0xff] }
  0x15   : > { %187 = vst [vmem:[%s4321_s27 + $0x28] sm:$0xff] %v186_v5  ;;  %v200_v12 = vld [vmem:[%s4316_s26 + $0x180] sm:$0xff]  ;;  %v202_v13 = vld [vmem:[%s4316_s26 + $0x188] sm:$0xff] }
  0x16   : > { %189 = vst [vmem:[%s4321_s27 + $0x30] sm:$0xff] %v188_v6  ;;  %v204_v14 = vld [vmem:[%s4316_s26 + $0x1c0] sm:$0xff]  ;;  %v206_v15 = vld [vmem:[%s4316_s26 + $0x1c8] sm:$0xff] }
  0x17   : > { %191 = vst [vmem:[%s4321_s27 + $0x38] sm:$0xff] %v190_v7  ;;  %v208_v16 = vld [vmem:[%s4316_s26 + $0x200] sm:$0xff]  ;;  %v210_v17 = vld [vmem:[%s4316_s26 + $0x208] sm:$0xff] }
  0x18   : > { %193 = vst [vmem:[%s4321_s27 + $0x40] sm:$0xff] %v192_v8  ;;  %v212_v18 = vld [vmem:[%s4316_s26 + $0x240] sm:$0xff]  ;;  %v214_v19 = vld [vmem:[%s4316_s26 + $0x248] sm:$0xff] }
  0x19   : > { %195 = vst [vmem:[%s4321_s27 + $0x48] sm:$0xff] %v194_v9  ;;  %v216_v20 = vld [vmem:[%s4316_s26 + $0x280] sm:$0xff]  ;;  %v218_v21 = vld [vmem:[%s4316_s26 + $0x288] sm:$0xff] }
  0x1a   : > { %197 = vst [vmem:[%s4321_s27 + $0x50] sm:$0xff] %v196_v10  ;;  %v220_v22 = vld [vmem:[%s4316_s26 + $0x2c0] sm:$0xff]  ;;  %v222_v23 = vld [vmem:[%s4316_s26 + $0x2c8] sm:$0xff] }
  0x1b   : > { %199 = vst [vmem:[%s4321_s27 + $0x58] sm:$0xff] %v198_v11  ;;  %v224_v24 = vld [vmem:[%s4316_s26 + $0x300] sm:$0xff]  ;;  %v226_v25 = vld [vmem:[%s4316_s26 + $0x308] sm:$0xff] }
  0x1c   : > { %201 = vst [vmem:[%s4321_s27 + $0x60] sm:$0xff] %v200_v12  ;;  %v228_v26 = vld [vmem:[%s4316_s26 + $0x340] sm:$0xff]  ;;  %v230_v27 = vld [vmem:[%s4316_s26 + $0x348] sm:$0xff] }
  0x1d   : > { %203 = vst [vmem:[%s4321_s27 + $0x68] sm:$0xff] %v202_v13  ;;  %v232_v28 = vld [vmem:[%s4316_s26 + $0x380] sm:$0xff]  ;;  %v234_v29 = vld [vmem:[%s4316_s26 + $0x388] sm:$0xff] }
  0x1e   : > { %205 = vst [vmem:[%s4321_s27 + $0x70] sm:$0xff] %v204_v14  ;;  %v236_v30 = vld [vmem:[%s4316_s26 + $0x3c0] sm:$0xff]  ;;  %v238_v31 = vld [vmem:[%s4316_s26 + $0x3c8] sm:$0xff] }
  0x1f   : > { %207 = vst [vmem:[%s4321_s27 + $0x78] sm:$0xff] %v206_v15  ;;  %v240_v32 = vld [vmem:[%s4316_s26 + $0x400] sm:$0xff]  ;;  %v242_v33 = vld [vmem:[%s4316_s26 + $0x408] sm:$0xff] }
  0x20   : > { %209 = vst [vmem:[%s4321_s27 + $0x80] sm:$0xff] %v208_v16  ;;  %v244_v34 = vld [vmem:[%s4316_s26 + $0x440] sm:$0xff]  ;;  %v246_v35 = vld [vmem:[%s4316_s26 + $0x448] sm:$0xff] }
  0x21   : > { %211 = vst [vmem:[%s4321_s27 + $0x88] sm:$0xff] %v210_v17  ;;  %v248_v36 = vld [vmem:[%s4316_s26 + $0x480] sm:$0xff]  ;;  %v250_v37 = vld [vmem:[%s4316_s26 + $0x488] sm:$0xff] }
  0x22   : > { %213 = vst [vmem:[%s4321_s27 + $0x90] sm:$0xff] %v212_v18  ;;  %v252_v38 = vld [vmem:[%s4316_s26 + $0x4c0] sm:$0xff]  ;;  %v254_v39 = vld [vmem:[%s4316_s26 + $0x4c8] sm:$0xff] }
  0x23   : > { %215 = vst [vmem:[%s4321_s27 + $0x98] sm:$0xff] %v214_v19  ;;  %v256_v40 = vld [vmem:[%s4316_s26 + $0x500] sm:$0xff]  ;;  %v258_v41 = vld [vmem:[%s4316_s26 + $0x508] sm:$0xff] }
  0x24   : > { %217 = vst [vmem:[%s4321_s27 + $0xa0] sm:$0xff] %v216_v20  ;;  %v260_v42 = vld [vmem:[%s4316_s26 + $0x540] sm:$0xff]  ;;  %v262_v43 = vld [vmem:[%s4316_s26 + $0x548] sm:$0xff] }
  0x25   : > { %219 = vst [vmem:[%s4321_s27 + $0xa8] sm:$0xff] %v218_v21  ;;  %v264_v44 = vld [vmem:[%s4316_s26 + $0x580] sm:$0xff]  ;;  %v266_v45 = vld [vmem:[%s4316_s26 + $0x588] sm:$0xff] }
  0x26   : > { %221 = vst [vmem:[%s4321_s27 + $0xb0] sm:$0xff] %v220_v22  ;;  %v268_v46 = vld [vmem:[%s4316_s26 + $0x5c0] sm:$0xff]  ;;  %v270_v47 = vld [vmem:[%s4316_s26 + $0x5c8] sm:$0xff] }
  0x27   : > { %223 = vst [vmem:[%s4321_s27 + $0xb8] sm:$0xff] %v222_v23  ;;  %v272_v48 = vld [vmem:[%s4316_s26 + $0x600] sm:$0xff]  ;;  %v274_v49 = vld [vmem:[%s4316_s26 + $0x608] sm:$0xff] }
  0x28   : > { %225 = vst [vmem:[%s4321_s27 + $0xc0] sm:$0xff] %v224_v24  ;;  %v276_v50 = vld [vmem:[%s4316_s26 + $0x640] sm:$0xff]  ;;  %v278_v51 = vld [vmem:[%s4316_s26 + $0x648] sm:$0xff] }
  0x29   : > { %227 = vst [vmem:[%s4321_s27 + $0xc8] sm:$0xff] %v226_v25  ;;  %v280_v52 = vld [vmem:[%s4316_s26 + $0x680] sm:$0xff]  ;;  %v282_v53 = vld [vmem:[%s4316_s26 + $0x688] sm:$0xff] }
  0x2a   : > { %229 = vst [vmem:[%s4321_s27 + $0xd0] sm:$0xff] %v228_v26  ;;  %v284_v54 = vld [vmem:[%s4316_s26 + $0x6c0] sm:$0xff]  ;;  %v286_v55 = vld [vmem:[%s4316_s26 + $0x6c8] sm:$0xff] }
  0x2b   : > { %231 = vst [vmem:[%s4321_s27 + $0xd8] sm:$0xff] %v230_v27  ;;  %v288_v56 = vld [vmem:[%s4316_s26 + $0x700] sm:$0xff]  ;;  %v290_v57 = vld [vmem:[%s4316_s26 + $0x708] sm:$0xff] }
  0x2c   : > { %233 = vst [vmem:[%s4321_s27 + $0xe0] sm:$0xff] %v232_v28  ;;  %v292_v58 = vld [vmem:[%s4316_s26 + $0x740] sm:$0xff]  ;;  %v294_v59 = vld [vmem:[%s4316_s26 + $0x748] sm:$0xff] }
  0x2d   : > { %235 = vst [vmem:[%s4321_s27 + $0xe8] sm:$0xff] %v234_v29  ;;  %v296_v60 = vld [vmem:[%s4316_s26 + $0x780] sm:$0xff]  ;;  %v298_v61 = vld [vmem:[%s4316_s26 + $0x788] sm:$0xff] }
  0x2e   : > { %237 = vst [vmem:[%s4321_s27 + $0xf0] sm:$0xff] %v236_v30  ;;  %v300_v62 = vld [vmem:[%s4316_s26 + $0x7c0] sm:$0xff]  ;;  %v302_v63 = vld [vmem:[%s4316_s26 + $0x7c8] sm:$0xff] }
  0x2f   : > { %239 = vst [vmem:[%s4321_s27 + $0xf8] sm:$0xff] %v238_v31  ;;  %v304_v0 = vld [vmem:[%s4316_s26 + $0x800] sm:$0xff]  ;;  %v306_v1 = vld [vmem:[%s4316_s26 + $0x808] sm:$0xff] }
  0x30   : > { %241 = vst [vmem:[%s4321_s27 + $0x100] sm:$0xff] %v240_v32  ;;  %v308_v2 = vld [vmem:[%s4316_s26 + $0x840] sm:$0xff]  ;;  %v310_v3 = vld [vmem:[%s4316_s26 + $0x848] sm:$0xff] }
  0x31   : > { %243 = vst [vmem:[%s4321_s27 + $0x108] sm:$0xff] %v242_v33  ;;  %v312_v4 = vld [vmem:[%s4316_s26 + $0x880] sm:$0xff]  ;;  %v314_v5 = vld [vmem:[%s4316_s26 + $0x888] sm:$0xff] }
  0x32   : > { %245 = vst [vmem:[%s4321_s27 + $0x110] sm:$0xff] %v244_v34  ;;  %v316_v6 = vld [vmem:[%s4316_s26 + $0x8c0] sm:$0xff]  ;;  %v318_v7 = vld [vmem:[%s4316_s26 + $0x8c8] sm:$0xff] }
  0x33   : > { %247 = vst [vmem:[%s4321_s27 + $0x118] sm:$0xff] %v246_v35  ;;  %v320_v8 = vld [vmem:[%s4316_s26 + $0x900] sm:$0xff]  ;;  %v322_v9 = vld [vmem:[%s4316_s26 + $0x908] sm:$0xff] }
  0x34   : > { %249 = vst [vmem:[%s4321_s27 + $0x120] sm:$0xff] %v248_v36  ;;  %v324_v10 = vld [vmem:[%s4316_s26 + $0x940] sm:$0xff]  ;;  %v326_v11 = vld [vmem:[%s4316_s26 + $0x948] sm:$0xff] }
  0x35   : > { %251 = vst [vmem:[%s4321_s27 + $0x128] sm:$0xff] %v250_v37  ;;  %v328_v12 = vld [vmem:[%s4316_s26 + $0x980] sm:$0xff]  ;;  %v330_v13 = vld [vmem:[%s4316_s26 + $0x988] sm:$0xff] }
  0x36   : > { %253 = vst [vmem:[%s4321_s27 + $0x130] sm:$0xff] %v252_v38  ;;  %v332_v14 = vld [vmem:[%s4316_s26 + $0x9c0] sm:$0xff]  ;;  %v334_v15 = vld [vmem:[%s4316_s26 + $0x9c8] sm:$0xff] }
  0x37   : > { %255 = vst [vmem:[%s4321_s27 + $0x138] sm:$0xff] %v254_v39  ;;  %v336_v16 = vld [vmem:[%s4316_s26 + $0xa00] sm:$0xff]  ;;  %v338_v17 = vld [vmem:[%s4316_s26 + $0xa08] sm:$0xff] }
  0x38   : > { %257 = vst [vmem:[%s4321_s27 + $0x140] sm:$0xff] %v256_v40  ;;  %v340_v18 = vld [vmem:[%s4316_s26 + $0xa40] sm:$0xff]  ;;  %v342_v19 = vld [vmem:[%s4316_s26 + $0xa48] sm:$0xff] }
  0x39   : > { %259 = vst [vmem:[%s4321_s27 + $0x148] sm:$0xff] %v258_v41  ;;  %v344_v20 = vld [vmem:[%s4316_s26 + $0xa80] sm:$0xff]  ;;  %v346_v21 = vld [vmem:[%s4316_s26 + $0xa88] sm:$0xff] }
  0x3a   : > { %261 = vst [vmem:[%s4321_s27 + $0x150] sm:$0xff] %v260_v42  ;;  %v348_v22 = vld [vmem:[%s4316_s26 + $0xac0] sm:$0xff]  ;;  %v350_v23 = vld [vmem:[%s4316_s26 + $0xac8] sm:$0xff] }
  0x3b   : > { %263 = vst [vmem:[%s4321_s27 + $0x158] sm:$0xff] %v262_v43  ;;  %v352_v24 = vld [vmem:[%s4316_s26 + $0xb00] sm:$0xff]  ;;  %v354_v25 = vld [vmem:[%s4316_s26 + $0xb08] sm:$0xff] }
  0x3c   : > { %265 = vst [vmem:[%s4321_s27 + $0x160] sm:$0xff] %v264_v44  ;;  %v356_v26 = vld [vmem:[%s4316_s26 + $0xb40] sm:$0xff]  ;;  %v358_v27 = vld [vmem:[%s4316_s26 + $0xb48] sm:$0xff] }
  0x3d   : > { %267 = vst [vmem:[%s4321_s27 + $0x168] sm:$0xff] %v266_v45  ;;  %v360_v28 = vld [vmem:[%s4316_s26 + $0xb80] sm:$0xff]  ;;  %v362_v29 = vld [vmem:[%s4316_s26 + $0xb88] sm:$0xff] }
  0x3e   : > { %269 = vst [vmem:[%s4321_s27 + $0x170] sm:$0xff] %v268_v46  ;;  %v364_v30 = vld [vmem:[%s4316_s26 + $0xbc0] sm:$0xff]  ;;  %v366_v31 = vld [vmem:[%s4316_s26 + $0xbc8] sm:$0xff] }
  0x3f   : > { %271 = vst [vmem:[%s4321_s27 + $0x178] sm:$0xff] %v270_v47  ;;  %v368_v32 = vld [vmem:[%s4316_s26 + $0xc00] sm:$0xff]  ;;  %v370_v33 = vld [vmem:[%s4316_s26 + $0xc08] sm:$0xff] }
  0x40   : > { %273 = vst [vmem:[%s4321_s27 + $0x180] sm:$0xff] %v272_v48  ;;  %v372_v34 = vld [vmem:[%s4316_s26 + $0xc40] sm:$0xff]  ;;  %v374_v35 = vld [vmem:[%s4316_s26 + $0xc48] sm:$0xff] }
  0x41   : > { %275 = vst [vmem:[%s4321_s27 + $0x188] sm:$0xff] %v274_v49  ;;  %v376_v36 = vld [vmem:[%s4316_s26 + $0xc80] sm:$0xff]  ;;  %v378_v37 = vld [vmem:[%s4316_s26 + $0xc88] sm:$0xff] }
  0x42   : > { %277 = vst [vmem:[%s4321_s27 + $0x190] sm:$0xff] %v276_v50  ;;  %v380_v38 = vld [vmem:[%s4316_s26 + $0xcc0] sm:$0xff]  ;;  %v382_v39 = vld [vmem:[%s4316_s26 + $0xcc8] sm:$0xff] }
  0x43   : > { %279 = vst [vmem:[%s4321_s27 + $0x198] sm:$0xff] %v278_v51  ;;  %v384_v40 = vld [vmem:[%s4316_s26 + $0xd00] sm:$0xff]  ;;  %v386_v41 = vld [vmem:[%s4316_s26 + $0xd08] sm:$0xff] }
  0x44   : > { %281 = vst [vmem:[%s4321_s27 + $0x1a0] sm:$0xff] %v280_v52  ;;  %v388_v42 = vld [vmem:[%s4316_s26 + $0xd40] sm:$0xff]  ;;  %v390_v43 = vld [vmem:[%s4316_s26 + $0xd48] sm:$0xff] }
  0x45   : > { %283 = vst [vmem:[%s4321_s27 + $0x1a8] sm:$0xff] %v282_v53  ;;  %v392_v44 = vld [vmem:[%s4316_s26 + $0xd80] sm:$0xff]  ;;  %v394_v45 = vld [vmem:[%s4316_s26 + $0xd88] sm:$0xff] }
  0x46   : > { %285 = vst [vmem:[%s4321_s27 + $0x1b0] sm:$0xff] %v284_v54  ;;  %v396_v46 = vld [vmem:[%s4316_s26 + $0xdc0] sm:$0xff]  ;;  %v398_v47 = vld [vmem:[%s4316_s26 + $0xdc8] sm:$0xff] }
  0x47   : > { %287 = vst [vmem:[%s4321_s27 + $0x1b8] sm:$0xff] %v286_v55  ;;  %v400_v48 = vld [vmem:[%s4316_s26 + $0xe00] sm:$0xff]  ;;  %v402_v49 = vld [vmem:[%s4316_s26 + $0xe08] sm:$0xff] }
  0x48   : > { %289 = vst [vmem:[%s4321_s27 + $0x1c0] sm:$0xff] %v288_v56  ;;  %v404_v50 = vld [vmem:[%s4316_s26 + $0xe40] sm:$0xff]  ;;  %v406_v51 = vld [vmem:[%s4316_s26 + $0xe48] sm:$0xff] }
  0x49   : > { %291 = vst [vmem:[%s4321_s27 + $0x1c8] sm:$0xff] %v290_v57  ;;  %v408_v52 = vld [vmem:[%s4316_s26 + $0xe80] sm:$0xff]  ;;  %v410_v53 = vld [vmem:[%s4316_s26 + $0xe88] sm:$0xff] }
  0x4a   : > { %293 = vst [vmem:[%s4321_s27 + $0x1d0] sm:$0xff] %v292_v58  ;;  %v412_v54 = vld [vmem:[%s4316_s26 + $0xec0] sm:$0xff]  ;;  %v414_v55 = vld [vmem:[%s4316_s26 + $0xec8] sm:$0xff] }
  0x4b   : > { %295 = vst [vmem:[%s4321_s27 + $0x1d8] sm:$0xff] %v294_v59  ;;  %v416_v56 = vld [vmem:[%s4316_s26 + $0xf00] sm:$0xff]  ;;  %v418_v57 = vld [vmem:[%s4316_s26 + $0xf08] sm:$0xff] }
  0x4c   : > { %297 = vst [vmem:[%s4321_s27 + $0x1e0] sm:$0xff] %v296_v60  ;;  %v420_v58 = vld [vmem:[%s4316_s26 + $0xf40] sm:$0xff]  ;;  %v422_v59 = vld [vmem:[%s4316_s26 + $0xf48] sm:$0xff] }
  0x4d   : > { %299 = vst [vmem:[%s4321_s27 + $0x1e8] sm:$0xff] %v298_v61  ;;  %v424_v60 = vld [vmem:[%s4316_s26 + $0xf80] sm:$0xff]  ;;  %v426_v61 = vld [vmem:[%s4316_s26 + $0xf88] sm:$0xff] }
  0x4e   : > { %301 = vst [vmem:[%s4321_s27 + $0x1f0] sm:$0xff] %v300_v62  ;;  %v428_v62 = vld [vmem:[%s4316_s26 + $0xfc0] sm:$0xff] }
  0x4f   : > { %303 = vst [vmem:[%s4321_s27 + $0x1f8] sm:$0xff] %v302_v63  ;;  %v430_v63 = vld [vmem:[%s4316_s26 + $0xfc8] sm:$0xff] }
  0x50   : > { %305 = vst [vmem:[%s4321_s27 + $0x200] sm:$0xff] %v304_v0  ;;  %v432_v0 = vld [vmem:[%s4316_s26 + $0x1000] sm:$0xff] }
  0x51   : > { %307 = vst [vmem:[%s4321_s27 + $0x208] sm:$0xff] %v306_v1  ;;  %v434_v1 = vld [vmem:[%s4316_s26 + $0x1008] sm:$0xff] }
  0x52   : > { %309 = vst [vmem:[%s4321_s27 + $0x210] sm:$0xff] %v308_v2  ;;  %v436_v2 = vld [vmem:[%s4316_s26 + $0x1040] sm:$0xff] }
  0x53   : > { %311 = vst [vmem:[%s4321_s27 + $0x218] sm:$0xff] %v310_v3  ;;  %v438_v3 = vld [vmem:[%s4316_s26 + $0x1048] sm:$0xff] }
  0x54   : > { %313 = vst [vmem:[%s4321_s27 + $0x220] sm:$0xff] %v312_v4  ;;  %v440_v4 = vld [vmem:[%s4316_s26 + $0x1080] sm:$0xff] }
  0x55   : > { %315 = vst [vmem:[%s4321_s27 + $0x228] sm:$0xff] %v314_v5  ;;  %v442_v5 = vld [vmem:[%s4316_s26 + $0x1088] sm:$0xff] }
  0x56   : > { %317 = vst [vmem:[%s4321_s27 + $0x230] sm:$0xff] %v316_v6  ;;  %v444_v6 = vld [vmem:[%s4316_s26 + $0x10c0] sm:$0xff] }
  0x57   : > { %319 = vst [vmem:[%s4321_s27 + $0x238] sm:$0xff] %v318_v7  ;;  %v446_v7 = vld [vmem:[%s4316_s26 + $0x10c8] sm:$0xff] }
  0x58   : > { %321 = vst [vmem:[%s4321_s27 + $0x240] sm:$0xff] %v320_v8  ;;  %v448_v8 = vld [vmem:[%s4316_s26 + $0x1100] sm:$0xff] }
  0x59   : > { %323 = vst [vmem:[%s4321_s27 + $0x248] sm:$0xff] %v322_v9  ;;  %v450_v9 = vld [vmem:[%s4316_s26 + $0x1108] sm:$0xff] }
  0x5a   : > { %325 = vst [vmem:[%s4321_s27 + $0x250] sm:$0xff] %v324_v10  ;;  %v452_v10 = vld [vmem:[%s4316_s26 + $0x1140] sm:$0xff] }
  0x5b   : > { %327 = vst [vmem:[%s4321_s27 + $0x258] sm:$0xff] %v326_v11  ;;  %v454_v11 = vld [vmem:[%s4316_s26 + $0x1148] sm:$0xff] }
  0x5c   : > { %329 = vst [vmem:[%s4321_s27 + $0x260] sm:$0xff] %v328_v12  ;;  %v456_v12 = vld [vmem:[%s4316_s26 + $0x1180] sm:$0xff] }
  0x5d   : > { %331 = vst [vmem:[%s4321_s27 + $0x268] sm:$0xff] %v330_v13  ;;  %v458_v13 = vld [vmem:[%s4316_s26 + $0x1188] sm:$0xff] }
  0x5e   : > { %333 = vst [vmem:[%s4321_s27 + $0x270] sm:$0xff] %v332_v14  ;;  %v460_v14 = vld [vmem:[%s4316_s26 + $0x11c0] sm:$0xff] }
  0x5f   : > { %335 = vst [vmem:[%s4321_s27 + $0x278] sm:$0xff] %v334_v15  ;;  %v462_v15 = vld [vmem:[%s4316_s26 + $0x11c8] sm:$0xff] }
  0x60   : > { %337 = vst [vmem:[%s4321_s27 + $0x280] sm:$0xff] %v336_v16  ;;  %v464_v16 = vld [vmem:[%s4316_s26 + $0x1200] sm:$0xff] }
  0x61   : > { %339 = vst [vmem:[%s4321_s27 + $0x288] sm:$0xff] %v338_v17  ;;  %v466_v17 = vld [vmem:[%s4316_s26 + $0x1208] sm:$0xff] }
  0x62   : > { %341 = vst [vmem:[%s4321_s27 + $0x290] sm:$0xff] %v340_v18  ;;  %v468_v18 = vld [vmem:[%s4316_s26 + $0x1240] sm:$0xff] }
  0x63   : > { %343 = vst [vmem:[%s4321_s27 + $0x298] sm:$0xff] %v342_v19  ;;  %v470_v19 = vld [vmem:[%s4316_s26 + $0x1248] sm:$0xff] }
  0x64   : > { %345 = vst [vmem:[%s4321_s27 + $0x2a0] sm:$0xff] %v344_v20  ;;  %v472_v20 = vld [vmem:[%s4316_s26 + $0x1280] sm:$0xff] }
  0x65   : > { %347 = vst [vmem:[%s4321_s27 + $0x2a8] sm:$0xff] %v346_v21  ;;  %v474_v21 = vld [vmem:[%s4316_s26 + $0x1288] sm:$0xff] }
  0x66   : > { %349 = vst [vmem:[%s4321_s27 + $0x2b0] sm:$0xff] %v348_v22  ;;  %v476_v22 = vld [vmem:[%s4316_s26 + $0x12c0] sm:$0xff] }
  0x67   : > { %351 = vst [vmem:[%s4321_s27 + $0x2b8] sm:$0xff] %v350_v23  ;;  %v478_v23 = vld [vmem:[%s4316_s26 + $0x12c8] sm:$0xff] }
  0x68   : > { %353 = vst [vmem:[%s4321_s27 + $0x2c0] sm:$0xff] %v352_v24  ;;  %v480_v24 = vld [vmem:[%s4316_s26 + $0x1300] sm:$0xff] }
  0x69   : > { %355 = vst [vmem:[%s4321_s27 + $0x2c8] sm:$0xff] %v354_v25  ;;  %v482_v25 = vld [vmem:[%s4316_s26 + $0x1308] sm:$0xff] }
  0x6a   : > { %357 = vst [vmem:[%s4321_s27 + $0x2d0] sm:$0xff] %v356_v26  ;;  %v484_v26 = vld [vmem:[%s4316_s26 + $0x1340] sm:$0xff] }
  0x6b   : > { %359 = vst [vmem:[%s4321_s27 + $0x2d8] sm:$0xff] %v358_v27  ;;  %v486_v27 = vld [vmem:[%s4316_s26 + $0x1348] sm:$0xff] }
  0x6c   : > { %361 = vst [vmem:[%s4321_s27 + $0x2e0] sm:$0xff] %v360_v28  ;;  %v488_v28 = vld [vmem:[%s4316_s26 + $0x1380] sm:$0xff] }
  0x6d   : > { %363 = vst [vmem:[%s4321_s27 + $0x2e8] sm:$0xff] %v362_v29  ;;  %v490_v29 = vld [vmem:[%s4316_s26 + $0x1388] sm:$0xff] }
  0x6e   : > { %365 = vst [vmem:[%s4321_s27 + $0x2f0] sm:$0xff] %v364_v30  ;;  %v492_v30 = vld [vmem:[%s4316_s26 + $0x13c0] sm:$0xff] }
  0x6f   : > { %367 = vst [vmem:[%s4321_s27 + $0x2f8] sm:$0xff] %v366_v31  ;;  %v494_v31 = vld [vmem:[%s4316_s26 + $0x13c8] sm:$0xff] }
  0x70   : > { %369 = vst [vmem:[%s4321_s27 + $0x300] sm:$0xff] %v368_v32  ;;  %v496_v32 = vld [vmem:[%s4316_s26 + $0x1400] sm:$0xff] }
  0x71   : > { %371 = vst [vmem:[%s4321_s27 + $0x308] sm:$0xff] %v370_v33  ;;  %v498_v33 = vld [vmem:[%s4316_s26 + $0x1408] sm:$0xff] }
  0x72   : > { %373 = vst [vmem:[%s4321_s27 + $0x310] sm:$0xff] %v372_v34  ;;  %v500_v34 = vld [vmem:[%s4316_s26 + $0x1440] sm:$0xff] }
  0x73   : > { %375 = vst [vmem:[%s4321_s27 + $0x318] sm:$0xff] %v374_v35  ;;  %v502_v35 = vld [vmem:[%s4316_s26 + $0x1448] sm:$0xff] }
  0x74   : > { %377 = vst [vmem:[%s4321_s27 + $0x320] sm:$0xff] %v376_v36  ;;  %v504_v36 = vld [vmem:[%s4316_s26 + $0x1480] sm:$0xff] }
  0x75   : > { %379 = vst [vmem:[%s4321_s27 + $0x328] sm:$0xff] %v378_v37  ;;  %v506_v37 = vld [vmem:[%s4316_s26 + $0x1488] sm:$0xff] }
  0x76   : > { %381 = vst [vmem:[%s4321_s27 + $0x330] sm:$0xff] %v380_v38  ;;  %v508_v38 = vld [vmem:[%s4316_s26 + $0x14c0] sm:$0xff] }
  0x77   : > { %383 = vst [vmem:[%s4321_s27 + $0x338] sm:$0xff] %v382_v39  ;;  %v510_v39 = vld [vmem:[%s4316_s26 + $0x14c8] sm:$0xff] }
  0x78   : > { %385 = vst [vmem:[%s4321_s27 + $0x340] sm:$0xff] %v384_v40  ;;  %v512_v40 = vld [vmem:[%s4316_s26 + $0x1500] sm:$0xff] }
  0x79   : > { %387 = vst [vmem:[%s4321_s27 + $0x348] sm:$0xff] %v386_v41  ;;  %v514_v41 = vld [vmem:[%s4316_s26 + $0x1508] sm:$0xff] }
  0x7a   : > { %389 = vst [vmem:[%s4321_s27 + $0x350] sm:$0xff] %v388_v42  ;;  %v516_v42 = vld [vmem:[%s4316_s26 + $0x1540] sm:$0xff] }
  0x7b   : > { %391 = vst [vmem:[%s4321_s27 + $0x358] sm:$0xff] %v390_v43  ;;  %v518_v43 = vld [vmem:[%s4316_s26 + $0x1548] sm:$0xff] }
  0x7c   : > { %393 = vst [vmem:[%s4321_s27 + $0x360] sm:$0xff] %v392_v44  ;;  %v520_v44 = vld [vmem:[%s4316_s26 + $0x1580] sm:$0xff] }
  0x7d   : > { %395 = vst [vmem:[%s4321_s27 + $0x368] sm:$0xff] %v394_v45  ;;  %v522_v45 = vld [vmem:[%s4316_s26 + $0x1588] sm:$0xff] }
  0x7e   : > { %397 = vst [vmem:[%s4321_s27 + $0x370] sm:$0xff] %v396_v46  ;;  %v524_v46 = vld [vmem:[%s4316_s26 + $0x15c0] sm:$0xff] }
  0x7f   : > { %399 = vst [vmem:[%s4321_s27 + $0x378] sm:$0xff] %v398_v47  ;;  %v526_v47 = vld [vmem:[%s4316_s26 + $0x15c8] sm:$0xff] }
  0x80   : > { %401 = vst [vmem:[%s4321_s27 + $0x380] sm:$0xff] %v400_v48  ;;  %v528_v48 = vld [vmem:[%s4316_s26 + $0x1600] sm:$0xff] }
  0x81   : > { %403 = vst [vmem:[%s4321_s27 + $0x388] sm:$0xff] %v402_v49  ;;  %v530_v49 = vld [vmem:[%s4316_s26 + $0x1608] sm:$0xff] }
  0x82   : > { %405 = vst [vmem:[%s4321_s27 + $0x390] sm:$0xff] %v404_v50  ;;  %v532_v50 = vld [vmem:[%s4316_s26 + $0x1640] sm:$0xff] }
  0x83   : > { %407 = vst [vmem:[%s4321_s27 + $0x398] sm:$0xff] %v406_v51  ;;  %v534_v51 = vld [vmem:[%s4316_s26 + $0x1648] sm:$0xff] }
  0x84   : > { %409 = vst [vmem:[%s4321_s27 + $0x3a0] sm:$0xff] %v408_v52  ;;  %v536_v52 = vld [vmem:[%s4316_s26 + $0x1680] sm:$0xff] }
  0x85   : > { %411 = vst [vmem:[%s4321_s27 + $0x3a8] sm:$0xff] %v410_v53  ;;  %v538_v53 = vld [vmem:[%s4316_s26 + $0x1688] sm:$0xff] }
  0x86   : > { %413 = vst [vmem:[%s4321_s27 + $0x3b0] sm:$0xff] %v412_v54  ;;  %v540_v54 = vld [vmem:[%s4316_s26 + $0x16c0] sm:$0xff] }
  0x87   : > { %415 = vst [vmem:[%s4321_s27 + $0x3b8] sm:$0xff] %v414_v55  ;;  %v542_v55 = vld [vmem:[%s4316_s26 + $0x16c8] sm:$0xff] }
  0x88   : > { %417 = vst [vmem:[%s4321_s27 + $0x3c0] sm:$0xff] %v416_v56  ;;  %v544_v56 = vld [vmem:[%s4316_s26 + $0x1700] sm:$0xff] }
  0x89   : > { %419 = vst [vmem:[%s4321_s27 + $0x3c8] sm:$0xff] %v418_v57  ;;  %v546_v57 = vld [vmem:[%s4316_s26 + $0x1708] sm:$0xff] }
  0x8a   : > { %421 = vst [vmem:[%s4321_s27 + $0x3d0] sm:$0xff] %v420_v58  ;;  %v548_v58 = vld [vmem:[%s4316_s26 + $0x1740] sm:$0xff] }
  0x8b   : > { %423 = vst [vmem:[%s4321_s27 + $0x3d8] sm:$0xff] %v422_v59  ;;  %v550_v59 = vld [vmem:[%s4316_s26 + $0x1748] sm:$0xff] }
  0x8c   : > { %425 = vst [vmem:[%s4321_s27 + $0x3e0] sm:$0xff] %v424_v60  ;;  %v552_v60 = vld [vmem:[%s4316_s26 + $0x1780] sm:$0xff] }
  0x8d   : > { %427 = vst [vmem:[%s4321_s27 + $0x3e8] sm:$0xff] %v426_v61  ;;  %v554_v61 = vld [vmem:[%s4316_s26 + $0x1788] sm:$0xff] }
  0x8e   : > { %429 = vst [vmem:[%s4321_s27 + $0x3f0] sm:$0xff] %v428_v62  ;;  %v556_v62 = vld [vmem:[%s4316_s26 + $0x17c0] sm:$0xff] }
  0x8f   : > { %431 = vst [vmem:[%s4321_s27 + $0x3f8] sm:$0xff] %v430_v63  ;;  %v558_v63 = vld [vmem:[%s4316_s26 + $0x17c8] sm:$0xff] }
  0x90   : > { %433 = vst [vmem:[%s4321_s27 + $0x400] sm:$0xff] %v432_v0  ;;  %v560_v0 = vld [vmem:[%s4316_s26 + $0x1800] sm:$0xff] }
  0x91   : > { %435 = vst [vmem:[%s4321_s27 + $0x408] sm:$0xff] %v434_v1  ;;  %v562_v1 = vld [vmem:[%s4316_s26 + $0x1808] sm:$0xff] }
  0x92   : > { %437 = vst [vmem:[%s4321_s27 + $0x410] sm:$0xff] %v436_v2  ;;  %v564_v2 = vld [vmem:[%s4316_s26 + $0x1840] sm:$0xff] }
  0x93   : > { %439 = vst [vmem:[%s4321_s27 + $0x418] sm:$0xff] %v438_v3  ;;  %v566_v3 = vld [vmem:[%s4316_s26 + $0x1848] sm:$0xff] }
  0x94   : > { %441 = vst [vmem:[%s4321_s27 + $0x420] sm:$0xff] %v440_v4  ;;  %v568_v4 = vld [vmem:[%s4316_s26 + $0x1880] sm:$0xff] }
  0x95   : > { %443 = vst [vmem:[%s4321_s27 + $0x428] sm:$0xff] %v442_v5  ;;  %v570_v5 = vld [vmem:[%s4316_s26 + $0x1888] sm:$0xff] }
  0x96   : > { %445 = vst [vmem:[%s4321_s27 + $0x430] sm:$0xff] %v444_v6  ;;  %v572_v6 = vld [vmem:[%s4316_s26 + $0x18c0] sm:$0xff] }
  0x97   : > { %447 = vst [vmem:[%s4321_s27 + $0x438] sm:$0xff] %v446_v7  ;;  %v574_v7 = vld [vmem:[%s4316_s26 + $0x18c8] sm:$0xff] }
  0x98   : > { %449 = vst [vmem:[%s4321_s27 + $0x440] sm:$0xff] %v448_v8  ;;  %v576_v8 = vld [vmem:[%s4316_s26 + $0x1900] sm:$0xff] }
  0x99   : > { %451 = vst [vmem:[%s4321_s27 + $0x448] sm:$0xff] %v450_v9  ;;  %v578_v9 = vld [vmem:[%s4316_s26 + $0x1908] sm:$0xff] }
  0x9a   : > { %453 = vst [vmem:[%s4321_s27 + $0x450] sm:$0xff] %v452_v10  ;;  %v580_v10 = vld [vmem:[%s4316_s26 + $0x1940] sm:$0xff] }
  0x9b   : > { %455 = vst [vmem:[%s4321_s27 + $0x458] sm:$0xff] %v454_v11  ;;  %v582_v11 = vld [vmem:[%s4316_s26 + $0x1948] sm:$0xff] }
  0x9c   : > { %457 = vst [vmem:[%s4321_s27 + $0x460] sm:$0xff] %v456_v12  ;;  %v584_v12 = vld [vmem:[%s4316_s26 + $0x1980] sm:$0xff] }
  0x9d   : > { %459 = vst [vmem:[%s4321_s27 + $0x468] sm:$0xff] %v458_v13  ;;  %v586_v13 = vld [vmem:[%s4316_s26 + $0x1988] sm:$0xff] }
  0x9e   : > { %461 = vst [vmem:[%s4321_s27 + $0x470] sm:$0xff] %v460_v14  ;;  %v588_v14 = vld [vmem:[%s4316_s26 + $0x19c0] sm:$0xff] }
  0x9f   : > { %463 = vst [vmem:[%s4321_s27 + $0x478] sm:$0xff] %v462_v15  ;;  %v590_v15 = vld [vmem:[%s4316_s26 + $0x19c8] sm:$0xff] }
  0xa0   : > { %465 = vst [vmem:[%s4321_s27 + $0x480] sm:$0xff] %v464_v16  ;;  %v592_v16 = vld [vmem:[%s4316_s26 + $0x1a00] sm:$0xff] }
  0xa1   : > { %467 = vst [vmem:[%s4321_s27 + $0x488] sm:$0xff] %v466_v17  ;;  %v594_v17 = vld [vmem:[%s4316_s26 + $0x1a08] sm:$0xff] }
  0xa2   : > { %469 = vst [vmem:[%s4321_s27 + $0x490] sm:$0xff] %v468_v18  ;;  %v596_v18 = vld [vmem:[%s4316_s26 + $0x1a40] sm:$0xff] }
  0xa3   : > { %471 = vst [vmem:[%s4321_s27 + $0x498] sm:$0xff] %v470_v19  ;;  %v598_v19 = vld [vmem:[%s4316_s26 + $0x1a48] sm:$0xff] }
  0xa4   : > { %473 = vst [vmem:[%s4321_s27 + $0x4a0] sm:$0xff] %v472_v20  ;;  %v600_v20 = vld [vmem:[%s4316_s26 + $0x1a80] sm:$0xff] }
  0xa5   : > { %475 = vst [vmem:[%s4321_s27 + $0x4a8] sm:$0xff] %v474_v21  ;;  %v602_v21 = vld [vmem:[%s4316_s26 + $0x1a88] sm:$0xff] }
  0xa6   : > { %477 = vst [vmem:[%s4321_s27 + $0x4b0] sm:$0xff] %v476_v22  ;;  %v604_v22 = vld [vmem:[%s4316_s26 + $0x1ac0] sm:$0xff] }
  0xa7   : > { %479 = vst [vmem:[%s4321_s27 + $0x4b8] sm:$0xff] %v478_v23  ;;  %v606_v23 = vld [vmem:[%s4316_s26 + $0x1ac8] sm:$0xff] }
  0xa8   : > { %481 = vst [vmem:[%s4321_s27 + $0x4c0] sm:$0xff] %v480_v24  ;;  %v608_v24 = vld [vmem:[%s4316_s26 + $0x1b00] sm:$0xff] }
  0xa9   : > { %483 = vst [vmem:[%s4321_s27 + $0x4c8] sm:$0xff] %v482_v25  ;;  %v610_v25 = vld [vmem:[%s4316_s26 + $0x1b08] sm:$0xff] }
  0xaa   : > { %485 = vst [vmem:[%s4321_s27 + $0x4d0] sm:$0xff] %v484_v26  ;;  %v612_v26 = vld [vmem:[%s4316_s26 + $0x1b40] sm:$0xff] }
  0xab   : > { %487 = vst [vmem:[%s4321_s27 + $0x4d8] sm:$0xff] %v486_v27  ;;  %v614_v27 = vld [vmem:[%s4316_s26 + $0x1b48] sm:$0xff] }
  0xac   : > { %489 = vst [vmem:[%s4321_s27 + $0x4e0] sm:$0xff] %v488_v28  ;;  %v616_v28 = vld [vmem:[%s4316_s26 + $0x1b80] sm:$0xff] }
  0xad   : > { %491 = vst [vmem:[%s4321_s27 + $0x4e8] sm:$0xff] %v490_v29  ;;  %v618_v29 = vld [vmem:[%s4316_s26 + $0x1b88] sm:$0xff] }
  0xae   : > { %493 = vst [vmem:[%s4321_s27 + $0x4f0] sm:$0xff] %v492_v30  ;;  %v620_v30 = vld [vmem:[%s4316_s26 + $0x1bc0] sm:$0xff] }
  0xaf   : > { %495 = vst [vmem:[%s4321_s27 + $0x4f8] sm:$0xff] %v494_v31  ;;  %v622_v31 = vld [vmem:[%s4316_s26 + $0x1bc8] sm:$0xff] }
  0xb0   : > { %497 = vst [vmem:[%s4321_s27 + $0x500] sm:$0xff] %v496_v32  ;;  %v624_v32 = vld [vmem:[%s4316_s26 + $0x1c00] sm:$0xff] }
  0xb1   : > { %499 = vst [vmem:[%s4321_s27 + $0x508] sm:$0xff] %v498_v33  ;;  %v626_v33 = vld [vmem:[%s4316_s26 + $0x1c08] sm:$0xff] }
  0xb2   : > { %501 = vst [vmem:[%s4321_s27 + $0x510] sm:$0xff] %v500_v34  ;;  %v628_v34 = vld [vmem:[%s4316_s26 + $0x1c40] sm:$0xff] }
  0xb3   : > { %503 = vst [vmem:[%s4321_s27 + $0x518] sm:$0xff] %v502_v35  ;;  %v630_v35 = vld [vmem:[%s4316_s26 + $0x1c48] sm:$0xff] }
  0xb4   : > { %505 = vst [vmem:[%s4321_s27 + $0x520] sm:$0xff] %v504_v36  ;;  %v632_v36 = vld [vmem:[%s4316_s26 + $0x1c80] sm:$0xff] }
  0xb5   : > { %507 = vst [vmem:[%s4321_s27 + $0x528] sm:$0xff] %v506_v37  ;;  %v634_v37 = vld [vmem:[%s4316_s26 + $0x1c88] sm:$0xff] }
  0xb6   : > { %509 = vst [vmem:[%s4321_s27 + $0x530] sm:$0xff] %v508_v38  ;;  %v636_v38 = vld [vmem:[%s4316_s26 + $0x1cc0] sm:$0xff] }
  0xb7   : > { %511 = vst [vmem:[%s4321_s27 + $0x538] sm:$0xff] %v510_v39  ;;  %v638_v39 = vld [vmem:[%s4316_s26 + $0x1cc8] sm:$0xff] }
  0xb8   : > { %513 = vst [vmem:[%s4321_s27 + $0x540] sm:$0xff] %v512_v40  ;;  %v640_v40 = vld [vmem:[%s4316_s26 + $0x1d00] sm:$0xff] }
  0xb9   : > { %515 = vst [vmem:[%s4321_s27 + $0x548] sm:$0xff] %v514_v41  ;;  %v642_v41 = vld [vmem:[%s4316_s26 + $0x1d08] sm:$0xff] }
  0xba   : > { %517 = vst [vmem:[%s4321_s27 + $0x550] sm:$0xff] %v516_v42  ;;  %v644_v42 = vld [vmem:[%s4316_s26 + $0x1d40] sm:$0xff] }
  0xbb   : > { %519 = vst [vmem:[%s4321_s27 + $0x558] sm:$0xff] %v518_v43  ;;  %v646_v43 = vld [vmem:[%s4316_s26 + $0x1d48] sm:$0xff] }
  0xbc   : > { %521 = vst [vmem:[%s4321_s27 + $0x560] sm:$0xff] %v520_v44  ;;  %v648_v44 = vld [vmem:[%s4316_s26 + $0x1d80] sm:$0xff] }
  0xbd   : > { %523 = vst [vmem:[%s4321_s27 + $0x568] sm:$0xff] %v522_v45  ;;  %v650_v45 = vld [vmem:[%s4316_s26 + $0x1d88] sm:$0xff] }
  0xbe   : > { %525 = vst [vmem:[%s4321_s27 + $0x570] sm:$0xff] %v524_v46  ;;  %v652_v46 = vld [vmem:[%s4316_s26 + $0x1dc0] sm:$0xff] }
  0xbf   : > { %527 = vst [vmem:[%s4321_s27 + $0x578] sm:$0xff] %v526_v47  ;;  %v654_v47 = vld [vmem:[%s4316_s26 + $0x1dc8] sm:$0xff] }
  0xc0   : > { %529 = vst [vmem:[%s4321_s27 + $0x580] sm:$0xff] %v528_v48  ;;  %v656_v48 = vld [vmem:[%s4316_s26 + $0x1e00] sm:$0xff] }
  0xc1   : > { %531 = vst [vmem:[%s4321_s27 + $0x588] sm:$0xff] %v530_v49  ;;  %v658_v49 = vld [vmem:[%s4316_s26 + $0x1e08] sm:$0xff] }
  0xc2   : > { %533 = vst [vmem:[%s4321_s27 + $0x590] sm:$0xff] %v532_v50  ;;  %v660_v50 = vld [vmem:[%s4316_s26 + $0x1e40] sm:$0xff] }
  0xc3   : > { %535 = vst [vmem:[%s4321_s27 + $0x598] sm:$0xff] %v534_v51  ;;  %v662_v51 = vld [vmem:[%s4316_s26 + $0x1e48] sm:$0xff] }
  0xc4   : > { %537 = vst [vmem:[%s4321_s27 + $0x5a0] sm:$0xff] %v536_v52  ;;  %v664_v52 = vld [vmem:[%s4316_s26 + $0x1e80] sm:$0xff] }
  0xc5   : > { %539 = vst [vmem:[%s4321_s27 + $0x5a8] sm:$0xff] %v538_v53  ;;  %v666_v53 = vld [vmem:[%s4316_s26 + $0x1e88] sm:$0xff] }
  0xc6   : > { %541 = vst [vmem:[%s4321_s27 + $0x5b0] sm:$0xff] %v540_v54  ;;  %v668_v54 = vld [vmem:[%s4316_s26 + $0x1ec0] sm:$0xff] }
  0xc7   : > { %543 = vst [vmem:[%s4321_s27 + $0x5b8] sm:$0xff] %v542_v55  ;;  %v670_v55 = vld [vmem:[%s4316_s26 + $0x1ec8] sm:$0xff] }
  0xc8   : > { %545 = vst [vmem:[%s4321_s27 + $0x5c0] sm:$0xff] %v544_v56  ;;  %v672_v56 = vld [vmem:[%s4316_s26 + $0x1f00] sm:$0xff] }
  0xc9   : > { %547 = vst [vmem:[%s4321_s27 + $0x5c8] sm:$0xff] %v546_v57  ;;  %v674_v57 = vld [vmem:[%s4316_s26 + $0x1f08] sm:$0xff] }
  0xca   : > { %549 = vst [vmem:[%s4321_s27 + $0x5d0] sm:$0xff] %v548_v58  ;;  %v676_v58 = vld [vmem:[%s4316_s26 + $0x1f40] sm:$0xff] }
  0xcb   : > { %551 = vst [vmem:[%s4321_s27 + $0x5d8] sm:$0xff] %v550_v59  ;;  %v678_v59 = vld [vmem:[%s4316_s26 + $0x1f48] sm:$0xff] }
  0xcc   : > { %553 = vst [vmem:[%s4321_s27 + $0x5e0] sm:$0xff] %v552_v60  ;;  %v680_v60 = vld [vmem:[%s4316_s26 + $0x1f80] sm:$0xff] }
  0xcd   : > { %555 = vst [vmem:[%s4321_s27 + $0x5e8] sm:$0xff] %v554_v61  ;;  %v682_v61 = vld [vmem:[%s4316_s26 + $0x1f88] sm:$0xff] }
  0xce   : > { %557 = vst [vmem:[%s4321_s27 + $0x5f0] sm:$0xff] %v556_v62  ;;  %v684_v62 = vld [vmem:[%s4316_s26 + $0x1fc0] sm:$0xff] }
  0xcf   : > { %559 = vst [vmem:[%s4321_s27 + $0x5f8] sm:$0xff] %v558_v63  ;;  %v686_v63 = vld [vmem:[%s4316_s26 + $0x1fc8] sm:$0xff] }
  0xd0   : > { %561 = vst [vmem:[%s4321_s27 + $0x600] sm:$0xff] %v560_v0 }
  0xd1   : > { %563 = vst [vmem:[%s4321_s27 + $0x608] sm:$0xff] %v562_v1 }
  0xd2   : > { %565 = vst [vmem:[%s4321_s27 + $0x610] sm:$0xff] %v564_v2 }
  0xd3   : > { %567 = vst [vmem:[%s4321_s27 + $0x618] sm:$0xff] %v566_v3 }
  0xd4   : > { %569 = vst [vmem:[%s4321_s27 + $0x620] sm:$0xff] %v568_v4 }
  0xd5   : > { %571 = vst [vmem:[%s4321_s27 + $0x628] sm:$0xff] %v570_v5 }
  0xd6   : > { %573 = vst [vmem:[%s4321_s27 + $0x630] sm:$0xff] %v572_v6 }
  0xd7   : > { %575 = vst [vmem:[%s4321_s27 + $0x638] sm:$0xff] %v574_v7 }
  0xd8   : > { %577 = vst [vmem:[%s4321_s27 + $0x640] sm:$0xff] %v576_v8 }
  0xd9   : > { %579 = vst [vmem:[%s4321_s27 + $0x648] sm:$0xff] %v578_v9 }
  0xda   : > { %581 = vst [vmem:[%s4321_s27 + $0x650] sm:$0xff] %v580_v10 }
  0xdb   : > { %583 = vst [vmem:[%s4321_s27 + $0x658] sm:$0xff] %v582_v11 }
  0xdc   : > { %585 = vst [vmem:[%s4321_s27 + $0x660] sm:$0xff] %v584_v12 }
  0xdd   : > { %587 = vst [vmem:[%s4321_s27 + $0x668] sm:$0xff] %v586_v13 }
  0xde   : > { %589 = vst [vmem:[%s4321_s27 + $0x670] sm:$0xff] %v588_v14 }
  0xdf   : > { %591 = vst [vmem:[%s4321_s27 + $0x678] sm:$0xff] %v590_v15 }
  0xe0   : > { %593 = vst [vmem:[%s4321_s27 + $0x680] sm:$0xff] %v592_v16 }
  0xe1   : > { %595 = vst [vmem:[%s4321_s27 + $0x688] sm:$0xff] %v594_v17 }
  0xe2   : > { %597 = vst [vmem:[%s4321_s27 + $0x690] sm:$0xff] %v596_v18 }
  0xe3   : > { %599 = vst [vmem:[%s4321_s27 + $0x698] sm:$0xff] %v598_v19 }
  0xe4   : > { %601 = vst [vmem:[%s4321_s27 + $0x6a0] sm:$0xff] %v600_v20 }
  0xe5   : > { %603 = vst [vmem:[%s4321_s27 + $0x6a8] sm:$0xff] %v602_v21 }
  0xe6   : > { %605 = vst [vmem:[%s4321_s27 + $0x6b0] sm:$0xff] %v604_v22 }
  0xe7   : > { %607 = vst [vmem:[%s4321_s27 + $0x6b8] sm:$0xff] %v606_v23 }
  0xe8   : > { %609 = vst [vmem:[%s4321_s27 + $0x6c0] sm:$0xff] %v608_v24 }
  0xe9   : > { %611 = vst [vmem:[%s4321_s27 + $0x6c8] sm:$0xff] %v610_v25 }
  0xea   : > { %613 = vst [vmem:[%s4321_s27 + $0x6d0] sm:$0xff] %v612_v26 }
  0xeb   : > { %615 = vst [vmem:[%s4321_s27 + $0x6d8] sm:$0xff] %v614_v27 }
  0xec   : > { %617 = vst [vmem:[%s4321_s27 + $0x6e0] sm:$0xff] %v616_v28 }
  0xed   : > { %619 = vst [vmem:[%s4321_s27 + $0x6e8] sm:$0xff] %v618_v29 }
  0xee   : > { %621 = vst [vmem:[%s4321_s27 + $0x6f0] sm:$0xff] %v620_v30 }
  0xef   : > { %623 = vst [vmem:[%s4321_s27 + $0x6f8] sm:$0xff] %v622_v31 }
  0xf0   : > { %625 = vst [vmem:[%s4321_s27 + $0x700] sm:$0xff] %v624_v32 }
  0xf1   : > { %627 = vst [vmem:[%s4321_s27 + $0x708] sm:$0xff] %v626_v33 }
  0xf2   : > { %629 = vst [vmem:[%s4321_s27 + $0x710] sm:$0xff] %v628_v34 }
  0xf3   : > { %631 = vst [vmem:[%s4321_s27 + $0x718] sm:$0xff] %v630_v35 }
  0xf4   : > { %633 = vst [vmem:[%s4321_s27 + $0x720] sm:$0xff] %v632_v36 }
  0xf5   : > { %635 = vst [vmem:[%s4321_s27 + $0x728] sm:$0xff] %v634_v37 }
  0xf6   : > { %637 = vst [vmem:[%s4321_s27 + $0x730] sm:$0xff] %v636_v38 }
  0xf7   : > { %639 = vst [vmem:[%s4321_s27 + $0x738] sm:$0xff] %v638_v39 }
  0xf8   : > { %641 = vst [vmem:[%s4321_s27 + $0x740] sm:$0xff] %v640_v40 }
  0xf9   : > { %643 = vst [vmem:[%s4321_s27 + $0x748] sm:$0xff] %v642_v41 }
  0xfa   : > { %645 = vst [vmem:[%s4321_s27 + $0x750] sm:$0xff] %v644_v42 }
  0xfb   : > { %647 = vst [vmem:[%s4321_s27 + $0x758] sm:$0xff] %v646_v43 }
  0xfc   : > { %649 = vst [vmem:[%s4321_s27 + $0x760] sm:$0xff] %v648_v44 }
  0xfd   : > { %651 = vst [vmem:[%s4321_s27 + $0x768] sm:$0xff] %v650_v45 }
  0xfe   : > { %653 = vst [vmem:[%s4321_s27 + $0x770] sm:$0xff] %v652_v46 }
  0xff   : > { %655 = vst [vmem:[%s4321_s27 + $0x778] sm:$0xff] %v654_v47 }
 0x100   : > { %657 = vst [vmem:[%s4321_s27 + $0x780] sm:$0xff] %v656_v48 }
 0x101   : > { %659 = vst [vmem:[%s4321_s27 + $0x788] sm:$0xff] %v658_v49 }
 0x102   : > { %661 = vst [vmem:[%s4321_s27 + $0x790] sm:$0xff] %v660_v50 }
 0x103   : > { %663 = vst [vmem:[%s4321_s27 + $0x798] sm:$0xff] %v662_v51 }
 0x104   : > { %665 = vst [vmem:[%s4321_s27 + $0x7a0] sm:$0xff] %v664_v52 }
 0x105   : > { %667 = vst [vmem:[%s4321_s27 + $0x7a8] sm:$0xff] %v666_v53 }
 0x106   : > { %669 = vst [vmem:[%s4321_s27 + $0x7b0] sm:$0xff] %v668_v54 }
 0x107   : > { %671 = vst [vmem:[%s4321_s27 + $0x7b8] sm:$0xff] %v670_v55 }
 0x108   : > { %673 = vst [vmem:[%s4321_s27 + $0x7c0] sm:$0xff] %v672_v56 }
 0x109   : > { %675 = vst [vmem:[%s4321_s27 + $0x7c8] sm:$0xff] %v674_v57 }
 0x10a   : > { %677 = vst [vmem:[%s4321_s27 + $0x7d0] sm:$0xff] %v676_v58 }
 0x10b   : > { %679 = vst [vmem:[%s4321_s27 + $0x7d8] sm:$0xff] %v678_v59 }
 0x10c   : > { %681 = vst [vmem:[%s4321_s27 + $0x7e0] sm:$0xff] %v680_v60 }
 0x10d   : > { %683 = vst [vmem:[%s4321_s27 + $0x7e8] sm:$0xff] %v682_v61 }
 0x10e   : > { %685 = vst [vmem:[%s4321_s27 + $0x7f0] sm:$0xff] %v684_v62 }
 0x10f   : > { %687 = vst [vmem:[%s4321_s27 + $0x7f8] sm:$0xff] %v686_v63 }
 0x110 PF: > { %p2885_p6 = scmp.ge.s32.totalorder %s4251_s16, 1  ;;  %p700_p7 = scmp.lt.s32.totalorder %s4251_s16, 5 }
 0x112   : > { %p701_p8 = pnand %p2885_p6, %p700_p7 }
 0x113   : > { %s707_s28 = sand.u32 (!%p701_p8), 1, %s4235_s12   ;;  %s2887_s12 = sshll.u32 (!%p701_p8), %s4243_s14, 2 }
 0x114   : > { %704 = sbr.rel (%p701_p8) target bundleno = 683 (0x2ab), region = 51  ;;  %s2886_s29 = sshll.u32 (!%p701_p8), %s707_s28, 11 }
 0x115   : > { %s4835_s30 = scalar_lea.vmem (!%p701_p8), [#allocation2], %s2886_s29  ;;  %p5232_p9 = scmp.lt.s32.totalorder (!%p701_p8), %s2887_s12, 15 }
 0x119   : > { %v3004_v0 = vld [vmem:[%s4835_s30 + $0xe0] sm:$0xf]  ;;  %v3947_v1 = vld [vmem:[%s4835_s30 + $0xec] sm:$0xf0]  ;;  %s5481_s12 = smov (!%p5232_p9, %s2887_s12), 15 }
 0x11a   : > { %v3132_v2 = vld [vmem:[%s4835_s30 + $0x1e0] sm:$0xf]  ;;  %v3005_v3 = vor.u32 %v3947_v1, %v3004_v0  ;;  %v3979_v4 = vld [vmem:[%s4835_s30 + $0x1ec] sm:$0xf0]  ;;  %s752_s21 = scalar_lea.vmem %s5471_s2, %s5481_s12  ;;  %s2889_s22 = sshll.u32 %s5481_s12, 3 }
 0x11b   : > { %v3260_v5 = vld [vmem:[%s4835_s30 + $0x2e0] sm:$0xf]  ;;  %v4011_v6 = vld [vmem:[%s4835_s30 + $0x2ec] sm:$0xf0]  ;;  %v3133_v7 = vor.u32 %v3979_v4, %v3132_v2  ;;  %s5352_s25 = scalar_lea.vmem %s5472_s3, %s2889_s22 }
 0x11c   : > { %v3261_v8 = vor.u32 %v4011_v6, %v3260_v5  ;;  %v3388_v9 = vld [vmem:[%s4835_s30 + $0x3e0] sm:$0xf]  ;;  %v4043_v10 = vld [vmem:[%s4835_s30 + $0x3ec] sm:$0xf0]  ;;  %2342 = vmatpush.bf16.msra.mxu0 %v3005_v3 }
 0x11d   : > { %v2988_v11 = vld [vmem:[%s4835_s30 + $0xc0] sm:$0xf]  ;;  %v3389_v12 = vor.u32 %v4043_v10, %v3388_v9  ;;  %v3943_v13 = vld [vmem:[%s4835_s30 + $0xcc] sm:$0xf0]  ;;  %2355 = vmatpush.bf16.msra.mxu1 %v3133_v7 }
 0x11e   : > { %v3116_v14 = vld [vmem:[%s4835_s30 + $0x1c0] sm:$0xf]  ;;  %v3975_v15 = vld [vmem:[%s4835_s30 + $0x1cc] sm:$0xf0]  ;;  %2368 = vmatpush.bf16.msra.mxu2 %v3261_v8  ;;  %v2989_v16 = vor.u32 %v3943_v13, %v2988_v11 }
 0x11f   : > { %v3117_v17 = vor.u32 %v3975_v15, %v3116_v14  ;;  %v3244_v18 = vld [vmem:[%s4835_s30 + $0x2c0] sm:$0xf]  ;;  %v4007_v19 = vld [vmem:[%s4835_s30 + $0x2cc] sm:$0xf0]  ;;  %2381 = vmatpush.bf16.msra.mxu3 %v3389_v12 }
 0x120   : > { %v3372_v20 = vld [vmem:[%s4835_s30 + $0x3c0] sm:$0xf]  ;;  %v3245_v21 = vor.u32 %v4007_v19, %v3244_v18  ;;  %v4039_v22 = vld [vmem:[%s4835_s30 + $0x3cc] sm:$0xf0]  ;;  %2343 = vmatpush.bf16.msra.mxu0 %v2989_v16 }
 0x121   : > { %v2972_v23 = vld [vmem:[%s4835_s30 + $0xa0] sm:$0xf]  ;;  %v3939_v24 = vld [vmem:[%s4835_s30 + $0xac] sm:$0xf0]  ;;  %v3373_v25 = vor.u32 %v4039_v22, %v3372_v20  ;;  %2356 = vmatpush.bf16.msra.mxu1 %v3117_v17 }
 0x122   : > { %v3100_v26 = vld [vmem:[%s4835_s30 + $0x1a0] sm:$0xf]  ;;  %v3971_v27 = vld [vmem:[%s4835_s30 + $0x1ac] sm:$0xf0]  ;;  %v2973_v29 = vor.u32 %v3939_v24, %v2972_v23  ;;  %2369 = vmatpush.bf16.msra.mxu2 %v3245_v21 }
 0x123   : > { %v3228_v28 = vld [vmem:[%s4835_s30 + $0x2a0] sm:$0xf]  ;;  %v4003_v30 = vld [vmem:[%s4835_s30 + $0x2ac] sm:$0xf0]  ;;  %v3101_v33 = vor.u32 %v3971_v27, %v3100_v26  ;;  %2382 = vmatpush.bf16.msra.mxu3 %v3373_v25 }
 0x124   : > { %v3356_v31 = vld [vmem:[%s4835_s30 + $0x3a0] sm:$0xf]  ;;  %v4035_v32 = vld [vmem:[%s4835_s30 + $0x3ac] sm:$0xf0]  ;;  %v3229_v34 = vor.u32 %v4003_v30, %v3228_v28  ;;  %2344 = vmatpush.bf16.msra.mxu0 %v2973_v29 }
 0x125   : > { %v2956_v35 = vld [vmem:[%s4835_s30 + $0x80] sm:$0xf]  ;;  %v3935_v36 = vld [vmem:[%s4835_s30 + $0x8c] sm:$0xf0]  ;;  %v3357_v38 = vor.u32 %v4035_v32, %v3356_v31  ;;  %2357 = vmatpush.bf16.msra.mxu1 %v3101_v33 }
 0x126   : > { %v3084_v37 = vld [vmem:[%s4835_s30 + $0x180] sm:$0xf]  ;;  %v3967_v39 = vld [vmem:[%s4835_s30 + $0x18c] sm:$0xf0]  ;;  %v2957_v44 = vor.u32 %v3935_v36, %v2956_v35  ;;  %2370 = vmatpush.bf16.msra.mxu2 %v3229_v34 }
 0x127   : > { %v3212_v40 = vld [vmem:[%s4835_s30 + $0x280] sm:$0xf]  ;;  %v3999_v41 = vld [vmem:[%s4835_s30 + $0x28c] sm:$0xf0]  ;;  %v3085_v45 = vor.u32 %v3967_v39, %v3084_v37  ;;  %2383 = vmatpush.bf16.msra.mxu3 %v3357_v38 }
 0x128   : > { %v3340_v42 = vld [vmem:[%s4835_s30 + $0x380] sm:$0xf]  ;;  %v4031_v43 = vld [vmem:[%s4835_s30 + $0x38c] sm:$0xf0]  ;;  %v3213_v46 = vor.u32 %v3999_v41, %v3212_v40  ;;  %2345 = vmatpush.bf16.msra.mxu0 %v2957_v44 }
 0x129   : > { %v2940_v47 = vld [vmem:[%s4835_s30 + $0x60] sm:$0xf]  ;;  %v3931_v48 = vld [vmem:[%s4835_s30 + $0x6c] sm:$0xf0]  ;;  %v3341_v50 = vor.u32 %v4031_v43, %v3340_v42  ;;  %2358 = vmatpush.bf16.msra.mxu1 %v3085_v45 }
 0x12a   : > { %v3068_v49 = vld [vmem:[%s4835_s30 + $0x160] sm:$0xf]  ;;  %v3963_v51 = vld [vmem:[%s4835_s30 + $0x16c] sm:$0xf0]  ;;  %v2941_v56 = vor.u32 %v3931_v48, %v2940_v47  ;;  %2371 = vmatpush.bf16.msra.mxu2 %v3213_v46 }
 0x12b   : > { %v3196_v52 = vld [vmem:[%s4835_s30 + $0x260] sm:$0xf]  ;;  %v3995_v53 = vld [vmem:[%s4835_s30 + $0x26c] sm:$0xf0]  ;;  %v3069_v57 = vor.u32 %v3963_v51, %v3068_v49  ;;  %2384 = vmatpush.bf16.msra.mxu3 %v3341_v50 }
 0x12c   : > { %v3324_v54 = vld [vmem:[%s4835_s30 + $0x360] sm:$0xf]  ;;  %v4027_v55 = vld [vmem:[%s4835_s30 + $0x36c] sm:$0xf0]  ;;  %v3197_v58 = vor.u32 %v3995_v53, %v3196_v52  ;;  %2346 = vmatpush.bf16.msra.mxu0 %v2941_v56 }
 0x12d   : > { %v2924_v59 = vld [vmem:[%s4835_s30 + $0x40] sm:$0xf]  ;;  %v3927_v60 = vld [vmem:[%s4835_s30 + $0x4c] sm:$0xf0]  ;;  %v3325_v62 = vor.u32 %v4027_v55, %v3324_v54  ;;  %2359 = vmatpush.bf16.msra.mxu1 %v3069_v57 }
 0x12e   : > { %v3052_v61 = vld [vmem:[%s4835_s30 + $0x140] sm:$0xf]  ;;  %v3959_v63 = vld [vmem:[%s4835_s30 + $0x14c] sm:$0xf0]  ;;  %v2925_v4 = vor.u32 %v3927_v60, %v2924_v59  ;;  %2372 = vmatpush.bf16.msra.mxu2 %v3197_v58  ;;  %v765_v58 = vld [vmem:[%s5469_s0 + $0x8] sm:$0xff] }
 0x12f   : > { %v3180_v0 = vld [vmem:[%s4835_s30 + $0x240] sm:$0xf]  ;;  %v3991_v1 = vld [vmem:[%s4835_s30 + $0x24c] sm:$0xf0]  ;;  %v3053_v5 = vor.u32 %v3959_v63, %v3052_v61  ;;  %2385 = vmatpush.bf16.msra.mxu3 %v3325_v62  ;;  %v1040_v63 = vunpack.c.l.b16 %v765_v58 }
 0x130   : > { %v3308_v2 = vld [vmem:[%s4835_s30 + $0x340] sm:$0xf]  ;;  %v4023_v3 = vld [vmem:[%s4835_s30 + $0x34c] sm:$0xf0]  ;;  %v3181_v6 = vor.u32 %v3991_v1, %v3180_v0  ;;  %2347 = vmatpush.bf16.msra.mxu0 %v2925_v4  ;;  %v1041_v0 = vunpack.c.h.b16 %v765_v58 }
 0x131   : > { %v2908_v7 = vld [vmem:[%s4835_s30 + $0x20] sm:$0xf]  ;;  %v3923_v8 = vld [vmem:[%s4835_s30 + $0x2c] sm:$0xf0]  ;;  %v3309_v10 = vor.u32 %v4023_v3, %v3308_v2  ;;  %2360 = vmatpush.bf16.msra.mxu1 %v3053_v5  ;;  %v4928_v4 = vpack.c.b16 %v1040_v63, %v1040_v63 }
 0x132   : > { %v3036_v9 = vld [vmem:[%s4835_s30 + $0x120] sm:$0xf]  ;;  %v3955_v11 = vld [vmem:[%s4835_s30 + $0x12c] sm:$0xf0]  ;;  %v2909_v16 = vor.u32 %v3923_v8, %v2908_v7  ;;  %2373 = vmatpush.bf16.msra.mxu2 %v3181_v6  ;;  %v4933_v6 = vpack.c.b16 %v1041_v0, %v1041_v0 }
 0x133   : > { %v3164_v12 = vld [vmem:[%s4835_s30 + $0x220] sm:$0xf]  ;;  %v3987_v13 = vld [vmem:[%s4835_s30 + $0x22c] sm:$0xf0]  ;;  %v3037_v19 = vor.u32 %v3955_v11, %v3036_v9  ;;  %2386 = vmatpush.bf16.msra.mxu3 %v3309_v10 }
 0x134   : > { %v3292_v14 = vld [vmem:[%s4835_s30 + $0x320] sm:$0xf]  ;;  %v4019_v15 = vld [vmem:[%s4835_s30 + $0x32c] sm:$0xf0]  ;;  %v3165_v20 = vor.u32 %v3987_v13, %v3164_v12  ;;  %2348 = vmatpush.bf16.msra.mxu0 %v2909_v16 }
 0x135   : > { %v2892_v17 = vld [vmem:[%s4835_s30] sm:$0xf]  ;;  %v3919_v18 = vld [vmem:[%s4835_s30 + $0xc] sm:$0xf0]  ;;  %v3293_v24 = vor.u32 %v4019_v15, %v3292_v14  ;;  %2361 = vmatpush.bf16.msra.mxu1 %v3037_v19 }
 0x136   : > { %v3020_v21 = vld [vmem:[%s4835_s30 + $0x100] sm:$0xf]  ;;  %v3951_v22 = vld [vmem:[%s4835_s30 + $0x10c] sm:$0xf0]  ;;  %v2893_v31 = vor.u32 %v3919_v18, %v2892_v17  ;;  %2374 = vmatpush.bf16.msra.mxu2 %v3165_v20 }
 0x137   : > { %v3148_v23 = vld [vmem:[%s4835_s30 + $0x200] sm:$0xf]  ;;  %v3983_v25 = vld [vmem:[%s4835_s30 + $0x20c] sm:$0xf0]  ;;  %v3021_v35 = vor.u32 %v3951_v22, %v3020_v21  ;;  %2387 = vmatpush.bf16.msra.mxu3 %v3293_v24 }
 0x138   : > { %v3276_v26 = vld [vmem:[%s4835_s30 + $0x300] sm:$0xf]  ;;  %v4015_v27 = vld [vmem:[%s4835_s30 + $0x30c] sm:$0xf0]  ;;  %v3149_v36 = vor.u32 %v3983_v25, %v3148_v23  ;;  %2349 = vmatpush.bf16.msra.mxu0 %v2893_v31 }
 0x139   : > { %v3516_v28 = vld [vmem:[%s4835_s30 + $0x4e0] sm:$0xf]  ;;  %v4075_v29 = vld [vmem:[%s4835_s30 + $0x4ec] sm:$0xf0]  ;;  %v3277_v39 = vor.u32 %v4015_v27, %v3276_v26  ;;  %2362 = vmatpush.bf16.msra.mxu1 %v3021_v35 }
 0x13a   : > { %v3644_v30 = vld [vmem:[%s4835_s30 + $0x5e0] sm:$0xf]  ;;  %v4107_v32 = vld [vmem:[%s4835_s30 + $0x5ec] sm:$0xf0]  ;;  %v3517_v40 = vor.u32 %v4075_v29, %v3516_v28  ;;  %2375 = vmatpush.bf16.msra.mxu2 %v3149_v36 }
 0x13b   : > { %v3772_v33 = vld [vmem:[%s4835_s30 + $0x6e0] sm:$0xf]  ;;  %v4139_v34 = vld [vmem:[%s4835_s30 + $0x6ec] sm:$0xf0]  ;;  %v3645_v41 = vor.u32 %v4107_v32, %v3644_v30  ;;  %2388 = vmatpush.bf16.msra.mxu3 %v3277_v39 }
 0x13c   : > { %v3900_v37 = vld [vmem:[%s4835_s30 + $0x7e0] sm:$0xf]  ;;  %v4171_v38 = vld [vmem:[%s4835_s30 + $0x7ec] sm:$0xf0]  ;;  %v3773_v42 = vor.u32 %v4139_v34, %v3772_v33  ;;  %2394 = vmatpush.bf16.msrb.mxu0 %v3517_v40 }
 0x13d   : > { %v3500_v43 = vld [vmem:[%s4835_s30 + $0x4c0] sm:$0xf]  ;;  %v4071_v44 = vld [vmem:[%s4835_s30 + $0x4cc] sm:$0xf0]  ;;  %v3901_v46 = vor.u32 %v4171_v38, %v3900_v37  ;;  %2407 = vmatpush.bf16.msrb.mxu1 %v3645_v41  ;;  %2376 = vmatmul.bf16.vlgmr.msra.gmra.mxu2 %v4928_v4 }
 0x13e   : > { %v3628_v45 = vld [vmem:[%s4835_s30 + $0x5c0] sm:$0xf]  ;;  %v4103_v47 = vld [vmem:[%s4835_s30 + $0x5cc] sm:$0xf0]  ;;  %v3501_v52 = vor.u32 %v4071_v44, %v3500_v43  ;;  %2420 = vmatpush.bf16.msrb.mxu2 %v3773_v42  ;;  %2389 = vmatmul.bf16.vlgmr.msra.gmra.mxu3 %v4933_v6 }
 0x13f   : > { %v3756_v48 = vld [vmem:[%s4835_s30 + $0x6c0] sm:$0xf]  ;;  %v4135_v49 = vld [vmem:[%s4835_s30 + $0x6cc] sm:$0xf0]  ;;  %v3629_v54 = vor.u32 %v4103_v47, %v3628_v45  ;;  %2433 = vmatpush.bf16.msrb.mxu3 %v3901_v46 }
 0x140   : > { %v3884_v50 = vld [vmem:[%s4835_s30 + $0x7c0] sm:$0xf]  ;;  %v4167_v51 = vld [vmem:[%s4835_s30 + $0x7cc] sm:$0xf0]  ;;  %v3757_v55 = vor.u32 %v4135_v49, %v3756_v48  ;;  %2395 = vmatpush.bf16.msrb.mxu0 %v3501_v52 }
 0x141   : > { %v3484_v53 = vld [vmem:[%s4835_s30 + $0x4a0] sm:$0xf]  ;;  %v4067_v56 = vld [vmem:[%s4835_s30 + $0x4ac] sm:$0xf0]  ;;  %v3885_v59 = vor.u32 %v4167_v51, %v3884_v50  ;;  %2408 = vmatpush.bf16.msrb.mxu1 %v3629_v54 }
 0x142   : > { %v3612_v57 = vld [vmem:[%s4835_s30 + $0x5a0] sm:$0xf]  ;;  %v4099_v60 = vld [vmem:[%s4835_s30 + $0x5ac] sm:$0xf0]  ;;  %v3485_v3 = vor.u32 %v4067_v56, %v3484_v53  ;;  %2421 = vmatpush.bf16.msrb.mxu2 %v3757_v55 }
 0x143   : > { %v3740_v61 = vld [vmem:[%s4835_s30 + $0x6a0] sm:$0xf]  ;;  %v4131_v62 = vld [vmem:[%s4835_s30 + $0x6ac] sm:$0xf0]  ;;  %v3613_v7 = vor.u32 %v4099_v60, %v3612_v57  ;;  %2434 = vmatpush.bf16.msrb.mxu3 %v3885_v59 }
 0x144   : > { %v3868_v1 = vld [vmem:[%s4835_s30 + $0x7a0] sm:$0xf]  ;;  %v4163_v2 = vld [vmem:[%s4835_s30 + $0x7ac] sm:$0xf0]  ;;  %v3741_v8 = vor.u32 %v4131_v62, %v3740_v61  ;;  %2396 = vmatpush.bf16.msrb.mxu0 %v3485_v3  ;;  %v767_v3 = vld [vmem:[%s5469_s0 + $0x18] sm:$0xff] }
 0x145   : > { %v764_v5 = vld [vmem:[%s5469_s0] sm:$0xff]  ;;  %v4063_v10 = vld [vmem:[%s4835_s30 + $0x48c] sm:$0xf0]  ;;  %v3869_v14 = vor.u32 %v4163_v2, %v3868_v1  ;;  %2409 = vmatpush.bf16.msrb.mxu1 %v3613_v7 }
 0x146   : > { %v3468_v9 = vld [vmem:[%s4835_s30 + $0x480] sm:$0xf]  ;;  %v1038_v12 = vunpack.c.l.b16 %v764_v5  ;;  %v1039_v13 = vunpack.c.h.b16 %v764_v5  ;;  %v4095_v15 = vld [vmem:[%s4835_s30 + $0x58c] sm:$0xf0]  ;;  %2422 = vmatpush.bf16.msrb.mxu2 %v3741_v8 }
 0x147   : > { %v3596_v11 = vld [vmem:[%s4835_s30 + $0x580] sm:$0xf]  ;;  %v4127_v17 = vld [vmem:[%s4835_s30 + $0x68c] sm:$0xf0]  ;;  %v3469_v22 = vor.u32 %v4063_v10, %v3468_v9  ;;  %2435 = vmatpush.bf16.msrb.mxu3 %v3869_v14  ;;  %v3945_v10 = vld [vmem:[%s4835_s30 + $0xe4] sm:$0xf] }
 0x148   : > { %v3724_v16 = vld [vmem:[%s4835_s30 + $0x680] sm:$0xf]  ;;  %v4159_v19 = vld [vmem:[%s4835_s30 + $0x78c] sm:$0xf0]  ;;  %v4944_v20 = vpack.c.b16 %v1038_v12, %v1038_v12  ;;  %v4947_v21 = vpack.c.b16 %v1039_v13, %v1039_v13  ;;  %v3597_v23 = vor.u32 %v4095_v15, %v3596_v11  ;;  %v3006_v11 = vld [vmem:[%s4835_s30 + $0xf0] sm:$0xf0] }
 0x149   : > { %v3852_v18 = vld [vmem:[%s4835_s30 + $0x780] sm:$0xf]  ;;  %v3725_v24 = vor.u32 %v4127_v17, %v3724_v16  ;;  %v4059_v26 = vld [vmem:[%s4835_s30 + $0x46c] sm:$0xf0]  ;;  %2397 = vmatpush.bf16.msrb.mxu0 %v3469_v22  ;;  %v3977_v12 = vld [vmem:[%s4835_s30 + $0x1e4] sm:$0xf]  ;;  %v1044_v17 = vunpack.c.l.b16 %v767_v3 }
 0x14a   : > { %v3452_v25 = vld [vmem:[%s4835_s30 + $0x460] sm:$0xf]  ;;  %v3853_v28 = vor.u32 %v4159_v19, %v3852_v18  ;;  %v4091_v29 = vld [vmem:[%s4835_s30 + $0x56c] sm:$0xf0]  ;;  %2350 = vmatmul.bf16.vlgmr.msra.gmra.mxu0 %v4944_v20  ;;  %2363 = vmatmul.bf16.vlgmr.msra.gmra.mxu1 %v4947_v21  ;;  %v3134_v14 = vld [vmem:[%s4835_s30 + $0x1f0] sm:$0xf0] }
 0x14b   : > { %v3580_v27 = vld [vmem:[%s4835_s30 + $0x560] sm:$0xf]  ;;  %v4123_v31 = vld [vmem:[%s4835_s30 + $0x66c] sm:$0xf0]  ;;  %v3453_v34 = vor.u32 %v4059_v26, %v3452_v25  ;;  %2410 = vmatpush.bf16.msrb.mxu1 %v3597_v23  ;;  %2423 = vmatpush.bf16.msrb.mxu2 %v3725_v24  ;;  %v4009_v15 = vld [vmem:[%s4835_s30 + $0x2e4] sm:$0xf]  ;;  %v1045_v25 = vunpack.c.h.b16 %v767_v3 }
 0x14c   : > { %v3708_v30 = vld [vmem:[%s4835_s30 + $0x660] sm:$0xf]  ;;  %v4155_v33 = vld [vmem:[%s4835_s30 + $0x76c] sm:$0xf0]  ;;  %v3581_v35 = vor.u32 %v4091_v29, %v3580_v27  ;;  %2436 = vmatpush.bf16.msrb.mxu3 %v3853_v28  ;;  %v3262_v16 = vld [vmem:[%s4835_s30 + $0x2f0] sm:$0xf0]  ;;  %v3009_v27 = vor.u32 %v3945_v10, %v3006_v11  ;;  %v3137_v29 = vor.u32 %v3977_v12, %v3134_v14 }
 0x14d   : > { %v3836_v32 = vld [vmem:[%s4835_s30 + $0x760] sm:$0xf]  ;;  %v3709_v36 = vor.u32 %v4123_v31, %v3708_v30  ;;  %v4055_v38 = vld [vmem:[%s4835_s30 + $0x44c] sm:$0xf0]  ;;  %2398 = vmatpush.bf16.msrb.mxu0 %v3453_v34  ;;  %v4041_v22 = vld [vmem:[%s4835_s30 + $0x3e4] sm:$0xf]  ;;  %v3265_v30 = vor.u32 %v4009_v15, %v3262_v16 }
 0x14e   : > { %v3436_v37 = vld [vmem:[%s4835_s30 + $0x440] sm:$0xf]  ;;  %v3837_v40 = vor.u32 %v4155_v33, %v3836_v32  ;;  %v4087_v41 = vld [vmem:[%s4835_s30 + $0x54c] sm:$0xf0]  ;;  %v3390_v23 = vld [vmem:[%s4835_s30 + $0x3f0] sm:$0xf0] }
 0x14f   : > { %v3564_v39 = vld [vmem:[%s4835_s30 + $0x540] sm:$0xf]  ;;  %v4119_v43 = vld [vmem:[%s4835_s30 + $0x64c] sm:$0xf0]  ;;  %v3437_v46 = vor.u32 %v4055_v38, %v3436_v37  ;;  %2411 = vmatpush.bf16.msrb.mxu1 %v3581_v35  ;;  %2424 = vmatpush.bf16.msrb.mxu2 %v3709_v36  ;;  %v3941_v31 = vld [vmem:[%s4835_s30 + $0xc4] sm:$0xf]  ;;  %v3393_v34 = vor.u32 %v4041_v22, %v3390_v23  ;;  %v5003_v38 = vpack.c.b16 %v1044_v17, %v1044_v17 }
 0x150   : > { %v3692_v42 = vld [vmem:[%s4835_s30 + $0x640] sm:$0xf]  ;;  %v4151_v45 = vld [vmem:[%s4835_s30 + $0x74c] sm:$0xf0]  ;;  %v3565_v47 = vor.u32 %v4087_v41, %v3564_v39  ;;  %2437 = vmatpush.bf16.msrb.mxu3 %v3837_v40  ;;  %v2990_v32 = vld [vmem:[%s4835_s30 + $0xd0] sm:$0xf0] }
 0x151   : > { %v3820_v44 = vld [vmem:[%s4835_s30 + $0x740] sm:$0xf]  ;;  %v3693_v48 = vor.u32 %v4119_v43, %v3692_v42  ;;  %v4051_v50 = vld [vmem:[%s4835_s30 + $0x42c] sm:$0xf0]  ;;  %2399 = vmatpush.bf16.msrb.mxu0 %v3437_v46  ;;  %v3973_v33 = vld [vmem:[%s4835_s30 + $0x1c4] sm:$0xf]  ;;  %v5009_v42 = vpack.c.b16 %v1045_v25, %v1045_v25  ;;  %v2993_v43 = vor.u32 %v3941_v31, %v2990_v32 }
 0x152   : > { %v3420_v49 = vld [vmem:[%s4835_s30 + $0x420] sm:$0xf]  ;;  %v3821_v52 = vor.u32 %v4151_v45, %v3820_v44  ;;  %v4083_v53 = vld [vmem:[%s4835_s30 + $0x52c] sm:$0xf0]  ;;  %v3118_v35 = vld [vmem:[%s4835_s30 + $0x1d0] sm:$0xf0] }
 0x153   : > { %v3548_v51 = vld [vmem:[%s4835_s30 + $0x520] sm:$0xf]  ;;  %v4115_v55 = vld [vmem:[%s4835_s30 + $0x62c] sm:$0xf0]  ;;  %v3421_v59 = vor.u32 %v4051_v50, %v3420_v49  ;;  %2412 = vmatpush.bf16.msrb.mxu1 %v3565_v47  ;;  %2425 = vmatpush.bf16.msrb.mxu2 %v3693_v48  ;;  %v4005_v36 = vld [vmem:[%s4835_s30 + $0x2c4] sm:$0xf]  ;;  %v3121_v45 = vor.u32 %v3973_v33, %v3118_v35 }
 0x154   : > { %v3676_v54 = vld [vmem:[%s4835_s30 + $0x620] sm:$0xf]  ;;  %v4147_v57 = vld [vmem:[%s4835_s30 + $0x72c] sm:$0xf0]  ;;  %v3549_v63 = vor.u32 %v4083_v53, %v3548_v51  ;;  %2438 = vmatpush.bf16.msrb.mxu3 %v3821_v52  ;;  %v3246_v37 = vld [vmem:[%s4835_s30 + $0x2d0] sm:$0xf0] }
 0x155   : > { %v3804_v56 = vld [vmem:[%s4835_s30 + $0x720] sm:$0xf]  ;;  %v4047_v60 = vld [vmem:[%s4835_s30 + $0x40c] sm:$0xf0]  ;;  %v3677_v0 = vor.u32 %v4115_v55, %v3676_v54  ;;  %2400 = vmatpush.bf16.msrb.mxu0 %v3421_v59  ;;  %v4037_v39 = vld [vmem:[%s4835_s30 + $0x3c4] sm:$0xf]  ;;  %v3249_v46 = vor.u32 %v4005_v36, %v3246_v37 }
 0x156   : > { %v3404_v58 = vld [vmem:[%s4835_s30 + $0x400] sm:$0xf]  ;;  %v4079_v62 = vld [vmem:[%s4835_s30 + $0x50c] sm:$0xf0]  ;;  %v3805_v5 = vor.u32 %v4147_v57, %v3804_v56  ;;  %v3374_v40 = vld [vmem:[%s4835_s30 + $0x3d0] sm:$0xf0] }
 0x157   : > { %v3532_v61 = vld [vmem:[%s4835_s30 + $0x500] sm:$0xf]  ;;  %v4111_v2 = vld [vmem:[%s4835_s30 + $0x60c] sm:$0xf0]  ;;  %v3405_v13 = vor.u32 %v4047_v60, %v3404_v58  ;;  %2413 = vmatpush.bf16.msrb.mxu1 %v3549_v63  ;;  %2426 = vmatpush.bf16.msrb.mxu2 %v3677_v0  ;;  %v3937_v47 = vld [vmem:[%s4835_s30 + $0xa4] sm:$0xf]  ;;  %v3377_v50 = vor.u32 %v4037_v39, %v3374_v40 }
 0x158   : > { %v3660_v1 = vld [vmem:[%s4835_s30 + $0x600] sm:$0xf]  ;;  %v4143_v8 = vld [vmem:[%s4835_s30 + $0x70c] sm:$0xf0]  ;;  %v3533_v18 = vor.u32 %v4079_v62, %v3532_v61  ;;  %2439 = vmatpush.bf16.msrb.mxu3 %v3805_v5  ;;  %v2974_v48 = vld [vmem:[%s4835_s30 + $0xb0] sm:$0xf0] }
 0x159   : > { %v3788_v7 = vld [vmem:[%s4835_s30 + $0x700] sm:$0xf]  ;;  %v766_v9 = vld [vmem:[%s5469_s0 + $0x10] sm:$0xff]  ;;  %v3661_v19 = vor.u32 %v4111_v2, %v3660_v1  ;;  %2401 = vmatpush.bf16.msrb.mxu0 %v3405_v13  ;;  %v3969_v49 = vld [vmem:[%s4835_s30 + $0x1a4] sm:$0xf]  ;;  %v2977_v56 = vor.u32 %v3937_v47, %v2974_v48 }
 0x15a   : > { %v1042_v24 = vunpack.c.l.b16 %v766_v9  ;;  %v3789_v26 = vor.u32 %v4143_v8, %v3788_v7  ;;  %v1043_v28 = vunpack.c.h.b16 %v766_v9  ;;  %v3102_v51 = vld [vmem:[%s4835_s30 + $0x1b0] sm:$0xf0]  ;;  %v4001_v52 = vld [vmem:[%s4835_s30 + $0x2a4] sm:$0xf] }
 0x15b   : > { %2414 = vmatpush.bf16.msrb.mxu1 %v3533_v18  ;;  %2427 = vmatpush.bf16.msrb.mxu2 %v3661_v19  ;;  %v3230_v53 = vld [vmem:[%s4835_s30 + $0x2b0] sm:$0xf0]  ;;  %v4033_v54 = vld [vmem:[%s4835_s30 + $0x3a4] sm:$0xf]  ;;  %v3105_v57 = vor.u32 %v3969_v49, %v3102_v51 }
 0x15c   : > { %v5007_v41 = vpack.c.b16 %v1042_v24, %v1042_v24  ;;  %2440 = vmatpush.bf16.msrb.mxu3 %v3789_v26  ;;  %v5011_v44 = vpack.c.b16 %v1043_v28, %v1043_v28  ;;  %v3358_v55 = vld [vmem:[%s4835_s30 + $0x3b0] sm:$0xf0]  ;;  %v3233_v58 = vor.u32 %v4001_v52, %v3230_v53  ;;  %v3933_v59 = vld [vmem:[%s4835_s30 + $0x84] sm:$0xf] }
 0x15d   : > { %2446 = vmatpush.bf16.msra.mxu0 %v3009_v27  ;;  %v2958_v60 = vld [vmem:[%s4835_s30 + $0x90] sm:$0xf0]  ;;  %v3965_v61 = vld [vmem:[%s4835_s30 + $0x184] sm:$0xf]  ;;  %v3361_v62 = vor.u32 %v4033_v54, %v3358_v55 }
 0x15e   : > { %2428 = vmatmul.bf16.vlgmr.msrb.gmra.mxu2 %v5003_v38  ;;  %2402 = vmatmul.bf16.vlgmr.msrb.gmra.mxu0 %v5007_v41  ;;  %v3086_v63 = vld [vmem:[%s4835_s30 + $0x190] sm:$0xf0]  ;;  %v3997_v0 = vld [vmem:[%s4835_s30 + $0x284] sm:$0xf]  ;;  %v2961_v5 = vor.u32 %v3933_v59, %v2958_v60 }
 0x15f   : > { %2459 = vmatpush.bf16.msra.mxu1 %v3137_v29  ;;  %2472 = vmatpush.bf16.msra.mxu2 %v3265_v30  ;;  %v3214_v1 = vld [vmem:[%s4835_s30 + $0x290] sm:$0xf0]  ;;  %v4029_v2 = vld [vmem:[%s4835_s30 + $0x384] sm:$0xf]  ;;  %v3089_v7 = vor.u32 %v3965_v61, %v3086_v63 }
 0x160   : > { %2485 = vmatpush.bf16.msra.mxu3 %v3393_v34  ;;  %2415 = vmatmul.bf16.vlgmr.msrb.gmra.mxu1 %v5011_v44  ;;  %v3342_v3 = vld [vmem:[%s4835_s30 + $0x390] sm:$0xf0]  ;;  %v3217_v8 = vor.u32 %v3997_v0, %v3214_v1  ;;  %v3929_v9 = vld [vmem:[%s4835_s30 + $0x64] sm:$0xf] }
 0x161   : > { %2441 = vmatmul.bf16.vlgmr.msrb.gmra.mxu3 %v5009_v42  ;;  %2447 = vmatpush.bf16.msra.mxu0 %v2993_v43  ;;  %v2942_v10 = vld [vmem:[%s4835_s30 + $0x70] sm:$0xf0]  ;;  %v3961_v11 = vld [vmem:[%s4835_s30 + $0x164] sm:$0xf]  ;;  %v3345_v12 = vor.u32 %v4029_v2, %v3342_v3 }
 0x162   : > { %v3070_v13 = vld [vmem:[%s4835_s30 + $0x170] sm:$0xf0]  ;;  %v3993_v14 = vld [vmem:[%s4835_s30 + $0x264] sm:$0xf]  ;;  %v2945_v18 = vor.u32 %v3929_v9, %v2942_v10 }
 0x163   : > { %2460 = vmatpush.bf16.msra.mxu1 %v3121_v45  ;;  %2473 = vmatpush.bf16.msra.mxu2 %v3249_v46  ;;  %v3198_v15 = vld [vmem:[%s4835_s30 + $0x270] sm:$0xf0]  ;;  %v4025_v16 = vld [vmem:[%s4835_s30 + $0x364] sm:$0xf]  ;;  %v3073_v19 = vor.u32 %v3961_v11, %v3070_v13 }
 0x164   : > { %2486 = vmatpush.bf16.msra.mxu3 %v3377_v50  ;;  %v3326_v17 = vld [vmem:[%s4835_s30 + $0x370] sm:$0xf0]  ;;  %v3201_v22 = vor.u32 %v3993_v14, %v3198_v15  ;;  %v3925_v23 = vld [vmem:[%s4835_s30 + $0x44] sm:$0xf] }
 0x165   : > { %2448 = vmatpush.bf16.msra.mxu0 %v2977_v56  ;;  %v2926_v24 = vld [vmem:[%s4835_s30 + $0x50] sm:$0xf0]  ;;  %v3957_v25 = vld [vmem:[%s4835_s30 + $0x144] sm:$0xf]  ;;  %v3329_v26 = vor.u32 %v4025_v16, %v3326_v17 }
 0x166   : > { %v3054_v27 = vld [vmem:[%s4835_s30 + $0x150] sm:$0xf0]  ;;  %v3989_v28 = vld [vmem:[%s4835_s30 + $0x244] sm:$0xf]  ;;  %v2929_v32 = vor.u32 %v3925_v23, %v2926_v24 }
 0x167   : > { %2461 = vmatpush.bf16.msra.mxu1 %v3105_v57  ;;  %2474 = vmatpush.bf16.msra.mxu2 %v3233_v58  ;;  %v3182_v29 = vld [vmem:[%s4835_s30 + $0x250] sm:$0xf0]  ;;  %v4021_v30 = vld [vmem:[%s4835_s30 + $0x344] sm:$0xf]  ;;  %v3057_v33 = vor.u32 %v3957_v25, %v3054_v27 }
 0x168   : > { %2487 = vmatpush.bf16.msra.mxu3 %v3361_v62  ;;  %v3310_v31 = vld [vmem:[%s4835_s30 + $0x350] sm:$0xf0]  ;;  %v3185_v34 = vor.u32 %v3989_v28, %v3182_v29  ;;  %v3921_v35 = vld [vmem:[%s4835_s30 + $0x24] sm:$0xf] }
 0x169   : > { %2449 = vmatpush.bf16.msra.mxu0 %v2961_v5  ;;  %v2910_v36 = vld [vmem:[%s4835_s30 + $0x30] sm:$0xf0]  ;;  %v3953_v37 = vld [vmem:[%s4835_s30 + $0x124] sm:$0xf]  ;;  %v3313_v39 = vor.u32 %v4021_v30, %v3310_v31 }
 0x16a   : > { %v3038_v40 = vld [vmem:[%s4835_s30 + $0x130] sm:$0xf0]  ;;  %v3985_v43 = vld [vmem:[%s4835_s30 + $0x224] sm:$0xf]  ;;  %v2913_v48 = vor.u32 %v3921_v35, %v2910_v36 }
 0x16b   : > { %2462 = vmatpush.bf16.msra.mxu1 %v3089_v7  ;;  %2475 = vmatpush.bf16.msra.mxu2 %v3217_v8  ;;  %v3166_v45 = vld [vmem:[%s4835_s30 + $0x230] sm:$0xf0]  ;;  %v4017_v46 = vld [vmem:[%s4835_s30 + $0x324] sm:$0xf]  ;;  %v3041_v51 = vor.u32 %v3953_v37, %v3038_v40 }
 0x16c   : > { %2488 = vmatpush.bf16.msra.mxu3 %v3345_v12  ;;  %v3294_v47 = vld [vmem:[%s4835_s30 + $0x330] sm:$0xf0]  ;;  %v3917_v49 = vld [vmem:[%s4835_s30 + $0x4] sm:$0xf]  ;;  %v3169_v52 = vor.u32 %v3985_v43, %v3166_v45 }
 0x16d   : > { %2450 = vmatpush.bf16.msra.mxu0 %v2945_v18  ;;  %v2894_v50 = vld [vmem:[%s4835_s30 + $0x10] sm:$0xf0]  ;;  %v3949_v53 = vld [vmem:[%s4835_s30 + $0x104] sm:$0xf]  ;;  %v3297_v56 = vor.u32 %v4017_v46, %v3294_v47 }
 0x16e   : > { %v3022_v54 = vld [vmem:[%s4835_s30 + $0x110] sm:$0xf0]  ;;  %v3981_v55 = vld [vmem:[%s4835_s30 + $0x204] sm:$0xf]  ;;  %v2897_v63 = vor.u32 %v3917_v49, %v2894_v50 }
 0x16f   : > { %2463 = vmatpush.bf16.msra.mxu1 %v3073_v19  ;;  %2476 = vmatpush.bf16.msra.mxu2 %v3201_v22  ;;  %v3150_v57 = vld [vmem:[%s4835_s30 + $0x210] sm:$0xf0]  ;;  %v4013_v58 = vld [vmem:[%s4835_s30 + $0x304] sm:$0xf]  ;;  %v3025_v3 = vor.u32 %v3949_v53, %v3022_v54 }
 0x170   : > { %2489 = vmatpush.bf16.msra.mxu3 %v3329_v26  ;;  %v3278_v59 = vld [vmem:[%s4835_s30 + $0x310] sm:$0xf0]  ;;  %v4073_v60 = vld [vmem:[%s4835_s30 + $0x4e4] sm:$0xf]  ;;  %v3153_v5 = vor.u32 %v3981_v55, %v3150_v57 }
 0x171   : > { %2451 = vmatpush.bf16.msra.mxu0 %v2929_v32  ;;  %v3518_v61 = vld [vmem:[%s4835_s30 + $0x4f0] sm:$0xf0]  ;;  %v4105_v62 = vld [vmem:[%s4835_s30 + $0x5e4] sm:$0xf]  ;;  %v3281_v9 = vor.u32 %v4013_v58, %v3278_v59 }
 0x172   : > { %v3646_v0 = vld [vmem:[%s4835_s30 + $0x5f0] sm:$0xf0]  ;;  %v4137_v1 = vld [vmem:[%s4835_s30 + $0x6e4] sm:$0xf]  ;;  %v3521_v10 = vor.u32 %v4073_v60, %v3518_v61 }
 0x173   : > { %2464 = vmatpush.bf16.msra.mxu1 %v3057_v33  ;;  %2477 = vmatpush.bf16.msra.mxu2 %v3185_v34  ;;  %v3774_v2 = vld [vmem:[%s4835_s30 + $0x6f0] sm:$0xf0]  ;;  %v4169_v7 = vld [vmem:[%s4835_s30 + $0x7e4] sm:$0xf]  ;;  %v3649_v11 = vor.u32 %v4105_v62, %v3646_v0 }
 0x174   : > { %2490 = vmatpush.bf16.msra.mxu3 %v3313_v39  ;;  %v3902_v8 = vld [vmem:[%s4835_s30 + $0x7f0] sm:$0xf0]  ;;  %v3777_v12 = vor.u32 %v4137_v1, %v3774_v2  ;;  %v4069_v13 = vld [vmem:[%s4835_s30 + $0x4c4] sm:$0xf] }
 0x175   : > { %2452 = vmatpush.bf16.msra.mxu0 %v2913_v48  ;;  %v3502_v14 = vld [vmem:[%s4835_s30 + $0x4d0] sm:$0xf0]  ;;  %v4101_v15 = vld [vmem:[%s4835_s30 + $0x5c4] sm:$0xf]  ;;  %v3905_v16 = vor.u32 %v4169_v7, %v3902_v8 }
 0x176   : > { %v3630_v17 = vld [vmem:[%s4835_s30 + $0x5d0] sm:$0xf0]  ;;  %v4133_v18 = vld [vmem:[%s4835_s30 + $0x6c4] sm:$0xf]  ;;  %v3505_v24 = vor.u32 %v4069_v13, %v3502_v14 }
 0x177   : > { %2465 = vmatpush.bf16.msra.mxu1 %v3041_v51  ;;  %2478 = vmatpush.bf16.msra.mxu2 %v3169_v52  ;;  %v3758_v19 = vld [vmem:[%s4835_s30 + $0x6d0] sm:$0xf0]  ;;  %v4165_v22 = vld [vmem:[%s4835_s30 + $0x7c4] sm:$0xf]  ;;  %v3633_v25 = vor.u32 %v4101_v15, %v3630_v17 }
 0x178   : > { %2491 = vmatpush.bf16.msra.mxu3 %v3297_v56  ;;  %v3886_v23 = vld [vmem:[%s4835_s30 + $0x7d0] sm:$0xf0]  ;;  %v3761_v26 = vor.u32 %v4133_v18, %v3758_v19  ;;  %v4065_v27 = vld [vmem:[%s4835_s30 + $0x4a4] sm:$0xf] }
 0x179   : > { %2453 = vmatpush.bf16.msra.mxu0 %v2897_v63  ;;  %v3486_v28 = vld [vmem:[%s4835_s30 + $0x4b0] sm:$0xf0]  ;;  %v4097_v29 = vld [vmem:[%s4835_s30 + $0x5a4] sm:$0xf]  ;;  %v3889_v30 = vor.u32 %v4165_v22, %v3886_v23 }
 0x17a   : > { %v3614_v31 = vld [vmem:[%s4835_s30 + $0x5b0] sm:$0xf0]  ;;  %v4129_v32 = vld [vmem:[%s4835_s30 + $0x6a4] sm:$0xf]  ;;  %v3489_v36 = vor.u32 %v4065_v27, %v3486_v28 }
 0x17b   : > { %2466 = vmatpush.bf16.msra.mxu1 %v3025_v3  ;;  %2479 = vmatpush.bf16.msra.mxu2 %v3153_v5  ;;  %v3742_v33 = vld [vmem:[%s4835_s30 + $0x6b0] sm:$0xf0]  ;;  %v4161_v34 = vld [vmem:[%s4835_s30 + $0x7a4] sm:$0xf]  ;;  %v3617_v37 = vor.u32 %v4097_v29, %v3614_v31 }
 0x17c   : > { %2492 = vmatpush.bf16.msra.mxu3 %v3281_v9  ;;  %v3870_v35 = vld [vmem:[%s4835_s30 + $0x7b0] sm:$0xf0]  ;;  %2454 = vmatmul.bf16.vlgmr.msra.gmra.mxu0 %v4944_v20  ;;  %v3745_v39 = vor.u32 %v4129_v32, %v3742_v33  ;;  %v4061_v40 = vld [vmem:[%s4835_s30 + $0x484] sm:$0xf] }
 0x17d   : > { %2498 = vmatpush.bf16.msrb.mxu0 %v3521_v10  ;;  %v3470_v43 = vld [vmem:[%s4835_s30 + $0x490] sm:$0xf0]  ;;  %v4093_v45 = vld [vmem:[%s4835_s30 + $0x584] sm:$0xf]  ;;  %v3873_v46 = vor.u32 %v4161_v34, %v3870_v35 }
 0x17e   : > { %2480 = vmatmul.bf16.vlgmr.msra.gmra.mxu2 %v4928_v4  ;;  %2467 = vmatmul.bf16.vlgmr.msra.gmra.mxu1 %v4947_v21  ;;  %v3598_v47 = vld [vmem:[%s4835_s30 + $0x590] sm:$0xf0]  ;;  %v4125_v48 = vld [vmem:[%s4835_s30 + $0x684] sm:$0xf]  ;;  %v3473_v52 = vor.u32 %v4061_v40, %v3470_v43  ;;  %v3012_v43 = vld [vmem:[%s4835_s30 + $0xe8] sm:$0xf] }
 0x17f   : > { %2511 = vmatpush.bf16.msrb.mxu1 %v3649_v11  ;;  %2524 = vmatpush.bf16.msrb.mxu2 %v3777_v12  ;;  %v3726_v49 = vld [vmem:[%s4835_s30 + $0x690] sm:$0xf0]  ;;  %v4157_v50 = vld [vmem:[%s4835_s30 + $0x784] sm:$0xf]  ;;  %v3601_v53 = vor.u32 %v4093_v45, %v3598_v47  ;;  %v3948_v45 = vld [vmem:[%s4835_s30 + $0xf4] sm:$0xf0] }
 0x180   : > { %2537 = vmatpush.bf16.msrb.mxu3 %v3905_v16  ;;  %v3854_v51 = vld [vmem:[%s4835_s30 + $0x790] sm:$0xf0]  ;;  %v3729_v54 = vor.u32 %v4125_v48, %v3726_v49  ;;  %v4057_v55 = vld [vmem:[%s4835_s30 + $0x464] sm:$0xf]  ;;  %v3980_v48 = vld [vmem:[%s4835_s30 + $0x1f4] sm:$0xf0] }
 0x181   : > { %2493 = vmatmul.bf16.vlgmr.msra.gmra.mxu3 %v4933_v6  ;;  %2499 = vmatpush.bf16.msrb.mxu0 %v3505_v24  ;;  %v3454_v56 = vld [vmem:[%s4835_s30 + $0x470] sm:$0xf0]  ;;  %v4089_v57 = vld [vmem:[%s4835_s30 + $0x564] sm:$0xf]  ;;  %v3857_v58 = vor.u32 %v4157_v50, %v3854_v51  ;;  %v3268_v49 = vld [vmem:[%s4835_s30 + $0x2e8] sm:$0xf] }
 0x182   : > { %v3582_v59 = vld [vmem:[%s4835_s30 + $0x570] sm:$0xf0]  ;;  %v4121_v60 = vld [vmem:[%s4835_s30 + $0x664] sm:$0xf]  ;;  %v3457_v0 = vor.u32 %v4057_v55, %v3454_v56  ;;  %v4012_v50 = vld [vmem:[%s4835_s30 + $0x2f4] sm:$0xf0]  ;;  %v3013_v56 = vor.u32 %v3948_v45, %v3012_v43 }
 0x183   : > { %2512 = vmatpush.bf16.msrb.mxu1 %v3633_v25  ;;  %2525 = vmatpush.bf16.msrb.mxu2 %v3761_v26  ;;  %v3710_v61 = vld [vmem:[%s4835_s30 + $0x670] sm:$0xf0]  ;;  %v4153_v62 = vld [vmem:[%s4835_s30 + $0x764] sm:$0xf]  ;;  %v3585_v1 = vor.u32 %v4089_v57, %v3582_v59  ;;  %v2996_v59 = vld [vmem:[%s4835_s30 + $0xc8] sm:$0xf] }
 0x184   : > { %2538 = vmatpush.bf16.msrb.mxu3 %v3889_v30  ;;  %v3838_v63 = vld [vmem:[%s4835_s30 + $0x770] sm:$0xf0]  ;;  %v3713_v2 = vor.u32 %v4121_v60, %v3710_v61  ;;  %v4053_v3 = vld [vmem:[%s4835_s30 + $0x444] sm:$0xf]  ;;  %v3944_v60 = vld [vmem:[%s4835_s30 + $0xd4] sm:$0xf0] }
 0x185   : > { %2500 = vmatpush.bf16.msrb.mxu0 %v3489_v36  ;;  %v3438_v5 = vld [vmem:[%s4835_s30 + $0x450] sm:$0xf0]  ;;  %v4085_v7 = vld [vmem:[%s4835_s30 + $0x544] sm:$0xf]  ;;  %v3841_v8 = vor.u32 %v4153_v62, %v3838_v63  ;;  %v3124_v61 = vld [vmem:[%s4835_s30 + $0x1c8] sm:$0xf] }
 0x186   : > { %v3566_v9 = vld [vmem:[%s4835_s30 + $0x550] sm:$0xf0]  ;;  %v4117_v10 = vld [vmem:[%s4835_s30 + $0x644] sm:$0xf]  ;;  %v3441_v14 = vor.u32 %v4053_v3, %v3438_v5  ;;  %v3976_v63 = vld [vmem:[%s4835_s30 + $0x1d4] sm:$0xf0]  ;;  %v2997_v5 = vor.u32 %v3944_v60, %v2996_v59 }
 0x187   : > { %2513 = vmatpush.bf16.msrb.mxu1 %v3617_v37  ;;  %2526 = vmatpush.bf16.msrb.mxu2 %v3745_v39  ;;  %v3694_v11 = vld [vmem:[%s4835_s30 + $0x650] sm:$0xf0]  ;;  %v4149_v12 = vld [vmem:[%s4835_s30 + $0x744] sm:$0xf]  ;;  %v3569_v15 = vor.u32 %v4085_v7, %v3566_v9  ;;  %v4040_v3 = vld [vmem:[%s4835_s30 + $0x3d4] sm:$0xf0]  ;;  %v3125_v7 = vor.u32 %v3976_v63, %v3124_v61 }
 0x188   : > { %2539 = vmatpush.bf16.msrb.mxu3 %v3873_v46  ;;  %v3822_v13 = vld [vmem:[%s4835_s30 + $0x750] sm:$0xf0]  ;;  %v3697_v16 = vor.u32 %v4117_v10, %v3694_v11  ;;  %v4049_v17 = vld [vmem:[%s4835_s30 + $0x424] sm:$0xf]  ;;  %v3140_v46 = vld [vmem:[%s4835_s30 + $0x1e8] sm:$0xf] }
 0x189   : > { %2501 = vmatpush.bf16.msrb.mxu0 %v3473_v52  ;;  %v3422_v18 = vld [vmem:[%s4835_s30 + $0x430] sm:$0xf0]  ;;  %v4081_v19 = vld [vmem:[%s4835_s30 + $0x524] sm:$0xf]  ;;  %v3825_v22 = vor.u32 %v4149_v12, %v3822_v13  ;;  %v3141_v57 = vor.u32 %v3980_v48, %v3140_v46  ;;  %v2980_v9 = vld [vmem:[%s4835_s30 + $0xa8] sm:$0xf] }
 0x18a   : > { %v3550_v23 = vld [vmem:[%s4835_s30 + $0x530] sm:$0xf0]  ;;  %v4113_v24 = vld [vmem:[%s4835_s30 + $0x624] sm:$0xf]  ;;  %v3425_v28 = vor.u32 %v4049_v17, %v3422_v18  ;;  %v3940_v10 = vld [vmem:[%s4835_s30 + $0xb4] sm:$0xf0] }
 0x18b   : > { %2514 = vmatpush.bf16.msrb.mxu1 %v3601_v53  ;;  %2527 = vmatpush.bf16.msrb.mxu2 %v3729_v54  ;;  %v3678_v25 = vld [vmem:[%s4835_s30 + $0x630] sm:$0xf0]  ;;  %v4145_v26 = vld [vmem:[%s4835_s30 + $0x724] sm:$0xf]  ;;  %v3553_v31 = vor.u32 %v4081_v19, %v3550_v23  ;;  %v3396_v53 = vld [vmem:[%s4835_s30 + $0x3e8] sm:$0xf]  ;;  %v2981_v18 = vor.u32 %v3940_v10, %v2980_v9 }
 0x18c   : > { %2540 = vmatpush.bf16.msrb.mxu3 %v3857_v58  ;;  %v3806_v27 = vld [vmem:[%s4835_s30 + $0x730] sm:$0xf0]  ;;  %v4045_v29 = vld [vmem:[%s4835_s30 + $0x404] sm:$0xf]  ;;  %v3681_v32 = vor.u32 %v4113_v24, %v3678_v25  ;;  %v4044_v54 = vld [vmem:[%s4835_s30 + $0x3f4] sm:$0xf0]  ;;  %v3269_v58 = vor.u32 %v4012_v50, %v3268_v49 }
 0x18d   : > { %2502 = vmatpush.bf16.msrb.mxu0 %v3457_v0  ;;  %v3406_v30 = vld [vmem:[%s4835_s30 + $0x410] sm:$0xf0]  ;;  %v4077_v33 = vld [vmem:[%s4835_s30 + $0x504] sm:$0xf]  ;;  %v3809_v36 = vor.u32 %v4145_v26, %v3806_v27  ;;  %v3397_v62 = vor.u32 %v4044_v54, %v3396_v53  ;;  %v3252_v0 = vld [vmem:[%s4835_s30 + $0x2c8] sm:$0xf] }
 0x18e   : > { %v3534_v34 = vld [vmem:[%s4835_s30 + $0x510] sm:$0xf0]  ;;  %v4109_v35 = vld [vmem:[%s4835_s30 + $0x604] sm:$0xf]  ;;  %v3409_v47 = vor.u32 %v4045_v29, %v3406_v30  ;;  %v3108_v11 = vld [vmem:[%s4835_s30 + $0x1a8] sm:$0xf] }
 0x18f   : > { %2515 = vmatpush.bf16.msrb.mxu1 %v3585_v1  ;;  %2528 = vmatpush.bf16.msrb.mxu2 %v3713_v2  ;;  %v3662_v37 = vld [vmem:[%s4835_s30 + $0x610] sm:$0xf0]  ;;  %v4141_v39 = vld [vmem:[%s4835_s30 + $0x704] sm:$0xf]  ;;  %v3537_v51 = vor.u32 %v4077_v33, %v3534_v34  ;;  %v4008_v1 = vld [vmem:[%s4835_s30 + $0x2d4] sm:$0xf0] }
 0x190   : > { %2541 = vmatpush.bf16.msrb.mxu3 %v3841_v8  ;;  %v3790_v40 = vld [vmem:[%s4835_s30 + $0x710] sm:$0xf0]  ;;  %v3665_v52 = vor.u32 %v4109_v35, %v3662_v37  ;;  %v3380_v2 = vld [vmem:[%s4835_s30 + $0x3c8] sm:$0xf]  ;;  %v3253_v8 = vor.u32 %v4008_v1, %v3252_v0  ;;  %v3972_v13 = vld [vmem:[%s4835_s30 + $0x1b4] sm:$0xf0] }
 0x191   : > { %2503 = vmatpush.bf16.msrb.mxu0 %v3441_v14  ;;  %v3793_v55 = vor.u32 %v4141_v39, %v3790_v40  ;;  %v3381_v12 = vor.u32 %v4040_v3, %v3380_v2  ;;  %v3236_v14 = vld [vmem:[%s4835_s30 + $0x2a8] sm:$0xf]  ;;  %v4036_v17 = vld [vmem:[%s4835_s30 + $0x3b4] sm:$0xf0]  ;;  %v3109_v19 = vor.u32 %v3972_v13, %v3108_v11 }
 0x192   : > { %v2964_v23 = vld [vmem:[%s4835_s30 + $0x88] sm:$0xf]  ;;  %v3936_v24 = vld [vmem:[%s4835_s30 + $0x94] sm:$0xf0] }
 0x193   : > { %2516 = vmatpush.bf16.msrb.mxu1 %v3569_v15  ;;  %2529 = vmatpush.bf16.msrb.mxu2 %v3697_v16  ;;  %v4004_v15 = vld [vmem:[%s4835_s30 + $0x2b4] sm:$0xf0]  ;;  %v3364_v16 = vld [vmem:[%s4835_s30 + $0x3a8] sm:$0xf] }
 0x194   : > { %2542 = vmatpush.bf16.msrb.mxu3 %v3825_v22  ;;  %v3237_v22 = vor.u32 %v4004_v15, %v3236_v14  ;;  %v3092_v25 = vld [vmem:[%s4835_s30 + $0x188] sm:$0xf]  ;;  %v3365_v26 = vor.u32 %v4036_v17, %v3364_v16  ;;  %v3968_v27 = vld [vmem:[%s4835_s30 + $0x194] sm:$0xf0] }
 0x195   : > { %2504 = vmatpush.bf16.msrb.mxu0 %v3425_v28  ;;  %v3220_v28 = vld [vmem:[%s4835_s30 + $0x288] sm:$0xf]  ;;  %v4000_v29 = vld [vmem:[%s4835_s30 + $0x294] sm:$0xf0]  ;;  %v3093_v33 = vor.u32 %v3968_v27, %v3092_v25 }
 0x196   : > { %v3348_v30 = vld [vmem:[%s4835_s30 + $0x388] sm:$0xf]  ;;  %v3221_v34 = vor.u32 %v4000_v29, %v3220_v28  ;;  %v3964_v40 = vld [vmem:[%s4835_s30 + $0x174] sm:$0xf0] }
 0x197   : > { %2517 = vmatpush.bf16.msrb.mxu1 %v3553_v31  ;;  %2530 = vmatpush.bf16.msrb.mxu2 %v3681_v32  ;;  %v4032_v31 = vld [vmem:[%s4835_s30 + $0x394] sm:$0xf0]  ;;  %v2965_v32 = vor.u32 %v3936_v24, %v2964_v23  ;;  %v2948_v35 = vld [vmem:[%s4835_s30 + $0x68] sm:$0xf] }
 0x198   : > { %2543 = vmatpush.bf16.msrb.mxu3 %v3809_v36  ;;  %v3932_v36 = vld [vmem:[%s4835_s30 + $0x74] sm:$0xf0]  ;;  %v3076_v37 = vld [vmem:[%s4835_s30 + $0x168] sm:$0xf]  ;;  %v3349_v39 = vor.u32 %v4032_v31, %v3348_v30 }
 0x199   : > { %2505 = vmatpush.bf16.msrb.mxu0 %v3409_v47  ;;  %v3204_v43 = vld [vmem:[%s4835_s30 + $0x268] sm:$0xf]  ;;  %v3996_v45 = vld [vmem:[%s4835_s30 + $0x274] sm:$0xf0]  ;;  %v2949_v48 = vor.u32 %v3932_v36, %v2948_v35  ;;  %v3077_v49 = vor.u32 %v3964_v40, %v3076_v37 }
 0x19a   : > { %v3332_v46 = vld [vmem:[%s4835_s30 + $0x368] sm:$0xf]  ;;  %v4028_v47 = vld [vmem:[%s4835_s30 + $0x374] sm:$0xf0]  ;;  %v3205_v50 = vor.u32 %v3996_v45, %v3204_v43 }
 0x19b   : > { %2518 = vmatpush.bf16.msrb.mxu1 %v3537_v51  ;;  %2531 = vmatpush.bf16.msrb.mxu2 %v3665_v52  ;;  %v2932_v51 = vld [vmem:[%s4835_s30 + $0x48] sm:$0xf]  ;;  %v3928_v52 = vld [vmem:[%s4835_s30 + $0x54] sm:$0xf0]  ;;  %v3333_v54 = vor.u32 %v4028_v47, %v3332_v46 }
 0x19c   : > { %2544 = vmatpush.bf16.msrb.mxu3 %v3793_v55  ;;  %2506 = vmatmul.bf16.vlgmr.msrb.gmra.mxu0 %v5007_v41  ;;  %v3060_v53 = vld [vmem:[%s4835_s30 + $0x148] sm:$0xf]  ;;  %v3960_v55 = vld [vmem:[%s4835_s30 + $0x154] sm:$0xf0]  ;;  %v2933_v60 = vor.u32 %v3928_v52, %v2932_v51 }
 0x19d   : > { %2550 = vmatpush.bf16.msra.mxu0 %v3013_v56  ;;  %v3188_v56 = vld [vmem:[%s4835_s30 + $0x248] sm:$0xf]  ;;  %v4024_v59 = vld [vmem:[%s4835_s30 + $0x354] sm:$0xf0]  ;;  %v3061_v61 = vor.u32 %v3960_v55, %v3060_v53 }
 0x19e   : > { %2532 = vmatmul.bf16.vlgmr.msrb.gmra.mxu2 %v5003_v38  ;;  %2519 = vmatmul.bf16.vlgmr.msrb.gmra.mxu1 %v5011_v44  ;;  %v2916_v63 = vld [vmem:[%s4835_s30 + $0x28] sm:$0xf]  ;;  %v3924_v0 = vld [vmem:[%s4835_s30 + $0x34] sm:$0xf0] }
 0x19f   : > { %2563 = vmatpush.bf16.msra.mxu1 %v3141_v57  ;;  %2576 = vmatpush.bf16.msra.mxu2 %v3269_v58  ;;  %v3992_v57 = vld [vmem:[%s4835_s30 + $0x254] sm:$0xf0]  ;;  %v3316_v58 = vld [vmem:[%s4835_s30 + $0x348] sm:$0xf]  ;;  %v2917_v10 = vor.u32 %v3924_v0, %v2916_v63 }
 0x1a0   : > { %2589 = vmatpush.bf16.msra.mxu3 %v3397_v62  ;;  %v3189_v62 = vor.u32 %v3992_v57, %v3188_v56  ;;  %v3044_v1 = vld [vmem:[%s4835_s30 + $0x128] sm:$0xf]  ;;  %v3317_v2 = vor.u32 %v4024_v59, %v3316_v58  ;;  %v3956_v3 = vld [vmem:[%s4835_s30 + $0x134] sm:$0xf0] }
 0x1a1   : > { %2545 = vmatmul.bf16.vlgmr.msrb.gmra.mxu3 %v5009_v42  ;;  %2551 = vmatpush.bf16.msra.mxu0 %v2997_v5  ;;  %v3172_v5 = vld [vmem:[%s4835_s30 + $0x228] sm:$0xf]  ;;  %v4020_v9 = vld [vmem:[%s4835_s30 + $0x334] sm:$0xf0]  ;;  %v3045_v13 = vor.u32 %v3956_v3, %v3044_v1 }
 0x1a2   : > { %v2900_v11 = vld [vmem:[%s4835_s30 + $0x8] sm:$0xf]  ;;  %v3952_v16 = vld [vmem:[%s4835_s30 + $0x114] sm:$0xf0] }
 0x1a3   : > { %2564 = vmatpush.bf16.msra.mxu1 %v3125_v7  ;;  %2577 = vmatpush.bf16.msra.mxu2 %v3253_v8  ;;  %v3988_v7 = vld [vmem:[%s4835_s30 + $0x234] sm:$0xf0]  ;;  %v3300_v8 = vld [vmem:[%s4835_s30 + $0x328] sm:$0xf] }
 0x1a4   : > { %2590 = vmatpush.bf16.msra.mxu3 %v3381_v12  ;;  %v3920_v12 = vld [vmem:[%s4835_s30 + $0x14] sm:$0xf0]  ;;  %v3173_v14 = vor.u32 %v3988_v7, %v3172_v5  ;;  %v3028_v15 = vld [vmem:[%s4835_s30 + $0x108] sm:$0xf] }
 0x1a5   : > { %2552 = vmatpush.bf16.msra.mxu0 %v2981_v18  ;;  %v3156_v17 = vld [vmem:[%s4835_s30 + $0x208] sm:$0xf]  ;;  %v3301_v18 = vor.u32 %v4020_v9, %v3300_v8  ;;  %v4016_v23 = vld [vmem:[%s4835_s30 + $0x314] sm:$0xf0]  ;;  %v2901_v27 = vor.u32 %v3920_v12, %v2900_v11  ;;  %v3029_v31 = vor.u32 %v3952_v16, %v3028_v15 }
 0x1a6   : > { %v3524_v24 = vld [vmem:[%s4835_s30 + $0x4e8] sm:$0xf]  ;;  %v4076_v25 = vld [vmem:[%s4835_s30 + $0x4f4] sm:$0xf0] }
 0x1a7   : > { %2565 = vmatpush.bf16.msra.mxu1 %v3109_v19  ;;  %2578 = vmatpush.bf16.msra.mxu2 %v3237_v22  ;;  %v3984_v19 = vld [vmem:[%s4835_s30 + $0x214] sm:$0xf0]  ;;  %v3284_v22 = vld [vmem:[%s4835_s30 + $0x308] sm:$0xf]  ;;  %v3525_v36 = vor.u32 %v4076_v25, %v3524_v24 }
 0x1a8   : > { %2591 = vmatpush.bf16.msra.mxu3 %v3365_v26  ;;  %v3652_v26 = vld [vmem:[%s4835_s30 + $0x5e8] sm:$0xf]  ;;  %v4108_v28 = vld [vmem:[%s4835_s30 + $0x5f4] sm:$0xf0]  ;;  %v3285_v35 = vor.u32 %v4016_v23, %v3284_v22 }
 0x1a9   : > { %2553 = vmatpush.bf16.msra.mxu0 %v2965_v32  ;;  %v3780_v29 = vld [vmem:[%s4835_s30 + $0x6e8] sm:$0xf]  ;;  %v4140_v30 = vld [vmem:[%s4835_s30 + $0x6f4] sm:$0xf0]  ;;  %v3157_v32 = vor.u32 %v3984_v19, %v3156_v17  ;;  %v3653_v37 = vor.u32 %v4108_v28, %v3652_v26 }
 0x1aa   : > { %v3508_v40 = vld [vmem:[%s4835_s30 + $0x4c8] sm:$0xf]  ;;  %v4072_v43 = vld [vmem:[%s4835_s30 + $0x4d4] sm:$0xf0] }
 0x1ab   : > { %2566 = vmatpush.bf16.msra.mxu1 %v3093_v33  ;;  %2579 = vmatpush.bf16.msra.mxu2 %v3221_v34  ;;  %v3908_v33 = vld [vmem:[%s4835_s30 + $0x7e8] sm:$0xf]  ;;  %v4172_v34 = vld [vmem:[%s4835_s30 + $0x7f4] sm:$0xf0]  ;;  %v3509_v52 = vor.u32 %v4072_v43, %v3508_v40 }
 0x1ac   : > { %2592 = vmatpush.bf16.msra.mxu3 %v3349_v39  ;;  %v3781_v39 = vor.u32 %v4140_v30, %v3780_v29  ;;  %v3636_v45 = vld [vmem:[%s4835_s30 + $0x5c8] sm:$0xf]  ;;  %v3909_v46 = vor.u32 %v4172_v34, %v3908_v33  ;;  %v4104_v47 = vld [vmem:[%s4835_s30 + $0x5d4] sm:$0xf0] }
 0x1ad   : > { %2554 = vmatpush.bf16.msra.mxu0 %v2949_v48  ;;  %v3764_v48 = vld [vmem:[%s4835_s30 + $0x6c8] sm:$0xf]  ;;  %v4168_v51 = vld [vmem:[%s4835_s30 + $0x7d4] sm:$0xf0]  ;;  %v3637_v53 = vor.u32 %v4104_v47, %v3636_v45 }
 0x1ae   : > { %v3492_v55 = vld [vmem:[%s4835_s30 + $0x4a8] sm:$0xf]  ;;  %v4068_v56 = vld [vmem:[%s4835_s30 + $0x4b4] sm:$0xf0] }
 0x1af   : > { %2567 = vmatpush.bf16.msra.mxu1 %v3077_v49  ;;  %2580 = vmatpush.bf16.msra.mxu2 %v3205_v50  ;;  %v4136_v49 = vld [vmem:[%s4835_s30 + $0x6d4] sm:$0xf0]  ;;  %v3892_v50 = vld [vmem:[%s4835_s30 + $0x7c8] sm:$0xf]  ;;  %v3493_v0 = vor.u32 %v4068_v56, %v3492_v55 }
 0x1b0   : > { %2593 = vmatpush.bf16.msra.mxu3 %v3333_v54  ;;  %v3765_v54 = vor.u32 %v4136_v49, %v3764_v48  ;;  %v3620_v57 = vld [vmem:[%s4835_s30 + $0x5a8] sm:$0xf]  ;;  %v3893_v58 = vor.u32 %v4168_v51, %v3892_v50  ;;  %v4100_v59 = vld [vmem:[%s4835_s30 + $0x5b4] sm:$0xf0] }
 0x1b1   : > { %2555 = vmatpush.bf16.msra.mxu0 %v2933_v60  ;;  %v3748_v60 = vld [vmem:[%s4835_s30 + $0x6a8] sm:$0xf]  ;;  %v4164_v63 = vld [vmem:[%s4835_s30 + $0x7b4] sm:$0xf0]  ;;  %v3621_v1 = vor.u32 %v4100_v59, %v3620_v57 }
 0x1b2   : > { %v3476_v3 = vld [vmem:[%s4835_s30 + $0x488] sm:$0xf]  ;;  %v4064_v5 = vld [vmem:[%s4835_s30 + $0x494] sm:$0xf0] }
 0x1b3   : > { %2568 = vmatpush.bf16.msra.mxu1 %v3061_v61  ;;  %2581 = vmatpush.bf16.msra.mxu2 %v3189_v62  ;;  %v4132_v61 = vld [vmem:[%s4835_s30 + $0x6b4] sm:$0xf0]  ;;  %v3876_v62 = vld [vmem:[%s4835_s30 + $0x7a8] sm:$0xf] }
 0x1b4   : > { %2594 = vmatpush.bf16.msra.mxu3 %v3317_v2  ;;  %v3749_v2 = vor.u32 %v4132_v61, %v3748_v60  ;;  %v3604_v7 = vld [vmem:[%s4835_s30 + $0x588] sm:$0xf]  ;;  %v3877_v8 = vor.u32 %v4164_v63, %v3876_v62  ;;  %v4096_v9 = vld [vmem:[%s4835_s30 + $0x594] sm:$0xf0] }
 0x1b5   : > { %2556 = vmatpush.bf16.msra.mxu0 %v2917_v10  ;;  %v3732_v10 = vld [vmem:[%s4835_s30 + $0x688] sm:$0xf]  ;;  %v4128_v11 = vld [vmem:[%s4835_s30 + $0x694] sm:$0xf0]  ;;  %v3605_v15 = vor.u32 %v4096_v9, %v3604_v7 }
 0x1b6   : > { %v3860_v12 = vld [vmem:[%s4835_s30 + $0x788] sm:$0xf]  ;;  %v3733_v16 = vor.u32 %v4128_v11, %v3732_v10  ;;  %v4092_v23 = vld [vmem:[%s4835_s30 + $0x574] sm:$0xf0] }
 0x1b7   : > { %2569 = vmatpush.bf16.msra.mxu1 %v3045_v13  ;;  %2582 = vmatpush.bf16.msra.mxu2 %v3173_v14  ;;  %v4160_v13 = vld [vmem:[%s4835_s30 + $0x794] sm:$0xf0]  ;;  %v3477_v14 = vor.u32 %v4064_v5, %v3476_v3  ;;  %v3460_v17 = vld [vmem:[%s4835_s30 + $0x468] sm:$0xf] }
 0x1b8   : > { %2595 = vmatpush.bf16.msra.mxu3 %v3301_v18  ;;  %v4060_v18 = vld [vmem:[%s4835_s30 + $0x474] sm:$0xf0]  ;;  %v3588_v19 = vld [vmem:[%s4835_s30 + $0x568] sm:$0xf]  ;;  %v3861_v22 = vor.u32 %v4160_v13, %v3860_v12  ;;  %v3946_v12 = vld [vmem:[%s4835_s30 + $0xec] sm:$0xf] }
 0x1b9   : > { %2557 = vmatpush.bf16.msra.mxu0 %v2901_v27  ;;  %v3716_v24 = vld [vmem:[%s4835_s30 + $0x668] sm:$0xf]  ;;  %v4124_v25 = vld [vmem:[%s4835_s30 + $0x674] sm:$0xf0]  ;;  %v3461_v28 = vor.u32 %v4060_v18, %v3460_v17  ;;  %v3589_v29 = vor.u32 %v4092_v23, %v3588_v19  ;;  %v3014_v13 = vld [vmem:[%s4835_s30 + $0xf8] sm:$0xf0] }
 0x1ba   : > { %v3844_v26 = vld [vmem:[%s4835_s30 + $0x768] sm:$0xf]  ;;  %v4156_v27 = vld [vmem:[%s4835_s30 + $0x774] sm:$0xf0]  ;;  %v3717_v30 = vor.u32 %v4124_v25, %v3716_v24  ;;  %v3142_v18 = vld [vmem:[%s4835_s30 + $0x1f8] sm:$0xf0] }
 0x1bb   : > { %2570 = vmatpush.bf16.msra.mxu1 %v3029_v31  ;;  %2583 = vmatpush.bf16.msra.mxu2 %v3157_v32  ;;  %v3444_v31 = vld [vmem:[%s4835_s30 + $0x448] sm:$0xf]  ;;  %v4056_v32 = vld [vmem:[%s4835_s30 + $0x454] sm:$0xf0]  ;;  %v3845_v34 = vor.u32 %v4156_v27, %v3844_v26  ;;  %v4010_v19 = vld [vmem:[%s4835_s30 + $0x2ec] sm:$0xf] }
 0x1bc   : > { %2596 = vmatpush.bf16.msra.mxu3 %v3285_v35  ;;  %2558 = vmatmul.bf16.vlgmr.msra.gmra.mxu0 %v4944_v20  ;;  %v3572_v33 = vld [vmem:[%s4835_s30 + $0x548] sm:$0xf]  ;;  %v4088_v35 = vld [vmem:[%s4835_s30 + $0x554] sm:$0xf0]  ;;  %v3445_v45 = vor.u32 %v4056_v32, %v3444_v31  ;;  %v4042_v26 = vld [vmem:[%s4835_s30 + $0x3ec] sm:$0xf] }
 0x1bd   : > { %2602 = vmatpush.bf16.msrb.mxu0 %v3525_v36  ;;  %v3700_v36 = vld [vmem:[%s4835_s30 + $0x648] sm:$0xf]  ;;  %v4152_v40 = vld [vmem:[%s4835_s30 + $0x754] sm:$0xf0]  ;;  %v3573_v48 = vor.u32 %v4088_v35, %v3572_v33  ;;  %v3398_v27 = vld [vmem:[%s4835_s30 + $0x3f8] sm:$0xf0] }
 0x1be   : > { %2584 = vmatmul.bf16.vlgmr.msra.gmra.mxu2 %v4928_v4  ;;  %2571 = vmatmul.bf16.vlgmr.msra.gmra.mxu1 %v4947_v21  ;;  %v3428_v50 = vld [vmem:[%s4835_s30 + $0x428] sm:$0xf]  ;;  %v4052_v51 = vld [vmem:[%s4835_s30 + $0x434] sm:$0xf0]  ;;  %v3942_v35 = vld [vmem:[%s4835_s30 + $0xcc] sm:$0xf] }
 0x1bf   : > { %2615 = vmatpush.bf16.msrb.mxu1 %v3653_v37  ;;  %2628 = vmatpush.bf16.msrb.mxu2 %v3781_v39  ;;  %v4120_v37 = vld [vmem:[%s4835_s30 + $0x654] sm:$0xf0]  ;;  %v3828_v39 = vld [vmem:[%s4835_s30 + $0x748] sm:$0xf]  ;;  %v3429_v62 = vor.u32 %v4052_v51, %v3428_v50 }
 0x1c0   : > { %2641 = vmatpush.bf16.msrb.mxu3 %v3909_v46  ;;  %v5270_v46 = vld [vmem:[%s752_s21] sm:$0xf]  ;;  %v3701_v49 = vor.u32 %v4120_v37, %v3700_v36  ;;  %v4084_v55 = vld [vmem:[%s4835_s30 + $0x534] sm:$0xf0]  ;;  %v3684_v56 = vld [vmem:[%s4835_s30 + $0x628] sm:$0xf] }
 0x1c1   : > { %2597 = vmatmul.bf16.vlgmr.msra.gmra.mxu3 %v4933_v6  ;;  %2603 = vmatpush.bf16.msrb.mxu0 %v3509_v52  ;;  %v3556_v52 = vld [vmem:[%s4835_s30 + $0x528] sm:$0xf]  ;;  %v4116_v57 = vld [vmem:[%s4835_s30 + $0x634] sm:$0xf0]  ;;  %v1026_v61 = vperm.slane %v5270_v46, 0 }
 0x1c2   : > { %v3812_v59 = vld [vmem:[%s4835_s30 + $0x728] sm:$0xf]  ;;  %v4148_v60 = vld [vmem:[%s4835_s30 + $0x734] sm:$0xf0]  ;;  %v2998_v36 = vld [vmem:[%s4835_s30 + $0xd8] sm:$0xf0] }
 0x1c3   : > { %2616 = vmatpush.bf16.msrb.mxu1 %v3637_v53  ;;  %2629 = vmatpush.bf16.msrb.mxu2 %v3765_v54  ;;  %v5275_v53 = vpop.f32.mrf.mxu2  ;;  %v3829_v54 = vor.u32 %v4152_v40, %v3828_v39  ;;  %v3412_v63 = vld [vmem:[%s4835_s30 + $0x408] sm:$0xf]  ;;  %v4080_v5 = vld [vmem:[%s4835_s30 + $0x514] sm:$0xf0]  ;;  %v3974_v37 = vld [vmem:[%s4835_s30 + $0x1cc] sm:$0xf]  ;;  %v3401_v39 = vor.u32 %v4042_v26, %v3398_v27 }
 0x1c4   : > { %2642 = vmatpush.bf16.msrb.mxu3 %v3893_v58  ;;  %v5280_v58 = vpop.f32.mrf.mxu3  ;;  %v3540_v3 = vld [vmem:[%s4835_s30 + $0x508] sm:$0xf]  ;;  %v4112_v9 = vld [vmem:[%s4835_s30 + $0x614] sm:$0xf0]  ;;  %v3126_v40 = vld [vmem:[%s4835_s30 + $0x1d8] sm:$0xf0] }
 0x1c5   : > { %2604 = vmatpush.bf16.msrb.mxu0 %v3493_v0  ;;  %v4048_v0 = vld [vmem:[%s4835_s30 + $0x414] sm:$0xf0]  ;;  %v3668_v7 = vld [vmem:[%s4835_s30 + $0x608] sm:$0xf]  ;;  %v3541_v24 = vor.u32 %v4080_v5, %v3540_v3  ;;  %v3129_v50 = vor.u32 %v3974_v37, %v3126_v40  ;;  %v3934_v3 = vld [vmem:[%s4835_s30 + $0x8c] sm:$0xf] }
 0x1c6   : > { %v3796_v10 = vld [vmem:[%s4835_s30 + $0x708] sm:$0xf]  ;;  %v4144_v11 = vld [vmem:[%s4835_s30 + $0x714] sm:$0xf0]  ;;  %v3413_v17 = vor.u32 %v4048_v0, %v3412_v63  ;;  %v3669_v25 = vor.u32 %v4112_v9, %v3668_v7  ;;  %v2966_v5 = vld [vmem:[%s4835_s30 + $0x98] sm:$0xf0] }
 0x1c7   : > { %2617 = vmatpush.bf16.msrb.mxu1 %v3621_v1  ;;  %2630 = vmatpush.bf16.msrb.mxu2 %v3749_v2  ;;  %v2351_v43 = vpop.f32.mrf.mxu0  ;;  %v2364_v47 = vpop.f32.mrf.mxu1  ;;  %v3557_v1 = vor.u32 %v4084_v55, %v3556_v52  ;;  %v3685_v2 = vor.u32 %v4116_v57, %v3684_v56  ;;  %v2982_v55 = vld [vmem:[%s4835_s30 + $0xb8] sm:$0xf0]  ;;  %v3970_v56 = vld [vmem:[%s4835_s30 + $0x1ac] sm:$0xf] }
 0x1c8   : > { %2643 = vmatpush.bf16.msrb.mxu3 %v3877_v8  ;;  %v3813_v8 = vor.u32 %v4148_v60, %v3812_v59  ;;  %v3110_v59 = vld [vmem:[%s4835_s30 + $0x1b8] sm:$0xf0]  ;;  %v4002_v60 = vld [vmem:[%s4835_s30 + $0x2ac] sm:$0xf] }
 0x1c9   : > { %2605 = vmatpush.bf16.msrb.mxu0 %v3477_v14  ;;  %v3978_v14 = vld [vmem:[%s4835_s30 + $0x1ec] sm:$0xf]  ;;  %v3094_v9 = vld [vmem:[%s4835_s30 + $0x198] sm:$0xf0] }
 0x1ca   : > { %v3145_v32 = vor.u32 %v3978_v14, %v3142_v18  ;;  %v3966_v7 = vld [vmem:[%s4835_s30 + $0x18c] sm:$0xf]  ;;  %v2950_v18 = vld [vmem:[%s4835_s30 + $0x78] sm:$0xf0] }
 0x1cb   : > { %2618 = vmatpush.bf16.msrb.mxu1 %v3605_v15  ;;  %2631 = vmatpush.bf16.msrb.mxu2 %v3733_v16  ;;  %v2352_v15 = vadd.f32 %v2351_v43, %v1026_v61  ;;  %v4006_v43 = vld [vmem:[%s4835_s30 + $0x2cc] sm:$0xf]  ;;  %v3238_v61 = vld [vmem:[%s4835_s30 + $0x2b8] sm:$0xf0] }
 0x1cc   : > { %2644 = vmatpush.bf16.msrb.mxu3 %v3861_v22  ;;  %v3270_v22 = vld [vmem:[%s4835_s30 + $0x2f8] sm:$0xf0]  ;;  %v2392_v31 = vpop.f32.mrf.mxu3  ;;  %v3994_v26 = vld [vmem:[%s4835_s30 + $0x26c] sm:$0xf] }
 0x1cd   : > { %2606 = vmatpush.bf16.msrb.mxu0 %v3461_v28  ;;  %v2379_v28 = vpop.f32.mrf.mxu2  ;;  %v3273_v33 = vor.u32 %v4010_v19, %v3270_v22  ;;  %v3962_v19 = vld [vmem:[%s4835_s30 + $0x16c] sm:$0xf]  ;;  %v3206_v27 = vld [vmem:[%s4835_s30 + $0x278] sm:$0xf0] }
 0x1ce   : > { %v4026_v28 = vld [vmem:[%s4835_s30 + $0x36c] sm:$0xf]  ;;  %v3062_v40 = vld [vmem:[%s4835_s30 + $0x158] sm:$0xf0] }
 0x1cf   : > { %2619 = vmatpush.bf16.msrb.mxu1 %v3589_v29  ;;  %2632 = vmatpush.bf16.msrb.mxu2 %v3717_v30  ;;  %v2353_v16 = vpop.f32.mrf.mxu0  ;;  %v2366_v23 = vpop.f32.mrf.mxu1  ;;  %v3797_v29 = vor.u32 %v4144_v11, %v3796_v10  ;;  %v3017_v30 = vor.u32 %v3946_v12, %v3014_v13  ;;  %v3998_v10 = vld [vmem:[%s4835_s30 + $0x28c] sm:$0xf]  ;;  %v3222_v11 = vld [vmem:[%s4835_s30 + $0x298] sm:$0xf0] }
 0x1d0   : > { %2645 = vmatpush.bf16.msrb.mxu3 %v3845_v34  ;;  %v2365_v34 = vadd.f32 %v2364_v47, %v2352_v15  ;;  %v3001_v47 = vor.u32 %v3942_v35, %v2998_v36  ;;  %v4030_v12 = vld [vmem:[%s4835_s30 + $0x38c] sm:$0xf]  ;;  %v3350_v13 = vld [vmem:[%s4835_s30 + $0x398] sm:$0xf0]  ;;  %v3097_v15 = vor.u32 %v3966_v7, %v3094_v9  ;;  %v3225_v16 = vor.u32 %v3998_v10, %v3222_v11 }
 0x1d1   : > { %2607 = vmatpush.bf16.msrb.mxu0 %v3445_v45  ;;  %v3254_v45 = vld [vmem:[%s4835_s30 + $0x2d8] sm:$0xf0]  ;;  %v3958_v36 = vld [vmem:[%s4835_s30 + $0x14c] sm:$0xf] }
 0x1d2   : > { %v3257_v51 = vor.u32 %v4006_v43, %v3254_v45  ;;  %v2378_v52 = vadd.f32 %v5275_v53, %v2365_v34  ;;  %v3366_v53 = vld [vmem:[%s4835_s30 + $0x3b8] sm:$0xf0]  ;;  %v3926_v34 = vld [vmem:[%s4835_s30 + $0x4c] sm:$0xf] }
 0x1d3   : > { %2620 = vmatpush.bf16.msrb.mxu1 %v3573_v48  ;;  %2633 = vmatpush.bf16.msrb.mxu2 %v3701_v49  ;;  %v4038_v48 = vld [vmem:[%s4835_s30 + $0x3cc] sm:$0xf]  ;;  %v3382_v49 = vld [vmem:[%s4835_s30 + $0x3d8] sm:$0xf0] }
 0x1d4   : > { %2646 = vmatpush.bf16.msrb.mxu3 %v3829_v54  ;;  %v3938_v54 = vld [vmem:[%s4835_s30 + $0xac] sm:$0xf]  ;;  %v3385_v57 = vor.u32 %v4038_v48, %v3382_v49  ;;  %v2391_v0 = vadd.f32 %v5280_v58, %v2378_v52  ;;  %v2969_v58 = vor.u32 %v3934_v3, %v2966_v5  ;;  %v2934_v35 = vld [vmem:[%s4835_s30 + $0x58] sm:$0xf0] }
 0x1d5   : > { %2608 = vmatpush.bf16.msrb.mxu0 %v3429_v62  ;;  %v4034_v62 = vld [vmem:[%s4835_s30 + $0x3ac] sm:$0xf]  ;;  %v2985_v63 = vor.u32 %v3938_v54, %v2982_v55  ;;  %v3190_v45 = vld [vmem:[%s4835_s30 + $0x258] sm:$0xf0] }
 0x1d6   : > { %v3990_v43 = vld [vmem:[%s4835_s30 + $0x24c] sm:$0xf]  ;;  %v3302_v3 = vld [vmem:[%s4835_s30 + $0x338] sm:$0xf0] }
 0x1d7   : > { %2621 = vmatpush.bf16.msrb.mxu1 %v3557_v1  ;;  %2634 = vmatpush.bf16.msrb.mxu2 %v3685_v2  ;;  %v3113_v1 = vor.u32 %v3970_v56, %v3110_v59  ;;  %v3241_v2 = vor.u32 %v4002_v60, %v3238_v61  ;;  %v3922_v54 = vld [vmem:[%s4835_s30 + $0x2c] sm:$0xf]  ;;  %v3065_v56 = vor.u32 %v3958_v36, %v3062_v40  ;;  %v2918_v59 = vld [vmem:[%s4835_s30 + $0x38] sm:$0xf0] }
 0x1d8   : > { %2647 = vmatpush.bf16.msrb.mxu3 %v3813_v8  ;;  %v3369_v8 = vor.u32 %v4034_v62, %v3366_v53  ;;  %v3954_v60 = vld [vmem:[%s4835_s30 + $0x12c] sm:$0xf]  ;;  %v3046_v61 = vld [vmem:[%s4835_s30 + $0x138] sm:$0xf0]  ;;  %v2921_v5 = vor.u32 %v3922_v54, %v2918_v59 }
 0x1d9   : > { %2609 = vmatpush.bf16.msrb.mxu0 %v3413_v17  ;;  %v3930_v17 = vld [vmem:[%s4835_s30 + $0x6c] sm:$0xf]  ;;  %v3049_v9 = vor.u32 %v3954_v60, %v3046_v61  ;;  %v3622_v59 = vld [vmem:[%s4835_s30 + $0x5b8] sm:$0xf0] }
 0x1da   : > { %v2953_v31 = vor.u32 %v3930_v17, %v2950_v18  ;;  %v3918_v7 = vld [vmem:[%s4835_s30 + $0xc] sm:$0xf]  ;;  %v3286_v17 = vld [vmem:[%s4835_s30 + $0x318] sm:$0xf0] }
 0x1db   : > { %2622 = vmatpush.bf16.msrb.mxu1 %v3541_v24  ;;  %2635 = vmatpush.bf16.msrb.mxu2 %v3669_v25  ;;  %v2403_v14 = vpop.f32.mrf.mxu0  ;;  %v3353_v24 = vor.u32 %v4030_v12, %v3350_v13  ;;  %v3078_v25 = vld [vmem:[%s4835_s30 + $0x178] sm:$0xf0]  ;;  %v3950_v11 = vld [vmem:[%s4835_s30 + $0x10c] sm:$0xf] }
 0x1dc   : > { %2648 = vmatpush.bf16.msrb.mxu3 %v3797_v29  ;;  %2610 = vmatmul.bf16.vlgmr.msrb.gmra.mxu0 %v5007_v41  ;;  %v2404_v22 = vadd.f32 %v2403_v14, %v2391_v0  ;;  %v3334_v29 = vld [vmem:[%s4835_s30 + $0x378] sm:$0xf0]  ;;  %v3986_v0 = vld [vmem:[%s4835_s30 + $0x22c] sm:$0xf] }
 0x1dd   : > { %2654 = vmatpush.bf16.msra.mxu0 %v3017_v30  ;;  %v2416_v23 = vpop.f32.mrf.mxu1  ;;  %v3030_v12 = vld [vmem:[%s4835_s30 + $0x118] sm:$0xf0]  ;;  %v3982_v13 = vld [vmem:[%s4835_s30 + $0x20c] sm:$0xf] }
 0x1de   : > { %2636 = vmatmul.bf16.vlgmr.msrb.gmra.mxu2 %v5003_v38  ;;  %2623 = vmatmul.bf16.vlgmr.msrb.gmra.mxu1 %v5011_v44  ;;  %v2417_v30 = vadd.f32 %v2416_v23, %v2404_v22  ;;  %v3526_v22 = vld [vmem:[%s4835_s30 + $0x4f8] sm:$0xf0]  ;;  %v4106_v23 = vld [vmem:[%s4835_s30 + $0x5ec] sm:$0xf] }
 0x1df   : > { %2667 = vmatpush.bf16.msra.mxu1 %v3145_v32  ;;  %2680 = vmatpush.bf16.msra.mxu2 %v3273_v33  ;;  %v3081_v32 = vor.u32 %v3962_v19, %v3078_v25  ;;  %v3209_v33 = vor.u32 %v3994_v26, %v3206_v27  ;;  %v4074_v19 = vld [vmem:[%s4835_s30 + $0x4ec] sm:$0xf]  ;;  %v3654_v25 = vld [vmem:[%s4835_s30 + $0x5f8] sm:$0xf0] }
 0x1e0   : > { %2693 = vmatpush.bf16.msra.mxu3 %v3401_v39  ;;  %v3337_v39 = vor.u32 %v4026_v28, %v3334_v29  ;;  %v4138_v26 = vld [vmem:[%s4835_s30 + $0x6ec] sm:$0xf]  ;;  %v3782_v27 = vld [vmem:[%s4835_s30 + $0x6f8] sm:$0xf0]  ;;  %v3033_v28 = vor.u32 %v3950_v11, %v3030_v12 }
 0x1e1   : > { %2649 = vmatmul.bf16.vlgmr.msrb.gmra.mxu3 %v5009_v42  ;;  %2655 = vmatpush.bf16.msra.mxu0 %v3001_v47  ;;  %v2429_v37 = vpop.f32.mrf.mxu2  ;;  %v4022_v47 = vld [vmem:[%s4835_s30 + $0x34c] sm:$0xf]  ;;  %v3750_v61 = vld [vmem:[%s4835_s30 + $0x6b8] sm:$0xf0] }
 0x1e2   : > { %v2430_v48 = vadd.f32 %v2429_v37, %v2417_v30  ;;  %v4170_v30 = vld [vmem:[%s4835_s30 + $0x7ec] sm:$0xf]  ;;  %v3510_v37 = vld [vmem:[%s4835_s30 + $0x4d8] sm:$0xf0] }
 0x1e3   : > { %2668 = vmatpush.bf16.msra.mxu1 %v3129_v50  ;;  %2681 = vmatpush.bf16.msra.mxu2 %v3257_v51  ;;  %v3318_v50 = vld [vmem:[%s4835_s30 + $0x358] sm:$0xf0]  ;;  %v2937_v51 = vor.u32 %v3926_v34, %v2934_v35  ;;  %v2405_v55 = vpop.f32.mrf.mxu0  ;;  %v3657_v34 = vor.u32 %v4106_v23, %v3654_v25  ;;  %v3785_v35 = vor.u32 %v4138_v26, %v3782_v27  ;;  %v4070_v36 = vld [vmem:[%s4835_s30 + $0x4cc] sm:$0xf] }
 0x1e4   : > { %2694 = vmatpush.bf16.msra.mxu3 %v3385_v57  ;;  %v2442_v49 = vpop.f32.mrf.mxu3  ;;  %v3193_v57 = vor.u32 %v3990_v43, %v3190_v45  ;;  %v3321_v53 = vor.u32 %v4022_v47, %v3318_v50  ;;  %v3638_v43 = vld [vmem:[%s4835_s30 + $0x5d8] sm:$0xf0]  ;;  %v4134_v45 = vld [vmem:[%s4835_s30 + $0x6cc] sm:$0xf]  ;;  %v3513_v50 = vor.u32 %v4070_v36, %v3510_v37 }
 0x1e5   : > { %2656 = vmatpush.bf16.msra.mxu0 %v2985_v63  ;;  %v2443_v52 = vadd.f32 %v2442_v49, %v2430_v48  ;;  %v2418_v62 = vpop.f32.mrf.mxu1  ;;  %v3766_v48 = vld [vmem:[%s4835_s30 + $0x6d8] sm:$0xf0]  ;;  %v4166_v49 = vld [vmem:[%s4835_s30 + $0x7cc] sm:$0xf] }
 0x1e6   : > { %v3894_v47 = vld [vmem:[%s4835_s30 + $0x7d8] sm:$0xf0]  ;;  %v4066_v54 = vld [vmem:[%s4835_s30 + $0x4ac] sm:$0xf] }
 0x1e7   : > { %2669 = vmatpush.bf16.msra.mxu1 %v3113_v1  ;;  %2682 = vmatpush.bf16.msra.mxu2 %v3241_v2  ;;  %v2758_v63 = vmax.f32 %v2443_v52, 0.0  ;;  %v3174_v1 = vld [vmem:[%s4835_s30 + $0x238] sm:$0xf0]  ;;  %v4018_v2 = vld [vmem:[%s4835_s30 + $0x32c] sm:$0xf]  ;;  %v3769_v52 = vor.u32 %v4134_v45, %v3766_v48 }
 0x1e8   : > { %2695 = vmatpush.bf16.msra.mxu3 %v3369_v8  ;;  %v2902_v8 = vld [vmem:[%s4835_s30 + $0x18] sm:$0xf0]  ;;  %v3177_v10 = vor.u32 %v3986_v0, %v3174_v1  ;;  %v3305_v14 = vor.u32 %v4018_v2, %v3302_v3  ;;  %v4130_v60 = vld [vmem:[%s4835_s30 + $0x6ac] sm:$0xf] }
 0x1e9   : > { %2657 = vmatpush.bf16.msra.mxu0 %v2969_v58  ;;  %2762 = vst [vmem:[%s5352_s25] sm:$0xff] %v2758_v63  ;;  %v2431_v58 = vpop.f32.mrf.mxu2  ;;  %v3494_v55 = vld [vmem:[%s4835_s30 + $0x4b8] sm:$0xf0]  ;;  %v4162_v62 = vld [vmem:[%s4835_s30 + $0x7ac] sm:$0xf]  ;;  %v3753_v0 = vor.u32 %v4130_v60, %v3750_v61 }
 0x1ea   : > { %v3497_v63 = vor.u32 %v4066_v54, %v3494_v55  ;;  %v4062_v1 = vld [vmem:[%s4835_s30 + $0x48c] sm:$0xf]  ;;  %v3478_v2 = vld [vmem:[%s4835_s30 + $0x498] sm:$0xf0] }
 0x1eb   : > { %2670 = vmatpush.bf16.msra.mxu1 %v3097_v15  ;;  %2683 = vmatpush.bf16.msra.mxu2 %v3225_v16  ;;  %v3158_v15 = vld [vmem:[%s4835_s30 + $0x218] sm:$0xf0]  ;;  %v4014_v16 = vld [vmem:[%s4835_s30 + $0x30c] sm:$0xf] }
 0x1ec   : > { %2696 = vmatpush.bf16.msra.mxu3 %v3353_v24  ;;  %v2444_v18 = vpop.f32.mrf.mxu3  ;;  %v2905_v24 = vor.u32 %v3918_v7, %v2902_v8  ;;  %v3161_v29 = vor.u32 %v3982_v13, %v3158_v15  ;;  %v3734_v7 = vld [vmem:[%s4835_s30 + $0x698] sm:$0xf0]  ;;  %v4158_v8 = vld [vmem:[%s4835_s30 + $0x78c] sm:$0xf] }
 0x1ed   : > { %2658 = vmatpush.bf16.msra.mxu0 %v2953_v31  ;;  %v3910_v31 = vld [vmem:[%s4835_s30 + $0x7f8] sm:$0xf0]  ;;  %v4058_v13 = vld [vmem:[%s4835_s30 + $0x46c] sm:$0xf] }
 0x1ee   : > { %v3913_v40 = vor.u32 %v4170_v30, %v3910_v31  ;;  %v3462_v58 = vld [vmem:[%s4835_s30 + $0x478] sm:$0xf0]  ;;  %v4122_v18 = vld [vmem:[%s4835_s30 + $0x66c] sm:$0xf] }
 0x1ef   : > { %2671 = vmatpush.bf16.msra.mxu1 %v3081_v32  ;;  %2684 = vmatpush.bf16.msra.mxu2 %v3209_v33  ;;  %v3289_v32 = vor.u32 %v4014_v16, %v3286_v17  ;;  %v3529_v33 = vor.u32 %v4074_v19, %v3526_v22  ;;  %v3590_v17 = vld [vmem:[%s4835_s30 + $0x578] sm:$0xf0]  ;;  %v4154_v22 = vld [vmem:[%s4835_s30 + $0x76c] sm:$0xf] }
 0x1f0   : > { %2697 = vmatpush.bf16.msra.mxu3 %v3337_v39  ;;  %v4102_v39 = vld [vmem:[%s4835_s30 + $0x5cc] sm:$0xf]  ;;  %v3718_v19 = vld [vmem:[%s4835_s30 + $0x678] sm:$0xf0] }
 0x1f1   : > { %2659 = vmatpush.bf16.msra.mxu0 %v2937_v51  ;;  %v3641_v51 = vor.u32 %v4102_v39, %v3638_v43  ;;  %v3846_v23 = vld [vmem:[%s4835_s30 + $0x778] sm:$0xf0]  ;;  %v3721_v26 = vor.u32 %v4122_v18, %v3718_v19  ;;  %v4054_v27 = vld [vmem:[%s4835_s30 + $0x44c] sm:$0xf] }
 0x1f2   : > { %v3849_v31 = vor.u32 %v4154_v22, %v3846_v23  ;;  %v4150_v36 = vld [vmem:[%s4835_s30 + $0x74c] sm:$0xf]  ;;  %v3830_v37 = vld [vmem:[%s4835_s30 + $0x758] sm:$0xf0] }
 0x1f3   : > { %2672 = vmatpush.bf16.msra.mxu1 %v3065_v56  ;;  %2685 = vmatpush.bf16.msra.mxu2 %v3193_v57  ;;  %v4098_v56 = vld [vmem:[%s4835_s30 + $0x5ac] sm:$0xf]  ;;  %v3897_v57 = vor.u32 %v4166_v49, %v3894_v47  ;;  %v3430_v49 = vld [vmem:[%s4835_s30 + $0x438] sm:$0xf0] }
 0x1f4   : > { %2698 = vmatpush.bf16.msra.mxu3 %v3321_v53  ;;  %v3878_v53 = vld [vmem:[%s4835_s30 + $0x7b8] sm:$0xf0]  ;;  %v4050_v48 = vld [vmem:[%s4835_s30 + $0x42c] sm:$0xf] }
 0x1f5   : > { %2660 = vmatpush.bf16.msra.mxu0 %v2921_v5  ;;  %v3881_v3 = vor.u32 %v4162_v62, %v3878_v53  ;;  %v3606_v5 = vld [vmem:[%s4835_s30 + $0x598] sm:$0xf0]  ;;  %v4082_v47 = vld [vmem:[%s4835_s30 + $0x52c] sm:$0xf]  ;;  %v3433_v60 = vor.u32 %v4050_v48, %v3430_v49 }
 0x1f6   : > { %v4114_v54 = vld [vmem:[%s4835_s30 + $0x62c] sm:$0xf]  ;;  %v3686_v55 = vld [vmem:[%s4835_s30 + $0x638] sm:$0xf0] }
 0x1f7   : > { %2673 = vmatpush.bf16.msra.mxu1 %v3049_v9  ;;  %2686 = vmatpush.bf16.msra.mxu2 %v3177_v10  ;;  %v3862_v9 = vld [vmem:[%s4835_s30 + $0x798] sm:$0xf0]  ;;  %v3689_v62 = vor.u32 %v4114_v54, %v3686_v55  ;;  %v4046_v53 = vld [vmem:[%s4835_s30 + $0x40c] sm:$0xf] }
 0x1f8   : > { %2699 = vmatpush.bf16.msra.mxu3 %v3305_v14  ;;  %v4090_v14 = vld [vmem:[%s4835_s30 + $0x56c] sm:$0xf]  ;;  %v3865_v16 = vor.u32 %v4158_v8, %v3862_v9 }
 0x1f9   : > { %2661 = vmatpush.bf16.msra.mxu0 %v2905_v24  ;;  %v5406_v10 = vpop.f32.mrf.mxu0  ;;  %v3465_v24 = vor.u32 %v4058_v13, %v3462_v58  ;;  %v3593_v25 = vor.u32 %v4090_v14, %v3590_v17 }
 0x1fb   : > { %2674 = vmatpush.bf16.msra.mxu1 %v3033_v28  ;;  %2687 = vmatpush.bf16.msra.mxu2 %v3161_v29  ;;  %v5411_v15 = vpop.f32.mrf.mxu1  ;;  %v3446_v28 = vld [vmem:[%s4835_s30 + $0x458] sm:$0xf0]  ;;  %v4086_v29 = vld [vmem:[%s4835_s30 + $0x54c] sm:$0xf] }
 0x1fc   : > { %2700 = vmatpush.bf16.msra.mxu3 %v3289_v32  ;;  %2662 = vmatmul.bf16.vlgmr.msra.gmra.mxu0 %v4944_v20  ;;  %v4126_v20 = vld [vmem:[%s4835_s30 + $0x68c] sm:$0xf]  ;;  %v3574_v32 = vld [vmem:[%s4835_s30 + $0x558] sm:$0xf0]  ;;  %v3449_v39 = vor.u32 %v4054_v27, %v3446_v28 }
 0x1fd   : > { %2706 = vmatpush.bf16.msrb.mxu0 %v3529_v33  ;;  %v3737_v12 = vor.u32 %v4126_v20, %v3734_v7  ;;  %v4118_v33 = vld [vmem:[%s4835_s30 + $0x64c] sm:$0xf]  ;;  %v3577_v43 = vor.u32 %v4086_v29, %v3574_v32  ;;  %v3798_v7 = vld [vmem:[%s4835_s30 + $0x718] sm:$0xf0] }
 0x1fe   : > { %2688 = vmatmul.bf16.vlgmr.msra.gmra.mxu2 %v4928_v4  ;;  %2675 = vmatmul.bf16.vlgmr.msra.gmra.mxu1 %v4947_v21  ;;  %v3625_v4 = vor.u32 %v4098_v56, %v3622_v59  ;;  %v3481_v21 = vor.u32 %v4062_v1, %v3478_v2  ;;  %v4146_v56 = vld [vmem:[%s4835_s30 + $0x72c] sm:$0xf]  ;;  %v1027_v59 = vperm.slane %v5270_v46, 1  ;;  %v3542_v2 = vld [vmem:[%s4835_s30 + $0x518] sm:$0xf0] }
 0x1ff   : > { %2719 = vmatpush.bf16.msrb.mxu1 %v3657_v34  ;;  %2732 = vmatpush.bf16.msrb.mxu2 %v3785_v35  ;;  %v3702_v34 = vld [vmem:[%s4835_s30 + $0x658] sm:$0xf0]  ;;  %v4142_v20 = vld [vmem:[%s4835_s30 + $0x70c] sm:$0xf] }
 0x200   : > { %2745 = vmatpush.bf16.msrb.mxu3 %v3913_v40  ;;  %v3705_v45 = vor.u32 %v4118_v33, %v3702_v34  ;;  %v2456_v8 = vadd.f32 %v5406_v10, %v1027_v59 }
 0x201   : > { %2701 = vmatmul.bf16.vlgmr.msra.gmra.mxu3 %v4933_v6  ;;  %2707 = vmatpush.bf16.msrb.mxu0 %v3513_v50  ;;  %v4094_v6 = vld [vmem:[%s4835_s30 + $0x58c] sm:$0xf]  ;;  %v2481_v30 = vpop.f32.mrf.mxu2  ;;  %v2457_v40 = vpop.f32.mrf.mxu0 }
 0x202   : > { %v3609_v11 = vor.u32 %v4094_v6, %v3606_v5  ;;  %v4110_v6 = vld [vmem:[%s4835_s30 + $0x60c] sm:$0xf]  ;;  %v2469_v13 = vadd.f32 %v5411_v15, %v2456_v8 }
 0x203   : > { %2720 = vmatpush.bf16.msrb.mxu1 %v3641_v51  ;;  %2733 = vmatpush.bf16.msrb.mxu2 %v3769_v52  ;;  %v2470_v50 = vpop.f32.mrf.mxu1  ;;  %v3833_v51 = vor.u32 %v4150_v36, %v3830_v37  ;;  %v3558_v52 = vld [vmem:[%s4835_s30 + $0x538] sm:$0xf0] }
 0x204   : > { %2746 = vmatpush.bf16.msrb.mxu3 %v3897_v57  ;;  %v2494_v35 = vpop.f32.mrf.mxu3  ;;  %v3814_v57 = vld [vmem:[%s4835_s30 + $0x738] sm:$0xf0]  ;;  %v3561_v61 = vor.u32 %v4082_v47, %v3558_v52  ;;  %v2482_v58 = vadd.f32 %v2481_v30, %v2469_v13 }
 0x205   : > { %2708 = vmatpush.bf16.msrb.mxu0 %v3497_v63  ;;  %v3414_v63 = vld [vmem:[%s4835_s30 + $0x418] sm:$0xf0]  ;;  %v3817_v1 = vor.u32 %v4146_v56, %v3814_v57 }
 0x206   : > { %v3417_v9 = vor.u32 %v4046_v53, %v3414_v63  ;;  %v2495_v10 = vadd.f32 %v2494_v35, %v2482_v58  ;;  %v1029_v63 = vperm.slane %v5270_v46, 3 }
 0x207   : > { %2721 = vmatpush.bf16.msrb.mxu1 %v3625_v4  ;;  %2734 = vmatpush.bf16.msrb.mxu2 %v3753_v0  ;;  %v4078_v4 = vld [vmem:[%s4835_s30 + $0x50c] sm:$0xf] }
 0x208   : > { %2747 = vmatpush.bf16.msrb.mxu3 %v3881_v3  ;;  %v3670_v3 = vld [vmem:[%s4835_s30 + $0x618] sm:$0xf0] }
 0x209   : > { %2709 = vmatpush.bf16.msrb.mxu0 %v3481_v21  ;;  %v2483_v0 = vpop.f32.mrf.mxu2  ;;  %v3545_v21 = vor.u32 %v4078_v4, %v3542_v2 }
 0x20b   : > { %2722 = vmatpush.bf16.msrb.mxu1 %v3609_v11  ;;  %2735 = vmatpush.bf16.msrb.mxu2 %v3737_v12  ;;  %v3673_v11 = vor.u32 %v4110_v6, %v3670_v3  ;;  %v3801_v12 = vor.u32 %v4142_v20, %v3798_v7 }
 0x20c   : > { %2748 = vmatpush.bf16.msrb.mxu3 %v3865_v16  ;;  %v2496_v5 = vpop.f32.mrf.mxu3 }
 0x20d   : > { %2710 = vmatpush.bf16.msrb.mxu0 %v3465_v24 }
 0x20f   : > { %2723 = vmatpush.bf16.msrb.mxu1 %v3593_v25  ;;  %2736 = vmatpush.bf16.msrb.mxu2 %v3721_v26 }
 0x210   : > { %2749 = vmatpush.bf16.msrb.mxu3 %v3849_v31  ;;  %v1028_v31 = vperm.slane %v5270_v46, 2 }
 0x211   : > { %2711 = vmatpush.bf16.msrb.mxu0 %v3449_v39 }
 0x213   : > { %2724 = vmatpush.bf16.msrb.mxu1 %v3577_v43  ;;  %2737 = vmatpush.bf16.msrb.mxu2 %v3705_v45 }
 0x214   : > { %2750 = vmatpush.bf16.msrb.mxu3 %v3833_v51 }
 0x215   : > { %2712 = vmatpush.bf16.msrb.mxu0 %v3433_v60 }
 0x217   : > { %2725 = vmatpush.bf16.msrb.mxu1 %v3561_v61  ;;  %2738 = vmatpush.bf16.msrb.mxu2 %v3689_v62 }
 0x218   : > { %2751 = vmatpush.bf16.msrb.mxu3 %v3817_v1 }
 0x219   : > { %2713 = vmatpush.bf16.msrb.mxu0 %v3417_v9  ;;  %v2507_v14 = vpop.f32.mrf.mxu0 }
 0x21a   : > { %v2508_v16 = vadd.f32 %v2507_v14, %v2495_v10 }
 0x21b   : > { %2726 = vmatpush.bf16.msrb.mxu1 %v3545_v21  ;;  %2739 = vmatpush.bf16.msrb.mxu2 %v3673_v11  ;;  %v2520_v17 = vpop.f32.mrf.mxu1 }
 0x21c   : > { %2752 = vmatpush.bf16.msrb.mxu3 %v3801_v12  ;;  %2714 = vmatmul.bf16.vlgmr.msrb.gmra.mxu0 %v5007_v41  ;;  %v2521_v18 = vadd.f32 %v2520_v17, %v2508_v16 }
 0x21e   : > { %2727 = vmatmul.bf16.vlgmr.msrb.gmra.mxu1 %v5011_v44  ;;  %2740 = vmatmul.bf16.vlgmr.msrb.gmra.mxu2 %v5003_v38 }
 0x21f   : > { %2753 = vmatmul.bf16.vlgmr.msrb.gmra.mxu3 %v5009_v42 }
 0x221   : > { %v2533_v15 = vpop.f32.mrf.mxu2  ;;  %v2509_v24 = vpop.f32.mrf.mxu0 }
 0x222   : > { %v2534_v19 = vadd.f32 %v2533_v15, %v2521_v18 }
 0x223   : > { %v2522_v25 = vpop.f32.mrf.mxu1 }
 0x224   : > { %v2546_v22 = vpop.f32.mrf.mxu3 }
 0x225   : > { %v2547_v23 = vadd.f32 %v2546_v22, %v2534_v19 }
 0x227   : > { %v2759_v41 = vmax.f32 %v2547_v23, 0.0 }
 0x229   : > { %2763 = vst [vmem:[%s5352_s25 + $0x8] sm:$0xff] %v2759_v41  ;;  %v2535_v26 = vpop.f32.mrf.mxu2 }
 0x22c   : > { %v2548_v27 = vpop.f32.mrf.mxu3 }
 0x239   : > { %v2559_v44 = vpop.f32.mrf.mxu0 }
 0x23a   : > { %v2560_v34 = vadd.f32 %v2559_v44, %v1028_v31 }
 0x23b   : > { %v2572_v28 = vpop.f32.mrf.mxu1 }
 0x23c   : > { %v2573_v35 = vadd.f32 %v2572_v28, %v2560_v34 }
 0x241   : > { %v2585_v38 = vpop.f32.mrf.mxu2  ;;  %v2561_v42 = vpop.f32.mrf.mxu0 }
 0x242   : > { %v2586_v36 = vadd.f32 %v2585_v38, %v2573_v35 }
 0x243   : > { %v2574_v30 = vpop.f32.mrf.mxu1 }
 0x244   : > { %v2598_v29 = vpop.f32.mrf.mxu3 }
 0x245   : > { %v2599_v37 = vadd.f32 %v2598_v29, %v2586_v36 }
 0x249   : > { %v2587_v32 = vpop.f32.mrf.mxu2 }
 0x24c   : > { %v2600_v33 = vpop.f32.mrf.mxu3 }
 0x259   : > { %v2611_v39 = vpop.f32.mrf.mxu0 }
 0x25a   : > { %v2612_v40 = vadd.f32 %v2611_v39, %v2599_v37 }
 0x25b   : > { %v2624_v43 = vpop.f32.mrf.mxu1 }
 0x25c   : > { %v2625_v45 = vadd.f32 %v2624_v43, %v2612_v40 }
 0x261   : > { %v2637_v48 = vpop.f32.mrf.mxu2  ;;  %v2613_v51 = vpop.f32.mrf.mxu0 }
 0x262   : > { %v2638_v49 = vadd.f32 %v2637_v48, %v2625_v45 }
 0x263   : > { %v2626_v52 = vpop.f32.mrf.mxu1 }
 0x264   : > { %v2650_v47 = vpop.f32.mrf.mxu3 }
 0x265   : > { %v2651_v50 = vadd.f32 %v2650_v47, %v2638_v49 }
 0x267   : > { %v2760_v54 = vmax.f32 %v2651_v50, 0.0 }
 0x269   : > { %2764 = vst [vmem:[%s5352_s25 + $0x10] sm:$0xff] %v2760_v54  ;;  %v2639_v55 = vpop.f32.mrf.mxu2 }
 0x26c   : > { %v2652_v56 = vpop.f32.mrf.mxu3 }
 0x279   : > { %v2663_v57 = vpop.f32.mrf.mxu0 }
 0x27a   : > { %v2664_v1 = vadd.f32 %v2663_v57, %v1029_v63 }
 0x27b   : > { %v2676_v59 = vpop.f32.mrf.mxu1 }
 0x27c   : > { %v2677_v2 = vadd.f32 %v2676_v59, %v2664_v1 }
 0x281   : > { %v2689_v60 = vpop.f32.mrf.mxu2  ;;  %v2665_v62 = vpop.f32.mrf.mxu0 }
 0x282   : > { %v2690_v6 = vadd.f32 %v2689_v60, %v2677_v2 }
 0x283   : > { %v2678_v53 = vpop.f32.mrf.mxu1 }
 0x284   : > { %v2702_v61 = vpop.f32.mrf.mxu3 }
 0x285   : > { %v2703_v3 = vadd.f32 %v2702_v61, %v2690_v6 }
 0x289   : > { %v2691_v4 = vpop.f32.mrf.mxu2 }
 0x28c   : > { %v2704_v0 = vpop.f32.mrf.mxu3 }
 0x299   : > { %v2715_v5 = vpop.f32.mrf.mxu0 }
 0x29a   : > { %v2716_v7 = vadd.f32 %v2715_v5, %v2703_v3 }
 0x29b   : > { %v2728_v20 = vpop.f32.mrf.mxu1 }
 0x29c   : > { %v2729_v8 = vadd.f32 %v2728_v20, %v2716_v7 }
 0x2a1   : > { %v2741_v9 = vpop.f32.mrf.mxu2  ;;  %v2717_v12 = vpop.f32.mrf.mxu0 }
 0x2a2   : > { %v2742_v21 = vadd.f32 %v2741_v9, %v2729_v8  ;;  %v2754_v11 = vpop.f32.mrf.mxu3 }
 0x2a3   : > { %v2730_v13 = vpop.f32.mrf.mxu1 }
 0x2a4   : > { %v2755_v58 = vadd.f32 %v2754_v11, %v2742_v21 }
 0x2a6   : > { %v2761_v10 = vmax.f32 %v2755_v58, 0.0 }
 0x2a8   : > { %2765 = vst [vmem:[%s5352_s25 + $0x18] sm:$0xff] %v2761_v10 }
 0x2a9   : > { %v2743_v46 = vpop.f32.mrf.mxu2 }
 0x2aa   : > { %v2756_v14 = vpop.f32.mrf.mxu3 }
 0x2ab PF: > { %s13_s16 = sadd.s32 1, %s4251_s16   ;;  %s5474_s12 = smov %s4239_s13 }
 0x2ac   : > { %p10_p10 = scmp.ge.s32.totalorder %s13_s16, 6   ;;  %s5475_s13 = smov %s4308_s20 }
 0x2ad   : > { %s5476_s14 = smov %s4247_s15  ;;  %s5477_s15 = smov %s5479_s17 }
 0x2ae   :  { %12 = sbr.rel (!%p10_p10) target bundleno = 3 (0x3), region = 96 }

// kernel: forward.11
= control target key start
LH: loop header
LB: loop body
LE: loop exit
PB: predicated region body
PF: predicated region fallthrough
CT: control target
= control target key end

     0   :  { %s2394_s1 = inlined_call_operand.vmem [shape: bf16[2048,128], index: 1, kind: input, shape index: {}]   ;;  %s2395_s2 = inlined_call_operand.vmem [shape: f32[1,128], index: 2, kind: input, shape index: {}]   ;;  %s2396_s0 = inlined_call_operand.vmem [shape: bf16[8,2048], index: 0, kind: input, shape index: {}]   ;;  %s2397_s3 = inlined_call_operand.vmem [shape: f32[8,128], index: 3, kind: output, shape index: {}]  }
   0x1   :  { %v1838_v0 = vld [vmem:[%s2394_s1 + $0x38] sm:$0xff]  ;;  %v1837_v4 = vld [vmem:[%s2394_s1 + $0x30] sm:$0xff]  ;;  %v1836_v8 = vld [vmem:[%s2394_s1 + $0x28] sm:$0xff] }
   0x2   :  { %v1846_v1 = vld [vmem:[%s2394_s1 + $0x78] sm:$0xff]  ;;  %1106 = vmatpush.bf16.msra.mxu0 %v1838_v0  ;;  %v1845_v5 = vld [vmem:[%s2394_s1 + $0x70] sm:$0xff]  ;;  %v1844_v9 = vld [vmem:[%s2394_s1 + $0x68] sm:$0xff] }
   0x3   :  { %v1854_v2 = vld [vmem:[%s2394_s1 + $0xb8] sm:$0xff]  ;;  %1119 = vmatpush.bf16.msra.mxu1 %v1846_v1  ;;  %v1853_v6 = vld [vmem:[%s2394_s1 + $0xb0] sm:$0xff]  ;;  %v1852_v10 = vld [vmem:[%s2394_s1 + $0xa8] sm:$0xff] }
   0x4   :  { %v1862_v3 = vld [vmem:[%s2394_s1 + $0xf8] sm:$0xff]  ;;  %1132 = vmatpush.bf16.msra.mxu2 %v1854_v2  ;;  %v1861_v7 = vld [vmem:[%s2394_s1 + $0xf0] sm:$0xff]  ;;  %v1860_v11 = vld [vmem:[%s2394_s1 + $0xe8] sm:$0xff] }
   0x5   :  { %1145 = vmatpush.bf16.msra.mxu3 %v1862_v3  ;;  %v1835_v12 = vld [vmem:[%s2394_s1 + $0x20] sm:$0xff]  ;;  %v1834_v16 = vld [vmem:[%s2394_s1 + $0x18] sm:$0xff]  ;;  %v1833_v20 = vld [vmem:[%s2394_s1 + $0x10] sm:$0xff] }
   0x6   :  { %1107 = vmatpush.bf16.msra.mxu0 %v1837_v4  ;;  %v1843_v13 = vld [vmem:[%s2394_s1 + $0x60] sm:$0xff]  ;;  %v1842_v17 = vld [vmem:[%s2394_s1 + $0x58] sm:$0xff]  ;;  %v1841_v21 = vld [vmem:[%s2394_s1 + $0x50] sm:$0xff] }
   0x7   :  { %1120 = vmatpush.bf16.msra.mxu1 %v1845_v5  ;;  %v1851_v14 = vld [vmem:[%s2394_s1 + $0xa0] sm:$0xff]  ;;  %v1850_v18 = vld [vmem:[%s2394_s1 + $0x98] sm:$0xff]  ;;  %v1849_v22 = vld [vmem:[%s2394_s1 + $0x90] sm:$0xff] }
   0x8   :  { %1133 = vmatpush.bf16.msra.mxu2 %v1853_v6  ;;  %v1859_v15 = vld [vmem:[%s2394_s1 + $0xe0] sm:$0xff]  ;;  %v1858_v19 = vld [vmem:[%s2394_s1 + $0xd8] sm:$0xff]  ;;  %v1857_v23 = vld [vmem:[%s2394_s1 + $0xd0] sm:$0xff] }
   0x9   :  { %1146 = vmatpush.bf16.msra.mxu3 %v1861_v7  ;;  %v1832_v24 = vld [vmem:[%s2394_s1 + $0x8] sm:$0xff]  ;;  %v14_v29 = vld [vmem:[%s2396_s0] sm:$0xff]  ;;  %v1870_v38 = vld [vmem:[%s2394_s1 + $0x138] sm:$0xff] }
   0xa   :  { %1108 = vmatpush.bf16.msra.mxu0 %v1836_v8  ;;  %v1840_v25 = vld [vmem:[%s2394_s1 + $0x48] sm:$0xff]  ;;  %v1831_v30 = vld [vmem:[%s2394_s1] sm:$0xff]  ;;  %v290_v33 = vunpack.c.l.b16 %v14_v29  ;;  %v291_v37 = vunpack.c.h.b16 %v14_v29  ;;  %v1878_v39 = vld [vmem:[%s2394_s1 + $0x178] sm:$0xff] }
   0xb   :  { %1121 = vmatpush.bf16.msra.mxu1 %v1844_v9  ;;  %v1848_v26 = vld [vmem:[%s2394_s1 + $0x88] sm:$0xff]  ;;  %v1839_v31 = vld [vmem:[%s2394_s1 + $0x40] sm:$0xff]  ;;  %v1886_v40 = vld [vmem:[%s2394_s1 + $0x1b8] sm:$0xff] }
   0xc   :  { %1134 = vmatpush.bf16.msra.mxu2 %v1852_v10  ;;  %v1856_v27 = vld [vmem:[%s2394_s1 + $0xc8] sm:$0xff]  ;;  %v1847_v34 = vld [vmem:[%s2394_s1 + $0x80] sm:$0xff]  ;;  %v1894_v41 = vld [vmem:[%s2394_s1 + $0x1f8] sm:$0xff]  ;;  %v306_v43 = vpack.c.b16 %v290_v33, %v290_v33  ;;  %v307_v45 = vpack.c.b16 %v291_v37, %v291_v37 }
   0xd   :  { %1147 = vmatpush.bf16.msra.mxu3 %v1860_v11  ;;  %v15_v28 = vld [vmem:[%s2396_s0 + $0x8] sm:$0xff]  ;;  %v1855_v35 = vld [vmem:[%s2394_s1 + $0xc0] sm:$0xff]  ;;  %v1869_v46 = vld [vmem:[%s2394_s1 + $0x130] sm:$0xff] }
   0xe   :  { %1109 = vmatpush.bf16.msra.mxu0 %v1835_v12  ;;  %v292_v32 = vunpack.c.l.b16 %v15_v28  ;;  %v293_v36 = vunpack.c.h.b16 %v15_v28  ;;  %v1877_v47 = vld [vmem:[%s2394_s1 + $0x170] sm:$0xff]  ;;  %v1868_v50 = vld [vmem:[%s2394_s1 + $0x128] sm:$0xff]  ;;  %v1867_v54 = vld [vmem:[%s2394_s1 + $0x120] sm:$0xff] }
   0xf   :  { %1122 = vmatpush.bf16.msra.mxu1 %v1843_v13  ;;  %v1885_v48 = vld [vmem:[%s2394_s1 + $0x1b0] sm:$0xff]  ;;  %v1876_v51 = vld [vmem:[%s2394_s1 + $0x168] sm:$0xff]  ;;  %v1875_v55 = vld [vmem:[%s2394_s1 + $0x160] sm:$0xff] }
  0x10   :  { %1135 = vmatpush.bf16.msra.mxu2 %v1851_v14  ;;  %v308_v42 = vpack.c.b16 %v292_v32, %v292_v32  ;;  %v309_v44 = vpack.c.b16 %v293_v36, %v293_v36  ;;  %v1893_v49 = vld [vmem:[%s2394_s1 + $0x1f0] sm:$0xff]  ;;  %v1884_v52 = vld [vmem:[%s2394_s1 + $0x1a8] sm:$0xff]  ;;  %v1883_v56 = vld [vmem:[%s2394_s1 + $0x1a0] sm:$0xff] }
  0x11   :  { %1148 = vmatpush.bf16.msra.mxu3 %v1859_v15  ;;  %v1892_v53 = vld [vmem:[%s2394_s1 + $0x1e8] sm:$0xff]  ;;  %v1891_v57 = vld [vmem:[%s2394_s1 + $0x1e0] sm:$0xff]  ;;  %v1866_v58 = vld [vmem:[%s2394_s1 + $0x118] sm:$0xff] }
  0x12   :  { %1110 = vmatpush.bf16.msra.mxu0 %v1834_v16  ;;  %v1874_v59 = vld [vmem:[%s2394_s1 + $0x158] sm:$0xff]  ;;  %v1865_v62 = vld [vmem:[%s2394_s1 + $0x110] sm:$0xff]  ;;  %v1864_v2 = vld [vmem:[%s2394_s1 + $0x108] sm:$0xff] }
  0x13   :  { %1123 = vmatpush.bf16.msra.mxu1 %v1842_v17  ;;  %v1882_v60 = vld [vmem:[%s2394_s1 + $0x198] sm:$0xff]  ;;  %v1873_v63 = vld [vmem:[%s2394_s1 + $0x150] sm:$0xff]  ;;  %v1872_v3 = vld [vmem:[%s2394_s1 + $0x148] sm:$0xff] }
  0x14   :  { %1136 = vmatpush.bf16.msra.mxu2 %v1850_v18  ;;  %v1890_v61 = vld [vmem:[%s2394_s1 + $0x1d8] sm:$0xff]  ;;  %v1881_v0 = vld [vmem:[%s2394_s1 + $0x190] sm:$0xff]  ;;  %v1880_v4 = vld [vmem:[%s2394_s1 + $0x188] sm:$0xff] }
  0x15   :  { %1149 = vmatpush.bf16.msra.mxu3 %v1858_v19  ;;  %v1889_v1 = vld [vmem:[%s2394_s1 + $0x1d0] sm:$0xff]  ;;  %v1888_v5 = vld [vmem:[%s2394_s1 + $0x1c8] sm:$0xff]  ;;  %v17_v6 = vld [vmem:[%s2396_s0 + $0x18] sm:$0xff] }
  0x16   :  { %1111 = vmatpush.bf16.msra.mxu0 %v1833_v20  ;;  %v16_v7 = vld [vmem:[%s2396_s0 + $0x10] sm:$0xff]  ;;  %v1863_v8 = vld [vmem:[%s2394_s1 + $0x100] sm:$0xff]  ;;  %v296_v10 = vunpack.c.l.b16 %v17_v6  ;;  %v297_v14 = vunpack.c.h.b16 %v17_v6  ;;  %v1902_v16 = vld [vmem:[%s2394_s1 + $0x238] sm:$0xff] }
  0x17   :  { %1124 = vmatpush.bf16.msra.mxu1 %v1841_v21  ;;  %v1871_v9 = vld [vmem:[%s2394_s1 + $0x140] sm:$0xff]  ;;  %v294_v11 = vunpack.c.l.b16 %v16_v7  ;;  %v295_v15 = vunpack.c.h.b16 %v16_v7  ;;  %v1910_v17 = vld [vmem:[%s2394_s1 + $0x278] sm:$0xff]  ;;  %v1900_v28 = vld [vmem:[%s2394_s1 + $0x228] sm:$0xff] }
  0x18   :  { %1137 = vmatpush.bf16.msra.mxu2 %v1849_v22  ;;  %v1879_v12 = vld [vmem:[%s2394_s1 + $0x180] sm:$0xff]  ;;  %v1918_v18 = vld [vmem:[%s2394_s1 + $0x2b8] sm:$0xff]  ;;  %v312_v20 = vpack.c.b16 %v296_v10, %v296_v10  ;;  %v313_v22 = vpack.c.b16 %v297_v14, %v297_v14  ;;  %v1908_v29 = vld [vmem:[%s2394_s1 + $0x268] sm:$0xff] }
  0x19   :  { %1150 = vmatpush.bf16.msra.mxu3 %v1857_v23  ;;  %v1887_v13 = vld [vmem:[%s2394_s1 + $0x1c0] sm:$0xff]  ;;  %v1926_v19 = vld [vmem:[%s2394_s1 + $0x2f8] sm:$0xff]  ;;  %v310_v21 = vpack.c.b16 %v294_v11, %v294_v11  ;;  %v311_v23 = vpack.c.b16 %v295_v15, %v295_v15  ;;  %v1932_v6 = vld [vmem:[%s2394_s1 + $0x328] sm:$0xff] }
  0x1a   :  { %1112 = vmatpush.bf16.msra.mxu0 %v1832_v24  ;;  %v1901_v24 = vld [vmem:[%s2394_s1 + $0x230] sm:$0xff]  ;;  %v1899_v32 = vld [vmem:[%s2394_s1 + $0x220] sm:$0xff]  ;;  %v1898_v36 = vld [vmem:[%s2394_s1 + $0x218] sm:$0xff] }
  0x1b   :  { %1125 = vmatpush.bf16.msra.mxu1 %v1840_v25  ;;  %v1909_v25 = vld [vmem:[%s2394_s1 + $0x270] sm:$0xff]  ;;  %v1907_v33 = vld [vmem:[%s2394_s1 + $0x260] sm:$0xff]  ;;  %v1906_v37 = vld [vmem:[%s2394_s1 + $0x258] sm:$0xff] }
  0x1c   :  { %1138 = vmatpush.bf16.msra.mxu2 %v1848_v26  ;;  %v1917_v26 = vld [vmem:[%s2394_s1 + $0x2b0] sm:$0xff]  ;;  %v1940_v7 = vld [vmem:[%s2394_s1 + $0x368] sm:$0xff]  ;;  %v1931_v10 = vld [vmem:[%s2394_s1 + $0x320] sm:$0xff] }
  0x1d   :  { %1151 = vmatpush.bf16.msra.mxu3 %v1856_v27  ;;  %v1925_v27 = vld [vmem:[%s2394_s1 + $0x2f0] sm:$0xff]  ;;  %v1939_v11 = vld [vmem:[%s2394_s1 + $0x360] sm:$0xff]  ;;  %v1930_v14 = vld [vmem:[%s2394_s1 + $0x318] sm:$0xff] }
  0x1e   :  { %1113 = vmatpush.bf16.msra.mxu0 %v1831_v30  ;;  %v1916_v30 = vld [vmem:[%s2394_s1 + $0x2a8] sm:$0xff]  ;;  %v1938_v15 = vld [vmem:[%s2394_s1 + $0x358] sm:$0xff] }
  0x1f   :  { %1126 = vmatpush.bf16.msra.mxu1 %v1839_v31  ;;  %v1924_v31 = vld [vmem:[%s2394_s1 + $0x2e8] sm:$0xff] }
  0x20   :  { %1139 = vmatpush.bf16.msra.mxu2 %v1847_v34  ;;  %v1915_v34 = vld [vmem:[%s2394_s1 + $0x2a0] sm:$0xff] }
  0x21   :  { %1152 = vmatpush.bf16.msra.mxu3 %v1855_v35  ;;  %1114 = vmatmul.bf16.vlgmr.msra.gmra.mxu0 %v306_v43  ;;  %v1923_v35 = vld [vmem:[%s2394_s1 + $0x2e0] sm:$0xff]  ;;  %v1921_v43 = vld [vmem:[%s2394_s1 + $0x2d0] sm:$0xff] }
  0x22   :  { %1158 = vmatpush.bf16.msrb.mxu0 %v1870_v38  ;;  %1127 = vmatmul.bf16.vlgmr.msra.gmra.mxu1 %v307_v45  ;;  %v1914_v38 = vld [vmem:[%s2394_s1 + $0x298] sm:$0xff]  ;;  %v1904_v45 = vld [vmem:[%s2394_s1 + $0x248] sm:$0xff] }
  0x23   :  { %1171 = vmatpush.bf16.msrb.mxu1 %v1878_v39  ;;  %1140 = vmatmul.bf16.vlgmr.msra.gmra.mxu2 %v308_v42  ;;  %v1922_v39 = vld [vmem:[%s2394_s1 + $0x2d8] sm:$0xff]  ;;  %v1913_v42 = vld [vmem:[%s2394_s1 + $0x290] sm:$0xff] }
  0x24   :  { %1184 = vmatpush.bf16.msrb.mxu2 %v1886_v40  ;;  %1153 = vmatmul.bf16.vlgmr.msra.gmra.mxu3 %v309_v44  ;;  %v1897_v40 = vld [vmem:[%s2394_s1 + $0x210] sm:$0xff]  ;;  %v1896_v44 = vld [vmem:[%s2394_s1 + $0x208] sm:$0xff] }
  0x25   :  { %1197 = vmatpush.bf16.msrb.mxu3 %v1894_v41  ;;  %v1905_v41 = vld [vmem:[%s2394_s1 + $0x250] sm:$0xff] }
  0x26   :  { %1159 = vmatpush.bf16.msrb.mxu0 %v1869_v46  ;;  %v1912_v46 = vld [vmem:[%s2394_s1 + $0x288] sm:$0xff] }
  0x27   :  { %1172 = vmatpush.bf16.msrb.mxu1 %v1877_v47  ;;  %v1920_v47 = vld [vmem:[%s2394_s1 + $0x2c8] sm:$0xff] }
  0x28   :  { %1185 = vmatpush.bf16.msrb.mxu2 %v1885_v48  ;;  %v18_v48 = vld [vmem:[%s2396_s0 + $0x20] sm:$0xff] }
  0x29   :  { %1198 = vmatpush.bf16.msrb.mxu3 %v1893_v49  ;;  %v19_v49 = vld [vmem:[%s2396_s0 + $0x28] sm:$0xff] }
  0x2a   :  { %1160 = vmatpush.bf16.msrb.mxu0 %v1868_v50  ;;  %v1895_v50 = vld [vmem:[%s2394_s1 + $0x200] sm:$0xff] }
  0x2b   :  { %1173 = vmatpush.bf16.msrb.mxu1 %v1876_v51  ;;  %v1903_v51 = vld [vmem:[%s2394_s1 + $0x240] sm:$0xff] }
  0x2c   :  { %1186 = vmatpush.bf16.msrb.mxu2 %v1884_v52  ;;  %v298_v52 = vunpack.c.l.b16 %v18_v48 }
  0x2d   :  { %1199 = vmatpush.bf16.msrb.mxu3 %v1892_v53  ;;  %v300_v53 = vunpack.c.l.b16 %v19_v49 }
  0x2e   :  { %1161 = vmatpush.bf16.msrb.mxu0 %v1867_v54  ;;  %v1911_v54 = vld [vmem:[%s2394_s1 + $0x280] sm:$0xff] }
  0x2f   :  { %1174 = vmatpush.bf16.msrb.mxu1 %v1875_v55  ;;  %v1919_v55 = vld [vmem:[%s2394_s1 + $0x2c0] sm:$0xff] }
  0x30   :  { %1187 = vmatpush.bf16.msrb.mxu2 %v1883_v56  ;;  %v299_v56 = vunpack.c.h.b16 %v18_v48 }
  0x31   :  { %1200 = vmatpush.bf16.msrb.mxu3 %v1891_v57  ;;  %v301_v57 = vunpack.c.h.b16 %v19_v49 }
  0x32   :  { %1162 = vmatpush.bf16.msrb.mxu0 %v1866_v58  ;;  %v1934_v58 = vld [vmem:[%s2394_s1 + $0x338] sm:$0xff] }
  0x33   :  { %1175 = vmatpush.bf16.msrb.mxu1 %v1874_v59  ;;  %v1942_v59 = vld [vmem:[%s2394_s1 + $0x378] sm:$0xff] }
  0x34   :  { %1188 = vmatpush.bf16.msrb.mxu2 %v1882_v60  ;;  %v1950_v60 = vld [vmem:[%s2394_s1 + $0x3b8] sm:$0xff] }
  0x35   :  { %1201 = vmatpush.bf16.msrb.mxu3 %v1890_v61  ;;  %v1958_v61 = vld [vmem:[%s2394_s1 + $0x3f8] sm:$0xff] }
  0x36   :  { %1163 = vmatpush.bf16.msrb.mxu0 %v1865_v62  ;;  %v314_v62 = vpack.c.b16 %v298_v52, %v298_v52 }
  0x37   :  { %1176 = vmatpush.bf16.msrb.mxu1 %v1873_v63  ;;  %v316_v63 = vpack.c.b16 %v300_v53, %v300_v53 }
  0x38   :  { %1189 = vmatpush.bf16.msrb.mxu2 %v1881_v0  ;;  %v315_v0 = vpack.c.b16 %v299_v56, %v299_v56 }
  0x39   :  { %1202 = vmatpush.bf16.msrb.mxu3 %v1889_v1  ;;  %v317_v1 = vpack.c.b16 %v301_v57, %v301_v57 }
  0x3a   :  { %1164 = vmatpush.bf16.msrb.mxu0 %v1864_v2  ;;  %v1933_v2 = vld [vmem:[%s2394_s1 + $0x330] sm:$0xff] }
  0x3b   :  { %1177 = vmatpush.bf16.msrb.mxu1 %v1872_v3  ;;  %v1941_v3 = vld [vmem:[%s2394_s1 + $0x370] sm:$0xff] }
  0x3c   :  { %1190 = vmatpush.bf16.msrb.mxu2 %v1880_v4  ;;  %v1949_v4 = vld [vmem:[%s2394_s1 + $0x3b0] sm:$0xff] }
  0x3d   :  { %1203 = vmatpush.bf16.msrb.mxu3 %v1888_v5  ;;  %v1957_v5 = vld [vmem:[%s2394_s1 + $0x3f0] sm:$0xff] }
  0x3e   :  { %1165 = vmatpush.bf16.msrb.mxu0 %v1863_v8  ;;  %v1948_v8 = vld [vmem:[%s2394_s1 + $0x3a8] sm:$0xff] }
  0x3f   :  { %1178 = vmatpush.bf16.msrb.mxu1 %v1871_v9  ;;  %v1956_v9 = vld [vmem:[%s2394_s1 + $0x3e8] sm:$0xff] }
  0x40   :  { %1191 = vmatpush.bf16.msrb.mxu2 %v1879_v12  ;;  %v1947_v12 = vld [vmem:[%s2394_s1 + $0x3a0] sm:$0xff] }
  0x41   :  { %1204 = vmatpush.bf16.msrb.mxu3 %v1887_v13  ;;  %1166 = vmatmul.bf16.vlgmr.msrb.gmra.mxu0 %v310_v21  ;;  %v1955_v13 = vld [vmem:[%s2394_s1 + $0x3e0] sm:$0xff]  ;;  %v1953_v21 = vld [vmem:[%s2394_s1 + $0x3d0] sm:$0xff] }
  0x42   :  { %1210 = vmatpush.bf16.msra.mxu0 %v1902_v16  ;;  %1179 = vmatmul.bf16.vlgmr.msrb.gmra.mxu1 %v311_v23  ;;  %v1946_v16 = vld [vmem:[%s2394_s1 + $0x398] sm:$0xff]  ;;  %v1936_v23 = vld [vmem:[%s2394_s1 + $0x348] sm:$0xff] }
  0x43   :  { %1223 = vmatpush.bf16.msra.mxu1 %v1910_v17  ;;  %1192 = vmatmul.bf16.vlgmr.msrb.gmra.mxu2 %v312_v20  ;;  %v1954_v17 = vld [vmem:[%s2394_s1 + $0x3d8] sm:$0xff]  ;;  %v1945_v20 = vld [vmem:[%s2394_s1 + $0x390] sm:$0xff] }
  0x44   :  { %1236 = vmatpush.bf16.msra.mxu2 %v1918_v18  ;;  %1205 = vmatmul.bf16.vlgmr.msrb.gmra.mxu3 %v313_v22  ;;  %v1929_v18 = vld [vmem:[%s2394_s1 + $0x310] sm:$0xff]  ;;  %v1928_v22 = vld [vmem:[%s2394_s1 + $0x308] sm:$0xff] }
  0x45   :  { %1249 = vmatpush.bf16.msra.mxu3 %v1926_v19  ;;  %v1937_v19 = vld [vmem:[%s2394_s1 + $0x350] sm:$0xff] }
  0x46   :  { %1211 = vmatpush.bf16.msra.mxu0 %v1901_v24  ;;  %v20_v24 = vld [vmem:[%s2396_s0 + $0x30] sm:$0xff] }
  0x47   :  { %1224 = vmatpush.bf16.msra.mxu1 %v1909_v25  ;;  %v1944_v25 = vld [vmem:[%s2394_s1 + $0x388] sm:$0xff] }
  0x48   :  { %1237 = vmatpush.bf16.msra.mxu2 %v1917_v26  ;;  %v1952_v26 = vld [vmem:[%s2394_s1 + $0x3c8] sm:$0xff] }
  0x49   :  { %1250 = vmatpush.bf16.msra.mxu3 %v1925_v27  ;;  %v21_v27 = vld [vmem:[%s2396_s0 + $0x38] sm:$0xff] }
  0x4a   :  { %1212 = vmatpush.bf16.msra.mxu0 %v1900_v28  ;;  %v302_v28 = vunpack.c.l.b16 %v20_v24 }
  0x4b   :  { %1225 = vmatpush.bf16.msra.mxu1 %v1908_v29  ;;  %v303_v29 = vunpack.c.h.b16 %v20_v24 }
  0x4c   :  { %1238 = vmatpush.bf16.msra.mxu2 %v1916_v30  ;;  %v1927_v30 = vld [vmem:[%s2394_s1 + $0x300] sm:$0xff] }
  0x4d   :  { %1251 = vmatpush.bf16.msra.mxu3 %v1924_v31  ;;  %v1935_v31 = vld [vmem:[%s2394_s1 + $0x340] sm:$0xff] }
  0x4e   :  { %1213 = vmatpush.bf16.msra.mxu0 %v1899_v32  ;;  %v304_v32 = vunpack.c.l.b16 %v21_v27 }
  0x4f   :  { %1226 = vmatpush.bf16.msra.mxu1 %v1907_v33  ;;  %v305_v33 = vunpack.c.h.b16 %v21_v27 }
  0x50   :  { %1239 = vmatpush.bf16.msra.mxu2 %v1915_v34  ;;  %v1943_v34 = vld [vmem:[%s2394_s1 + $0x380] sm:$0xff] }
  0x51   :  { %1252 = vmatpush.bf16.msra.mxu3 %v1923_v35  ;;  %v1951_v35 = vld [vmem:[%s2394_s1 + $0x3c0] sm:$0xff] }
  0x52   :  { %1214 = vmatpush.bf16.msra.mxu0 %v1898_v36  ;;  %v318_v36 = vpack.c.b16 %v302_v28, %v302_v28 }
  0x53   :  { %1227 = vmatpush.bf16.msra.mxu1 %v1906_v37  ;;  %v319_v37 = vpack.c.b16 %v303_v29, %v303_v29 }
  0x54   :  { %1240 = vmatpush.bf16.msra.mxu2 %v1914_v38  ;;  %v320_v38 = vpack.c.b16 %v304_v32, %v304_v32 }
  0x55   :  { %1253 = vmatpush.bf16.msra.mxu3 %v1922_v39  ;;  %v321_v39 = vpack.c.b16 %v305_v33, %v305_v33 }
  0x56   :  { %1215 = vmatpush.bf16.msra.mxu0 %v1897_v40  ;;  %v1959_v40 = vld [vmem:[%s2395_s2] ss:$0 sm:$0xff] }
  0x57   :  { %1228 = vmatpush.bf16.msra.mxu1 %v1905_v41 }
  0x58   :  { %1241 = vmatpush.bf16.msra.mxu2 %v1913_v42 }
  0x59   :  { %1254 = vmatpush.bf16.msra.mxu3 %v1921_v43 }
  0x5a   :  { %1216 = vmatpush.bf16.msra.mxu0 %v1896_v44 }
  0x5b   :  { %1229 = vmatpush.bf16.msra.mxu1 %v1904_v45 }
  0x5c   :  { %1242 = vmatpush.bf16.msra.mxu2 %v1912_v46 }
  0x5d   :  { %1255 = vmatpush.bf16.msra.mxu3 %v1920_v47 }
  0x5e   :  { %1217 = vmatpush.bf16.msra.mxu0 %v1895_v50 }
  0x5f   :  { %1230 = vmatpush.bf16.msra.mxu1 %v1903_v51 }
  0x60   :  { %1243 = vmatpush.bf16.msra.mxu2 %v1911_v54 }
  0x61   :  { %1256 = vmatpush.bf16.msra.mxu3 %v1919_v55  ;;  %1218 = vmatmul.bf16.vlgmr.msra.gmra.mxu0 %v314_v62 }
  0x62   :  { %1262 = vmatpush.bf16.msrb.mxu0 %v1934_v58  ;;  %1231 = vmatmul.bf16.vlgmr.msra.gmra.mxu1 %v315_v0 }
  0x63   :  { %1275 = vmatpush.bf16.msrb.mxu1 %v1942_v59  ;;  %1244 = vmatmul.bf16.vlgmr.msra.gmra.mxu2 %v316_v63 }
  0x64   :  { %1288 = vmatpush.bf16.msrb.mxu2 %v1950_v60  ;;  %1257 = vmatmul.bf16.vlgmr.msra.gmra.mxu3 %v317_v1 }
  0x65   :  { %1301 = vmatpush.bf16.msrb.mxu3 %v1958_v61 }
  0x66   :  { %1263 = vmatpush.bf16.msrb.mxu0 %v1933_v2 }
  0x67   :  { %1276 = vmatpush.bf16.msrb.mxu1 %v1941_v3 }
  0x68   :  { %1289 = vmatpush.bf16.msrb.mxu2 %v1949_v4 }
  0x69   :  { %1302 = vmatpush.bf16.msrb.mxu3 %v1957_v5 }
  0x6a   :  { %1264 = vmatpush.bf16.msrb.mxu0 %v1932_v6 }
  0x6b   :  { %1277 = vmatpush.bf16.msrb.mxu1 %v1940_v7 }
  0x6c   :  { %1290 = vmatpush.bf16.msrb.mxu2 %v1948_v8 }
  0x6d   :  { %1303 = vmatpush.bf16.msrb.mxu3 %v1956_v9 }
  0x6e   :  { %1265 = vmatpush.bf16.msrb.mxu0 %v1931_v10 }
  0x6f   :  { %1278 = vmatpush.bf16.msrb.mxu1 %v1939_v11 }
  0x70   :  { %1291 = vmatpush.bf16.msrb.mxu2 %v1947_v12 }
  0x71   :  { %1304 = vmatpush.bf16.msrb.mxu3 %v1955_v13 }
  0x72   :  { %1266 = vmatpush.bf16.msrb.mxu0 %v1930_v14 }
  0x73   :  { %1279 = vmatpush.bf16.msrb.mxu1 %v1938_v15 }
  0x74   :  { %1292 = vmatpush.bf16.msrb.mxu2 %v1946_v16 }
  0x75   :  { %1305 = vmatpush.bf16.msrb.mxu3 %v1954_v17 }
  0x76   :  { %1267 = vmatpush.bf16.msrb.mxu0 %v1929_v18 }
  0x77   :  { %1280 = vmatpush.bf16.msrb.mxu1 %v1937_v19 }
  0x78   :  { %1293 = vmatpush.bf16.msrb.mxu2 %v1945_v20 }
  0x79   :  { %1306 = vmatpush.bf16.msrb.mxu3 %v1953_v21 }
  0x7a   :  { %1268 = vmatpush.bf16.msrb.mxu0 %v1928_v22 }
  0x7b   :  { %1281 = vmatpush.bf16.msrb.mxu1 %v1936_v23 }
  0x7c   :  { %1294 = vmatpush.bf16.msrb.mxu2 %v1944_v25 }
  0x7d   :  { %1307 = vmatpush.bf16.msrb.mxu3 %v1952_v26 }
  0x7e   :  { %1269 = vmatpush.bf16.msrb.mxu0 %v1927_v30 }
  0x7f   :  { %1282 = vmatpush.bf16.msrb.mxu1 %v1935_v31 }
  0x80   :  { %1295 = vmatpush.bf16.msrb.mxu2 %v1943_v34 }
  0x81   :  { %1308 = vmatpush.bf16.msrb.mxu3 %v1951_v35  ;;  %1270 = vmatmul.bf16.vlgmr.msrb.gmra.mxu0 %v318_v36 }
  0x82   :  { %1283 = vmatmul.bf16.vlgmr.msrb.gmra.mxu1 %v319_v37 }
  0x83   :  { %1296 = vmatmul.bf16.vlgmr.msrb.gmra.mxu2 %v320_v38 }
  0x84   :  { %1309 = vmatmul.bf16.vlgmr.msrb.gmra.mxu3 %v321_v39 }
  0x9e   :  { %v1115_v41 = vpop.f32.mrf.mxu0 }
  0x9f   :  { %v1116_v42 = vadd.f32 %v1959_v40, %v1115_v41  ;;  %v1128_v43 = vpop.f32.mrf.mxu1 }
  0xa1   :  { %v1129_v44 = vadd.f32 %v1128_v43, %v1116_v42 }
  0xa6   :  { %v1141_v45 = vpop.f32.mrf.mxu2  ;;  %v1117_v48 = vpop.f32.mrf.mxu0 }
  0xa7   :  { %v1142_v46 = vadd.f32 %v1141_v45, %v1129_v44  ;;  %v1154_v47 = vpop.f32.mrf.mxu3  ;;  %v1130_v50 = vpop.f32.mrf.mxu1 }
  0xa9   :  { %v1155_v49 = vadd.f32 %v1154_v47, %v1142_v46 }
  0xae   :  { %v1143_v51 = vpop.f32.mrf.mxu2 }
  0xaf   :  { %v1156_v52 = vpop.f32.mrf.mxu3 }
  0xbe   :  { %v1167_v53 = vpop.f32.mrf.mxu0 }
  0xbf   :  { %v1180_v54 = vpop.f32.mrf.mxu1  ;;  %v1168_v63 = vadd.f32 %v1167_v53, %v1155_v49 }
  0xc1   :  { %v1181_v3 = vadd.f32 %v1180_v54, %v1168_v63 }
  0xc6   :  { %v1193_v55 = vpop.f32.mrf.mxu2  ;;  %v1169_v57 = vpop.f32.mrf.mxu0 }
  0xc7   :  { %v1206_v56 = vpop.f32.mrf.mxu3  ;;  %v1182_v58 = vpop.f32.mrf.mxu1  ;;  %v1194_v5 = vadd.f32 %v1193_v55, %v1181_v3 }
  0xc9   :  { %v1207_v8 = vadd.f32 %v1206_v56, %v1194_v5 }
  0xce   :  { %v1195_v59 = vpop.f32.mrf.mxu2 }
  0xcf   :  { %v1208_v60 = vpop.f32.mrf.mxu3 }
  0xde   :  { %v1219_v61 = vpop.f32.mrf.mxu0 }
  0xdf   :  { %v1232_v62 = vpop.f32.mrf.mxu1  ;;  %v1220_v9 = vadd.f32 %v1219_v61, %v1207_v8 }
  0xe1   :  { %v1233_v10 = vadd.f32 %v1232_v62, %v1220_v9 }
  0xe6   :  { %v1245_v0 = vpop.f32.mrf.mxu2  ;;  %v1221_v2 = vpop.f32.mrf.mxu0 }
  0xe7   :  { %v1258_v1 = vpop.f32.mrf.mxu3  ;;  %v1234_v4 = vpop.f32.mrf.mxu1  ;;  %v1246_v11 = vadd.f32 %v1245_v0, %v1233_v10 }
  0xe9   :  { %v1259_v12 = vadd.f32 %v1258_v1, %v1246_v11 }
  0xee   :  { %v1247_v6 = vpop.f32.mrf.mxu2 }
  0xef   :  { %v1260_v7 = vpop.f32.mrf.mxu3 }
  0xfe   :  { %v1271_v13 = vpop.f32.mrf.mxu0 }
  0xff   :  { %v1284_v14 = vpop.f32.mrf.mxu1  ;;  %v1272_v15 = vadd.f32 %v1271_v13, %v1259_v12 }
 0x101   :  { %v1285_v16 = vadd.f32 %v1284_v14, %v1272_v15 }
 0x106   :  { %v1297_v17 = vpop.f32.mrf.mxu2  ;;  %v1273_v20 = vpop.f32.mrf.mxu0 }
 0x107   :  { %v1310_v18 = vpop.f32.mrf.mxu3  ;;  %v1298_v19 = vadd.f32 %v1297_v17, %v1285_v16  ;;  %v1286_v21 = vpop.f32.mrf.mxu1 }
 0x109   :  { %v1311_v22 = vadd.f32 %v1310_v18, %v1298_v19 }
 0x10b   :  { %1314 = vst [vmem:[%s2397_s3] sm:$0xff] %v1311_v22 }
 0x10e   :  { %v1299_v23 = vpop.f32.mrf.mxu2 }
 0x10f   :  { %v1312_v24 = vpop.f32.mrf.mxu3 }

// kernel: forward.10
= control target key start
LH: loop header
LB: loop body
LE: loop exit
PB: predicated region body
PF: predicated region fallthrough
CT: control target
= control target key end

     0   :  { %s8682_s12 = smov 0   ;;  %s8684_s13 = smov 0   ;;  %s10578_s0 = inlined_call_operand.vmem [shape: bf16[8,2048], index: 0, kind: input, shape index: {}]   ;;  %s10579_s1 = inlined_call_operand.vmem [shape: bf16[2048,2048], index: 1, kind: input, shape index: {}]   ;;  %s10580_s2 = inlined_call_operand.vmem [shape: f32[1,2048], index: 2, kind: input, shape index: {}]   ;;  %s10581_s3 = inlined_call_operand.vmem [shape: f32[8,2048], index: 3, kind: output, shape index: {}]  }
   0x1   :  { %s8686_s14 = smov 0   ;;  %s8688_s15 = smov 0  }
   0x2   :  { %s8690_s16 = smov 0  }
   0x3 LB: > { %s22_s17 = sadd.s32 1, %s8640_s15  ;;  %p65_p1 = scmp.ne.s32.totalorder %s8632_s13, %s8628_s12  ;;  %s8644_s16 = sphi %s8690_s16, %s13_s16   ;;  %s8640_s15 = sphi %s8688_s15, %s10591_s15   ;;  %s8636_s14 = sphi %s8686_s14, %s10590_s14   ;;  %s8632_s13 = sphi %s8684_s13, %s10589_s13   ;;  %s8628_s12 = sphi %s8682_s12, %s10588_s12  }
   0x4   : > { %p23_p0 = scmp.ge.s32.totalorder %s22_s17, 4  ;;  %p66_p2 = scmp.eq.s32.totalorder %s8644_s16, 0 }
   0x5   : > { %s58_s19 = sadd.s32 1, %s8632_s13  ;;  %p5943_p5 = scmp.ge.s32.totalorder %s8644_s16, 4 }
   0x6   : > { %s10593_s17 = smov (%p23_p0, %s22_s17), 0  ;;  %p67_p3 = por %p66_p2, %p65_p1 }
   0x7   : > { %s55_s18 = ssub.s32 %s8640_s15, %s10593_s17  ;;  %153 = sbr.rel (%p5943_p5) target bundleno = 274 (0x112), region = 20 }
   0x8   : > { %p56_p4 = scmp.eq.s32.totalorder %s55_s18, 0 }
   0xa   : > { %s8717_s20 = scalar_select %p56_p4, %s8632_s13, %s58_s19  }
   0xc   : > { %156 = sbr.rel (!%p67_p3) target bundleno = 274 (0x112), region = 24  ;;  %s158_s21 = sand.u32 (%p67_p3), 1, %s8632_s13  }
   0xd   : > { %s8004_s22 = sshll.u32 (%p67_p3), %s8640_s15, 4  ;;  %s8722_s23 = sshll.u32 (%p67_p3), %s158_s21, 12 }
   0xe   : > { %s8727_s26 = scalar_lea.vmem (%p67_p3), %s10579_s1, %s8004_s22   ;;  %s160_s27 = scalar_lea.vmem (%p67_p3), [#allocation2], %s8722_s23  }
   0xf   : > { %s10582_s28 = smov (%p67_p3), %s160_s27  ;;  %s10583_s29 = smov (%p67_p3), %s8727_s26 }
  0x10   : > { %s8737_s30 = smov (%p67_p3), 0   ;;  %s8739_s4 = smov (%p67_p3), 0  }
  0x11 LB: >> { %v177_v0 = vld [vmem:[%s8652_s29] sm:$0xff]  ;;  %s689_s5 = sadd.s32 1, %s8656_s30  ;;  %s173_s4 = sadd.s32 1, %s8660_s4   ;;  %s8660_s4 = sphi %s8739_s4, %s173_s4   ;;  %s8656_s30 = sphi %s8737_s30, %s10586_s30   ;;  %s8652_s29 = sphi %s10583_s29, %s10585_s29   ;;  %s8648_s28 = sphi %s10582_s28, %s10584_s28  }
  0x12   : >> { %v179_v1 = vld [vmem:[%s8652_s29 + $0x40] sm:$0xff]  ;;  %178 = vst [vmem:[%s8648_s28] sm:$0xff] %v177_v0  ;;  %p690_p6 = scmp.ge.s32.totalorder %s689_s5, 2  ;;  %p170_p7 = scmp.ge.s32.totalorder %s173_s4, 2  }
  0x13   : >> { %v181_v2 = vld [vmem:[%s8652_s29 + $0x80] sm:$0xff]  ;;  %180 = vst [vmem:[%s8648_s28 + $0x10] sm:$0xff] %v179_v1 }
  0x14   : >> { %v183_v3 = vld [vmem:[%s8652_s29 + $0xc0] sm:$0xff]  ;;  %182 = vst [vmem:[%s8648_s28 + $0x20] sm:$0xff] %v181_v2  ;;  %s10595_s5 = smov (%p690_p6, %s689_s5), 0 }
  0x15   : >> { %v185_v4 = vld [vmem:[%s8652_s29 + $0x100] sm:$0xff]  ;;  %184 = vst [vmem:[%s8648_s28 + $0x30] sm:$0xff] %v183_v3  ;;  %s5947_s6 = sshll.u32 %s10595_s5, 3  ;;  %s10586_s30 = smov %s10595_s5 }
  0x16   : >> { %v187_v5 = vld [vmem:[%s8652_s29 + $0x140] sm:$0xff]  ;;  %186 = vst [vmem:[%s8648_s28 + $0x40] sm:$0xff] %v185_v4  ;;  %s9017_s7 = scalar_lea.vmem %s8727_s26, %s5947_s6   ;;  %s9021_s8 = scalar_lea.vmem %s160_s27, %s5947_s6 [#allocation2]  }
  0x17   : >> { %v189_v6 = vld [vmem:[%s8652_s29 + $0x180] sm:$0xff]  ;;  %188 = vst [vmem:[%s8648_s28 + $0x50] sm:$0xff] %v187_v5 }
  0x18   : >> { %v191_v7 = vld [vmem:[%s8652_s29 + $0x1c0] sm:$0xff]  ;;  %190 = vst [vmem:[%s8648_s28 + $0x60] sm:$0xff] %v189_v6 }
  0x19   : >> { %v193_v8 = vld [vmem:[%s8652_s29 + $0x200] sm:$0xff]  ;;  %192 = vst [vmem:[%s8648_s28 + $0x70] sm:$0xff] %v191_v7 }
  0x1a   : >> { %v195_v9 = vld [vmem:[%s8652_s29 + $0x240] sm:$0xff]  ;;  %194 = vst [vmem:[%s8648_s28 + $0x80] sm:$0xff] %v193_v8 }
  0x1b   : >> { %v197_v10 = vld [vmem:[%s8652_s29 + $0x280] sm:$0xff]  ;;  %196 = vst [vmem:[%s8648_s28 + $0x90] sm:$0xff] %v195_v9 }
  0x1c   : >> { %v199_v11 = vld [vmem:[%s8652_s29 + $0x2c0] sm:$0xff]  ;;  %198 = vst [vmem:[%s8648_s28 + $0xa0] sm:$0xff] %v197_v10 }
  0x1d   : >> { %v201_v12 = vld [vmem:[%s8652_s29 + $0x300] sm:$0xff]  ;;  %200 = vst [vmem:[%s8648_s28 + $0xb0] sm:$0xff] %v199_v11 }
  0x1e   : >> { %v203_v13 = vld [vmem:[%s8652_s29 + $0x340] sm:$0xff]  ;;  %202 = vst [vmem:[%s8648_s28 + $0xc0] sm:$0xff] %v201_v12 }
  0x1f   : >> { %v205_v14 = vld [vmem:[%s8652_s29 + $0x380] sm:$0xff]  ;;  %204 = vst [vmem:[%s8648_s28 + $0xd0] sm:$0xff] %v203_v13 }
  0x20   : >> { %v207_v15 = vld [vmem:[%s8652_s29 + $0x3c0] sm:$0xff]  ;;  %206 = vst [vmem:[%s8648_s28 + $0xe0] sm:$0xff] %v205_v14 }
  0x21   : >> { %v209_v16 = vld [vmem:[%s8652_s29 + $0x400] sm:$0xff]  ;;  %208 = vst [vmem:[%s8648_s28 + $0xf0] sm:$0xff] %v207_v15 }
  0x22   : >> { %v211_v17 = vld [vmem:[%s8652_s29 + $0x440] sm:$0xff]  ;;  %210 = vst [vmem:[%s8648_s28 + $0x100] sm:$0xff] %v209_v16 }
  0x23   : >> { %v213_v18 = vld [vmem:[%s8652_s29 + $0x480] sm:$0xff]  ;;  %212 = vst [vmem:[%s8648_s28 + $0x110] sm:$0xff] %v211_v17 }
  0x24   : >> { %v215_v19 = vld [vmem:[%s8652_s29 + $0x4c0] sm:$0xff]  ;;  %214 = vst [vmem:[%s8648_s28 + $0x120] sm:$0xff] %v213_v18 }
  0x25   : >> { %v217_v20 = vld [vmem:[%s8652_s29 + $0x500] sm:$0xff]  ;;  %216 = vst [vmem:[%s8648_s28 + $0x130] sm:$0xff] %v215_v19 }
  0x26   : >> { %v219_v21 = vld [vmem:[%s8652_s29 + $0x540] sm:$0xff]  ;;  %218 = vst [vmem:[%s8648_s28 + $0x140] sm:$0xff] %v217_v20 }
  0x27   : >> { %v221_v22 = vld [vmem:[%s8652_s29 + $0x580] sm:$0xff]  ;;  %220 = vst [vmem:[%s8648_s28 + $0x150] sm:$0xff] %v219_v21 }
  0x28   : >> { %v223_v23 = vld [vmem:[%s8652_s29 + $0x5c0] sm:$0xff]  ;;  %222 = vst [vmem:[%s8648_s28 + $0x160] sm:$0xff] %v221_v22 }
  0x29   : >> { %v225_v24 = vld [vmem:[%s8652_s29 + $0x600] sm:$0xff]  ;;  %224 = vst [vmem:[%s8648_s28 + $0x170] sm:$0xff] %v223_v23 }
  0x2a   : >> { %v227_v25 = vld [vmem:[%s8652_s29 + $0x640] sm:$0xff]  ;;  %226 = vst [vmem:[%s8648_s28 + $0x180] sm:$0xff] %v225_v24 }
  0x2b   : >> { %v229_v26 = vld [vmem:[%s8652_s29 + $0x680] sm:$0xff]  ;;  %228 = vst [vmem:[%s8648_s28 + $0x190] sm:$0xff] %v227_v25 }
  0x2c   : >> { %v231_v27 = vld [vmem:[%s8652_s29 + $0x6c0] sm:$0xff]  ;;  %230 = vst [vmem:[%s8648_s28 + $0x1a0] sm:$0xff] %v229_v26 }
  0x2d   : >> { %v233_v28 = vld [vmem:[%s8652_s29 + $0x700] sm:$0xff]  ;;  %232 = vst [vmem:[%s8648_s28 + $0x1b0] sm:$0xff] %v231_v27 }
  0x2e   : >> { %v235_v29 = vld [vmem:[%s8652_s29 + $0x740] sm:$0xff]  ;;  %234 = vst [vmem:[%s8648_s28 + $0x1c0] sm:$0xff] %v233_v28 }
  0x2f   : >> { %v237_v30 = vld [vmem:[%s8652_s29 + $0x780] sm:$0xff]  ;;  %236 = vst [vmem:[%s8648_s28 + $0x1d0] sm:$0xff] %v235_v29 }
  0x30   : >> { %v239_v31 = vld [vmem:[%s8652_s29 + $0x7c0] sm:$0xff]  ;;  %238 = vst [vmem:[%s8648_s28 + $0x1e0] sm:$0xff] %v237_v30 }
  0x31   : >> { %v241_v32 = vld [vmem:[%s8652_s29 + $0x800] sm:$0xff]  ;;  %240 = vst [vmem:[%s8648_s28 + $0x1f0] sm:$0xff] %v239_v31 }
  0x32   : >> { %v243_v33 = vld [vmem:[%s8652_s29 + $0x840] sm:$0xff]  ;;  %242 = vst [vmem:[%s8648_s28 + $0x200] sm:$0xff] %v241_v32 }
  0x33   : >> { %v245_v34 = vld [vmem:[%s8652_s29 + $0x880] sm:$0xff]  ;;  %244 = vst [vmem:[%s8648_s28 + $0x210] sm:$0xff] %v243_v33 }
  0x34   : >> { %v247_v35 = vld [vmem:[%s8652_s29 + $0x8c0] sm:$0xff]  ;;  %246 = vst [vmem:[%s8648_s28 + $0x220] sm:$0xff] %v245_v34 }
  0x35   : >> { %v249_v36 = vld [vmem:[%s8652_s29 + $0x900] sm:$0xff]  ;;  %248 = vst [vmem:[%s8648_s28 + $0x230] sm:$0xff] %v247_v35 }
  0x36   : >> { %v251_v37 = vld [vmem:[%s8652_s29 + $0x940] sm:$0xff]  ;;  %250 = vst [vmem:[%s8648_s28 + $0x240] sm:$0xff] %v249_v36 }
  0x37   : >> { %v253_v38 = vld [vmem:[%s8652_s29 + $0x980] sm:$0xff]  ;;  %252 = vst [vmem:[%s8648_s28 + $0x250] sm:$0xff] %v251_v37 }
  0x38   : >> { %v255_v39 = vld [vmem:[%s8652_s29 + $0x9c0] sm:$0xff]  ;;  %254 = vst [vmem:[%s8648_s28 + $0x260] sm:$0xff] %v253_v38 }
  0x39   : >> { %v257_v40 = vld [vmem:[%s8652_s29 + $0xa00] sm:$0xff]  ;;  %256 = vst [vmem:[%s8648_s28 + $0x270] sm:$0xff] %v255_v39 }
  0x3a   : >> { %v259_v41 = vld [vmem:[%s8652_s29 + $0xa40] sm:$0xff]  ;;  %258 = vst [vmem:[%s8648_s28 + $0x280] sm:$0xff] %v257_v40 }
  0x3b   : >> { %v261_v42 = vld [vmem:[%s8652_s29 + $0xa80] sm:$0xff]  ;;  %260 = vst [vmem:[%s8648_s28 + $0x290] sm:$0xff] %v259_v41 }
  0x3c   : >> { %v263_v43 = vld [vmem:[%s8652_s29 + $0xac0] sm:$0xff]  ;;  %262 = vst [vmem:[%s8648_s28 + $0x2a0] sm:$0xff] %v261_v42 }
  0x3d   : >> { %v265_v44 = vld [vmem:[%s8652_s29 + $0xb00] sm:$0xff]  ;;  %264 = vst [vmem:[%s8648_s28 + $0x2b0] sm:$0xff] %v263_v43 }
  0x3e   : >> { %v267_v45 = vld [vmem:[%s8652_s29 + $0xb40] sm:$0xff]  ;;  %266 = vst [vmem:[%s8648_s28 + $0x2c0] sm:$0xff] %v265_v44 }
  0x3f   : >> { %v269_v46 = vld [vmem:[%s8652_s29 + $0xb80] sm:$0xff]  ;;  %268 = vst [vmem:[%s8648_s28 + $0x2d0] sm:$0xff] %v267_v45 }
  0x40   : >> { %v271_v47 = vld [vmem:[%s8652_s29 + $0xbc0] sm:$0xff]  ;;  %270 = vst [vmem:[%s8648_s28 + $0x2e0] sm:$0xff] %v269_v46 }
  0x41   : >> { %v273_v48 = vld [vmem:[%s8652_s29 + $0xc00] sm:$0xff]  ;;  %272 = vst [vmem:[%s8648_s28 + $0x2f0] sm:$0xff] %v271_v47 }
  0x42   : >> { %v275_v49 = vld [vmem:[%s8652_s29 + $0xc40] sm:$0xff]  ;;  %274 = vst [vmem:[%s8648_s28 + $0x300] sm:$0xff] %v273_v48 }
  0x43   : >> { %v277_v50 = vld [vmem:[%s8652_s29 + $0xc80] sm:$0xff]  ;;  %276 = vst [vmem:[%s8648_s28 + $0x310] sm:$0xff] %v275_v49 }
  0x44   : >> { %v279_v51 = vld [vmem:[%s8652_s29 + $0xcc0] sm:$0xff]  ;;  %278 = vst [vmem:[%s8648_s28 + $0x320] sm:$0xff] %v277_v50 }
  0x45   : >> { %v281_v52 = vld [vmem:[%s8652_s29 + $0xd00] sm:$0xff]  ;;  %280 = vst [vmem:[%s8648_s28 + $0x330] sm:$0xff] %v279_v51 }
  0x46   : >> { %v283_v53 = vld [vmem:[%s8652_s29 + $0xd40] sm:$0xff]  ;;  %282 = vst [vmem:[%s8648_s28 + $0x340] sm:$0xff] %v281_v52 }
  0x47   : >> { %v285_v54 = vld [vmem:[%s8652_s29 + $0xd80] sm:$0xff]  ;;  %284 = vst [vmem:[%s8648_s28 + $0x350] sm:$0xff] %v283_v53 }
  0x48   : >> { %v287_v55 = vld [vmem:[%s8652_s29 + $0xdc0] sm:$0xff]  ;;  %286 = vst [vmem:[%s8648_s28 + $0x360] sm:$0xff] %v285_v54 }
  0x49   : >> { %v289_v56 = vld [vmem:[%s8652_s29 + $0xe00] sm:$0xff]  ;;  %288 = vst [vmem:[%s8648_s28 + $0x370] sm:$0xff] %v287_v55 }
  0x4a   : >> { %v291_v57 = vld [vmem:[%s8652_s29 + $0xe40] sm:$0xff]  ;;  %290 = vst [vmem:[%s8648_s28 + $0x380] sm:$0xff] %v289_v56 }
  0x4b   : >> { %v293_v58 = vld [vmem:[%s8652_s29 + $0xe80] sm:$0xff]  ;;  %292 = vst [vmem:[%s8648_s28 + $0x390] sm:$0xff] %v291_v57 }
  0x4c   : >> { %v295_v59 = vld [vmem:[%s8652_s29 + $0xec0] sm:$0xff]  ;;  %294 = vst [vmem:[%s8648_s28 + $0x3a0] sm:$0xff] %v293_v58 }
  0x4d   : >> { %v297_v60 = vld [vmem:[%s8652_s29 + $0xf00] sm:$0xff]  ;;  %296 = vst [vmem:[%s8648_s28 + $0x3b0] sm:$0xff] %v295_v59 }
  0x4e   : >> { %v299_v61 = vld [vmem:[%s8652_s29 + $0xf40] sm:$0xff]  ;;  %298 = vst [vmem:[%s8648_s28 + $0x3c0] sm:$0xff] %v297_v60 }
  0x4f   : >> { %v301_v62 = vld [vmem:[%s8652_s29 + $0xf80] sm:$0xff]  ;;  %300 = vst [vmem:[%s8648_s28 + $0x3d0] sm:$0xff] %v299_v61 }
  0x50   : >> { %v303_v63 = vld [vmem:[%s8652_s29 + $0xfc0] sm:$0xff]  ;;  %302 = vst [vmem:[%s8648_s28 + $0x3e0] sm:$0xff] %v301_v62 }
  0x51   : >> { %v305_v0 = vld [vmem:[%s8652_s29 + $0x1000] sm:$0xff]  ;;  %304 = vst [vmem:[%s8648_s28 + $0x3f0] sm:$0xff] %v303_v63 }
  0x52   : >> { %v307_v1 = vld [vmem:[%s8652_s29 + $0x1040] sm:$0xff]  ;;  %306 = vst [vmem:[%s8648_s28 + $0x400] sm:$0xff] %v305_v0 }
  0x53   : >> { %v309_v2 = vld [vmem:[%s8652_s29 + $0x1080] sm:$0xff]  ;;  %308 = vst [vmem:[%s8648_s28 + $0x410] sm:$0xff] %v307_v1 }
  0x54   : >> { %v311_v3 = vld [vmem:[%s8652_s29 + $0x10c0] sm:$0xff]  ;;  %310 = vst [vmem:[%s8648_s28 + $0x420] sm:$0xff] %v309_v2 }
  0x55   : >> { %v313_v4 = vld [vmem:[%s8652_s29 + $0x1100] sm:$0xff]  ;;  %312 = vst [vmem:[%s8648_s28 + $0x430] sm:$0xff] %v311_v3 }
  0x56   : >> { %v315_v5 = vld [vmem:[%s8652_s29 + $0x1140] sm:$0xff]  ;;  %314 = vst [vmem:[%s8648_s28 + $0x440] sm:$0xff] %v313_v4 }
  0x57   : >> { %v317_v6 = vld [vmem:[%s8652_s29 + $0x1180] sm:$0xff]  ;;  %316 = vst [vmem:[%s8648_s28 + $0x450] sm:$0xff] %v315_v5 }
  0x58   : >> { %v319_v7 = vld [vmem:[%s8652_s29 + $0x11c0] sm:$0xff]  ;;  %318 = vst [vmem:[%s8648_s28 + $0x460] sm:$0xff] %v317_v6 }
  0x59   : >> { %v321_v8 = vld [vmem:[%s8652_s29 + $0x1200] sm:$0xff]  ;;  %320 = vst [vmem:[%s8648_s28 + $0x470] sm:$0xff] %v319_v7 }
  0x5a   : >> { %v323_v9 = vld [vmem:[%s8652_s29 + $0x1240] sm:$0xff]  ;;  %322 = vst [vmem:[%s8648_s28 + $0x480] sm:$0xff] %v321_v8 }
  0x5b   : >> { %v325_v10 = vld [vmem:[%s8652_s29 + $0x1280] sm:$0xff]  ;;  %324 = vst [vmem:[%s8648_s28 + $0x490] sm:$0xff] %v323_v9 }
  0x5c   : >> { %v327_v11 = vld [vmem:[%s8652_s29 + $0x12c0] sm:$0xff]  ;;  %326 = vst [vmem:[%s8648_s28 + $0x4a0] sm:$0xff] %v325_v10 }
  0x5d   : >> { %v329_v12 = vld [vmem:[%s8652_s29 + $0x1300] sm:$0xff]  ;;  %328 = vst [vmem:[%s8648_s28 + $0x4b0] sm:$0xff] %v327_v11 }
  0x5e   : >> { %v331_v13 = vld [vmem:[%s8652_s29 + $0x1340] sm:$0xff]  ;;  %330 = vst [vmem:[%s8648_s28 + $0x4c0] sm:$0xff] %v329_v12 }
  0x5f   : >> { %v333_v14 = vld [vmem:[%s8652_s29 + $0x1380] sm:$0xff]  ;;  %332 = vst [vmem:[%s8648_s28 + $0x4d0] sm:$0xff] %v331_v13 }
  0x60   : >> { %v335_v15 = vld [vmem:[%s8652_s29 + $0x13c0] sm:$0xff]  ;;  %334 = vst [vmem:[%s8648_s28 + $0x4e0] sm:$0xff] %v333_v14 }
  0x61   : >> { %v337_v16 = vld [vmem:[%s8652_s29 + $0x1400] sm:$0xff]  ;;  %336 = vst [vmem:[%s8648_s28 + $0x4f0] sm:$0xff] %v335_v15 }
  0x62   : >> { %v339_v17 = vld [vmem:[%s8652_s29 + $0x1440] sm:$0xff]  ;;  %338 = vst [vmem:[%s8648_s28 + $0x500] sm:$0xff] %v337_v16 }
  0x63   : >> { %v341_v18 = vld [vmem:[%s8652_s29 + $0x1480] sm:$0xff]  ;;  %340 = vst [vmem:[%s8648_s28 + $0x510] sm:$0xff] %v339_v17 }
  0x64   : >> { %v343_v19 = vld [vmem:[%s8652_s29 + $0x14c0] sm:$0xff]  ;;  %342 = vst [vmem:[%s8648_s28 + $0x520] sm:$0xff] %v341_v18 }
  0x65   : >> { %v345_v20 = vld [vmem:[%s8652_s29 + $0x1500] sm:$0xff]  ;;  %344 = vst [vmem:[%s8648_s28 + $0x530] sm:$0xff] %v343_v19 }
  0x66   : >> { %v347_v21 = vld [vmem:[%s8652_s29 + $0x1540] sm:$0xff]  ;;  %346 = vst [vmem:[%s8648_s28 + $0x540] sm:$0xff] %v345_v20 }
  0x67   : >> { %v349_v22 = vld [vmem:[%s8652_s29 + $0x1580] sm:$0xff]  ;;  %348 = vst [vmem:[%s8648_s28 + $0x550] sm:$0xff] %v347_v21 }
  0x68   : >> { %v351_v23 = vld [vmem:[%s8652_s29 + $0x15c0] sm:$0xff]  ;;  %350 = vst [vmem:[%s8648_s28 + $0x560] sm:$0xff] %v349_v22 }
  0x69   : >> { %v353_v24 = vld [vmem:[%s8652_s29 + $0x1600] sm:$0xff]  ;;  %352 = vst [vmem:[%s8648_s28 + $0x570] sm:$0xff] %v351_v23 }
  0x6a   : >> { %v355_v25 = vld [vmem:[%s8652_s29 + $0x1640] sm:$0xff]  ;;  %354 = vst [vmem:[%s8648_s28 + $0x580] sm:$0xff] %v353_v24 }
  0x6b   : >> { %v357_v26 = vld [vmem:[%s8652_s29 + $0x1680] sm:$0xff]  ;;  %356 = vst [vmem:[%s8648_s28 + $0x590] sm:$0xff] %v355_v25 }
  0x6c   : >> { %v359_v27 = vld [vmem:[%s8652_s29 + $0x16c0] sm:$0xff]  ;;  %358 = vst [vmem:[%s8648_s28 + $0x5a0] sm:$0xff] %v357_v26 }
  0x6d   : >> { %v361_v28 = vld [vmem:[%s8652_s29 + $0x1700] sm:$0xff]  ;;  %360 = vst [vmem:[%s8648_s28 + $0x5b0] sm:$0xff] %v359_v27 }
  0x6e   : >> { %v363_v29 = vld [vmem:[%s8652_s29 + $0x1740] sm:$0xff]  ;;  %362 = vst [vmem:[%s8648_s28 + $0x5c0] sm:$0xff] %v361_v28 }
  0x6f   : >> { %v365_v30 = vld [vmem:[%s8652_s29 + $0x1780] sm:$0xff]  ;;  %364 = vst [vmem:[%s8648_s28 + $0x5d0] sm:$0xff] %v363_v29 }
  0x70   : >> { %v367_v31 = vld [vmem:[%s8652_s29 + $0x17c0] sm:$0xff]  ;;  %366 = vst [vmem:[%s8648_s28 + $0x5e0] sm:$0xff] %v365_v30 }
  0x71   : >> { %v369_v32 = vld [vmem:[%s8652_s29 + $0x1800] sm:$0xff]  ;;  %368 = vst [vmem:[%s8648_s28 + $0x5f0] sm:$0xff] %v367_v31 }
  0x72   : >> { %v371_v33 = vld [vmem:[%s8652_s29 + $0x1840] sm:$0xff]  ;;  %370 = vst [vmem:[%s8648_s28 + $0x600] sm:$0xff] %v369_v32 }
  0x73   : >> { %v373_v34 = vld [vmem:[%s8652_s29 + $0x1880] sm:$0xff]  ;;  %372 = vst [vmem:[%s8648_s28 + $0x610] sm:$0xff] %v371_v33 }
  0x74   : >> { %v375_v35 = vld [vmem:[%s8652_s29 + $0x18c0] sm:$0xff]  ;;  %374 = vst [vmem:[%s8648_s28 + $0x620] sm:$0xff] %v373_v34 }
  0x75   : >> { %v377_v36 = vld [vmem:[%s8652_s29 + $0x1900] sm:$0xff]  ;;  %376 = vst [vmem:[%s8648_s28 + $0x630] sm:$0xff] %v375_v35 }
  0x76   : >> { %v379_v37 = vld [vmem:[%s8652_s29 + $0x1940] sm:$0xff]  ;;  %378 = vst [vmem:[%s8648_s28 + $0x640] sm:$0xff] %v377_v36 }
  0x77   : >> { %v381_v38 = vld [vmem:[%s8652_s29 + $0x1980] sm:$0xff]  ;;  %380 = vst [vmem:[%s8648_s28 + $0x650] sm:$0xff] %v379_v37 }
  0x78   : >> { %v383_v39 = vld [vmem:[%s8652_s29 + $0x19c0] sm:$0xff]  ;;  %382 = vst [vmem:[%s8648_s28 + $0x660] sm:$0xff] %v381_v38 }
  0x79   : >> { %v385_v40 = vld [vmem:[%s8652_s29 + $0x1a00] sm:$0xff]  ;;  %384 = vst [vmem:[%s8648_s28 + $0x670] sm:$0xff] %v383_v39 }
  0x7a   : >> { %v387_v41 = vld [vmem:[%s8652_s29 + $0x1a40] sm:$0xff]  ;;  %386 = vst [vmem:[%s8648_s28 + $0x680] sm:$0xff] %v385_v40 }
  0x7b   : >> { %v389_v42 = vld [vmem:[%s8652_s29 + $0x1a80] sm:$0xff]  ;;  %388 = vst [vmem:[%s8648_s28 + $0x690] sm:$0xff] %v387_v41 }
  0x7c   : >> { %v391_v43 = vld [vmem:[%s8652_s29 + $0x1ac0] sm:$0xff]  ;;  %390 = vst [vmem:[%s8648_s28 + $0x6a0] sm:$0xff] %v389_v42 }
  0x7d   : >> { %v393_v44 = vld [vmem:[%s8652_s29 + $0x1b00] sm:$0xff]  ;;  %392 = vst [vmem:[%s8648_s28 + $0x6b0] sm:$0xff] %v391_v43 }
  0x7e   : >> { %v395_v45 = vld [vmem:[%s8652_s29 + $0x1b40] sm:$0xff]  ;;  %394 = vst [vmem:[%s8648_s28 + $0x6c0] sm:$0xff] %v393_v44 }
  0x7f   : >> { %v397_v46 = vld [vmem:[%s8652_s29 + $0x1b80] sm:$0xff]  ;;  %396 = vst [vmem:[%s8648_s28 + $0x6d0] sm:$0xff] %v395_v45 }
  0x80   : >> { %v399_v47 = vld [vmem:[%s8652_s29 + $0x1bc0] sm:$0xff]  ;;  %398 = vst [vmem:[%s8648_s28 + $0x6e0] sm:$0xff] %v397_v46 }
  0x81   : >> { %v401_v48 = vld [vmem:[%s8652_s29 + $0x1c00] sm:$0xff]  ;;  %400 = vst [vmem:[%s8648_s28 + $0x6f0] sm:$0xff] %v399_v47 }
  0x82   : >> { %v403_v49 = vld [vmem:[%s8652_s29 + $0x1c40] sm:$0xff]  ;;  %402 = vst [vmem:[%s8648_s28 + $0x700] sm:$0xff] %v401_v48 }
  0x83   : >> { %v405_v50 = vld [vmem:[%s8652_s29 + $0x1c80] sm:$0xff]  ;;  %404 = vst [vmem:[%s8648_s28 + $0x710] sm:$0xff] %v403_v49 }
  0x84   : >> { %v407_v51 = vld [vmem:[%s8652_s29 + $0x1cc0] sm:$0xff]  ;;  %406 = vst [vmem:[%s8648_s28 + $0x720] sm:$0xff] %v405_v50 }
  0x85   : >> { %v409_v52 = vld [vmem:[%s8652_s29 + $0x1d00] sm:$0xff]  ;;  %408 = vst [vmem:[%s8648_s28 + $0x730] sm:$0xff] %v407_v51 }
  0x86   : >> { %v411_v53 = vld [vmem:[%s8652_s29 + $0x1d40] sm:$0xff]  ;;  %410 = vst [vmem:[%s8648_s28 + $0x740] sm:$0xff] %v409_v52 }
  0x87   : >> { %v413_v54 = vld [vmem:[%s8652_s29 + $0x1d80] sm:$0xff]  ;;  %412 = vst [vmem:[%s8648_s28 + $0x750] sm:$0xff] %v411_v53 }
  0x88   : >> { %v415_v55 = vld [vmem:[%s8652_s29 + $0x1dc0] sm:$0xff]  ;;  %414 = vst [vmem:[%s8648_s28 + $0x760] sm:$0xff] %v413_v54 }
  0x89   : >> { %v417_v56 = vld [vmem:[%s8652_s29 + $0x1e00] sm:$0xff]  ;;  %416 = vst [vmem:[%s8648_s28 + $0x770] sm:$0xff] %v415_v55 }
  0x8a   : >> { %v419_v57 = vld [vmem:[%s8652_s29 + $0x1e40] sm:$0xff]  ;;  %418 = vst [vmem:[%s8648_s28 + $0x780] sm:$0xff] %v417_v56 }
  0x8b   : >> { %v421_v58 = vld [vmem:[%s8652_s29 + $0x1e80] sm:$0xff]  ;;  %420 = vst [vmem:[%s8648_s28 + $0x790] sm:$0xff] %v419_v57 }
  0x8c   : >> { %v423_v59 = vld [vmem:[%s8652_s29 + $0x1ec0] sm:$0xff]  ;;  %422 = vst [vmem:[%s8648_s28 + $0x7a0] sm:$0xff] %v421_v58 }
  0x8d   : >> { %v425_v60 = vld [vmem:[%s8652_s29 + $0x1f00] sm:$0xff]  ;;  %424 = vst [vmem:[%s8648_s28 + $0x7b0] sm:$0xff] %v423_v59 }
  0x8e   : >> { %v427_v61 = vld [vmem:[%s8652_s29 + $0x1f40] sm:$0xff]  ;;  %426 = vst [vmem:[%s8648_s28 + $0x7c0] sm:$0xff] %v425_v60 }
  0x8f   : >> { %v429_v62 = vld [vmem:[%s8652_s29 + $0x1f80] sm:$0xff]  ;;  %428 = vst [vmem:[%s8648_s28 + $0x7d0] sm:$0xff] %v427_v61 }
  0x90   : >> { %v431_v63 = vld [vmem:[%s8652_s29 + $0x1fc0] sm:$0xff]  ;;  %430 = vst [vmem:[%s8648_s28 + $0x7e0] sm:$0xff] %v429_v62 }
  0x91   : >> { %v433_v0 = vld [vmem:[%s8652_s29 + $0x2000] sm:$0xff]  ;;  %432 = vst [vmem:[%s8648_s28 + $0x7f0] sm:$0xff] %v431_v63 }
  0x92   : >> { %v435_v1 = vld [vmem:[%s8652_s29 + $0x2040] sm:$0xff]  ;;  %434 = vst [vmem:[%s8648_s28 + $0x800] sm:$0xff] %v433_v0 }
  0x93   : >> { %v437_v2 = vld [vmem:[%s8652_s29 + $0x2080] sm:$0xff]  ;;  %436 = vst [vmem:[%s8648_s28 + $0x810] sm:$0xff] %v435_v1 }
  0x94   : >> { %v439_v3 = vld [vmem:[%s8652_s29 + $0x20c0] sm:$0xff]  ;;  %438 = vst [vmem:[%s8648_s28 + $0x820] sm:$0xff] %v437_v2 }
  0x95   : >> { %v441_v4 = vld [vmem:[%s8652_s29 + $0x2100] sm:$0xff]  ;;  %440 = vst [vmem:[%s8648_s28 + $0x830] sm:$0xff] %v439_v3 }
  0x96   : >> { %v443_v5 = vld [vmem:[%s8652_s29 + $0x2140] sm:$0xff]  ;;  %442 = vst [vmem:[%s8648_s28 + $0x840] sm:$0xff] %v441_v4 }
  0x97   : >> { %v445_v6 = vld [vmem:[%s8652_s29 + $0x2180] sm:$0xff]  ;;  %444 = vst [vmem:[%s8648_s28 + $0x850] sm:$0xff] %v443_v5 }
  0x98   : >> { %v447_v7 = vld [vmem:[%s8652_s29 + $0x21c0] sm:$0xff]  ;;  %446 = vst [vmem:[%s8648_s28 + $0x860] sm:$0xff] %v445_v6 }
  0x99   : >> { %v449_v8 = vld [vmem:[%s8652_s29 + $0x2200] sm:$0xff]  ;;  %448 = vst [vmem:[%s8648_s28 + $0x870] sm:$0xff] %v447_v7 }
  0x9a   : >> { %v451_v9 = vld [vmem:[%s8652_s29 + $0x2240] sm:$0xff]  ;;  %450 = vst [vmem:[%s8648_s28 + $0x880] sm:$0xff] %v449_v8 }
  0x9b   : >> { %v453_v10 = vld [vmem:[%s8652_s29 + $0x2280] sm:$0xff]  ;;  %452 = vst [vmem:[%s8648_s28 + $0x890] sm:$0xff] %v451_v9 }
  0x9c   : >> { %v455_v11 = vld [vmem:[%s8652_s29 + $0x22c0] sm:$0xff]  ;;  %454 = vst [vmem:[%s8648_s28 + $0x8a0] sm:$0xff] %v453_v10 }
  0x9d   : >> { %v457_v12 = vld [vmem:[%s8652_s29 + $0x2300] sm:$0xff]  ;;  %456 = vst [vmem:[%s8648_s28 + $0x8b0] sm:$0xff] %v455_v11 }
  0x9e   : >> { %v459_v13 = vld [vmem:[%s8652_s29 + $0x2340] sm:$0xff]  ;;  %458 = vst [vmem:[%s8648_s28 + $0x8c0] sm:$0xff] %v457_v12 }
  0x9f   : >> { %v461_v14 = vld [vmem:[%s8652_s29 + $0x2380] sm:$0xff]  ;;  %460 = vst [vmem:[%s8648_s28 + $0x8d0] sm:$0xff] %v459_v13 }
  0xa0   : >> { %v463_v15 = vld [vmem:[%s8652_s29 + $0x23c0] sm:$0xff]  ;;  %462 = vst [vmem:[%s8648_s28 + $0x8e0] sm:$0xff] %v461_v14 }
  0xa1   : >> { %v465_v16 = vld [vmem:[%s8652_s29 + $0x2400] sm:$0xff]  ;;  %464 = vst [vmem:[%s8648_s28 + $0x8f0] sm:$0xff] %v463_v15 }
  0xa2   : >> { %v467_v17 = vld [vmem:[%s8652_s29 + $0x2440] sm:$0xff]  ;;  %466 = vst [vmem:[%s8648_s28 + $0x900] sm:$0xff] %v465_v16 }
  0xa3   : >> { %v469_v18 = vld [vmem:[%s8652_s29 + $0x2480] sm:$0xff]  ;;  %468 = vst [vmem:[%s8648_s28 + $0x910] sm:$0xff] %v467_v17 }
  0xa4   : >> { %v471_v19 = vld [vmem:[%s8652_s29 + $0x24c0] sm:$0xff]  ;;  %470 = vst [vmem:[%s8648_s28 + $0x920] sm:$0xff] %v469_v18 }
  0xa5   : >> { %v473_v20 = vld [vmem:[%s8652_s29 + $0x2500] sm:$0xff]  ;;  %472 = vst [vmem:[%s8648_s28 + $0x930] sm:$0xff] %v471_v19 }
  0xa6   : >> { %v475_v21 = vld [vmem:[%s8652_s29 + $0x2540] sm:$0xff]  ;;  %474 = vst [vmem:[%s8648_s28 + $0x940] sm:$0xff] %v473_v20 }
  0xa7   : >> { %v477_v22 = vld [vmem:[%s8652_s29 + $0x2580] sm:$0xff]  ;;  %476 = vst [vmem:[%s8648_s28 + $0x950] sm:$0xff] %v475_v21 }
  0xa8   : >> { %v479_v23 = vld [vmem:[%s8652_s29 + $0x25c0] sm:$0xff]  ;;  %478 = vst [vmem:[%s8648_s28 + $0x960] sm:$0xff] %v477_v22 }
  0xa9   : >> { %v481_v24 = vld [vmem:[%s8652_s29 + $0x2600] sm:$0xff]  ;;  %480 = vst [vmem:[%s8648_s28 + $0x970] sm:$0xff] %v479_v23 }
  0xaa   : >> { %v483_v25 = vld [vmem:[%s8652_s29 + $0x2640] sm:$0xff]  ;;  %482 = vst [vmem:[%s8648_s28 + $0x980] sm:$0xff] %v481_v24 }
  0xab   : >> { %v485_v26 = vld [vmem:[%s8652_s29 + $0x2680] sm:$0xff]  ;;  %484 = vst [vmem:[%s8648_s28 + $0x990] sm:$0xff] %v483_v25 }
  0xac   : >> { %v487_v27 = vld [vmem:[%s8652_s29 + $0x26c0] sm:$0xff]  ;;  %486 = vst [vmem:[%s8648_s28 + $0x9a0] sm:$0xff] %v485_v26 }
  0xad   : >> { %v489_v28 = vld [vmem:[%s8652_s29 + $0x2700] sm:$0xff]  ;;  %488 = vst [vmem:[%s8648_s28 + $0x9b0] sm:$0xff] %v487_v27 }
  0xae   : >> { %v491_v29 = vld [vmem:[%s8652_s29 + $0x2740] sm:$0xff]  ;;  %490 = vst [vmem:[%s8648_s28 + $0x9c0] sm:$0xff] %v489_v28 }
  0xaf   : >> { %v493_v30 = vld [vmem:[%s8652_s29 + $0x2780] sm:$0xff]  ;;  %492 = vst [vmem:[%s8648_s28 + $0x9d0] sm:$0xff] %v491_v29 }
  0xb0   : >> { %v495_v31 = vld [vmem:[%s8652_s29 + $0x27c0] sm:$0xff]  ;;  %494 = vst [vmem:[%s8648_s28 + $0x9e0] sm:$0xff] %v493_v30 }
  0xb1   : >> { %v497_v32 = vld [vmem:[%s8652_s29 + $0x2800] sm:$0xff]  ;;  %496 = vst [vmem:[%s8648_s28 + $0x9f0] sm:$0xff] %v495_v31 }
  0xb2   : >> { %v499_v33 = vld [vmem:[%s8652_s29 + $0x2840] sm:$0xff]  ;;  %498 = vst [vmem:[%s8648_s28 + $0xa00] sm:$0xff] %v497_v32 }
  0xb3   : >> { %v501_v34 = vld [vmem:[%s8652_s29 + $0x2880] sm:$0xff]  ;;  %500 = vst [vmem:[%s8648_s28 + $0xa10] sm:$0xff] %v499_v33 }
  0xb4   : >> { %v503_v35 = vld [vmem:[%s8652_s29 + $0x28c0] sm:$0xff]  ;;  %502 = vst [vmem:[%s8648_s28 + $0xa20] sm:$0xff] %v501_v34 }
  0xb5   : >> { %v505_v36 = vld [vmem:[%s8652_s29 + $0x2900] sm:$0xff]  ;;  %504 = vst [vmem:[%s8648_s28 + $0xa30] sm:$0xff] %v503_v35 }
  0xb6   : >> { %v507_v37 = vld [vmem:[%s8652_s29 + $0x2940] sm:$0xff]  ;;  %506 = vst [vmem:[%s8648_s28 + $0xa40] sm:$0xff] %v505_v36 }
  0xb7   : >> { %v509_v38 = vld [vmem:[%s8652_s29 + $0x2980] sm:$0xff]  ;;  %508 = vst [vmem:[%s8648_s28 + $0xa50] sm:$0xff] %v507_v37 }
  0xb8   : >> { %v511_v39 = vld [vmem:[%s8652_s29 + $0x29c0] sm:$0xff]  ;;  %510 = vst [vmem:[%s8648_s28 + $0xa60] sm:$0xff] %v509_v38 }
  0xb9   : >> { %v513_v40 = vld [vmem:[%s8652_s29 + $0x2a00] sm:$0xff]  ;;  %512 = vst [vmem:[%s8648_s28 + $0xa70] sm:$0xff] %v511_v39 }
  0xba   : >> { %v515_v41 = vld [vmem:[%s8652_s29 + $0x2a40] sm:$0xff]  ;;  %514 = vst [vmem:[%s8648_s28 + $0xa80] sm:$0xff] %v513_v40 }
  0xbb   : >> { %v517_v42 = vld [vmem:[%s8652_s29 + $0x2a80] sm:$0xff]  ;;  %516 = vst [vmem:[%s8648_s28 + $0xa90] sm:$0xff] %v515_v41 }
  0xbc   : >> { %v519_v43 = vld [vmem:[%s8652_s29 + $0x2ac0] sm:$0xff]  ;;  %518 = vst [vmem:[%s8648_s28 + $0xaa0] sm:$0xff] %v517_v42 }
  0xbd   : >> { %v521_v44 = vld [vmem:[%s8652_s29 + $0x2b00] sm:$0xff]  ;;  %520 = vst [vmem:[%s8648_s28 + $0xab0] sm:$0xff] %v519_v43 }
  0xbe   : >> { %v523_v45 = vld [vmem:[%s8652_s29 + $0x2b40] sm:$0xff]  ;;  %522 = vst [vmem:[%s8648_s28 + $0xac0] sm:$0xff] %v521_v44 }
  0xbf   : >> { %v525_v46 = vld [vmem:[%s8652_s29 + $0x2b80] sm:$0xff]  ;;  %524 = vst [vmem:[%s8648_s28 + $0xad0] sm:$0xff] %v523_v45 }
  0xc0   : >> { %v527_v47 = vld [vmem:[%s8652_s29 + $0x2bc0] sm:$0xff]  ;;  %526 = vst [vmem:[%s8648_s28 + $0xae0] sm:$0xff] %v525_v46 }
  0xc1   : >> { %v529_v48 = vld [vmem:[%s8652_s29 + $0x2c00] sm:$0xff]  ;;  %528 = vst [vmem:[%s8648_s28 + $0xaf0] sm:$0xff] %v527_v47 }
  0xc2   : >> { %v531_v49 = vld [vmem:[%s8652_s29 + $0x2c40] sm:$0xff]  ;;  %530 = vst [vmem:[%s8648_s28 + $0xb00] sm:$0xff] %v529_v48 }
  0xc3   : >> { %v533_v50 = vld [vmem:[%s8652_s29 + $0x2c80] sm:$0xff]  ;;  %532 = vst [vmem:[%s8648_s28 + $0xb10] sm:$0xff] %v531_v49 }
  0xc4   : >> { %v535_v51 = vld [vmem:[%s8652_s29 + $0x2cc0] sm:$0xff]  ;;  %534 = vst [vmem:[%s8648_s28 + $0xb20] sm:$0xff] %v533_v50 }
  0xc5   : >> { %v537_v52 = vld [vmem:[%s8652_s29 + $0x2d00] sm:$0xff]  ;;  %536 = vst [vmem:[%s8648_s28 + $0xb30] sm:$0xff] %v535_v51 }
  0xc6   : >> { %v539_v53 = vld [vmem:[%s8652_s29 + $0x2d40] sm:$0xff]  ;;  %538 = vst [vmem:[%s8648_s28 + $0xb40] sm:$0xff] %v537_v52 }
  0xc7   : >> { %v541_v54 = vld [vmem:[%s8652_s29 + $0x2d80] sm:$0xff]  ;;  %540 = vst [vmem:[%s8648_s28 + $0xb50] sm:$0xff] %v539_v53 }
  0xc8   : >> { %v543_v55 = vld [vmem:[%s8652_s29 + $0x2dc0] sm:$0xff]  ;;  %542 = vst [vmem:[%s8648_s28 + $0xb60] sm:$0xff] %v541_v54 }
  0xc9   : >> { %v545_v56 = vld [vmem:[%s8652_s29 + $0x2e00] sm:$0xff]  ;;  %544 = vst [vmem:[%s8648_s28 + $0xb70] sm:$0xff] %v543_v55 }
  0xca   : >> { %v547_v57 = vld [vmem:[%s8652_s29 + $0x2e40] sm:$0xff]  ;;  %546 = vst [vmem:[%s8648_s28 + $0xb80] sm:$0xff] %v545_v56 }
  0xcb   : >> { %v549_v58 = vld [vmem:[%s8652_s29 + $0x2e80] sm:$0xff]  ;;  %548 = vst [vmem:[%s8648_s28 + $0xb90] sm:$0xff] %v547_v57 }
  0xcc   : >> { %v551_v59 = vld [vmem:[%s8652_s29 + $0x2ec0] sm:$0xff]  ;;  %550 = vst [vmem:[%s8648_s28 + $0xba0] sm:$0xff] %v549_v58 }
  0xcd   : >> { %v553_v60 = vld [vmem:[%s8652_s29 + $0x2f00] sm:$0xff]  ;;  %552 = vst [vmem:[%s8648_s28 + $0xbb0] sm:$0xff] %v551_v59 }
  0xce   : >> { %v555_v61 = vld [vmem:[%s8652_s29 + $0x2f40] sm:$0xff]  ;;  %554 = vst [vmem:[%s8648_s28 + $0xbc0] sm:$0xff] %v553_v60 }
  0xcf   : >> { %v557_v62 = vld [vmem:[%s8652_s29 + $0x2f80] sm:$0xff]  ;;  %556 = vst [vmem:[%s8648_s28 + $0xbd0] sm:$0xff] %v555_v61 }
  0xd0   : >> { %v559_v63 = vld [vmem:[%s8652_s29 + $0x2fc0] sm:$0xff]  ;;  %558 = vst [vmem:[%s8648_s28 + $0xbe0] sm:$0xff] %v557_v62 }
  0xd1   : >> { %v561_v0 = vld [vmem:[%s8652_s29 + $0x3000] sm:$0xff]  ;;  %560 = vst [vmem:[%s8648_s28 + $0xbf0] sm:$0xff] %v559_v63 }
  0xd2   : >> { %v563_v1 = vld [vmem:[%s8652_s29 + $0x3040] sm:$0xff]  ;;  %562 = vst [vmem:[%s8648_s28 + $0xc00] sm:$0xff] %v561_v0 }
  0xd3   : >> { %v565_v2 = vld [vmem:[%s8652_s29 + $0x3080] sm:$0xff]  ;;  %564 = vst [vmem:[%s8648_s28 + $0xc10] sm:$0xff] %v563_v1 }
  0xd4   : >> { %v567_v3 = vld [vmem:[%s8652_s29 + $0x30c0] sm:$0xff]  ;;  %566 = vst [vmem:[%s8648_s28 + $0xc20] sm:$0xff] %v565_v2 }
  0xd5   : >> { %v569_v4 = vld [vmem:[%s8652_s29 + $0x3100] sm:$0xff]  ;;  %568 = vst [vmem:[%s8648_s28 + $0xc30] sm:$0xff] %v567_v3 }
  0xd6   : >> { %v571_v5 = vld [vmem:[%s8652_s29 + $0x3140] sm:$0xff]  ;;  %570 = vst [vmem:[%s8648_s28 + $0xc40] sm:$0xff] %v569_v4 }
  0xd7   : >> { %v573_v6 = vld [vmem:[%s8652_s29 + $0x3180] sm:$0xff]  ;;  %572 = vst [vmem:[%s8648_s28 + $0xc50] sm:$0xff] %v571_v5 }
  0xd8   : >> { %v575_v7 = vld [vmem:[%s8652_s29 + $0x31c0] sm:$0xff]  ;;  %574 = vst [vmem:[%s8648_s28 + $0xc60] sm:$0xff] %v573_v6 }
  0xd9   : >> { %v577_v8 = vld [vmem:[%s8652_s29 + $0x3200] sm:$0xff]  ;;  %576 = vst [vmem:[%s8648_s28 + $0xc70] sm:$0xff] %v575_v7 }
  0xda   : >> { %v579_v9 = vld [vmem:[%s8652_s29 + $0x3240] sm:$0xff]  ;;  %578 = vst [vmem:[%s8648_s28 + $0xc80] sm:$0xff] %v577_v8 }
  0xdb   : >> { %v581_v10 = vld [vmem:[%s8652_s29 + $0x3280] sm:$0xff]  ;;  %580 = vst [vmem:[%s8648_s28 + $0xc90] sm:$0xff] %v579_v9 }
  0xdc   : >> { %v583_v11 = vld [vmem:[%s8652_s29 + $0x32c0] sm:$0xff]  ;;  %582 = vst [vmem:[%s8648_s28 + $0xca0] sm:$0xff] %v581_v10 }
  0xdd   : >> { %v585_v12 = vld [vmem:[%s8652_s29 + $0x3300] sm:$0xff]  ;;  %584 = vst [vmem:[%s8648_s28 + $0xcb0] sm:$0xff] %v583_v11 }
  0xde   : >> { %v587_v13 = vld [vmem:[%s8652_s29 + $0x3340] sm:$0xff]  ;;  %586 = vst [vmem:[%s8648_s28 + $0xcc0] sm:$0xff] %v585_v12 }
  0xdf   : >> { %v589_v14 = vld [vmem:[%s8652_s29 + $0x3380] sm:$0xff]  ;;  %588 = vst [vmem:[%s8648_s28 + $0xcd0] sm:$0xff] %v587_v13 }
  0xe0   : >> { %v591_v15 = vld [vmem:[%s8652_s29 + $0x33c0] sm:$0xff]  ;;  %590 = vst [vmem:[%s8648_s28 + $0xce0] sm:$0xff] %v589_v14 }
  0xe1   : >> { %v593_v16 = vld [vmem:[%s8652_s29 + $0x3400] sm:$0xff]  ;;  %592 = vst [vmem:[%s8648_s28 + $0xcf0] sm:$0xff] %v591_v15 }
  0xe2   : >> { %v595_v17 = vld [vmem:[%s8652_s29 + $0x3440] sm:$0xff]  ;;  %594 = vst [vmem:[%s8648_s28 + $0xd00] sm:$0xff] %v593_v16 }
  0xe3   : >> { %v597_v18 = vld [vmem:[%s8652_s29 + $0x3480] sm:$0xff]  ;;  %596 = vst [vmem:[%s8648_s28 + $0xd10] sm:$0xff] %v595_v17 }
  0xe4   : >> { %v599_v19 = vld [vmem:[%s8652_s29 + $0x34c0] sm:$0xff]  ;;  %598 = vst [vmem:[%s8648_s28 + $0xd20] sm:$0xff] %v597_v18 }
  0xe5   : >> { %v601_v20 = vld [vmem:[%s8652_s29 + $0x3500] sm:$0xff]  ;;  %600 = vst [vmem:[%s8648_s28 + $0xd30] sm:$0xff] %v599_v19 }
  0xe6   : >> { %v603_v21 = vld [vmem:[%s8652_s29 + $0x3540] sm:$0xff]  ;;  %602 = vst [vmem:[%s8648_s28 + $0xd40] sm:$0xff] %v601_v20 }
  0xe7   : >> { %v605_v22 = vld [vmem:[%s8652_s29 + $0x3580] sm:$0xff]  ;;  %604 = vst [vmem:[%s8648_s28 + $0xd50] sm:$0xff] %v603_v21 }
  0xe8   : >> { %v607_v23 = vld [vmem:[%s8652_s29 + $0x35c0] sm:$0xff]  ;;  %606 = vst [vmem:[%s8648_s28 + $0xd60] sm:$0xff] %v605_v22 }
  0xe9   : >> { %v609_v24 = vld [vmem:[%s8652_s29 + $0x3600] sm:$0xff]  ;;  %608 = vst [vmem:[%s8648_s28 + $0xd70] sm:$0xff] %v607_v23 }
  0xea   : >> { %v611_v25 = vld [vmem:[%s8652_s29 + $0x3640] sm:$0xff]  ;;  %610 = vst [vmem:[%s8648_s28 + $0xd80] sm:$0xff] %v609_v24 }
  0xeb   : >> { %v613_v26 = vld [vmem:[%s8652_s29 + $0x3680] sm:$0xff]  ;;  %612 = vst [vmem:[%s8648_s28 + $0xd90] sm:$0xff] %v611_v25 }
  0xec   : >> { %v615_v27 = vld [vmem:[%s8652_s29 + $0x36c0] sm:$0xff]  ;;  %614 = vst [vmem:[%s8648_s28 + $0xda0] sm:$0xff] %v613_v26 }
  0xed   : >> { %v617_v28 = vld [vmem:[%s8652_s29 + $0x3700] sm:$0xff]  ;;  %616 = vst [vmem:[%s8648_s28 + $0xdb0] sm:$0xff] %v615_v27 }
  0xee   : >> { %v619_v29 = vld [vmem:[%s8652_s29 + $0x3740] sm:$0xff]  ;;  %618 = vst [vmem:[%s8648_s28 + $0xdc0] sm:$0xff] %v617_v28 }
  0xef   : >> { %v621_v30 = vld [vmem:[%s8652_s29 + $0x3780] sm:$0xff]  ;;  %620 = vst [vmem:[%s8648_s28 + $0xdd0] sm:$0xff] %v619_v29 }
  0xf0   : >> { %v623_v31 = vld [vmem:[%s8652_s29 + $0x37c0] sm:$0xff]  ;;  %622 = vst [vmem:[%s8648_s28 + $0xde0] sm:$0xff] %v621_v30 }
  0xf1   : >> { %v625_v32 = vld [vmem:[%s8652_s29 + $0x3800] sm:$0xff]  ;;  %624 = vst [vmem:[%s8648_s28 + $0xdf0] sm:$0xff] %v623_v31 }
  0xf2   : >> { %v627_v33 = vld [vmem:[%s8652_s29 + $0x3840] sm:$0xff]  ;;  %626 = vst [vmem:[%s8648_s28 + $0xe00] sm:$0xff] %v625_v32 }
  0xf3   : >> { %v629_v34 = vld [vmem:[%s8652_s29 + $0x3880] sm:$0xff]  ;;  %628 = vst [vmem:[%s8648_s28 + $0xe10] sm:$0xff] %v627_v33 }
  0xf4   : >> { %v631_v35 = vld [vmem:[%s8652_s29 + $0x38c0] sm:$0xff]  ;;  %630 = vst [vmem:[%s8648_s28 + $0xe20] sm:$0xff] %v629_v34 }
  0xf5   : >> { %v633_v36 = vld [vmem:[%s8652_s29 + $0x3900] sm:$0xff]  ;;  %632 = vst [vmem:[%s8648_s28 + $0xe30] sm:$0xff] %v631_v35 }
  0xf6   : >> { %v635_v37 = vld [vmem:[%s8652_s29 + $0x3940] sm:$0xff]  ;;  %634 = vst [vmem:[%s8648_s28 + $0xe40] sm:$0xff] %v633_v36 }
  0xf7   : >> { %v637_v38 = vld [vmem:[%s8652_s29 + $0x3980] sm:$0xff]  ;;  %636 = vst [vmem:[%s8648_s28 + $0xe50] sm:$0xff] %v635_v37 }
  0xf8   : >> { %v639_v39 = vld [vmem:[%s8652_s29 + $0x39c0] sm:$0xff]  ;;  %638 = vst [vmem:[%s8648_s28 + $0xe60] sm:$0xff] %v637_v38 }
  0xf9   : >> { %v641_v40 = vld [vmem:[%s8652_s29 + $0x3a00] sm:$0xff]  ;;  %640 = vst [vmem:[%s8648_s28 + $0xe70] sm:$0xff] %v639_v39 }
  0xfa   : >> { %v643_v41 = vld [vmem:[%s8652_s29 + $0x3a40] sm:$0xff]  ;;  %642 = vst [vmem:[%s8648_s28 + $0xe80] sm:$0xff] %v641_v40 }
  0xfb   : >> { %v645_v42 = vld [vmem:[%s8652_s29 + $0x3a80] sm:$0xff]  ;;  %644 = vst [vmem:[%s8648_s28 + $0xe90] sm:$0xff] %v643_v41 }
  0xfc   : >> { %v647_v43 = vld [vmem:[%s8652_s29 + $0x3ac0] sm:$0xff]  ;;  %646 = vst [vmem:[%s8648_s28 + $0xea0] sm:$0xff] %v645_v42 }
  0xfd   : >> { %v649_v44 = vld [vmem:[%s8652_s29 + $0x3b00] sm:$0xff]  ;;  %648 = vst [vmem:[%s8648_s28 + $0xeb0] sm:$0xff] %v647_v43 }
  0xfe   : >> { %v651_v45 = vld [vmem:[%s8652_s29 + $0x3b40] sm:$0xff]  ;;  %650 = vst [vmem:[%s8648_s28 + $0xec0] sm:$0xff] %v649_v44 }
  0xff   : >> { %v653_v46 = vld [vmem:[%s8652_s29 + $0x3b80] sm:$0xff]  ;;  %652 = vst [vmem:[%s8648_s28 + $0xed0] sm:$0xff] %v651_v45 }
 0x100   : >> { %v655_v47 = vld [vmem:[%s8652_s29 + $0x3bc0] sm:$0xff]  ;;  %654 = vst [vmem:[%s8648_s28 + $0xee0] sm:$0xff] %v653_v46 }
 0x101   : >> { %v657_v48 = vld [vmem:[%s8652_s29 + $0x3c00] sm:$0xff]  ;;  %656 = vst [vmem:[%s8648_s28 + $0xef0] sm:$0xff] %v655_v47 }
 0x102   : >> { %v659_v49 = vld [vmem:[%s8652_s29 + $0x3c40] sm:$0xff]  ;;  %658 = vst [vmem:[%s8648_s28 + $0xf00] sm:$0xff] %v657_v48 }
 0x103   : >> { %v661_v50 = vld [vmem:[%s8652_s29 + $0x3c80] sm:$0xff]  ;;  %660 = vst [vmem:[%s8648_s28 + $0xf10] sm:$0xff] %v659_v49 }
 0x104   : >> { %v663_v51 = vld [vmem:[%s8652_s29 + $0x3cc0] sm:$0xff]  ;;  %662 = vst [vmem:[%s8648_s28 + $0xf20] sm:$0xff] %v661_v50 }
 0x105   : >> { %v665_v52 = vld [vmem:[%s8652_s29 + $0x3d00] sm:$0xff]  ;;  %664 = vst [vmem:[%s8648_s28 + $0xf30] sm:$0xff] %v663_v51 }
 0x106   : >> { %v667_v53 = vld [vmem:[%s8652_s29 + $0x3d40] sm:$0xff]  ;;  %666 = vst [vmem:[%s8648_s28 + $0xf40] sm:$0xff] %v665_v52 }
 0x107   : >> { %v669_v54 = vld [vmem:[%s8652_s29 + $0x3d80] sm:$0xff]  ;;  %668 = vst [vmem:[%s8648_s28 + $0xf50] sm:$0xff] %v667_v53 }
 0x108   : >> { %v671_v55 = vld [vmem:[%s8652_s29 + $0x3dc0] sm:$0xff]  ;;  %670 = vst [vmem:[%s8648_s28 + $0xf60] sm:$0xff] %v669_v54 }
 0x109   : >> { %v673_v56 = vld [vmem:[%s8652_s29 + $0x3e00] sm:$0xff]  ;;  %672 = vst [vmem:[%s8648_s28 + $0xf70] sm:$0xff] %v671_v55 }
 0x10a   : >> { %v675_v57 = vld [vmem:[%s8652_s29 + $0x3e40] sm:$0xff]  ;;  %674 = vst [vmem:[%s8648_s28 + $0xf80] sm:$0xff] %v673_v56 }
 0x10b   : >> { %v677_v58 = vld [vmem:[%s8652_s29 + $0x3e80] sm:$0xff]  ;;  %676 = vst [vmem:[%s8648_s28 + $0xf90] sm:$0xff] %v675_v57 }
 0x10c   : >> { %v679_v59 = vld [vmem:[%s8652_s29 + $0x3ec0] sm:$0xff]  ;;  %678 = vst [vmem:[%s8648_s28 + $0xfa0] sm:$0xff] %v677_v58 }
 0x10d   : >> { %v681_v60 = vld [vmem:[%s8652_s29 + $0x3f00] sm:$0xff]  ;;  %680 = vst [vmem:[%s8648_s28 + $0xfb0] sm:$0xff] %v679_v59  ;;  %172 = sbr.rel (!%p170_p7) target bundleno = 17 (0x11), region = 112 }
 0x10e   : >> { %v683_v61 = vld [vmem:[%s8652_s29 + $0x3f40] sm:$0xff]  ;;  %682 = vst [vmem:[%s8648_s28 + $0xfc0] sm:$0xff] %v681_v60 }
 0x10f   : >> { %v685_v62 = vld [vmem:[%s8652_s29 + $0x3f80] sm:$0xff]  ;;  %684 = vst [vmem:[%s8648_s28 + $0xfd0] sm:$0xff] %v683_v61 }
 0x110   : >> { %v687_v63 = vld [vmem:[%s8652_s29 + $0x3fc0] sm:$0xff]  ;;  %686 = vst [vmem:[%s8648_s28 + $0xfe0] sm:$0xff] %v685_v62  ;;  %s10585_s29 = smov %s9017_s7 }
 0x111   : >> { %688 = vst [vmem:[%s8648_s28 + $0xff0] sm:$0xff] %v687_v63  ;;  %s10584_s28 = smov %s9021_s8 }
 0x112 PF: > { %p5949_p8 = scmp.ge.s32.totalorder %s8644_s16, 1  ;;  %p1760_p9 = scmp.lt.s32.totalorder %s8644_s16, 5 }
 0x114   : > { %p1761_p10 = pnand %p5949_p8, %p1760_p9 }
 0x115   : > { %s1767_s9 = sand.u32 (!%p1761_p10), 1, %s8628_s12   ;;  %s5951_s7 = sshll.u32 (!%p1761_p10), %s8636_s14, 2 }
 0x116   : > { %1764 = sbr.rel (%p1761_p10) target bundleno = 942 (0x3ae), region = 65  ;;  %s5950_s10 = sshll.u32 (!%p1761_p10), %s1767_s9, 12 }
 0x117   : > { %s9291_s11 = scalar_lea.vmem (!%p1761_p10), [#allocation2], %s5950_s10  ;;  %p9791_p11 = scmp.lt.s32.totalorder (!%p1761_p10), %s5951_s7, 15 }
 0x11b   : > { %v6068_v0 = vld [vmem:[%s9291_s11 + $0xe0] sm:$0xf]  ;;  %v8035_v1 = vld [vmem:[%s9291_s11 + $0xec] sm:$0xf0]  ;;  %s10597_s7 = smov (!%p9791_p11, %s5951_s7), 15 }
 0x11c   : > { %v6196_v2 = vld [vmem:[%s9291_s11 + $0x1e0] sm:$0xf]  ;;  %v6069_v3 = vor.u32 %v8035_v1, %v6068_v0  ;;  %v8067_v4 = vld [vmem:[%s9291_s11 + $0x1ec] sm:$0xf0]  ;;  %s9826_s10 = scalar_lea.vmem %s10580_s2, %s10597_s7  ;;  %s5953_s12 = sshll.u32 %s10597_s7, 3 }
 0x11d   : > { %v6324_v5 = vld [vmem:[%s9291_s11 + $0x2e0] sm:$0xf]  ;;  %v8099_v6 = vld [vmem:[%s9291_s11 + $0x2ec] sm:$0xf0]  ;;  %v6197_v7 = vor.u32 %v8067_v4, %v6196_v2  ;;  %s10007_s21 = scalar_lea.vmem %s10581_s3, %s5953_s12 }
 0x11e   : > { %v6325_v8 = vor.u32 %v8099_v6, %v6324_v5  ;;  %v6452_v9 = vld [vmem:[%s9291_s11 + $0x3e0] sm:$0xf]  ;;  %v8131_v10 = vld [vmem:[%s9291_s11 + $0x3ec] sm:$0xf0]  ;;  %4970 = vmatpush.bf16.msra.mxu0 %v6069_v3 }
 0x11f   : > { %v6052_v11 = vld [vmem:[%s9291_s11 + $0xc0] sm:$0xf]  ;;  %v6453_v12 = vor.u32 %v8131_v10, %v6452_v9  ;;  %v8031_v13 = vld [vmem:[%s9291_s11 + $0xcc] sm:$0xf0]  ;;  %4983 = vmatpush.bf16.msra.mxu1 %v6197_v7 }
 0x120   : > { %v6180_v14 = vld [vmem:[%s9291_s11 + $0x1c0] sm:$0xf]  ;;  %v8063_v15 = vld [vmem:[%s9291_s11 + $0x1cc] sm:$0xf0]  ;;  %4996 = vmatpush.bf16.msra.mxu2 %v6325_v8  ;;  %v6053_v16 = vor.u32 %v8031_v13, %v6052_v11 }
 0x121   : > { %v6181_v17 = vor.u32 %v8063_v15, %v6180_v14  ;;  %v6308_v18 = vld [vmem:[%s9291_s11 + $0x2c0] sm:$0xf]  ;;  %v8095_v19 = vld [vmem:[%s9291_s11 + $0x2cc] sm:$0xf0]  ;;  %5009 = vmatpush.bf16.msra.mxu3 %v6453_v12 }
 0x122   : > { %v6436_v20 = vld [vmem:[%s9291_s11 + $0x3c0] sm:$0xf]  ;;  %v6309_v21 = vor.u32 %v8095_v19, %v6308_v18  ;;  %v8127_v22 = vld [vmem:[%s9291_s11 + $0x3cc] sm:$0xf0]  ;;  %4971 = vmatpush.bf16.msra.mxu0 %v6053_v16 }
 0x123   : > { %v6036_v23 = vld [vmem:[%s9291_s11 + $0xa0] sm:$0xf]  ;;  %v8027_v24 = vld [vmem:[%s9291_s11 + $0xac] sm:$0xf0]  ;;  %v6437_v25 = vor.u32 %v8127_v22, %v6436_v20  ;;  %4984 = vmatpush.bf16.msra.mxu1 %v6181_v17 }
 0x124   : > { %v6164_v26 = vld [vmem:[%s9291_s11 + $0x1a0] sm:$0xf]  ;;  %v8059_v27 = vld [vmem:[%s9291_s11 + $0x1ac] sm:$0xf0]  ;;  %v6037_v29 = vor.u32 %v8027_v24, %v6036_v23  ;;  %4997 = vmatpush.bf16.msra.mxu2 %v6309_v21 }
 0x125   : > { %v6292_v28 = vld [vmem:[%s9291_s11 + $0x2a0] sm:$0xf]  ;;  %v8091_v30 = vld [vmem:[%s9291_s11 + $0x2ac] sm:$0xf0]  ;;  %v6165_v33 = vor.u32 %v8059_v27, %v6164_v26  ;;  %5010 = vmatpush.bf16.msra.mxu3 %v6437_v25 }
 0x126   : > { %v6420_v31 = vld [vmem:[%s9291_s11 + $0x3a0] sm:$0xf]  ;;  %v8123_v32 = vld [vmem:[%s9291_s11 + $0x3ac] sm:$0xf0]  ;;  %v6293_v34 = vor.u32 %v8091_v30, %v6292_v28  ;;  %4972 = vmatpush.bf16.msra.mxu0 %v6037_v29 }
 0x127   : > { %v6020_v35 = vld [vmem:[%s9291_s11 + $0x80] sm:$0xf]  ;;  %v8023_v36 = vld [vmem:[%s9291_s11 + $0x8c] sm:$0xf0]  ;;  %v6421_v38 = vor.u32 %v8123_v32, %v6420_v31  ;;  %4985 = vmatpush.bf16.msra.mxu1 %v6165_v33 }
 0x128   : > { %v6148_v37 = vld [vmem:[%s9291_s11 + $0x180] sm:$0xf]  ;;  %v8055_v39 = vld [vmem:[%s9291_s11 + $0x18c] sm:$0xf0]  ;;  %v6021_v44 = vor.u32 %v8023_v36, %v6020_v35  ;;  %4998 = vmatpush.bf16.msra.mxu2 %v6293_v34 }
 0x129   : > { %v6276_v40 = vld [vmem:[%s9291_s11 + $0x280] sm:$0xf]  ;;  %v8087_v41 = vld [vmem:[%s9291_s11 + $0x28c] sm:$0xf0]  ;;  %v6149_v45 = vor.u32 %v8055_v39, %v6148_v37  ;;  %5011 = vmatpush.bf16.msra.mxu3 %v6421_v38 }
 0x12a   : > { %v6404_v42 = vld [vmem:[%s9291_s11 + $0x380] sm:$0xf]  ;;  %v8119_v43 = vld [vmem:[%s9291_s11 + $0x38c] sm:$0xf0]  ;;  %v6277_v46 = vor.u32 %v8087_v41, %v6276_v40  ;;  %4973 = vmatpush.bf16.msra.mxu0 %v6021_v44 }
 0x12b   : > { %v6004_v47 = vld [vmem:[%s9291_s11 + $0x60] sm:$0xf]  ;;  %v8019_v48 = vld [vmem:[%s9291_s11 + $0x6c] sm:$0xf0]  ;;  %v6405_v50 = vor.u32 %v8119_v43, %v6404_v42  ;;  %4986 = vmatpush.bf16.msra.mxu1 %v6149_v45 }
 0x12c   : > { %v6132_v49 = vld [vmem:[%s9291_s11 + $0x160] sm:$0xf]  ;;  %v8051_v51 = vld [vmem:[%s9291_s11 + $0x16c] sm:$0xf0]  ;;  %v6005_v56 = vor.u32 %v8019_v48, %v6004_v47  ;;  %4999 = vmatpush.bf16.msra.mxu2 %v6277_v46 }
 0x12d   : > { %v6260_v52 = vld [vmem:[%s9291_s11 + $0x260] sm:$0xf]  ;;  %v8083_v53 = vld [vmem:[%s9291_s11 + $0x26c] sm:$0xf0]  ;;  %v6133_v57 = vor.u32 %v8051_v51, %v6132_v49  ;;  %5012 = vmatpush.bf16.msra.mxu3 %v6405_v50 }
 0x12e   : > { %v6388_v54 = vld [vmem:[%s9291_s11 + $0x360] sm:$0xf]  ;;  %v8115_v55 = vld [vmem:[%s9291_s11 + $0x36c] sm:$0xf0]  ;;  %v6261_v58 = vor.u32 %v8083_v53, %v6260_v52  ;;  %4974 = vmatpush.bf16.msra.mxu0 %v6005_v56 }
 0x12f   : > { %v5988_v59 = vld [vmem:[%s9291_s11 + $0x40] sm:$0xf]  ;;  %v8015_v60 = vld [vmem:[%s9291_s11 + $0x4c] sm:$0xf0]  ;;  %v6389_v62 = vor.u32 %v8115_v55, %v6388_v54  ;;  %4987 = vmatpush.bf16.msra.mxu1 %v6133_v57 }
 0x130   : > { %v6116_v61 = vld [vmem:[%s9291_s11 + $0x140] sm:$0xf]  ;;  %v8047_v63 = vld [vmem:[%s9291_s11 + $0x14c] sm:$0xf0]  ;;  %v5989_v4 = vor.u32 %v8015_v60, %v5988_v59  ;;  %5000 = vmatpush.bf16.msra.mxu2 %v6261_v58  ;;  %v1825_v58 = vld [vmem:[%s10578_s0 + $0x8] sm:$0xff] }
 0x131   : > { %v6244_v0 = vld [vmem:[%s9291_s11 + $0x240] sm:$0xf]  ;;  %v8079_v1 = vld [vmem:[%s9291_s11 + $0x24c] sm:$0xf0]  ;;  %v6117_v5 = vor.u32 %v8047_v63, %v6116_v61  ;;  %5013 = vmatpush.bf16.msra.mxu3 %v6389_v62  ;;  %v2364_v63 = vunpack.c.l.b16 %v1825_v58 }
 0x132   : > { %v6372_v2 = vld [vmem:[%s9291_s11 + $0x340] sm:$0xf]  ;;  %v8111_v3 = vld [vmem:[%s9291_s11 + $0x34c] sm:$0xf0]  ;;  %v6245_v6 = vor.u32 %v8079_v1, %v6244_v0  ;;  %4975 = vmatpush.bf16.msra.mxu0 %v5989_v4  ;;  %v2365_v0 = vunpack.c.h.b16 %v1825_v58 }
 0x133   : > { %v5972_v7 = vld [vmem:[%s9291_s11 + $0x20] sm:$0xf]  ;;  %v8011_v8 = vld [vmem:[%s9291_s11 + $0x2c] sm:$0xf0]  ;;  %v6373_v10 = vor.u32 %v8111_v3, %v6372_v2  ;;  %4988 = vmatpush.bf16.msra.mxu1 %v6117_v5  ;;  %v9384_v4 = vpack.c.b16 %v2364_v63, %v2364_v63 }
 0x134   : > { %v6100_v9 = vld [vmem:[%s9291_s11 + $0x120] sm:$0xf]  ;;  %v8043_v11 = vld [vmem:[%s9291_s11 + $0x12c] sm:$0xf0]  ;;  %v5973_v16 = vor.u32 %v8011_v8, %v5972_v7  ;;  %5001 = vmatpush.bf16.msra.mxu2 %v6245_v6  ;;  %v9389_v6 = vpack.c.b16 %v2365_v0, %v2365_v0 }
 0x135   : > { %v6228_v12 = vld [vmem:[%s9291_s11 + $0x220] sm:$0xf]  ;;  %v8075_v13 = vld [vmem:[%s9291_s11 + $0x22c] sm:$0xf0]  ;;  %v6101_v19 = vor.u32 %v8043_v11, %v6100_v9  ;;  %5014 = vmatpush.bf16.msra.mxu3 %v6373_v10 }
 0x136   : > { %v6356_v14 = vld [vmem:[%s9291_s11 + $0x320] sm:$0xf]  ;;  %v8107_v15 = vld [vmem:[%s9291_s11 + $0x32c] sm:$0xf0]  ;;  %v6229_v20 = vor.u32 %v8075_v13, %v6228_v12  ;;  %4976 = vmatpush.bf16.msra.mxu0 %v5973_v16 }
 0x137   : > { %v5956_v17 = vld [vmem:[%s9291_s11] sm:$0xf]  ;;  %v8007_v18 = vld [vmem:[%s9291_s11 + $0xc] sm:$0xf0]  ;;  %v6357_v24 = vor.u32 %v8107_v15, %v6356_v14  ;;  %4989 = vmatpush.bf16.msra.mxu1 %v6101_v19 }
 0x138   : > { %v6084_v21 = vld [vmem:[%s9291_s11 + $0x100] sm:$0xf]  ;;  %v8039_v22 = vld [vmem:[%s9291_s11 + $0x10c] sm:$0xf0]  ;;  %v5957_v31 = vor.u32 %v8007_v18, %v5956_v17  ;;  %5002 = vmatpush.bf16.msra.mxu2 %v6229_v20 }
 0x139   : > { %v6212_v23 = vld [vmem:[%s9291_s11 + $0x200] sm:$0xf]  ;;  %v8071_v25 = vld [vmem:[%s9291_s11 + $0x20c] sm:$0xf0]  ;;  %v6085_v35 = vor.u32 %v8039_v22, %v6084_v21  ;;  %5015 = vmatpush.bf16.msra.mxu3 %v6357_v24 }
 0x13a   : > { %v6340_v26 = vld [vmem:[%s9291_s11 + $0x300] sm:$0xf]  ;;  %v8103_v27 = vld [vmem:[%s9291_s11 + $0x30c] sm:$0xf0]  ;;  %v6213_v36 = vor.u32 %v8071_v25, %v6212_v23  ;;  %4977 = vmatpush.bf16.msra.mxu0 %v5957_v31 }
 0x13b   : > { %v6580_v28 = vld [vmem:[%s9291_s11 + $0x4e0] sm:$0xf]  ;;  %v8163_v29 = vld [vmem:[%s9291_s11 + $0x4ec] sm:$0xf0]  ;;  %v6341_v39 = vor.u32 %v8103_v27, %v6340_v26  ;;  %4990 = vmatpush.bf16.msra.mxu1 %v6085_v35 }
 0x13c   : > { %v6708_v30 = vld [vmem:[%s9291_s11 + $0x5e0] sm:$0xf]  ;;  %v8195_v32 = vld [vmem:[%s9291_s11 + $0x5ec] sm:$0xf0]  ;;  %v6581_v40 = vor.u32 %v8163_v29, %v6580_v28  ;;  %5003 = vmatpush.bf16.msra.mxu2 %v6213_v36 }
 0x13d   : > { %v6836_v33 = vld [vmem:[%s9291_s11 + $0x6e0] sm:$0xf]  ;;  %v8227_v34 = vld [vmem:[%s9291_s11 + $0x6ec] sm:$0xf0]  ;;  %v6709_v41 = vor.u32 %v8195_v32, %v6708_v30  ;;  %5016 = vmatpush.bf16.msra.mxu3 %v6341_v39 }
 0x13e   : > { %v6964_v37 = vld [vmem:[%s9291_s11 + $0x7e0] sm:$0xf]  ;;  %v8259_v38 = vld [vmem:[%s9291_s11 + $0x7ec] sm:$0xf0]  ;;  %v6837_v42 = vor.u32 %v8227_v34, %v6836_v33  ;;  %5022 = vmatpush.bf16.msrb.mxu0 %v6581_v40 }
 0x13f   : > { %v6564_v43 = vld [vmem:[%s9291_s11 + $0x4c0] sm:$0xf]  ;;  %v8159_v44 = vld [vmem:[%s9291_s11 + $0x4cc] sm:$0xf0]  ;;  %v6965_v46 = vor.u32 %v8259_v38, %v6964_v37  ;;  %5035 = vmatpush.bf16.msrb.mxu1 %v6709_v41  ;;  %5004 = vmatmul.bf16.vlgmr.msra.gmra.mxu2 %v9384_v4 }
 0x140   : > { %v6692_v45 = vld [vmem:[%s9291_s11 + $0x5c0] sm:$0xf]  ;;  %v8191_v47 = vld [vmem:[%s9291_s11 + $0x5cc] sm:$0xf0]  ;;  %v6565_v52 = vor.u32 %v8159_v44, %v6564_v43  ;;  %5048 = vmatpush.bf16.msrb.mxu2 %v6837_v42  ;;  %5017 = vmatmul.bf16.vlgmr.msra.gmra.mxu3 %v9389_v6 }
 0x141   : > { %v6820_v48 = vld [vmem:[%s9291_s11 + $0x6c0] sm:$0xf]  ;;  %v8223_v49 = vld [vmem:[%s9291_s11 + $0x6cc] sm:$0xf0]  ;;  %v6693_v54 = vor.u32 %v8191_v47, %v6692_v45  ;;  %5061 = vmatpush.bf16.msrb.mxu3 %v6965_v46 }
 0x142   : > { %v6948_v50 = vld [vmem:[%s9291_s11 + $0x7c0] sm:$0xf]  ;;  %v8255_v51 = vld [vmem:[%s9291_s11 + $0x7cc] sm:$0xf0]  ;;  %v6821_v55 = vor.u32 %v8223_v49, %v6820_v48  ;;  %5023 = vmatpush.bf16.msrb.mxu0 %v6565_v52 }
 0x143   : > { %v6548_v53 = vld [vmem:[%s9291_s11 + $0x4a0] sm:$0xf]  ;;  %v8155_v56 = vld [vmem:[%s9291_s11 + $0x4ac] sm:$0xf0]  ;;  %v6949_v59 = vor.u32 %v8255_v51, %v6948_v50  ;;  %5036 = vmatpush.bf16.msrb.mxu1 %v6693_v54 }
 0x144   : > { %v6676_v57 = vld [vmem:[%s9291_s11 + $0x5a0] sm:$0xf]  ;;  %v8187_v60 = vld [vmem:[%s9291_s11 + $0x5ac] sm:$0xf0]  ;;  %v6549_v3 = vor.u32 %v8155_v56, %v6548_v53  ;;  %5049 = vmatpush.bf16.msrb.mxu2 %v6821_v55 }
 0x145   : > { %v6804_v61 = vld [vmem:[%s9291_s11 + $0x6a0] sm:$0xf]  ;;  %v8219_v62 = vld [vmem:[%s9291_s11 + $0x6ac] sm:$0xf0]  ;;  %v6677_v7 = vor.u32 %v8187_v60, %v6676_v57  ;;  %5062 = vmatpush.bf16.msrb.mxu3 %v6949_v59 }
 0x146   : > { %v6932_v1 = vld [vmem:[%s9291_s11 + $0x7a0] sm:$0xf]  ;;  %v8251_v2 = vld [vmem:[%s9291_s11 + $0x7ac] sm:$0xf0]  ;;  %v6805_v8 = vor.u32 %v8219_v62, %v6804_v61  ;;  %5024 = vmatpush.bf16.msrb.mxu0 %v6549_v3  ;;  %v1827_v3 = vld [vmem:[%s10578_s0 + $0x18] sm:$0xff] }
 0x147   : > { %v1824_v5 = vld [vmem:[%s10578_s0] sm:$0xff]  ;;  %v8151_v10 = vld [vmem:[%s9291_s11 + $0x48c] sm:$0xf0]  ;;  %v6933_v14 = vor.u32 %v8251_v2, %v6932_v1  ;;  %5037 = vmatpush.bf16.msrb.mxu1 %v6677_v7 }
 0x148   : > { %v6532_v9 = vld [vmem:[%s9291_s11 + $0x480] sm:$0xf]  ;;  %v2362_v12 = vunpack.c.l.b16 %v1824_v5  ;;  %v2363_v13 = vunpack.c.h.b16 %v1824_v5  ;;  %v8183_v15 = vld [vmem:[%s9291_s11 + $0x58c] sm:$0xf0]  ;;  %5050 = vmatpush.bf16.msrb.mxu2 %v6805_v8 }
 0x149   : > { %v6660_v11 = vld [vmem:[%s9291_s11 + $0x580] sm:$0xf]  ;;  %v8215_v17 = vld [vmem:[%s9291_s11 + $0x68c] sm:$0xf0]  ;;  %v6533_v22 = vor.u32 %v8151_v10, %v6532_v9  ;;  %5063 = vmatpush.bf16.msrb.mxu3 %v6933_v14 }
 0x14a   : > { %v6788_v16 = vld [vmem:[%s9291_s11 + $0x680] sm:$0xf]  ;;  %v8247_v19 = vld [vmem:[%s9291_s11 + $0x78c] sm:$0xf0]  ;;  %v9400_v20 = vpack.c.b16 %v2362_v12, %v2362_v12  ;;  %v9403_v21 = vpack.c.b16 %v2363_v13, %v2363_v13  ;;  %v6661_v23 = vor.u32 %v8183_v15, %v6660_v11 }
 0x14b   : > { %v6916_v18 = vld [vmem:[%s9291_s11 + $0x780] sm:$0xf]  ;;  %v6789_v24 = vor.u32 %v8215_v17, %v6788_v16  ;;  %v8147_v26 = vld [vmem:[%s9291_s11 + $0x46c] sm:$0xf0]  ;;  %5025 = vmatpush.bf16.msrb.mxu0 %v6533_v22  ;;  %v2368_v17 = vunpack.c.l.b16 %v1827_v3 }
 0x14c   : > { %v6516_v25 = vld [vmem:[%s9291_s11 + $0x460] sm:$0xf]  ;;  %v6917_v28 = vor.u32 %v8247_v19, %v6916_v18  ;;  %v8179_v29 = vld [vmem:[%s9291_s11 + $0x56c] sm:$0xf0]  ;;  %4978 = vmatmul.bf16.vlgmr.msra.gmra.mxu0 %v9400_v20  ;;  %4991 = vmatmul.bf16.vlgmr.msra.gmra.mxu1 %v9403_v21 }
 0x14d   : > { %v6644_v27 = vld [vmem:[%s9291_s11 + $0x560] sm:$0xf]  ;;  %v8211_v31 = vld [vmem:[%s9291_s11 + $0x66c] sm:$0xf0]  ;;  %v6517_v34 = vor.u32 %v8147_v26, %v6516_v25  ;;  %5038 = vmatpush.bf16.msrb.mxu1 %v6661_v23  ;;  %5051 = vmatpush.bf16.msrb.mxu2 %v6789_v24  ;;  %v2369_v25 = vunpack.c.h.b16 %v1827_v3 }
 0x14e   : > { %v6772_v30 = vld [vmem:[%s9291_s11 + $0x660] sm:$0xf]  ;;  %v8243_v33 = vld [vmem:[%s9291_s11 + $0x76c] sm:$0xf0]  ;;  %v6645_v35 = vor.u32 %v8179_v29, %v6644_v27  ;;  %5064 = vmatpush.bf16.msrb.mxu3 %v6917_v28 }
 0x14f   : > { %v6900_v32 = vld [vmem:[%s9291_s11 + $0x760] sm:$0xf]  ;;  %v6773_v36 = vor.u32 %v8211_v31, %v6772_v30  ;;  %v8143_v38 = vld [vmem:[%s9291_s11 + $0x44c] sm:$0xf0]  ;;  %5026 = vmatpush.bf16.msrb.mxu0 %v6517_v34 }
 0x150   : > { %v6500_v37 = vld [vmem:[%s9291_s11 + $0x440] sm:$0xf]  ;;  %v6901_v40 = vor.u32 %v8243_v33, %v6900_v32  ;;  %v8175_v41 = vld [vmem:[%s9291_s11 + $0x54c] sm:$0xf0] }
 0x151   : > { %v6628_v39 = vld [vmem:[%s9291_s11 + $0x540] sm:$0xf]  ;;  %v8207_v43 = vld [vmem:[%s9291_s11 + $0x64c] sm:$0xf0]  ;;  %v6501_v46 = vor.u32 %v8143_v38, %v6500_v37  ;;  %5039 = vmatpush.bf16.msrb.mxu1 %v6645_v35  ;;  %5052 = vmatpush.bf16.msrb.mxu2 %v6773_v36  ;;  %v9459_v38 = vpack.c.b16 %v2368_v17, %v2368_v17 }
 0x152   : > { %v6756_v42 = vld [vmem:[%s9291_s11 + $0x640] sm:$0xf]  ;;  %v8239_v45 = vld [vmem:[%s9291_s11 + $0x74c] sm:$0xf0]  ;;  %v6629_v47 = vor.u32 %v8175_v41, %v6628_v39  ;;  %5065 = vmatpush.bf16.msrb.mxu3 %v6901_v40 }
 0x153   : > { %v6884_v44 = vld [vmem:[%s9291_s11 + $0x740] sm:$0xf]  ;;  %v6757_v48 = vor.u32 %v8207_v43, %v6756_v42  ;;  %v8139_v50 = vld [vmem:[%s9291_s11 + $0x42c] sm:$0xf0]  ;;  %5027 = vmatpush.bf16.msrb.mxu0 %v6501_v46  ;;  %v9465_v42 = vpack.c.b16 %v2369_v25, %v2369_v25 }
 0x154   : > { %v6484_v49 = vld [vmem:[%s9291_s11 + $0x420] sm:$0xf]  ;;  %v6885_v52 = vor.u32 %v8239_v45, %v6884_v44  ;;  %v8171_v53 = vld [vmem:[%s9291_s11 + $0x52c] sm:$0xf0] }
 0x155   : > { %v6612_v51 = vld [vmem:[%s9291_s11 + $0x520] sm:$0xf]  ;;  %v8203_v55 = vld [vmem:[%s9291_s11 + $0x62c] sm:$0xf0]  ;;  %v6485_v59 = vor.u32 %v8139_v50, %v6484_v49  ;;  %5040 = vmatpush.bf16.msrb.mxu1 %v6629_v47  ;;  %5053 = vmatpush.bf16.msrb.mxu2 %v6757_v48 }
 0x156   : > { %v6740_v54 = vld [vmem:[%s9291_s11 + $0x620] sm:$0xf]  ;;  %v8235_v57 = vld [vmem:[%s9291_s11 + $0x72c] sm:$0xf0]  ;;  %v6613_v63 = vor.u32 %v8171_v53, %v6612_v51  ;;  %5066 = vmatpush.bf16.msrb.mxu3 %v6885_v52 }
 0x157   : > { %v6868_v56 = vld [vmem:[%s9291_s11 + $0x720] sm:$0xf]  ;;  %v8135_v60 = vld [vmem:[%s9291_s11 + $0x40c] sm:$0xf0]  ;;  %v6741_v0 = vor.u32 %v8203_v55, %v6740_v54  ;;  %5028 = vmatpush.bf16.msrb.mxu0 %v6485_v59 }
 0x158   : > { %v6468_v58 = vld [vmem:[%s9291_s11 + $0x400] sm:$0xf]  ;;  %v8167_v62 = vld [vmem:[%s9291_s11 + $0x50c] sm:$0xf0]  ;;  %v6869_v5 = vor.u32 %v8235_v57, %v6868_v56 }
 0x159   : > { %v6596_v61 = vld [vmem:[%s9291_s11 + $0x500] sm:$0xf]  ;;  %v8199_v2 = vld [vmem:[%s9291_s11 + $0x60c] sm:$0xf0]  ;;  %v6469_v13 = vor.u32 %v8135_v60, %v6468_v58  ;;  %5041 = vmatpush.bf16.msrb.mxu1 %v6613_v63  ;;  %5054 = vmatpush.bf16.msrb.mxu2 %v6741_v0 }
 0x15a   : > { %v6724_v1 = vld [vmem:[%s9291_s11 + $0x600] sm:$0xf]  ;;  %v8231_v8 = vld [vmem:[%s9291_s11 + $0x70c] sm:$0xf0]  ;;  %v6597_v18 = vor.u32 %v8167_v62, %v6596_v61  ;;  %5067 = vmatpush.bf16.msrb.mxu3 %v6869_v5 }
 0x15b   : > { %v6852_v7 = vld [vmem:[%s9291_s11 + $0x700] sm:$0xf]  ;;  %v1826_v9 = vld [vmem:[%s10578_s0 + $0x10] sm:$0xff]  ;;  %v6725_v19 = vor.u32 %v8199_v2, %v6724_v1  ;;  %5029 = vmatpush.bf16.msrb.mxu0 %v6469_v13 }
 0x15c   : > { %v7092_v10 = vld [vmem:[%s9291_s11 + $0x8e0] sm:$0xf]  ;;  %v8291_v11 = vld [vmem:[%s9291_s11 + $0x8ec] sm:$0xf0]  ;;  %v2366_v24 = vunpack.c.l.b16 %v1826_v9  ;;  %v6853_v26 = vor.u32 %v8231_v8, %v6852_v7  ;;  %v2367_v28 = vunpack.c.h.b16 %v1826_v9 }
 0x15d   : > { %v7220_v12 = vld [vmem:[%s9291_s11 + $0x9e0] sm:$0xf]  ;;  %v8323_v14 = vld [vmem:[%s9291_s11 + $0x9ec] sm:$0xf0]  ;;  %v7093_v27 = vor.u32 %v8291_v11, %v7092_v10  ;;  %5042 = vmatpush.bf16.msrb.mxu1 %v6597_v18  ;;  %5055 = vmatpush.bf16.msrb.mxu2 %v6725_v19 }
 0x15e   : > { %v7348_v15 = vld [vmem:[%s9291_s11 + $0xae0] sm:$0xf]  ;;  %v8355_v16 = vld [vmem:[%s9291_s11 + $0xaec] sm:$0xf0]  ;;  %v7221_v29 = vor.u32 %v8323_v14, %v7220_v12  ;;  %v9463_v41 = vpack.c.b16 %v2366_v24, %v2366_v24  ;;  %5068 = vmatpush.bf16.msrb.mxu3 %v6853_v26  ;;  %v9467_v44 = vpack.c.b16 %v2367_v28, %v2367_v28 }
 0x15f   : > { %v7476_v22 = vld [vmem:[%s9291_s11 + $0xbe0] sm:$0xf]  ;;  %v8387_v23 = vld [vmem:[%s9291_s11 + $0xbec] sm:$0xf0]  ;;  %v7349_v30 = vor.u32 %v8355_v16, %v7348_v15  ;;  %5074 = vmatpush.bf16.msra.mxu0 %v7093_v27 }
 0x160   : > { %v7076_v31 = vld [vmem:[%s9291_s11 + $0x8c0] sm:$0xf]  ;;  %v8287_v32 = vld [vmem:[%s9291_s11 + $0x8cc] sm:$0xf0]  ;;  %v7477_v34 = vor.u32 %v8387_v23, %v7476_v22  ;;  %5056 = vmatmul.bf16.vlgmr.msrb.gmra.mxu2 %v9459_v38  ;;  %5030 = vmatmul.bf16.vlgmr.msrb.gmra.mxu0 %v9463_v41 }
 0x161   : > { %v7204_v33 = vld [vmem:[%s9291_s11 + $0x9c0] sm:$0xf]  ;;  %v8319_v35 = vld [vmem:[%s9291_s11 + $0x9cc] sm:$0xf0]  ;;  %v7077_v43 = vor.u32 %v8287_v32, %v7076_v31  ;;  %5087 = vmatpush.bf16.msra.mxu1 %v7221_v29  ;;  %5100 = vmatpush.bf16.msra.mxu2 %v7349_v30 }
 0x162   : > { %v7332_v36 = vld [vmem:[%s9291_s11 + $0xac0] sm:$0xf]  ;;  %v8351_v37 = vld [vmem:[%s9291_s11 + $0xacc] sm:$0xf0]  ;;  %v7205_v45 = vor.u32 %v8319_v35, %v7204_v33  ;;  %5113 = vmatpush.bf16.msra.mxu3 %v7477_v34  ;;  %5043 = vmatmul.bf16.vlgmr.msrb.gmra.mxu1 %v9467_v44 }
 0x163   : > { %v7460_v39 = vld [vmem:[%s9291_s11 + $0xbc0] sm:$0xf]  ;;  %v8383_v40 = vld [vmem:[%s9291_s11 + $0xbcc] sm:$0xf0]  ;;  %v7333_v46 = vor.u32 %v8351_v37, %v7332_v36  ;;  %5069 = vmatmul.bf16.vlgmr.msrb.gmra.mxu3 %v9465_v42  ;;  %5075 = vmatpush.bf16.msra.mxu0 %v7077_v43 }
 0x164   : > { %v7060_v47 = vld [vmem:[%s9291_s11 + $0x8a0] sm:$0xf]  ;;  %v8283_v48 = vld [vmem:[%s9291_s11 + $0x8ac] sm:$0xf0]  ;;  %v7461_v50 = vor.u32 %v8383_v40, %v7460_v39 }
 0x165   : > { %v7188_v49 = vld [vmem:[%s9291_s11 + $0x9a0] sm:$0xf]  ;;  %v8315_v51 = vld [vmem:[%s9291_s11 + $0x9ac] sm:$0xf0]  ;;  %v7061_v56 = vor.u32 %v8283_v48, %v7060_v47  ;;  %5088 = vmatpush.bf16.msra.mxu1 %v7205_v45  ;;  %5101 = vmatpush.bf16.msra.mxu2 %v7333_v46 }
 0x166   : > { %v7316_v52 = vld [vmem:[%s9291_s11 + $0xaa0] sm:$0xf]  ;;  %v8347_v53 = vld [vmem:[%s9291_s11 + $0xaac] sm:$0xf0]  ;;  %v7189_v57 = vor.u32 %v8315_v51, %v7188_v49  ;;  %5114 = vmatpush.bf16.msra.mxu3 %v7461_v50 }
 0x167   : > { %v7444_v54 = vld [vmem:[%s9291_s11 + $0xba0] sm:$0xf]  ;;  %v8379_v55 = vld [vmem:[%s9291_s11 + $0xbac] sm:$0xf0]  ;;  %v7317_v58 = vor.u32 %v8347_v53, %v7316_v52  ;;  %5076 = vmatpush.bf16.msra.mxu0 %v7061_v56 }
 0x168   : > { %v7044_v59 = vld [vmem:[%s9291_s11 + $0x880] sm:$0xf]  ;;  %v8279_v60 = vld [vmem:[%s9291_s11 + $0x88c] sm:$0xf0]  ;;  %v7445_v62 = vor.u32 %v8379_v55, %v7444_v54 }
 0x169   : > { %v7172_v61 = vld [vmem:[%s9291_s11 + $0x980] sm:$0xf]  ;;  %v8311_v63 = vld [vmem:[%s9291_s11 + $0x98c] sm:$0xf0]  ;;  %v7045_v5 = vor.u32 %v8279_v60, %v7044_v59  ;;  %5089 = vmatpush.bf16.msra.mxu1 %v7189_v57  ;;  %5102 = vmatpush.bf16.msra.mxu2 %v7317_v58 }
 0x16a   : > { %v7300_v0 = vld [vmem:[%s9291_s11 + $0xa80] sm:$0xf]  ;;  %v8343_v1 = vld [vmem:[%s9291_s11 + $0xa8c] sm:$0xf0]  ;;  %v7173_v7 = vor.u32 %v8311_v63, %v7172_v61  ;;  %5115 = vmatpush.bf16.msra.mxu3 %v7445_v62  ;;  %v1829_v61 = vld [vmem:[%s10578_s0 + $0x28] sm:$0xff] }
 0x16b   : > { %v7428_v2 = vld [vmem:[%s9291_s11 + $0xb80] sm:$0xf]  ;;  %v8375_v3 = vld [vmem:[%s9291_s11 + $0xb8c] sm:$0xf0]  ;;  %v7301_v8 = vor.u32 %v8343_v1, %v7300_v0  ;;  %5077 = vmatpush.bf16.msra.mxu0 %v7045_v5 }
 0x16c   : > { %v7028_v9 = vld [vmem:[%s9291_s11 + $0x860] sm:$0xf]  ;;  %v8275_v10 = vld [vmem:[%s9291_s11 + $0x86c] sm:$0xf0]  ;;  %v7429_v12 = vor.u32 %v8375_v3, %v7428_v2 }
 0x16d   : > { %v7156_v11 = vld [vmem:[%s9291_s11 + $0x960] sm:$0xf]  ;;  %v8307_v13 = vld [vmem:[%s9291_s11 + $0x96c] sm:$0xf0]  ;;  %v7029_v18 = vor.u32 %v8275_v10, %v7028_v9  ;;  %5090 = vmatpush.bf16.msra.mxu1 %v7173_v7  ;;  %5103 = vmatpush.bf16.msra.mxu2 %v7301_v8 }
 0x16e   : > { %v7284_v14 = vld [vmem:[%s9291_s11 + $0xa60] sm:$0xf]  ;;  %v8339_v15 = vld [vmem:[%s9291_s11 + $0xa6c] sm:$0xf0]  ;;  %v7157_v19 = vor.u32 %v8307_v13, %v7156_v11  ;;  %5116 = vmatpush.bf16.msra.mxu3 %v7429_v12  ;;  %v2372_v12 = vunpack.c.l.b16 %v1829_v61 }
 0x16f   : > { %v7412_v16 = vld [vmem:[%s9291_s11 + $0xb60] sm:$0xf]  ;;  %v8371_v17 = vld [vmem:[%s9291_s11 + $0xb6c] sm:$0xf0]  ;;  %v7285_v22 = vor.u32 %v8339_v15, %v7284_v14  ;;  %5078 = vmatpush.bf16.msra.mxu0 %v7029_v18 }
 0x170   : > { %v7012_v23 = vld [vmem:[%s9291_s11 + $0x840] sm:$0xf]  ;;  %v8271_v24 = vld [vmem:[%s9291_s11 + $0x84c] sm:$0xf0]  ;;  %v7413_v26 = vor.u32 %v8371_v17, %v7412_v16  ;;  %v2373_v16 = vunpack.c.h.b16 %v1829_v61 }
 0x171   : > { %v7140_v25 = vld [vmem:[%s9291_s11 + $0x940] sm:$0xf]  ;;  %v8303_v27 = vld [vmem:[%s9291_s11 + $0x94c] sm:$0xf0]  ;;  %v7013_v32 = vor.u32 %v8271_v24, %v7012_v23  ;;  %5091 = vmatpush.bf16.msra.mxu1 %v7157_v19  ;;  %5104 = vmatpush.bf16.msra.mxu2 %v7285_v22 }
 0x172   : > { %v7268_v28 = vld [vmem:[%s9291_s11 + $0xa40] sm:$0xf]  ;;  %v8335_v29 = vld [vmem:[%s9291_s11 + $0xa4c] sm:$0xf0]  ;;  %v7141_v33 = vor.u32 %v8303_v27, %v7140_v25  ;;  %5117 = vmatpush.bf16.msra.mxu3 %v7413_v26 }
 0x173   : > { %v7396_v30 = vld [vmem:[%s9291_s11 + $0xb40] sm:$0xf]  ;;  %v8367_v31 = vld [vmem:[%s9291_s11 + $0xb4c] sm:$0xf0]  ;;  %v7269_v34 = vor.u32 %v8335_v29, %v7268_v28  ;;  %5079 = vmatpush.bf16.msra.mxu0 %v7013_v32  ;;  %v9543_v29 = vpack.c.b16 %v2372_v12, %v2372_v12 }
 0x174   : > { %v6996_v35 = vld [vmem:[%s9291_s11 + $0x820] sm:$0xf]  ;;  %v8267_v36 = vld [vmem:[%s9291_s11 + $0x82c] sm:$0xf0]  ;;  %v7397_v39 = vor.u32 %v8367_v31, %v7396_v30 }
 0x175   : > { %v7124_v37 = vld [vmem:[%s9291_s11 + $0x920] sm:$0xf]  ;;  %v8299_v40 = vld [vmem:[%s9291_s11 + $0x92c] sm:$0xf0]  ;;  %v6997_v49 = vor.u32 %v8267_v36, %v6996_v35  ;;  %5092 = vmatpush.bf16.msra.mxu1 %v7141_v33  ;;  %5105 = vmatpush.bf16.msra.mxu2 %v7269_v34  ;;  %v9549_v33 = vpack.c.b16 %v2373_v16, %v2373_v16 }
 0x176   : > { %v7252_v43 = vld [vmem:[%s9291_s11 + $0xa20] sm:$0xf]  ;;  %v8331_v45 = vld [vmem:[%s9291_s11 + $0xa2c] sm:$0xf0]  ;;  %v7125_v53 = vor.u32 %v8299_v40, %v7124_v37  ;;  %5118 = vmatpush.bf16.msra.mxu3 %v7397_v39 }
 0x177   : > { %v7380_v46 = vld [vmem:[%s9291_s11 + $0xb20] sm:$0xf]  ;;  %v8363_v47 = vld [vmem:[%s9291_s11 + $0xb2c] sm:$0xf0]  ;;  %v7253_v54 = vor.u32 %v8331_v45, %v7252_v43  ;;  %5080 = vmatpush.bf16.msra.mxu0 %v6997_v49 }
 0x178   : > { %v6980_v48 = vld [vmem:[%s9291_s11 + $0x800] sm:$0xf]  ;;  %v8263_v50 = vld [vmem:[%s9291_s11 + $0x80c] sm:$0xf0]  ;;  %v7381_v58 = vor.u32 %v8363_v47, %v7380_v46 }
 0x179   : > { %v7108_v51 = vld [vmem:[%s9291_s11 + $0x900] sm:$0xf]  ;;  %v8295_v52 = vld [vmem:[%s9291_s11 + $0x90c] sm:$0xf0]  ;;  %v6981_v1 = vor.u32 %v8263_v50, %v6980_v48  ;;  %5093 = vmatpush.bf16.msra.mxu1 %v7125_v53  ;;  %5106 = vmatpush.bf16.msra.mxu2 %v7253_v54 }
 0x17a   : > { %v7236_v55 = vld [vmem:[%s9291_s11 + $0xa00] sm:$0xf]  ;;  %v8327_v56 = vld [vmem:[%s9291_s11 + $0xa0c] sm:$0xf0]  ;;  %v7109_v8 = vor.u32 %v8295_v52, %v7108_v51  ;;  %5119 = vmatpush.bf16.msra.mxu3 %v7381_v58 }
 0x17b   : > { %v1828_v57 = vld [vmem:[%s10578_s0 + $0x20] sm:$0xff]  ;;  %v8359_v60 = vld [vmem:[%s9291_s11 + $0xb0c] sm:$0xf0]  ;;  %v7237_v9 = vor.u32 %v8327_v56, %v7236_v55  ;;  %5081 = vmatpush.bf16.msra.mxu0 %v6981_v1 }
 0x17c   : > { %v7364_v59 = vld [vmem:[%s9291_s11 + $0xb00] sm:$0xf]  ;;  %v8419_v63 = vld [vmem:[%s9291_s11 + $0xcec] sm:$0xf0]  ;;  %v2370_v7 = vunpack.c.l.b16 %v1828_v57  ;;  %v2371_v13 = vunpack.c.h.b16 %v1828_v57 }
 0x17d   : > { %v7604_v62 = vld [vmem:[%s9291_s11 + $0xce0] sm:$0xf]  ;;  %v8451_v2 = vld [vmem:[%s9291_s11 + $0xdec] sm:$0xf0]  ;;  %v7365_v14 = vor.u32 %v8359_v60, %v7364_v59  ;;  %5094 = vmatpush.bf16.msra.mxu1 %v7109_v8  ;;  %5107 = vmatpush.bf16.msra.mxu2 %v7237_v9 }
 0x17e   : > { %v7732_v0 = vld [vmem:[%s9291_s11 + $0xde0] sm:$0xf]  ;;  %v8483_v5 = vld [vmem:[%s9291_s11 + $0xeec] sm:$0xf0]  ;;  %v7605_v15 = vor.u32 %v8419_v63, %v7604_v62  ;;  %v9538_v25 = vpack.c.b16 %v2370_v7, %v2370_v7  ;;  %v9545_v30 = vpack.c.b16 %v2371_v13, %v2371_v13 }
 0x17f   : > { %v7860_v3 = vld [vmem:[%s9291_s11 + $0xee0] sm:$0xf]  ;;  %v8515_v11 = vld [vmem:[%s9291_s11 + $0xfec] sm:$0xf0]  ;;  %v7733_v17 = vor.u32 %v8451_v2, %v7732_v0  ;;  %5120 = vmatpush.bf16.msra.mxu3 %v7365_v14 }
 0x180   : > { %v7988_v10 = vld [vmem:[%s9291_s11 + $0xfe0] sm:$0xf]  ;;  %v7861_v18 = vor.u32 %v8483_v5, %v7860_v3  ;;  %v8415_v22 = vld [vmem:[%s9291_s11 + $0xccc] sm:$0xf0]  ;;  %5126 = vmatpush.bf16.msrb.mxu0 %v7605_v15  ;;  %5108 = vmatmul.bf16.vlgmr.msra.gmra.mxu2 %v9543_v29 }
 0x181   : > { %v7588_v19 = vld [vmem:[%s9291_s11 + $0xcc0] sm:$0xf]  ;;  %v7989_v24 = vor.u32 %v8515_v11, %v7988_v10  ;;  %v8447_v26 = vld [vmem:[%s9291_s11 + $0xdcc] sm:$0xf0]  ;;  %5139 = vmatpush.bf16.msrb.mxu1 %v7733_v17  ;;  %5082 = vmatmul.bf16.vlgmr.msra.gmra.mxu0 %v9538_v25 }
 0x182   : > { %v7716_v23 = vld [vmem:[%s9291_s11 + $0xdc0] sm:$0xf]  ;;  %v8479_v28 = vld [vmem:[%s9291_s11 + $0xecc] sm:$0xf0]  ;;  %v7589_v34 = vor.u32 %v8415_v22, %v7588_v19  ;;  %5152 = vmatpush.bf16.msrb.mxu2 %v7861_v18  ;;  %5095 = vmatmul.bf16.vlgmr.msra.gmra.mxu1 %v9545_v30 }
 0x183   : > { %v7844_v27 = vld [vmem:[%s9291_s11 + $0xec0] sm:$0xf]  ;;  %v8511_v32 = vld [vmem:[%s9291_s11 + $0xfcc] sm:$0xf0]  ;;  %v7717_v35 = vor.u32 %v8447_v26, %v7716_v23  ;;  %5165 = vmatpush.bf16.msrb.mxu3 %v7989_v24 }
 0x184   : > { %v7972_v31 = vld [vmem:[%s9291_s11 + $0xfc0] sm:$0xf]  ;;  %v7845_v36 = vor.u32 %v8479_v28, %v7844_v27  ;;  %v8411_v39 = vld [vmem:[%s9291_s11 + $0xcac] sm:$0xf0]  ;;  %5121 = vmatmul.bf16.vlgmr.msra.gmra.mxu3 %v9549_v33  ;;  %5127 = vmatpush.bf16.msrb.mxu0 %v7589_v34 }
 0x185   : > { %v7572_v37 = vld [vmem:[%s9291_s11 + $0xca0] sm:$0xf]  ;;  %v7973_v43 = vor.u32 %v8511_v32, %v7972_v31  ;;  %v8443_v45 = vld [vmem:[%s9291_s11 + $0xdac] sm:$0xf0]  ;;  %5140 = vmatpush.bf16.msrb.mxu1 %v7717_v35 }
 0x186   : > { %v7700_v40 = vld [vmem:[%s9291_s11 + $0xda0] sm:$0xf]  ;;  %v8475_v47 = vld [vmem:[%s9291_s11 + $0xeac] sm:$0xf0]  ;;  %v7573_v50 = vor.u32 %v8411_v39, %v7572_v37  ;;  %5153 = vmatpush.bf16.msrb.mxu2 %v7845_v36 }
 0x187   : > { %v7828_v46 = vld [vmem:[%s9291_s11 + $0xea0] sm:$0xf]  ;;  %v8507_v49 = vld [vmem:[%s9291_s11 + $0xfac] sm:$0xf0]  ;;  %v7701_v51 = vor.u32 %v8443_v45, %v7700_v40  ;;  %5166 = vmatpush.bf16.msrb.mxu3 %v7973_v43 }
 0x188   : > { %v7956_v48 = vld [vmem:[%s9291_s11 + $0xfa0] sm:$0xf]  ;;  %v7829_v52 = vor.u32 %v8475_v47, %v7828_v46  ;;  %v8407_v54 = vld [vmem:[%s9291_s11 + $0xc8c] sm:$0xf0]  ;;  %5128 = vmatpush.bf16.msrb.mxu0 %v7573_v50 }
 0x189   : > { %v7556_v53 = vld [vmem:[%s9291_s11 + $0xc80] sm:$0xf]  ;;  %v7957_v56 = vor.u32 %v8507_v49, %v7956_v48  ;;  %v8439_v57 = vld [vmem:[%s9291_s11 + $0xd8c] sm:$0xf0]  ;;  %5141 = vmatpush.bf16.msrb.mxu1 %v7701_v51 }
 0x18a   : > { %v7684_v55 = vld [vmem:[%s9291_s11 + $0xd80] sm:$0xf]  ;;  %v8471_v59 = vld [vmem:[%s9291_s11 + $0xe8c] sm:$0xf0]  ;;  %v7557_v62 = vor.u32 %v8407_v54, %v7556_v53  ;;  %5154 = vmatpush.bf16.msrb.mxu2 %v7829_v52 }
 0x18b   : > { %v7812_v58 = vld [vmem:[%s9291_s11 + $0xe80] sm:$0xf]  ;;  %v8503_v61 = vld [vmem:[%s9291_s11 + $0xf8c] sm:$0xf0]  ;;  %v7685_v63 = vor.u32 %v8439_v57, %v7684_v55  ;;  %5167 = vmatpush.bf16.msrb.mxu3 %v7957_v56 }
 0x18c   : > { %v7940_v60 = vld [vmem:[%s9291_s11 + $0xf80] sm:$0xf]  ;;  %v7813_v0 = vor.u32 %v8471_v59, %v7812_v58  ;;  %v8403_v2 = vld [vmem:[%s9291_s11 + $0xc6c] sm:$0xf0]  ;;  %5129 = vmatpush.bf16.msrb.mxu0 %v7557_v62  ;;  %v1831_v59 = vld [vmem:[%s10578_s0 + $0x38] sm:$0xff] }
 0x18d   : > { %v7540_v1 = vld [vmem:[%s9291_s11 + $0xc60] sm:$0xf]  ;;  %v7941_v5 = vor.u32 %v8503_v61, %v7940_v60  ;;  %v8435_v7 = vld [vmem:[%s9291_s11 + $0xd6c] sm:$0xf0]  ;;  %5142 = vmatpush.bf16.msrb.mxu1 %v7685_v63  ;;  %v8033_v60 = vld [vmem:[%s9291_s11 + $0xe4] sm:$0xf] }
 0x18e   : > { %v7668_v3 = vld [vmem:[%s9291_s11 + $0xd60] sm:$0xf]  ;;  %v8467_v9 = vld [vmem:[%s9291_s11 + $0xe6c] sm:$0xf0]  ;;  %v7541_v12 = vor.u32 %v8403_v2, %v7540_v1  ;;  %5155 = vmatpush.bf16.msrb.mxu2 %v7813_v0  ;;  %v6070_v61 = vld [vmem:[%s9291_s11 + $0xf0] sm:$0xf0] }
 0x18f   : > { %v7796_v8 = vld [vmem:[%s9291_s11 + $0xe60] sm:$0xf]  ;;  %v8499_v11 = vld [vmem:[%s9291_s11 + $0xf6c] sm:$0xf0]  ;;  %v7669_v13 = vor.u32 %v8435_v7, %v7668_v3  ;;  %5168 = vmatpush.bf16.msrb.mxu3 %v7941_v5  ;;  %v8065_v62 = vld [vmem:[%s9291_s11 + $0x1e4] sm:$0xf] }
 0x190   : > { %v7924_v10 = vld [vmem:[%s9291_s11 + $0xf60] sm:$0xf]  ;;  %v7797_v14 = vor.u32 %v8467_v9, %v7796_v8  ;;  %v8399_v16 = vld [vmem:[%s9291_s11 + $0xc4c] sm:$0xf0]  ;;  %5130 = vmatpush.bf16.msrb.mxu0 %v7541_v12  ;;  %v6198_v0 = vld [vmem:[%s9291_s11 + $0x1f0] sm:$0xf0] }
 0x191   : > { %v7524_v15 = vld [vmem:[%s9291_s11 + $0xc40] sm:$0xf]  ;;  %v7925_v18 = vor.u32 %v8499_v11, %v7924_v10  ;;  %v8431_v19 = vld [vmem:[%s9291_s11 + $0xd4c] sm:$0xf0]  ;;  %5143 = vmatpush.bf16.msrb.mxu1 %v7669_v13  ;;  %v8097_v1 = vld [vmem:[%s9291_s11 + $0x2e4] sm:$0xf]  ;;  %v2376_v10 = vunpack.c.l.b16 %v1831_v59  ;;  %v6073_v13 = vor.u32 %v8033_v60, %v6070_v61 }
 0x192   : > { %v7652_v17 = vld [vmem:[%s9291_s11 + $0xd40] sm:$0xf]  ;;  %v8463_v23 = vld [vmem:[%s9291_s11 + $0xe4c] sm:$0xf0]  ;;  %v7525_v27 = vor.u32 %v8399_v16, %v7524_v15  ;;  %5156 = vmatpush.bf16.msrb.mxu2 %v7797_v14  ;;  %v6326_v2 = vld [vmem:[%s9291_s11 + $0x2f0] sm:$0xf0]  ;;  %v2377_v14 = vunpack.c.h.b16 %v1831_v59  ;;  %v6201_v15 = vor.u32 %v8065_v62, %v6198_v0 }
 0x193   : > { %v7780_v22 = vld [vmem:[%s9291_s11 + $0xe40] sm:$0xf]  ;;  %v8495_v26 = vld [vmem:[%s9291_s11 + $0xf4c] sm:$0xf0]  ;;  %v7653_v28 = vor.u32 %v8431_v19, %v7652_v17  ;;  %5169 = vmatpush.bf16.msrb.mxu3 %v7925_v18  ;;  %v8129_v8 = vld [vmem:[%s9291_s11 + $0x3e4] sm:$0xf]  ;;  %v6329_v16 = vor.u32 %v8097_v1, %v6326_v2 }
 0x194   : > { %v7908_v24 = vld [vmem:[%s9291_s11 + $0xf40] sm:$0xf]  ;;  %v7781_v31 = vor.u32 %v8463_v23, %v7780_v22  ;;  %v8395_v34 = vld [vmem:[%s9291_s11 + $0xc2c] sm:$0xf0]  ;;  %5131 = vmatpush.bf16.msrb.mxu0 %v7525_v27  ;;  %v6454_v9 = vld [vmem:[%s9291_s11 + $0x3f0] sm:$0xf0] }
 0x195   : > { %v7508_v32 = vld [vmem:[%s9291_s11 + $0xc20] sm:$0xf]  ;;  %v7909_v36 = vor.u32 %v8495_v26, %v7908_v24  ;;  %v8427_v37 = vld [vmem:[%s9291_s11 + $0xd2c] sm:$0xf0]  ;;  %5144 = vmatpush.bf16.msrb.mxu1 %v7653_v28  ;;  %v8029_v17 = vld [vmem:[%s9291_s11 + $0xc4] sm:$0xf]  ;;  %v6457_v22 = vor.u32 %v8129_v8, %v6454_v9  ;;  %v9625_v28 = vpack.c.b16 %v2376_v10, %v2376_v10 }
 0x196   : > { %v7636_v35 = vld [vmem:[%s9291_s11 + $0xd20] sm:$0xf]  ;;  %v8459_v40 = vld [vmem:[%s9291_s11 + $0xe2c] sm:$0xf0]  ;;  %v7509_v47 = vor.u32 %v8395_v34, %v7508_v32  ;;  %5157 = vmatpush.bf16.msrb.mxu2 %v7781_v31  ;;  %v6054_v18 = vld [vmem:[%s9291_s11 + $0xd0] sm:$0xf0] }
 0x197   : > { %v7764_v39 = vld [vmem:[%s9291_s11 + $0xe20] sm:$0xf]  ;;  %v8491_v45 = vld [vmem:[%s9291_s11 + $0xf2c] sm:$0xf0]  ;;  %v7637_v51 = vor.u32 %v8427_v37, %v7636_v35  ;;  %5170 = vmatpush.bf16.msrb.mxu3 %v7909_v36  ;;  %v8061_v19 = vld [vmem:[%s9291_s11 + $0x1c4] sm:$0xf]  ;;  %v9631_v35 = vpack.c.b16 %v2377_v14, %v2377_v14  ;;  %v6057_v36 = vor.u32 %v8029_v17, %v6054_v18 }
 0x198   : > { %v7892_v43 = vld [vmem:[%s9291_s11 + $0xf20] sm:$0xf]  ;;  %v8391_v48 = vld [vmem:[%s9291_s11 + $0xc0c] sm:$0xf0]  ;;  %v7765_v52 = vor.u32 %v8459_v40, %v7764_v39  ;;  %5132 = vmatpush.bf16.msrb.mxu0 %v7509_v47  ;;  %v6182_v24 = vld [vmem:[%s9291_s11 + $0x1d0] sm:$0xf0] }
 0x199   : > { %v7492_v46 = vld [vmem:[%s9291_s11 + $0xc00] sm:$0xf]  ;;  %v8423_v50 = vld [vmem:[%s9291_s11 + $0xd0c] sm:$0xf0]  ;;  %v7893_v56 = vor.u32 %v8491_v45, %v7892_v43  ;;  %5145 = vmatpush.bf16.msrb.mxu1 %v7637_v51  ;;  %v8093_v26 = vld [vmem:[%s9291_s11 + $0x2c4] sm:$0xf]  ;;  %v6185_v37 = vor.u32 %v8061_v19, %v6182_v24 }
 0x19a   : > { %v7620_v49 = vld [vmem:[%s9291_s11 + $0xd00] sm:$0xf]  ;;  %v8455_v54 = vld [vmem:[%s9291_s11 + $0xe0c] sm:$0xf0]  ;;  %v7493_v63 = vor.u32 %v8391_v48, %v7492_v46  ;;  %5158 = vmatpush.bf16.msrb.mxu2 %v7765_v52  ;;  %v6310_v27 = vld [vmem:[%s9291_s11 + $0x2d0] sm:$0xf0] }
 0x19b   : > { %v7748_v53 = vld [vmem:[%s9291_s11 + $0xe00] sm:$0xf]  ;;  %v1830_v55 = vld [vmem:[%s10578_s0 + $0x30] sm:$0xff]  ;;  %v7621_v5 = vor.u32 %v8423_v50, %v7620_v49  ;;  %5171 = vmatpush.bf16.msrb.mxu3 %v7893_v56  ;;  %v8125_v32 = vld [vmem:[%s9291_s11 + $0x3c4] sm:$0xf]  ;;  %v6313_v39 = vor.u32 %v8093_v26, %v6310_v27 }
 0x19c   : > { %v7876_v57 = vld [vmem:[%s9291_s11 + $0xf00] sm:$0xf]  ;;  %v8487_v58 = vld [vmem:[%s9291_s11 + $0xf0c] sm:$0xf0]  ;;  %v2374_v3 = vunpack.c.l.b16 %v1830_v55  ;;  %v7749_v7 = vor.u32 %v8455_v54, %v7748_v53  ;;  %v2375_v11 = vunpack.c.h.b16 %v1830_v55  ;;  %5133 = vmatpush.bf16.msrb.mxu0 %v7493_v63  ;;  %v6438_v34 = vld [vmem:[%s9291_s11 + $0x3d0] sm:$0xf0] }
 0x19d   : > { %v7877_v12 = vor.u32 %v8487_v58, %v7876_v57  ;;  %5146 = vmatpush.bf16.msrb.mxu1 %v7621_v5  ;;  %v8025_v40 = vld [vmem:[%s9291_s11 + $0xa4] sm:$0xf]  ;;  %v6038_v43 = vld [vmem:[%s9291_s11 + $0xb0] sm:$0xf0]  ;;  %v6441_v46 = vor.u32 %v8125_v32, %v6438_v34 }
 0x19e   : > { %v9620_v23 = vpack.c.b16 %v2374_v3, %v2374_v3  ;;  %5159 = vmatpush.bf16.msrb.mxu2 %v7749_v7  ;;  %v9627_v31 = vpack.c.b16 %v2375_v11, %v2375_v11  ;;  %v8057_v45 = vld [vmem:[%s9291_s11 + $0x1a4] sm:$0xf]  ;;  %v6166_v47 = vld [vmem:[%s9291_s11 + $0x1b0] sm:$0xf0]  ;;  %v6041_v52 = vor.u32 %v8025_v40, %v6038_v43 }
 0x19f   : > { %5172 = vmatpush.bf16.msrb.mxu3 %v7877_v12  ;;  %v8089_v48 = vld [vmem:[%s9291_s11 + $0x2a4] sm:$0xf]  ;;  %v6294_v49 = vld [vmem:[%s9291_s11 + $0x2b0] sm:$0xf0]  ;;  %v6169_v53 = vor.u32 %v8057_v45, %v6166_v47 }
 0x1a0   : > { %5178 = vmatpush.bf16.msra.mxu0 %v6073_v13  ;;  %5147 = vmatmul.bf16.vlgmr.msrb.gmra.mxu1 %v9627_v31  ;;  %v8121_v50 = vld [vmem:[%s9291_s11 + $0x3a4] sm:$0xf]  ;;  %v6422_v51 = vld [vmem:[%s9291_s11 + $0x3b0] sm:$0xf0]  ;;  %v6297_v54 = vor.u32 %v8089_v48, %v6294_v49 }
 0x1a1   : > { %5191 = vmatpush.bf16.msra.mxu1 %v6201_v15  ;;  %5134 = vmatmul.bf16.vlgmr.msrb.gmra.mxu0 %v9620_v23  ;;  %v8021_v55 = vld [vmem:[%s9291_s11 + $0x84] sm:$0xf]  ;;  %v6022_v56 = vld [vmem:[%s9291_s11 + $0x90] sm:$0xf0]  ;;  %v6425_v58 = vor.u32 %v8121_v50, %v6422_v51 }
 0x1a2   : > { %5204 = vmatpush.bf16.msra.mxu2 %v6329_v16  ;;  %5173 = vmatmul.bf16.vlgmr.msrb.gmra.mxu3 %v9631_v35  ;;  %v8053_v57 = vld [vmem:[%s9291_s11 + $0x184] sm:$0xf]  ;;  %v6150_v59 = vld [vmem:[%s9291_s11 + $0x190] sm:$0xf0]  ;;  %v6025_v0 = vor.u32 %v8021_v55, %v6022_v56 }
 0x1a3   : > { %5217 = vmatpush.bf16.msra.mxu3 %v6457_v22  ;;  %5160 = vmatmul.bf16.vlgmr.msrb.gmra.mxu2 %v9625_v28  ;;  %v8085_v60 = vld [vmem:[%s9291_s11 + $0x284] sm:$0xf]  ;;  %v6278_v61 = vld [vmem:[%s9291_s11 + $0x290] sm:$0xf0]  ;;  %v6153_v1 = vor.u32 %v8053_v57, %v6150_v59 }
 0x1a4   : > { %5179 = vmatpush.bf16.msra.mxu0 %v6057_v36  ;;  %v8117_v62 = vld [vmem:[%s9291_s11 + $0x384] sm:$0xf]  ;;  %v6406_v63 = vld [vmem:[%s9291_s11 + $0x390] sm:$0xf0]  ;;  %v6281_v2 = vor.u32 %v8085_v60, %v6278_v61 }
 0x1a5   : > { %5192 = vmatpush.bf16.msra.mxu1 %v6185_v37  ;;  %v8017_v3 = vld [vmem:[%s9291_s11 + $0x64] sm:$0xf]  ;;  %v6006_v5 = vld [vmem:[%s9291_s11 + $0x70] sm:$0xf0]  ;;  %v6409_v8 = vor.u32 %v8117_v62, %v6406_v63 }
 0x1a6   : > { %5205 = vmatpush.bf16.msra.mxu2 %v6313_v39  ;;  %v8049_v7 = vld [vmem:[%s9291_s11 + $0x164] sm:$0xf]  ;;  %v6134_v9 = vld [vmem:[%s9291_s11 + $0x170] sm:$0xf0]  ;;  %v6009_v14 = vor.u32 %v8017_v3, %v6006_v5 }
 0x1a7   : > { %5218 = vmatpush.bf16.msra.mxu3 %v6441_v46  ;;  %v8081_v10 = vld [vmem:[%s9291_s11 + $0x264] sm:$0xf]  ;;  %v6262_v11 = vld [vmem:[%s9291_s11 + $0x270] sm:$0xf0]  ;;  %v6137_v15 = vor.u32 %v8049_v7, %v6134_v9 }
 0x1a8   : > { %5180 = vmatpush.bf16.msra.mxu0 %v6041_v52  ;;  %v8113_v12 = vld [vmem:[%s9291_s11 + $0x364] sm:$0xf]  ;;  %v6390_v13 = vld [vmem:[%s9291_s11 + $0x370] sm:$0xf0]  ;;  %v6265_v16 = vor.u32 %v8081_v10, %v6262_v11 }
 0x1a9   : > { %5193 = vmatpush.bf16.msra.mxu1 %v6169_v53  ;;  %v8013_v17 = vld [vmem:[%s9291_s11 + $0x44] sm:$0xf]  ;;  %v5990_v18 = vld [vmem:[%s9291_s11 + $0x50] sm:$0xf0]  ;;  %v6393_v22 = vor.u32 %v8113_v12, %v6390_v13 }
 0x1aa   : > { %5206 = vmatpush.bf16.msra.mxu2 %v6297_v54  ;;  %v8045_v19 = vld [vmem:[%s9291_s11 + $0x144] sm:$0xf]  ;;  %v6118_v24 = vld [vmem:[%s9291_s11 + $0x150] sm:$0xf0]  ;;  %v5993_v36 = vor.u32 %v8013_v17, %v5990_v18 }
 0x1ab   : > { %5219 = vmatpush.bf16.msra.mxu3 %v6425_v58  ;;  %v8077_v26 = vld [vmem:[%s9291_s11 + $0x244] sm:$0xf]  ;;  %v6246_v27 = vld [vmem:[%s9291_s11 + $0x250] sm:$0xf0]  ;;  %v6121_v37 = vor.u32 %v8045_v19, %v6118_v24 }
 0x1ac   : > { %5181 = vmatpush.bf16.msra.mxu0 %v6025_v0  ;;  %v8109_v32 = vld [vmem:[%s9291_s11 + $0x344] sm:$0xf]  ;;  %v6374_v34 = vld [vmem:[%s9291_s11 + $0x350] sm:$0xf0]  ;;  %v6249_v39 = vor.u32 %v8077_v26, %v6246_v27 }
 0x1ad   : > { %5194 = vmatpush.bf16.msra.mxu1 %v6153_v1  ;;  %v8009_v40 = vld [vmem:[%s9291_s11 + $0x24] sm:$0xf]  ;;  %v5974_v43 = vld [vmem:[%s9291_s11 + $0x30] sm:$0xf0]  ;;  %v6377_v46 = vor.u32 %v8109_v32, %v6374_v34 }
 0x1ae   : > { %5207 = vmatpush.bf16.msra.mxu2 %v6281_v2  ;;  %v8041_v45 = vld [vmem:[%s9291_s11 + $0x124] sm:$0xf]  ;;  %v6102_v47 = vld [vmem:[%s9291_s11 + $0x130] sm:$0xf0]  ;;  %v5977_v52 = vor.u32 %v8009_v40, %v5974_v43 }
 0x1af   : > { %5220 = vmatpush.bf16.msra.mxu3 %v6409_v8  ;;  %v8073_v48 = vld [vmem:[%s9291_s11 + $0x224] sm:$0xf]  ;;  %v6230_v49 = vld [vmem:[%s9291_s11 + $0x230] sm:$0xf0]  ;;  %v6105_v55 = vor.u32 %v8041_v45, %v6102_v47 }
 0x1b0   : > { %5182 = vmatpush.bf16.msra.mxu0 %v6009_v14  ;;  %v8105_v50 = vld [vmem:[%s9291_s11 + $0x324] sm:$0xf]  ;;  %v6358_v51 = vld [vmem:[%s9291_s11 + $0x330] sm:$0xf0]  ;;  %v6233_v56 = vor.u32 %v8073_v48, %v6230_v49 }
 0x1b1   : > { %5195 = vmatpush.bf16.msra.mxu1 %v6137_v15  ;;  %v8005_v53 = vld [vmem:[%s9291_s11 + $0x4] sm:$0xf]  ;;  %v5958_v54 = vld [vmem:[%s9291_s11 + $0x10] sm:$0xf0]  ;;  %v6361_v60 = vor.u32 %v8105_v50, %v6358_v51 }
 0x1b2   : > { %5208 = vmatpush.bf16.msra.mxu2 %v6265_v16  ;;  %v8037_v57 = vld [vmem:[%s9291_s11 + $0x104] sm:$0xf]  ;;  %v6086_v58 = vld [vmem:[%s9291_s11 + $0x110] sm:$0xf0]  ;;  %v5961_v3 = vor.u32 %v8005_v53, %v5958_v54 }
 0x1b3   : > { %5221 = vmatpush.bf16.msra.mxu3 %v6393_v22  ;;  %v8069_v59 = vld [vmem:[%s9291_s11 + $0x204] sm:$0xf]  ;;  %v6214_v61 = vld [vmem:[%s9291_s11 + $0x210] sm:$0xf0]  ;;  %v6089_v9 = vor.u32 %v8037_v57, %v6086_v58 }
 0x1b4   : > { %5183 = vmatpush.bf16.msra.mxu0 %v5993_v36  ;;  %v8101_v62 = vld [vmem:[%s9291_s11 + $0x304] sm:$0xf]  ;;  %v6342_v63 = vld [vmem:[%s9291_s11 + $0x310] sm:$0xf0]  ;;  %v6217_v10 = vor.u32 %v8069_v59, %v6214_v61 }
 0x1b5   : > { %5196 = vmatpush.bf16.msra.mxu1 %v6121_v37  ;;  %v8161_v0 = vld [vmem:[%s9291_s11 + $0x4e4] sm:$0xf]  ;;  %v6582_v1 = vld [vmem:[%s9291_s11 + $0x4f0] sm:$0xf0]  ;;  %v6345_v13 = vor.u32 %v8101_v62, %v6342_v63 }
 0x1b6   : > { %5209 = vmatpush.bf16.msra.mxu2 %v6249_v39  ;;  %v8193_v2 = vld [vmem:[%s9291_s11 + $0x5e4] sm:$0xf]  ;;  %v6710_v5 = vld [vmem:[%s9291_s11 + $0x5f0] sm:$0xf0]  ;;  %v6585_v14 = vor.u32 %v8161_v0, %v6582_v1 }
 0x1b7   : > { %5222 = vmatpush.bf16.msra.mxu3 %v6377_v46  ;;  %v8225_v7 = vld [vmem:[%s9291_s11 + $0x6e4] sm:$0xf]  ;;  %v6838_v8 = vld [vmem:[%s9291_s11 + $0x6f0] sm:$0xf0]  ;;  %v6713_v15 = vor.u32 %v8193_v2, %v6710_v5 }
 0x1b8   : > { %5184 = vmatpush.bf16.msra.mxu0 %v5977_v52  ;;  %v8257_v11 = vld [vmem:[%s9291_s11 + $0x7e4] sm:$0xf]  ;;  %v6966_v12 = vld [vmem:[%s9291_s11 + $0x7f0] sm:$0xf0]  ;;  %v6841_v16 = vor.u32 %v8225_v7, %v6838_v8 }
 0x1b9   : > { %5197 = vmatpush.bf16.msra.mxu1 %v6105_v55  ;;  %v8157_v17 = vld [vmem:[%s9291_s11 + $0x4c4] sm:$0xf]  ;;  %v6566_v18 = vld [vmem:[%s9291_s11 + $0x4d0] sm:$0xf0]  ;;  %v6969_v22 = vor.u32 %v8257_v11, %v6966_v12 }
 0x1ba   : > { %5210 = vmatpush.bf16.msra.mxu2 %v6233_v56  ;;  %v8189_v19 = vld [vmem:[%s9291_s11 + $0x5c4] sm:$0xf]  ;;  %v6694_v24 = vld [vmem:[%s9291_s11 + $0x5d0] sm:$0xf0]  ;;  %v6569_v36 = vor.u32 %v8157_v17, %v6566_v18 }
 0x1bb   : > { %5223 = vmatpush.bf16.msra.mxu3 %v6361_v60  ;;  %v8221_v26 = vld [vmem:[%s9291_s11 + $0x6c4] sm:$0xf]  ;;  %v6822_v27 = vld [vmem:[%s9291_s11 + $0x6d0] sm:$0xf0]  ;;  %v6697_v37 = vor.u32 %v8189_v19, %v6694_v24 }
 0x1bc   : > { %5185 = vmatpush.bf16.msra.mxu0 %v5961_v3  ;;  %v8253_v32 = vld [vmem:[%s9291_s11 + $0x7c4] sm:$0xf]  ;;  %v6950_v34 = vld [vmem:[%s9291_s11 + $0x7d0] sm:$0xf0]  ;;  %v6825_v39 = vor.u32 %v8221_v26, %v6822_v27 }
 0x1bd   : > { %5198 = vmatpush.bf16.msra.mxu1 %v6089_v9  ;;  %v8153_v40 = vld [vmem:[%s9291_s11 + $0x4a4] sm:$0xf]  ;;  %v6550_v43 = vld [vmem:[%s9291_s11 + $0x4b0] sm:$0xf0]  ;;  %v6953_v46 = vor.u32 %v8253_v32, %v6950_v34 }
 0x1be   : > { %5211 = vmatpush.bf16.msra.mxu2 %v6217_v10  ;;  %v8185_v45 = vld [vmem:[%s9291_s11 + $0x5a4] sm:$0xf]  ;;  %v6678_v47 = vld [vmem:[%s9291_s11 + $0x5b0] sm:$0xf0]  ;;  %v6553_v52 = vor.u32 %v8153_v40, %v6550_v43 }
 0x1bf   : > { %5224 = vmatpush.bf16.msra.mxu3 %v6345_v13  ;;  %v8217_v48 = vld [vmem:[%s9291_s11 + $0x6a4] sm:$0xf]  ;;  %v6806_v49 = vld [vmem:[%s9291_s11 + $0x6b0] sm:$0xf0]  ;;  %5186 = vmatmul.bf16.vlgmr.msra.gmra.mxu0 %v9400_v20  ;;  %v6681_v53 = vor.u32 %v8185_v45, %v6678_v47 }
 0x1c0   : > { %5230 = vmatpush.bf16.msrb.mxu0 %v6585_v14  ;;  %v8249_v50 = vld [vmem:[%s9291_s11 + $0x7a4] sm:$0xf]  ;;  %v6934_v51 = vld [vmem:[%s9291_s11 + $0x7b0] sm:$0xf0]  ;;  %5199 = vmatmul.bf16.vlgmr.msra.gmra.mxu1 %v9403_v21  ;;  %v6809_v54 = vor.u32 %v8217_v48, %v6806_v49 }
 0x1c1   : > { %5243 = vmatpush.bf16.msrb.mxu1 %v6713_v15  ;;  %5212 = vmatmul.bf16.vlgmr.msra.gmra.mxu2 %v9384_v4  ;;  %v8149_v55 = vld [vmem:[%s9291_s11 + $0x484] sm:$0xf]  ;;  %v6534_v56 = vld [vmem:[%s9291_s11 + $0x490] sm:$0xf0]  ;;  %v6937_v58 = vor.u32 %v8249_v50, %v6934_v51 }
 0x1c2   : > { %5256 = vmatpush.bf16.msrb.mxu2 %v6841_v16  ;;  %5225 = vmatmul.bf16.vlgmr.msra.gmra.mxu3 %v9389_v6  ;;  %v8181_v57 = vld [vmem:[%s9291_s11 + $0x584] sm:$0xf]  ;;  %v6662_v59 = vld [vmem:[%s9291_s11 + $0x590] sm:$0xf0]  ;;  %v6537_v0 = vor.u32 %v8149_v55, %v6534_v56  ;;  %v9744_v48 = vpop.f32.mrf.mxu2 }
 0x1c3   : > { %5269 = vmatpush.bf16.msrb.mxu3 %v6969_v22  ;;  %v8213_v60 = vld [vmem:[%s9291_s11 + $0x684] sm:$0xf]  ;;  %v6790_v61 = vld [vmem:[%s9291_s11 + $0x690] sm:$0xf0]  ;;  %v6665_v1 = vor.u32 %v8181_v57, %v6662_v59 }
 0x1c4   : > { %5231 = vmatpush.bf16.msrb.mxu0 %v6569_v36  ;;  %v8245_v62 = vld [vmem:[%s9291_s11 + $0x784] sm:$0xf]  ;;  %v6918_v63 = vld [vmem:[%s9291_s11 + $0x790] sm:$0xf0]  ;;  %v6793_v2 = vor.u32 %v8213_v60, %v6790_v61 }
 0x1c5   : > { %5244 = vmatpush.bf16.msrb.mxu1 %v6697_v37  ;;  %v8145_v3 = vld [vmem:[%s9291_s11 + $0x464] sm:$0xf]  ;;  %v6518_v5 = vld [vmem:[%s9291_s11 + $0x470] sm:$0xf0]  ;;  %v6921_v8 = vor.u32 %v8245_v62, %v6918_v63 }
 0x1c6   : > { %5257 = vmatpush.bf16.msrb.mxu2 %v6825_v39  ;;  %v8177_v7 = vld [vmem:[%s9291_s11 + $0x564] sm:$0xf]  ;;  %v6646_v9 = vld [vmem:[%s9291_s11 + $0x570] sm:$0xf0]  ;;  %v6521_v14 = vor.u32 %v8145_v3, %v6518_v5 }
 0x1c7   : > { %5270 = vmatpush.bf16.msrb.mxu3 %v6953_v46  ;;  %v8209_v10 = vld [vmem:[%s9291_s11 + $0x664] sm:$0xf]  ;;  %v6774_v11 = vld [vmem:[%s9291_s11 + $0x670] sm:$0xf0]  ;;  %v6649_v15 = vor.u32 %v8177_v7, %v6646_v9 }
 0x1c8   : > { %5232 = vmatpush.bf16.msrb.mxu0 %v6553_v52  ;;  %v8241_v12 = vld [vmem:[%s9291_s11 + $0x764] sm:$0xf]  ;;  %v6902_v13 = vld [vmem:[%s9291_s11 + $0x770] sm:$0xf0]  ;;  %v6777_v16 = vor.u32 %v8209_v10, %v6774_v11 }
 0x1c9   : > { %5245 = vmatpush.bf16.msrb.mxu1 %v6681_v53  ;;  %v8141_v17 = vld [vmem:[%s9291_s11 + $0x444] sm:$0xf]  ;;  %v6502_v18 = vld [vmem:[%s9291_s11 + $0x450] sm:$0xf0]  ;;  %v6905_v22 = vor.u32 %v8241_v12, %v6902_v13  ;;  %v9737_v36 = vpop.f32.mrf.mxu0  ;;  %v9739_v39 = vpop.f32.mrf.mxu1 }
 0x1ca   : > { %5258 = vmatpush.bf16.msrb.mxu2 %v6809_v54  ;;  %v8173_v19 = vld [vmem:[%s9291_s11 + $0x544] sm:$0xf]  ;;  %v6630_v24 = vld [vmem:[%s9291_s11 + $0x550] sm:$0xf0]  ;;  %v6505_v37 = vor.u32 %v8141_v17, %v6502_v18  ;;  %v9749_v53 = vpop.f32.mrf.mxu3 }
 0x1cb   : > { %5271 = vmatpush.bf16.msrb.mxu3 %v6937_v58  ;;  %v8205_v26 = vld [vmem:[%s9291_s11 + $0x644] sm:$0xf]  ;;  %v6758_v27 = vld [vmem:[%s9291_s11 + $0x650] sm:$0xf0]  ;;  %v6633_v40 = vor.u32 %v8173_v19, %v6630_v24  ;;  %v5007_v19 = vpop.f32.mrf.mxu2 }
 0x1cc   : > { %5233 = vmatpush.bf16.msrb.mxu0 %v6537_v0  ;;  %v8237_v32 = vld [vmem:[%s9291_s11 + $0x744] sm:$0xf]  ;;  %v6886_v34 = vld [vmem:[%s9291_s11 + $0x750] sm:$0xf0]  ;;  %v6761_v43 = vor.u32 %v8205_v26, %v6758_v27 }
 0x1cd   : > { %5246 = vmatpush.bf16.msrb.mxu1 %v6665_v1  ;;  %v8137_v45 = vld [vmem:[%s9291_s11 + $0x424] sm:$0xf]  ;;  %v6486_v46 = vld [vmem:[%s9291_s11 + $0x430] sm:$0xf0]  ;;  %v6889_v49 = vor.u32 %v8237_v32, %v6886_v34 }
 0x1ce   : > { %5259 = vmatpush.bf16.msrb.mxu2 %v6793_v2  ;;  %v8169_v47 = vld [vmem:[%s9291_s11 + $0x524] sm:$0xf]  ;;  %v6614_v50 = vld [vmem:[%s9291_s11 + $0x530] sm:$0xf0]  ;;  %v6489_v56 = vor.u32 %v8137_v45, %v6486_v46 }
 0x1cf   : > { %5272 = vmatpush.bf16.msrb.mxu3 %v6921_v8  ;;  %v8201_v51 = vld [vmem:[%s9291_s11 + $0x624] sm:$0xf]  ;;  %v6742_v52 = vld [vmem:[%s9291_s11 + $0x630] sm:$0xf0]  ;;  %v6617_v59 = vor.u32 %v8169_v47, %v6614_v50 }
 0x1d0   : > { %5234 = vmatpush.bf16.msrb.mxu0 %v6521_v14  ;;  %v8233_v54 = vld [vmem:[%s9291_s11 + $0x724] sm:$0xf]  ;;  %v6870_v55 = vld [vmem:[%s9291_s11 + $0x730] sm:$0xf0]  ;;  %v6745_v60 = vor.u32 %v8201_v51, %v6742_v52 }
 0x1d1   : > { %5247 = vmatpush.bf16.msrb.mxu1 %v6649_v15  ;;  %v8133_v57 = vld [vmem:[%s9291_s11 + $0x404] sm:$0xf]  ;;  %v6470_v58 = vld [vmem:[%s9291_s11 + $0x410] sm:$0xf0]  ;;  %v6873_v0 = vor.u32 %v8233_v54, %v6870_v55  ;;  %v4981_v9 = vpop.f32.mrf.mxu0  ;;  %v4994_v14 = vpop.f32.mrf.mxu1 }
 0x1d2   : > { %5260 = vmatpush.bf16.msrb.mxu2 %v6777_v16  ;;  %v8165_v61 = vld [vmem:[%s9291_s11 + $0x504] sm:$0xf]  ;;  %v6598_v62 = vld [vmem:[%s9291_s11 + $0x510] sm:$0xf0]  ;;  %v6473_v10 = vor.u32 %v8133_v57, %v6470_v58  ;;  %v5020_v26 = vpop.f32.mrf.mxu3 }
 0x1d3   : > { %5273 = vmatpush.bf16.msrb.mxu3 %v6905_v22  ;;  %v8197_v63 = vld [vmem:[%s9291_s11 + $0x604] sm:$0xf]  ;;  %v6726_v1 = vld [vmem:[%s9291_s11 + $0x610] sm:$0xf0]  ;;  %v6601_v15 = vor.u32 %v8165_v61, %v6598_v62 }
 0x1d4   : > { %5235 = vmatpush.bf16.msrb.mxu0 %v6505_v37  ;;  %v8229_v2 = vld [vmem:[%s9291_s11 + $0x704] sm:$0xf]  ;;  %v6854_v3 = vld [vmem:[%s9291_s11 + $0x710] sm:$0xf0]  ;;  %v6729_v16 = vor.u32 %v8197_v63, %v6726_v1 }
 0x1d5   : > { %5248 = vmatpush.bf16.msrb.mxu1 %v6633_v40  ;;  %v8289_v5 = vld [vmem:[%s9291_s11 + $0x8e4] sm:$0xf]  ;;  %v7094_v7 = vld [vmem:[%s9291_s11 + $0x8f0] sm:$0xf0]  ;;  %v6857_v22 = vor.u32 %v8229_v2, %v6854_v3 }
 0x1d6   : > { %5261 = vmatpush.bf16.msrb.mxu2 %v6761_v43  ;;  %v8321_v8 = vld [vmem:[%s9291_s11 + $0x9e4] sm:$0xf]  ;;  %v7222_v11 = vld [vmem:[%s9291_s11 + $0x9f0] sm:$0xf0]  ;;  %v7097_v24 = vor.u32 %v8289_v5, %v7094_v7 }
 0x1d7   : > { %5274 = vmatpush.bf16.msrb.mxu3 %v6889_v49  ;;  %v8353_v12 = vld [vmem:[%s9291_s11 + $0xae4] sm:$0xf]  ;;  %v7350_v13 = vld [vmem:[%s9291_s11 + $0xaf0] sm:$0xf0]  ;;  %v7225_v27 = vor.u32 %v8321_v8, %v7222_v11 }
 0x1d8   : > { %5236 = vmatpush.bf16.msrb.mxu0 %v6489_v56  ;;  %v8385_v17 = vld [vmem:[%s9291_s11 + $0xbe4] sm:$0xf]  ;;  %v7478_v18 = vld [vmem:[%s9291_s11 + $0xbf0] sm:$0xf0]  ;;  %v7353_v32 = vor.u32 %v8353_v12, %v7350_v13 }
 0x1d9   : > { %5249 = vmatpush.bf16.msrb.mxu1 %v6617_v59  ;;  %v8285_v34 = vld [vmem:[%s9291_s11 + $0x8c4] sm:$0xf]  ;;  %v7078_v37 = vld [vmem:[%s9291_s11 + $0x8d0] sm:$0xf0]  ;;  %v7481_v43 = vor.u32 %v8385_v17, %v7478_v18 }
 0x1da   : > { %5262 = vmatpush.bf16.msrb.mxu2 %v6745_v60  ;;  %v8317_v40 = vld [vmem:[%s9291_s11 + $0x9c4] sm:$0xf]  ;;  %v7206_v45 = vld [vmem:[%s9291_s11 + $0x9d0] sm:$0xf0]  ;;  %v7081_v51 = vor.u32 %v8285_v34, %v7078_v37 }
 0x1db   : > { %5275 = vmatpush.bf16.msrb.mxu3 %v6873_v0  ;;  %v8349_v46 = vld [vmem:[%s9291_s11 + $0xac4] sm:$0xf]  ;;  %v7334_v47 = vld [vmem:[%s9291_s11 + $0xad0] sm:$0xf0]  ;;  %v7209_v52 = vor.u32 %v8317_v40, %v7206_v45 }
 0x1dc   : > { %5237 = vmatpush.bf16.msrb.mxu0 %v6473_v10  ;;  %v8381_v49 = vld [vmem:[%s9291_s11 + $0xbc4] sm:$0xf]  ;;  %v7462_v50 = vld [vmem:[%s9291_s11 + $0xbd0] sm:$0xf0]  ;;  %v7337_v54 = vor.u32 %v8349_v46, %v7334_v47 }
 0x1dd   : > { %5250 = vmatpush.bf16.msrb.mxu1 %v6601_v15  ;;  %v8281_v55 = vld [vmem:[%s9291_s11 + $0x8a4] sm:$0xf]  ;;  %v7062_v56 = vld [vmem:[%s9291_s11 + $0x8b0] sm:$0xf0]  ;;  %v7465_v58 = vor.u32 %v8381_v49, %v7462_v50  ;;  %v9810_v15 = vpop.f32.mrf.mxu0 }
 0x1de   : > { %5263 = vmatpush.bf16.msrb.mxu2 %v6729_v16  ;;  %v8313_v57 = vld [vmem:[%s9291_s11 + $0x9a4] sm:$0xf]  ;;  %v7190_v59 = vld [vmem:[%s9291_s11 + $0x9b0] sm:$0xf0]  ;;  %v7065_v0 = vor.u32 %v8281_v55, %v7062_v56 }
 0x1df   : > { %5276 = vmatpush.bf16.msrb.mxu3 %v6857_v22  ;;  %v8345_v60 = vld [vmem:[%s9291_s11 + $0xaa4] sm:$0xf]  ;;  %v7318_v61 = vld [vmem:[%s9291_s11 + $0xab0] sm:$0xf0]  ;;  %5238 = vmatmul.bf16.vlgmr.msrb.gmra.mxu0 %v9463_v41  ;;  %v7193_v1 = vor.u32 %v8313_v57, %v7190_v59 }
 0x1e0   : > { %5282 = vmatpush.bf16.msra.mxu0 %v7097_v24  ;;  %v8377_v62 = vld [vmem:[%s9291_s11 + $0xba4] sm:$0xf]  ;;  %v7446_v63 = vld [vmem:[%s9291_s11 + $0xbb0] sm:$0xf0]  ;;  %5251 = vmatmul.bf16.vlgmr.msrb.gmra.mxu1 %v9467_v44  ;;  %v7321_v2 = vor.u32 %v8345_v60, %v7318_v61  ;;  %v9815_v24 = vpop.f32.mrf.mxu1  ;;  %v9841_v60 = vld [vmem:[%s9826_s10] sm:$0xf] }
 0x1e1   : > { %5295 = vmatpush.bf16.msra.mxu1 %v7225_v27  ;;  %5264 = vmatmul.bf16.vlgmr.msrb.gmra.mxu2 %v9459_v38  ;;  %v8277_v3 = vld [vmem:[%s9291_s11 + $0x884] sm:$0xf]  ;;  %v7046_v5 = vld [vmem:[%s9291_s11 + $0x890] sm:$0xf0]  ;;  %v7449_v8 = vor.u32 %v8377_v62, %v7446_v63 }
 0x1e2   : > { %5308 = vmatpush.bf16.msra.mxu2 %v7353_v32  ;;  %5277 = vmatmul.bf16.vlgmr.msrb.gmra.mxu3 %v9465_v42  ;;  %v8309_v7 = vld [vmem:[%s9291_s11 + $0x984] sm:$0xf]  ;;  %v7174_v9 = vld [vmem:[%s9291_s11 + $0x990] sm:$0xf0]  ;;  %v7049_v14 = vor.u32 %v8277_v3, %v7046_v5 }
 0x1e3   : > { %5321 = vmatpush.bf16.msra.mxu3 %v7481_v43  ;;  %v8341_v10 = vld [vmem:[%s9291_s11 + $0xa84] sm:$0xf]  ;;  %v7302_v11 = vld [vmem:[%s9291_s11 + $0xa90] sm:$0xf0]  ;;  %v7177_v16 = vor.u32 %v8309_v7, %v7174_v9 }
 0x1e4   : > { %5283 = vmatpush.bf16.msra.mxu0 %v7081_v51  ;;  %v8373_v12 = vld [vmem:[%s9291_s11 + $0xb84] sm:$0xf]  ;;  %v7430_v13 = vld [vmem:[%s9291_s11 + $0xb90] sm:$0xf0]  ;;  %v7305_v17 = vor.u32 %v8341_v10, %v7302_v11  ;;  %v9831_v51 = vpop.f32.mrf.mxu2 }
 0x1e5   : > { %5296 = vmatpush.bf16.msra.mxu1 %v7209_v52  ;;  %v8273_v18 = vld [vmem:[%s9291_s11 + $0x864] sm:$0xf]  ;;  %v7030_v19 = vld [vmem:[%s9291_s11 + $0x870] sm:$0xf0]  ;;  %v7433_v26 = vor.u32 %v8373_v12, %v7430_v13  ;;  %v5033_v62 = vpop.f32.mrf.mxu0  ;;  %v2346_v13 = vperm.slane %v9841_v60, 0 }
 0x1e6   : > { %5309 = vmatpush.bf16.msra.mxu2 %v7337_v54  ;;  %v8305_v22 = vld [vmem:[%s9291_s11 + $0x964] sm:$0xf]  ;;  %v7158_v27 = vld [vmem:[%s9291_s11 + $0x970] sm:$0xf0]  ;;  %v7033_v43 = vor.u32 %v8273_v18, %v7030_v19  ;;  %v9836_v57 = vpop.f32.mrf.mxu3 }
 0x1e7   : > { %5322 = vmatpush.bf16.msra.mxu3 %v7465_v58  ;;  %v8337_v32 = vld [vmem:[%s9291_s11 + $0xa64] sm:$0xf]  ;;  %v7286_v34 = vld [vmem:[%s9291_s11 + $0xa70] sm:$0xf0]  ;;  %v7161_v45 = vor.u32 %v8305_v22, %v7158_v27 }
 0x1e8   : > { %5284 = vmatpush.bf16.msra.mxu0 %v7065_v0  ;;  %v8369_v37 = vld [vmem:[%s9291_s11 + $0xb64] sm:$0xf]  ;;  %v7414_v40 = vld [vmem:[%s9291_s11 + $0xb70] sm:$0xf0]  ;;  %v7289_v46 = vor.u32 %v8337_v32, %v7286_v34  ;;  %v5046_v5 = vpop.f32.mrf.mxu1 }
 0x1e9   : > { %5297 = vmatpush.bf16.msra.mxu1 %v7193_v1  ;;  %v8269_v47 = vld [vmem:[%s9291_s11 + $0x844] sm:$0xf]  ;;  %v7014_v49 = vld [vmem:[%s9291_s11 + $0x850] sm:$0xf0]  ;;  %v7417_v52 = vor.u32 %v8369_v37, %v7414_v40 }
 0x1ea   : > { %5310 = vmatpush.bf16.msra.mxu2 %v7321_v2  ;;  %v8301_v50 = vld [vmem:[%s9291_s11 + $0x944] sm:$0xf]  ;;  %v7142_v54 = vld [vmem:[%s9291_s11 + $0x950] sm:$0xf0]  ;;  %v7017_v61 = vor.u32 %v8269_v47, %v7014_v49 }
 0x1eb   : > { %5323 = vmatpush.bf16.msra.mxu3 %v7449_v8  ;;  %v8333_v55 = vld [vmem:[%s9291_s11 + $0xa44] sm:$0xf]  ;;  %v7270_v56 = vld [vmem:[%s9291_s11 + $0xa50] sm:$0xf0]  ;;  %v7145_v63 = vor.u32 %v8301_v50, %v7142_v54 }
 0x1ec   : > { %5285 = vmatpush.bf16.msra.mxu0 %v7049_v14  ;;  %v8365_v58 = vld [vmem:[%s9291_s11 + $0xb44] sm:$0xf]  ;;  %v7398_v59 = vld [vmem:[%s9291_s11 + $0xb50] sm:$0xf0]  ;;  %v7273_v0 = vor.u32 %v8333_v55, %v7270_v56  ;;  %v5059_v32 = vpop.f32.mrf.mxu2 }
 0x1ed   : > { %5298 = vmatpush.bf16.msra.mxu1 %v7177_v16  ;;  %v8265_v1 = vld [vmem:[%s9291_s11 + $0x824] sm:$0xf]  ;;  %v6998_v2 = vld [vmem:[%s9291_s11 + $0x830] sm:$0xf0]  ;;  %v7401_v7 = vor.u32 %v8365_v58, %v7398_v59 }
 0x1ee   : > { %5311 = vmatpush.bf16.msra.mxu2 %v7305_v17  ;;  %v8297_v3 = vld [vmem:[%s9291_s11 + $0x924] sm:$0xf]  ;;  %v7126_v8 = vld [vmem:[%s9291_s11 + $0x930] sm:$0xf0]  ;;  %v7001_v14 = vor.u32 %v8265_v1, %v6998_v2 }
 0x1ef   : > { %5324 = vmatpush.bf16.msra.mxu3 %v7433_v26  ;;  %v8329_v9 = vld [vmem:[%s9291_s11 + $0xa24] sm:$0xf]  ;;  %v7254_v10 = vld [vmem:[%s9291_s11 + $0xa30] sm:$0xf0]  ;;  %v7129_v18 = vor.u32 %v8297_v3, %v7126_v8 }
 0x1f0   : > { %5286 = vmatpush.bf16.msra.mxu0 %v7033_v43  ;;  %v8361_v11 = vld [vmem:[%s9291_s11 + $0xb24] sm:$0xf]  ;;  %v7382_v12 = vld [vmem:[%s9291_s11 + $0xb30] sm:$0xf0]  ;;  %v7257_v19 = vor.u32 %v8329_v9, %v7254_v10 }
 0x1f1   : > { %5299 = vmatpush.bf16.msra.mxu1 %v7161_v45  ;;  %v8261_v16 = vld [vmem:[%s9291_s11 + $0x804] sm:$0xf]  ;;  %v6982_v17 = vld [vmem:[%s9291_s11 + $0x810] sm:$0xf0]  ;;  %v7385_v34 = vor.u32 %v8361_v11, %v7382_v12  ;;  %v5072_v45 = vpop.f32.mrf.mxu3 }
 0x1f2   : > { %5312 = vmatpush.bf16.msra.mxu2 %v7289_v46  ;;  %v8293_v22 = vld [vmem:[%s9291_s11 + $0x904] sm:$0xf]  ;;  %v7110_v26 = vld [vmem:[%s9291_s11 + $0x910] sm:$0xf0]  ;;  %v6985_v50 = vor.u32 %v8261_v16, %v6982_v17 }
 0x1f3   : > { %5325 = vmatpush.bf16.msra.mxu3 %v7417_v52  ;;  %v8325_v27 = vld [vmem:[%s9291_s11 + $0xa04] sm:$0xf]  ;;  %v7238_v37 = vld [vmem:[%s9291_s11 + $0xa10] sm:$0xf0]  ;;  %v7113_v56 = vor.u32 %v8293_v22, %v7110_v26 }
 0x1f4   : > { %5287 = vmatpush.bf16.msra.mxu0 %v7017_v61  ;;  %v8357_v40 = vld [vmem:[%s9291_s11 + $0xb04] sm:$0xf]  ;;  %v7366_v43 = vld [vmem:[%s9291_s11 + $0xb10] sm:$0xf0]  ;;  %v7241_v58 = vor.u32 %v8325_v27, %v7238_v37 }
 0x1f5   : > { %5300 = vmatpush.bf16.msra.mxu1 %v7145_v63  ;;  %v8417_v46 = vld [vmem:[%s9291_s11 + $0xce4] sm:$0xf]  ;;  %v7606_v47 = vld [vmem:[%s9291_s11 + $0xcf0] sm:$0xf0]  ;;  %v7369_v62 = vor.u32 %v8357_v40, %v7366_v43 }
 0x1f6   : > { %5313 = vmatpush.bf16.msra.mxu2 %v7273_v0  ;;  %v8449_v49 = vld [vmem:[%s9291_s11 + $0xde4] sm:$0xf]  ;;  %v7734_v52 = vld [vmem:[%s9291_s11 + $0xdf0] sm:$0xf0]  ;;  %v7609_v63 = vor.u32 %v8417_v46, %v7606_v47  ;;  %v4980_v0 = vadd.f32 %v9737_v36, %v2346_v13 }
 0x1f7   : > { %5326 = vmatpush.bf16.msra.mxu3 %v7401_v7  ;;  %v8481_v54 = vld [vmem:[%s9291_s11 + $0xee4] sm:$0xf]  ;;  %v7862_v55 = vld [vmem:[%s9291_s11 + $0xef0] sm:$0xf0]  ;;  %v7737_v1 = vor.u32 %v8449_v49, %v7734_v52 }
 0x1f8   : > { %5288 = vmatpush.bf16.msra.mxu0 %v7001_v14  ;;  %v8513_v59 = vld [vmem:[%s9291_s11 + $0xfe4] sm:$0xf]  ;;  %v7990_v61 = vld [vmem:[%s9291_s11 + $0xff0] sm:$0xf0]  ;;  %v7865_v2 = vor.u32 %v8481_v54, %v7862_v55  ;;  %v4993_v13 = vadd.f32 %v9739_v39, %v4980_v0 }
 0x1f9   : > { %5301 = vmatpush.bf16.msra.mxu1 %v7129_v18  ;;  %v8413_v3 = vld [vmem:[%s9291_s11 + $0xcc4] sm:$0xf]  ;;  %v7590_v5 = vld [vmem:[%s9291_s11 + $0xcd0] sm:$0xf0]  ;;  %v7993_v8 = vor.u32 %v8513_v59, %v7990_v61 }
 0x1fa   : > { %5314 = vmatpush.bf16.msra.mxu2 %v7257_v19  ;;  %v8445_v7 = vld [vmem:[%s9291_s11 + $0xdc4] sm:$0xf]  ;;  %v7718_v9 = vld [vmem:[%s9291_s11 + $0xdd0] sm:$0xf0]  ;;  %v7593_v36 = vor.u32 %v8413_v3, %v7590_v5  ;;  %v5006_v43 = vadd.f32 %v9744_v48, %v4993_v13 }
 0x1fb   : > { %5327 = vmatpush.bf16.msra.mxu3 %v7385_v34  ;;  %v8477_v10 = vld [vmem:[%s9291_s11 + $0xec4] sm:$0xf]  ;;  %v7846_v11 = vld [vmem:[%s9291_s11 + $0xed0] sm:$0xf0]  ;;  %v7721_v16 = vor.u32 %v8445_v7, %v7718_v9 }
 0x1fc   : > { %5289 = vmatpush.bf16.msra.mxu0 %v6985_v50  ;;  %v8509_v12 = vld [vmem:[%s9291_s11 + $0xfc4] sm:$0xf]  ;;  %v7974_v14 = vld [vmem:[%s9291_s11 + $0xfd0] sm:$0xf0]  ;;  %v7849_v17 = vor.u32 %v8477_v10, %v7846_v11 }
 0x1fd   : > { %5302 = vmatpush.bf16.msra.mxu1 %v7113_v56  ;;  %v8409_v18 = vld [vmem:[%s9291_s11 + $0xca4] sm:$0xf]  ;;  %v7574_v19 = vld [vmem:[%s9291_s11 + $0xcb0] sm:$0xf0]  ;;  %v7977_v26 = vor.u32 %v8509_v12, %v7974_v14 }
 0x1fe   : > { %5315 = vmatpush.bf16.msra.mxu2 %v7241_v58  ;;  %v8441_v22 = vld [vmem:[%s9291_s11 + $0xda4] sm:$0xf]  ;;  %v7702_v27 = vld [vmem:[%s9291_s11 + $0xdb0] sm:$0xf0]  ;;  %v7577_v40 = vor.u32 %v8409_v18, %v7574_v19  ;;  %v9897_v58 = vpop.f32.mrf.mxu0 }
 0x1ff   : > { %5328 = vmatpush.bf16.msra.mxu3 %v7369_v62  ;;  %5290 = vmatmul.bf16.vlgmr.msra.gmra.mxu0 %v9538_v25  ;;  %v8473_v32 = vld [vmem:[%s9291_s11 + $0xea4] sm:$0xf]  ;;  %v7830_v34 = vld [vmem:[%s9291_s11 + $0xeb0] sm:$0xf0]  ;;  %v7705_v45 = vor.u32 %v8441_v22, %v7702_v27  ;;  %v9901_v62 = vpop.f32.mrf.mxu1 }
 0x200   : > { %5334 = vmatpush.bf16.msrb.mxu0 %v7609_v63  ;;  %5303 = vmatmul.bf16.vlgmr.msra.gmra.mxu1 %v9545_v30  ;;  %v8505_v39 = vld [vmem:[%s9291_s11 + $0xfa4] sm:$0xf]  ;;  %v7958_v37 = vld [vmem:[%s9291_s11 + $0xfb0] sm:$0xf0]  ;;  %v7833_v46 = vor.u32 %v8473_v32, %v7830_v34  ;;  %v5019_v63 = vadd.f32 %v9749_v53, %v5006_v43 }
 0x201   : > { %5347 = vmatpush.bf16.msrb.mxu1 %v7737_v1  ;;  %5316 = vmatmul.bf16.vlgmr.msra.gmra.mxu2 %v9543_v29  ;;  %v8405_v47 = vld [vmem:[%s9291_s11 + $0xc84] sm:$0xf]  ;;  %v7558_v49 = vld [vmem:[%s9291_s11 + $0xc90] sm:$0xf0]  ;;  %v7961_v52 = vor.u32 %v8505_v39, %v7958_v37 }
 0x202   : > { %5360 = vmatpush.bf16.msrb.mxu2 %v7865_v2  ;;  %5329 = vmatmul.bf16.vlgmr.msra.gmra.mxu3 %v9549_v33  ;;  %v8437_v50 = vld [vmem:[%s9291_s11 + $0xd84] sm:$0xf]  ;;  %v7686_v54 = vld [vmem:[%s9291_s11 + $0xd90] sm:$0xf0]  ;;  %v7561_v61 = vor.u32 %v8405_v47, %v7558_v49  ;;  %v5032_v14 = vadd.f32 %v9810_v15, %v5019_v63 }
 0x203   : > { %5373 = vmatpush.bf16.msrb.mxu3 %v7993_v8  ;;  %v8469_v55 = vld [vmem:[%s9291_s11 + $0xe84] sm:$0xf]  ;;  %v7814_v56 = vld [vmem:[%s9291_s11 + $0xe90] sm:$0xf0]  ;;  %v7689_v0 = vor.u32 %v8437_v50, %v7686_v54  ;;  %v9916_v22 = vpop.f32.mrf.mxu2 }
 0x204   : > { %5335 = vmatpush.bf16.msrb.mxu0 %v7593_v36  ;;  %v8501_v59 = vld [vmem:[%s9291_s11 + $0xf84] sm:$0xf]  ;;  %v7942_v48 = vld [vmem:[%s9291_s11 + $0xf90] sm:$0xf0]  ;;  %v7817_v1 = vor.u32 %v8469_v55, %v7814_v56 }
 0x205   : > { %5348 = vmatpush.bf16.msrb.mxu1 %v7721_v16  ;;  %v8401_v2 = vld [vmem:[%s9291_s11 + $0xc64] sm:$0xf]  ;;  %v7542_v3 = vld [vmem:[%s9291_s11 + $0xc70] sm:$0xf0]  ;;  %v7945_v7 = vor.u32 %v8501_v59, %v7942_v48 }
 0x206   : > { %5361 = vmatpush.bf16.msrb.mxu2 %v7849_v17  ;;  %v8433_v5 = vld [vmem:[%s9291_s11 + $0xd64] sm:$0xf]  ;;  %v7670_v8 = vld [vmem:[%s9291_s11 + $0xd70] sm:$0xf0]  ;;  %v7545_v53 = vor.u32 %v8401_v2, %v7542_v3  ;;  %v5085_v37 = vpop.f32.mrf.mxu0 }
 0x207   : > { %5374 = vmatpush.bf16.msrb.mxu3 %v7977_v26  ;;  %v8465_v9 = vld [vmem:[%s9291_s11 + $0xe64] sm:$0xf]  ;;  %v7798_v10 = vld [vmem:[%s9291_s11 + $0xe70] sm:$0xf0]  ;;  %v7673_v36 = vor.u32 %v8433_v5, %v7670_v8  ;;  %v9921_v34 = vpop.f32.mrf.mxu3  ;;  %v5098_v43 = vpop.f32.mrf.mxu1 }
 0x208   : > { %5336 = vmatpush.bf16.msrb.mxu0 %v7577_v40  ;;  %v8497_v11 = vld [vmem:[%s9291_s11 + $0xf64] sm:$0xf]  ;;  %v7926_v12 = vld [vmem:[%s9291_s11 + $0xf70] sm:$0xf0]  ;;  %v7801_v13 = vor.u32 %v8465_v9, %v7798_v10 }
 0x209   : > { %5349 = vmatpush.bf16.msrb.mxu1 %v7705_v45  ;;  %v8397_v16 = vld [vmem:[%s9291_s11 + $0xc44] sm:$0xf]  ;;  %v7526_v17 = vld [vmem:[%s9291_s11 + $0xc50] sm:$0xf0]  ;;  %v7929_v19 = vor.u32 %v8497_v11, %v7926_v12  ;;  %v5045_v45 = vadd.f32 %v9815_v24, %v5032_v14  ;;  %v8036_v14 = vld [vmem:[%s9291_s11 + $0xf4] sm:$0xf0] }
 0x20a   : > { %5362 = vmatpush.bf16.msrb.mxu2 %v7833_v46  ;;  %v8429_v18 = vld [vmem:[%s9291_s11 + $0xd44] sm:$0xf]  ;;  %v7654_v26 = vld [vmem:[%s9291_s11 + $0xd50] sm:$0xf0]  ;;  %v7529_v40 = vor.u32 %v8397_v16, %v7526_v17  ;;  %v8068_v17 = vld [vmem:[%s9291_s11 + $0x1f4] sm:$0xf0] }
 0x20b   : > { %5375 = vmatpush.bf16.msrb.mxu3 %v7961_v52  ;;  %v8461_v27 = vld [vmem:[%s9291_s11 + $0xe44] sm:$0xf]  ;;  %v7782_v32 = vld [vmem:[%s9291_s11 + $0xe50] sm:$0xf0]  ;;  %v7657_v46 = vor.u32 %v8429_v18, %v7654_v26  ;;  %v6332_v18 = vld [vmem:[%s9291_s11 + $0x2e8] sm:$0xf] }
 0x20c   : > { %5337 = vmatpush.bf16.msrb.mxu0 %v7561_v61  ;;  %v8493_v15 = vld [vmem:[%s9291_s11 + $0xf44] sm:$0xf]  ;;  %v7910_v39 = vld [vmem:[%s9291_s11 + $0xf50] sm:$0xf0]  ;;  %v7785_v47 = vor.u32 %v8461_v27, %v7782_v32 }
 0x20d   : > { %5350 = vmatpush.bf16.msrb.mxu1 %v7689_v0  ;;  %v8393_v49 = vld [vmem:[%s9291_s11 + $0xc24] sm:$0xf]  ;;  %v7510_v50 = vld [vmem:[%s9291_s11 + $0xc30] sm:$0xf0]  ;;  %v7913_v54 = vor.u32 %v8493_v15, %v7910_v39  ;;  %v6460_v15 = vld [vmem:[%s9291_s11 + $0x3e8] sm:$0xf] }
 0x20e   : > { %5363 = vmatpush.bf16.msrb.mxu2 %v7817_v1  ;;  %v8425_v52 = vld [vmem:[%s9291_s11 + $0xd24] sm:$0xf]  ;;  %v7638_v55 = vld [vmem:[%s9291_s11 + $0xd30] sm:$0xf0]  ;;  %v7513_v61 = vor.u32 %v8393_v49, %v7510_v50  ;;  %v5058_v1 = vadd.f32 %v9831_v51, %v5045_v45  ;;  %v6076_v51 = vld [vmem:[%s9291_s11 + $0xe8] sm:$0xf] }
 0x20f   : > { %5376 = vmatpush.bf16.msrb.mxu3 %v7945_v7  ;;  %v8457_v56 = vld [vmem:[%s9291_s11 + $0xe24] sm:$0xf]  ;;  %v7766_v59 = vld [vmem:[%s9291_s11 + $0xe30] sm:$0xf0]  ;;  %v7641_v2 = vor.u32 %v8425_v52, %v7638_v55  ;;  %v8132_v39 = vld [vmem:[%s9291_s11 + $0x3f4] sm:$0xf0] }
 0x210   : > { %5338 = vmatpush.bf16.msrb.mxu0 %v7545_v53  ;;  %v8489_v48 = vld [vmem:[%s9291_s11 + $0xf24] sm:$0xf]  ;;  %v7894_v24 = vld [vmem:[%s9291_s11 + $0xf30] sm:$0xf0]  ;;  %v7769_v3 = vor.u32 %v8457_v56, %v7766_v59  ;;  %v5111_v53 = vpop.f32.mrf.mxu2  ;;  %v5071_v26 = vadd.f32 %v9836_v57, %v5058_v1  ;;  %v8032_v57 = vld [vmem:[%s9291_s11 + $0xd4] sm:$0xf0]  ;;  %v6461_v50 = vor.u32 %v8132_v39, %v6460_v15 }
 0x211   : > { %5351 = vmatpush.bf16.msrb.mxu1 %v7673_v36  ;;  %v8389_v63 = vld [vmem:[%s9291_s11 + $0xc04] sm:$0xf]  ;;  %v7494_v0 = vld [vmem:[%s9291_s11 + $0xc10] sm:$0xf0]  ;;  %v7897_v9 = vor.u32 %v8489_v48, %v7894_v24  ;;  %v6204_v36 = vld [vmem:[%s9291_s11 + $0x1e8] sm:$0xf] }
 0x212   : > { %5364 = vmatpush.bf16.msrb.mxu2 %v7801_v13  ;;  %v8421_v5 = vld [vmem:[%s9291_s11 + $0xd04] sm:$0xf]  ;;  %v7622_v7 = vld [vmem:[%s9291_s11 + $0xd10] sm:$0xf0]  ;;  %v5124_v13 = vpop.f32.mrf.mxu3  ;;  %v7497_v16 = vor.u32 %v8389_v63, %v7494_v0  ;;  %v5084_v43 = vadd.f32 %v9897_v58, %v5071_v26  ;;  %v6205_v45 = vor.u32 %v8068_v17, %v6204_v36  ;;  %v6188_v49 = vld [vmem:[%s9291_s11 + $0x1c8] sm:$0xf] }
 0x213   : > { %5377 = vmatpush.bf16.msrb.mxu3 %v7929_v19  ;;  %v8453_v8 = vld [vmem:[%s9291_s11 + $0xe04] sm:$0xf]  ;;  %v7750_v10 = vld [vmem:[%s9291_s11 + $0xe10] sm:$0xf0]  ;;  %v8100_v19 = vld [vmem:[%s9291_s11 + $0x2f4] sm:$0xf0]  ;;  %v7625_v27 = vor.u32 %v8421_v5, %v7622_v7 }
 0x214   : > { %5339 = vmatpush.bf16.msrb.mxu0 %v7529_v40  ;;  %v8485_v11 = vld [vmem:[%s9291_s11 + $0xf04] sm:$0xf]  ;;  %v7878_v12 = vld [vmem:[%s9291_s11 + $0xf10] sm:$0xf0]  ;;  %v7753_v32 = vor.u32 %v8453_v8, %v7750_v10  ;;  %v6077_v40 = vor.u32 %v8036_v14, %v6076_v51  ;;  %v8064_v52 = vld [vmem:[%s9291_s11 + $0x1d4] sm:$0xf0]  ;;  %v5097_v48 = vadd.f32 %v9901_v62, %v5084_v43 }
 0x215   : > { %5352 = vmatpush.bf16.msrb.mxu1 %v7657_v46  ;;  %v7881_v37 = vor.u32 %v8485_v11, %v7878_v12  ;;  %v6333_v46 = vor.u32 %v8100_v19, %v6332_v18  ;;  %v8096_v55 = vld [vmem:[%s9291_s11 + $0x2d4] sm:$0xf0]  ;;  %v6444_v56 = vld [vmem:[%s9291_s11 + $0x3c8] sm:$0xf]  ;;  %v6189_v24 = vor.u32 %v8064_v52, %v6188_v49 }
 0x216   : > { %5365 = vmatpush.bf16.msrb.mxu2 %v7785_v47  ;;  %v6060_v47 = vld [vmem:[%s9291_s11 + $0xc8] sm:$0xf]  ;;  %v8128_v59 = vld [vmem:[%s9291_s11 + $0x3d4] sm:$0xf0]  ;;  %v5110_v62 = vadd.f32 %v9916_v22, %v5097_v48 }
 0x217   : > { %5378 = vmatpush.bf16.msrb.mxu3 %v7913_v54  ;;  %v6316_v54 = vld [vmem:[%s9291_s11 + $0x2c8] sm:$0xf]  ;;  %v6061_v58 = vor.u32 %v8032_v57, %v6060_v47  ;;  %v8028_v0 = vld [vmem:[%s9291_s11 + $0xb4] sm:$0xf0] }
 0x218   : > { %5340 = vmatpush.bf16.msrb.mxu0 %v7513_v61  ;;  %v6317_v61 = vor.u32 %v8096_v55, %v6316_v54  ;;  %v6044_v63 = vld [vmem:[%s9291_s11 + $0xa8] sm:$0xf]  ;;  %v8092_v7 = vld [vmem:[%s9291_s11 + $0x2b4] sm:$0xf0]  ;;  %v5123_v17 = vadd.f32 %v9921_v34, %v5110_v62 }
 0x219   : > { %5353 = vmatpush.bf16.msrb.mxu1 %v7641_v2  ;;  %v6172_v1 = vld [vmem:[%s9291_s11 + $0x1a8] sm:$0xf]  ;;  %v6445_v2 = vor.u32 %v8128_v59, %v6444_v56  ;;  %v6045_v10 = vor.u32 %v8028_v0, %v6044_v63  ;;  %v8024_v53 = vld [vmem:[%s9291_s11 + $0x94] sm:$0xf0] }
 0x21a   : > { %5366 = vmatpush.bf16.msrb.mxu2 %v7769_v3  ;;  %v8060_v3 = vld [vmem:[%s9291_s11 + $0x1b4] sm:$0xf0]  ;;  %v6300_v5 = vld [vmem:[%s9291_s11 + $0x2a8] sm:$0xf] }
 0x21b   : > { %5379 = vmatpush.bf16.msrb.mxu3 %v7897_v9  ;;  %v6428_v8 = vld [vmem:[%s9291_s11 + $0x3a8] sm:$0xf]  ;;  %v8124_v9 = vld [vmem:[%s9291_s11 + $0x3b4] sm:$0xf0]  ;;  %v6173_v11 = vor.u32 %v8060_v3, %v6172_v1  ;;  %v6301_v12 = vor.u32 %v8092_v7, %v6300_v5 }
 0x21c   : > { %5341 = vmatpush.bf16.msrb.mxu0 %v7497_v16  ;;  %v6028_v22 = vld [vmem:[%s9291_s11 + $0x88] sm:$0xf]  ;;  %v6429_v14 = vor.u32 %v8124_v9, %v6428_v8  ;;  %v8056_v36 = vld [vmem:[%s9291_s11 + $0x194] sm:$0xf0] }
 0x21d   : > { %5354 = vmatpush.bf16.msrb.mxu1 %v7625_v27  ;;  %v6156_v51 = vld [vmem:[%s9291_s11 + $0x188] sm:$0xf]  ;;  %v8088_v16 = vld [vmem:[%s9291_s11 + $0x294] sm:$0xf0]  ;;  %v6029_v27 = vor.u32 %v8024_v53, %v6028_v22 }
 0x21e   : > { %5367 = vmatpush.bf16.msrb.mxu2 %v7753_v32  ;;  %v6284_v13 = vld [vmem:[%s9291_s11 + $0x288] sm:$0xf]  ;;  %v5135_v18 = vpop.f32.mrf.mxu0  ;;  %v8120_v26 = vld [vmem:[%s9291_s11 + $0x394] sm:$0xf0]  ;;  %v5148_v32 = vpop.f32.mrf.mxu1  ;;  %v6157_v39 = vor.u32 %v8056_v36, %v6156_v51 }
 0x21f   : > { %5380 = vmatpush.bf16.msrb.mxu3 %v7881_v37  ;;  %5342 = vmatmul.bf16.vlgmr.msrb.gmra.mxu0 %v9620_v23  ;;  %v6412_v19 = vld [vmem:[%s9291_s11 + $0x388] sm:$0xf]  ;;  %v5136_v15 = vadd.f32 %v5135_v18, %v5123_v17  ;;  %v6285_v37 = vor.u32 %v8088_v16, %v6284_v13  ;;  %v8020_v43 = vld [vmem:[%s9291_s11 + $0x74] sm:$0xf0] }
 0x220   : > { %5386 = vmatpush.bf16.msra.mxu0 %v6077_v40  ;;  %5355 = vmatmul.bf16.vlgmr.msrb.gmra.mxu1 %v9627_v31  ;;  %v6012_v40 = vld [vmem:[%s9291_s11 + $0x68] sm:$0xf]  ;;  %v8084_v57 = vld [vmem:[%s9291_s11 + $0x274] sm:$0xf0] }
 0x221   : > { %5399 = vmatpush.bf16.msra.mxu1 %v6205_v45  ;;  %5368 = vmatmul.bf16.vlgmr.msrb.gmra.mxu2 %v9625_v28  ;;  %v6140_v34 = vld [vmem:[%s9291_s11 + $0x168] sm:$0xf]  ;;  %v6413_v45 = vor.u32 %v8120_v26, %v6412_v19  ;;  %v6013_v52 = vor.u32 %v8020_v43, %v6012_v40  ;;  %v5149_v54 = vadd.f32 %v5148_v32, %v5136_v15  ;;  %v8048_v63 = vld [vmem:[%s9291_s11 + $0x154] sm:$0xf0] }
 0x222   : > { %5412 = vmatpush.bf16.msra.mxu2 %v6333_v46  ;;  %5381 = vmatmul.bf16.vlgmr.msrb.gmra.mxu3 %v9631_v35  ;;  %v8052_v46 = vld [vmem:[%s9291_s11 + $0x174] sm:$0xf0]  ;;  %v6268_v47 = vld [vmem:[%s9291_s11 + $0x268] sm:$0xf] }
 0x223   : > { %5425 = vmatpush.bf16.msra.mxu3 %v6461_v50  ;;  %v6396_v49 = vld [vmem:[%s9291_s11 + $0x368] sm:$0xf]  ;;  %v8116_v50 = vld [vmem:[%s9291_s11 + $0x374] sm:$0xf0]  ;;  %v6141_v55 = vor.u32 %v8052_v46, %v6140_v34  ;;  %v6269_v56 = vor.u32 %v8084_v57, %v6268_v47 }
 0x224   : > { %5387 = vmatpush.bf16.msra.mxu0 %v6061_v58  ;;  %v5996_v59 = vld [vmem:[%s9291_s11 + $0x48] sm:$0xf]  ;;  %v8016_v58 = vld [vmem:[%s9291_s11 + $0x54] sm:$0xf0] }
 0x225   : > { %5400 = vmatpush.bf16.msra.mxu1 %v6189_v24  ;;  %v6124_v48 = vld [vmem:[%s9291_s11 + $0x148] sm:$0xf]  ;;  %v6397_v24 = vor.u32 %v8116_v50, %v6396_v49  ;;  %v8080_v1 = vld [vmem:[%s9291_s11 + $0x254] sm:$0xf0]  ;;  %v5174_v3 = vpop.f32.mrf.mxu3  ;;  %v5997_v8 = vor.u32 %v8016_v58, %v5996_v59 }
 0x226   : > { %5413 = vmatpush.bf16.msra.mxu2 %v6317_v61  ;;  %v5161_v61 = vpop.f32.mrf.mxu2  ;;  %v6252_v0 = vld [vmem:[%s9291_s11 + $0x248] sm:$0xf]  ;;  %v8112_v7 = vld [vmem:[%s9291_s11 + $0x354] sm:$0xf0]  ;;  %v5137_v62 = vpop.f32.mrf.mxu0 }
 0x227   : > { %5426 = vmatpush.bf16.msra.mxu3 %v6445_v2  ;;  %v5162_v2 = vadd.f32 %v5161_v61, %v5149_v54  ;;  %v6380_v5 = vld [vmem:[%s9291_s11 + $0x348] sm:$0xf]  ;;  %v5150_v9 = vpop.f32.mrf.mxu1  ;;  %v8012_v53 = vld [vmem:[%s9291_s11 + $0x34] sm:$0xf0] }
 0x228   : > { %5388 = vmatpush.bf16.msra.mxu0 %v6045_v10  ;;  %v5980_v22 = vld [vmem:[%s9291_s11 + $0x28] sm:$0xf]  ;;  %v8044_v36 = vld [vmem:[%s9291_s11 + $0x134] sm:$0xf0] }
 0x229   : > { %5401 = vmatpush.bf16.msra.mxu1 %v6173_v11  ;;  %v5175_v10 = vadd.f32 %v5174_v3, %v5162_v2  ;;  %v6125_v11 = vor.u32 %v8048_v63, %v6124_v48  ;;  %v6108_v51 = vld [vmem:[%s9291_s11 + $0x128] sm:$0xf]  ;;  %v8076_v16 = vld [vmem:[%s9291_s11 + $0x234] sm:$0xf0]  ;;  %v5981_v26 = vor.u32 %v8012_v53, %v5980_v22 }
 0x22a   : > { %5414 = vmatpush.bf16.msra.mxu2 %v6301_v12  ;;  %v6253_v12 = vor.u32 %v8080_v1, %v6252_v0  ;;  %v6236_v13 = vld [vmem:[%s9291_s11 + $0x228] sm:$0xf]  ;;  %v8108_v19 = vld [vmem:[%s9291_s11 + $0x334] sm:$0xf0]  ;;  %v6109_v15 = vor.u32 %v8044_v36, %v6108_v51 }
 0x22b   : > { %5427 = vmatpush.bf16.msra.mxu3 %v6429_v14  ;;  %v6381_v14 = vor.u32 %v8112_v7, %v6380_v5  ;;  %v5802_v17 = vmax.f32 %v5175_v10, 0.0  ;;  %v6364_v18 = vld [vmem:[%s9291_s11 + $0x328] sm:$0xf]  ;;  %v8008_v32 = vld [vmem:[%s9291_s11 + $0x14] sm:$0xf0] }
 0x22c   : > { %5389 = vmatpush.bf16.msra.mxu0 %v6029_v27  ;;  %v5964_v27 = vld [vmem:[%s9291_s11 + $0x8] sm:$0xf]  ;;  %v8040_v40 = vld [vmem:[%s9291_s11 + $0x114] sm:$0xf0]  ;;  %v6365_v34 = vor.u32 %v8108_v19, %v6364_v18 }
 0x22d   : > { %5402 = vmatpush.bf16.msra.mxu1 %v6157_v39  ;;  %5806 = vst [vmem:[%s10007_s21] sm:$0xff] %v5802_v17  ;;  %v6237_v39 = vor.u32 %v8076_v16, %v6236_v13  ;;  %v6220_v43 = vld [vmem:[%s9291_s11 + $0x208] sm:$0xf]  ;;  %v8104_v47 = vld [vmem:[%s9291_s11 + $0x314] sm:$0xf0]  ;;  %v5176_v54 = vpop.f32.mrf.mxu3 }
 0x22e   : > { %5415 = vmatpush.bf16.msra.mxu2 %v6285_v37  ;;  %v6092_v37 = vld [vmem:[%s9291_s11 + $0x108] sm:$0xf]  ;;  %v5163_v57 = vpop.f32.mrf.mxu2  ;;  %v8164_v50 = vld [vmem:[%s9291_s11 + $0x4f4] sm:$0xf0] }
 0x22f   : > { %5428 = vmatpush.bf16.msra.mxu3 %v6413_v45  ;;  %v8072_v45 = vld [vmem:[%s9291_s11 + $0x214] sm:$0xf0]  ;;  %v6348_v46 = vld [vmem:[%s9291_s11 + $0x308] sm:$0xf]  ;;  %v6093_v48 = vor.u32 %v8040_v40, %v6092_v37 }
 0x230   : > { %5390 = vmatpush.bf16.msra.mxu0 %v6013_v52  ;;  %v6588_v49 = vld [vmem:[%s9291_s11 + $0x4e8] sm:$0xf]  ;;  %v8228_v58 = vld [vmem:[%s9291_s11 + $0x6f4] sm:$0xf0]  ;;  %v6349_v0 = vor.u32 %v8104_v47, %v6348_v46 }
 0x231   : > { %5403 = vmatpush.bf16.msra.mxu1 %v6141_v55  ;;  %v6716_v52 = vld [vmem:[%s9291_s11 + $0x5e8] sm:$0xf]  ;;  %v5965_v55 = vor.u32 %v8008_v32, %v5964_v27  ;;  %v8260_v63 = vld [vmem:[%s9291_s11 + $0x7f4] sm:$0xf0]  ;;  %v6589_v1 = vor.u32 %v8164_v50, %v6588_v49 }
 0x232   : > { %5416 = vmatpush.bf16.msra.mxu2 %v6269_v56  ;;  %v8196_v56 = vld [vmem:[%s9291_s11 + $0x5f4] sm:$0xf0]  ;;  %v6844_v59 = vld [vmem:[%s9291_s11 + $0x6e8] sm:$0xf] }
 0x233   : > { %5429 = vmatpush.bf16.msra.mxu3 %v6397_v24  ;;  %v6221_v24 = vor.u32 %v8072_v45, %v6220_v43  ;;  %v6972_v61 = vld [vmem:[%s9291_s11 + $0x7e8] sm:$0xf]  ;;  %v6717_v2 = vor.u32 %v8196_v56, %v6716_v52  ;;  %v6845_v3 = vor.u32 %v8228_v58, %v6844_v59  ;;  %v8160_v7 = vld [vmem:[%s9291_s11 + $0x4d4] sm:$0xf0]  ;;  %v2347_v45 = vperm.slane %v9841_v60, 1 }
 0x234   : > { %5391 = vmatpush.bf16.msra.mxu0 %v5997_v8  ;;  %v6572_v5 = vld [vmem:[%s9291_s11 + $0x4c8] sm:$0xf]  ;;  %v6973_v8 = vor.u32 %v8260_v63, %v6972_v61  ;;  %v8192_v9 = vld [vmem:[%s9291_s11 + $0x5d4] sm:$0xf0] }
 0x235   : > { %5404 = vmatpush.bf16.msra.mxu1 %v6125_v11  ;;  %v6700_v62 = vld [vmem:[%s9291_s11 + $0x5c8] sm:$0xf]  ;;  %v8224_v11 = vld [vmem:[%s9291_s11 + $0x6d4] sm:$0xf0]  ;;  %v6573_v53 = vor.u32 %v8160_v7, %v6572_v5 }
 0x236   : > { %5417 = vmatpush.bf16.msra.mxu2 %v6253_v12  ;;  %v6828_v10 = vld [vmem:[%s9291_s11 + $0x6c8] sm:$0xf]  ;;  %v8256_v22 = vld [vmem:[%s9291_s11 + $0x7d4] sm:$0xf0]  ;;  %v6701_v51 = vor.u32 %v8192_v9, %v6700_v62 }
 0x237   : > { %5430 = vmatpush.bf16.msra.mxu3 %v6381_v14  ;;  %v6956_v12 = vld [vmem:[%s9291_s11 + $0x7c8] sm:$0xf]  ;;  %v6829_v14 = vor.u32 %v8224_v11, %v6828_v10  ;;  %v8156_v13 = vld [vmem:[%s9291_s11 + $0x4b4] sm:$0xf0] }
 0x238   : > { %5392 = vmatpush.bf16.msra.mxu0 %v5981_v26  ;;  %v6556_v36 = vld [vmem:[%s9291_s11 + $0x4a8] sm:$0xf]  ;;  %v6957_v17 = vor.u32 %v8256_v22, %v6956_v12  ;;  %v8188_v18 = vld [vmem:[%s9291_s11 + $0x5b4] sm:$0xf0] }
 0x239   : > { %5405 = vmatpush.bf16.msra.mxu1 %v6109_v15  ;;  %v6684_v16 = vld [vmem:[%s9291_s11 + $0x5a8] sm:$0xf]  ;;  %v8220_v26 = vld [vmem:[%s9291_s11 + $0x6b4] sm:$0xf0]  ;;  %v6557_v15 = vor.u32 %v8156_v13, %v6556_v36 }
 0x23a   : > { %5418 = vmatpush.bf16.msra.mxu2 %v6237_v39  ;;  %v6812_v19 = vld [vmem:[%s9291_s11 + $0x6a8] sm:$0xf]  ;;  %v8252_v32 = vld [vmem:[%s9291_s11 + $0x7b4] sm:$0xf0]  ;;  %v6685_v37 = vor.u32 %v8188_v18, %v6684_v16 }
 0x23b   : > { %5431 = vmatpush.bf16.msra.mxu3 %v6365_v34  ;;  %v6940_v27 = vld [vmem:[%s9291_s11 + $0x7a8] sm:$0xf]  ;;  %v6813_v40 = vor.u32 %v8220_v26, %v6812_v19  ;;  %v8152_v43 = vld [vmem:[%s9291_s11 + $0x494] sm:$0xf0] }
 0x23c   : > { %5393 = vmatpush.bf16.msra.mxu0 %v5965_v55  ;;  %v6540_v39 = vld [vmem:[%s9291_s11 + $0x488] sm:$0xf]  ;;  %v6941_v46 = vor.u32 %v8252_v32, %v6940_v27  ;;  %v8184_v47 = vld [vmem:[%s9291_s11 + $0x594] sm:$0xf0]  ;;  %v5187_v55 = vpop.f32.mrf.mxu0 }
 0x23d   : > { %5406 = vmatpush.bf16.msra.mxu1 %v6093_v48  ;;  %v6668_v34 = vld [vmem:[%s9291_s11 + $0x588] sm:$0xf]  ;;  %v8216_v49 = vld [vmem:[%s9291_s11 + $0x694] sm:$0xf0]  ;;  %v6541_v54 = vor.u32 %v8152_v43, %v6540_v39  ;;  %v5200_v61 = vpop.f32.mrf.mxu1 }
 0x23e   : > { %5419 = vmatpush.bf16.msra.mxu2 %v6221_v24  ;;  %v6796_v57 = vld [vmem:[%s9291_s11 + $0x688] sm:$0xf]  ;;  %v8248_v52 = vld [vmem:[%s9291_s11 + $0x794] sm:$0xf0]  ;;  %v6669_v60 = vor.u32 %v8184_v47, %v6668_v34  ;;  %v5188_v24 = vadd.f32 %v5187_v55, %v2347_v45 }
 0x23f   : > { %5432 = vmatpush.bf16.msra.mxu3 %v6349_v0  ;;  %5394 = vmatmul.bf16.vlgmr.msra.gmra.mxu0 %v9400_v20  ;;  %v6924_v50 = vld [vmem:[%s9291_s11 + $0x788] sm:$0xf]  ;;  %v6797_v56 = vor.u32 %v8216_v49, %v6796_v57  ;;  %v8148_v58 = vld [vmem:[%s9291_s11 + $0x474] sm:$0xf0] }
 0x240   : > { %5438 = vmatpush.bf16.msrb.mxu0 %v6589_v1  ;;  %5407 = vmatmul.bf16.vlgmr.msra.gmra.mxu1 %v9403_v21  ;;  %v6524_v59 = vld [vmem:[%s9291_s11 + $0x468] sm:$0xf]  ;;  %v6925_v63 = vor.u32 %v8248_v52, %v6924_v50  ;;  %v8180_v0 = vld [vmem:[%s9291_s11 + $0x574] sm:$0xf0]  ;;  %v5201_v7 = vadd.f32 %v5200_v61, %v5188_v24 }
 0x241   : > { %5451 = vmatpush.bf16.msrb.mxu1 %v6717_v2  ;;  %5420 = vmatmul.bf16.vlgmr.msra.gmra.mxu2 %v9384_v4  ;;  %v6652_v48 = vld [vmem:[%s9291_s11 + $0x568] sm:$0xf]  ;;  %v8212_v2 = vld [vmem:[%s9291_s11 + $0x674] sm:$0xf0]  ;;  %v6525_v62 = vor.u32 %v8148_v58, %v6524_v59 }
 0x242   : > { %5464 = vmatpush.bf16.msrb.mxu2 %v6845_v3  ;;  %5433 = vmatmul.bf16.vlgmr.msra.gmra.mxu3 %v9389_v6  ;;  %v6780_v1 = vld [vmem:[%s9291_s11 + $0x668] sm:$0xf]  ;;  %v8244_v5 = vld [vmem:[%s9291_s11 + $0x774] sm:$0xf0] }
 0x243   : > { %5477 = vmatpush.bf16.msrb.mxu3 %v6973_v8  ;;  %v6908_v3 = vld [vmem:[%s9291_s11 + $0x768] sm:$0xf]  ;;  %v6653_v8 = vor.u32 %v8180_v0, %v6652_v48  ;;  %v6781_v9 = vor.u32 %v8212_v2, %v6780_v1  ;;  %v8144_v11 = vld [vmem:[%s9291_s11 + $0x454] sm:$0xf0] }
 0x244   : > { %5439 = vmatpush.bf16.msrb.mxu0 %v6573_v53  ;;  %v6508_v10 = vld [vmem:[%s9291_s11 + $0x448] sm:$0xf]  ;;  %v5213_v22 = vpop.f32.mrf.mxu2  ;;  %v6909_v53 = vor.u32 %v8244_v5, %v6908_v3  ;;  %v8208_v36 = vld [vmem:[%s9291_s11 + $0x654] sm:$0xf0]  ;;  %v5189_v27 = vpop.f32.mrf.mxu0 }
 0x245   : > { %5452 = vmatpush.bf16.msrb.mxu1 %v6701_v51  ;;  %v6636_v12 = vld [vmem:[%s9291_s11 + $0x548] sm:$0xf]  ;;  %v8176_v51 = vld [vmem:[%s9291_s11 + $0x554] sm:$0xf0]  ;;  %v5214_v13 = vadd.f32 %v5213_v22, %v5201_v7  ;;  %v5226_v16 = vpop.f32.mrf.mxu3  ;;  %v6509_v19 = vor.u32 %v8144_v11, %v6508_v10  ;;  %v5202_v43 = vpop.f32.mrf.mxu1 }
 0x246   : > { %5465 = vmatpush.bf16.msrb.mxu2 %v6829_v14  ;;  %v6764_v14 = vld [vmem:[%s9291_s11 + $0x648] sm:$0xf]  ;;  %v8240_v18 = vld [vmem:[%s9291_s11 + $0x754] sm:$0xf0]  ;;  %v6637_v32 = vor.u32 %v8176_v51, %v6636_v12 }
 0x247   : > { %5478 = vmatpush.bf16.msrb.mxu3 %v6957_v17  ;;  %v6892_v17 = vld [vmem:[%s9291_s11 + $0x748] sm:$0xf]  ;;  %v10076_v26 = vadd.f32 %v5226_v16, %v5214_v13  ;;  %v8172_v45 = vld [vmem:[%s9291_s11 + $0x534] sm:$0xf0] }
 0x248   : > { %5440 = vmatpush.bf16.msrb.mxu0 %v6557_v15  ;;  %v6765_v15 = vor.u32 %v8208_v36, %v6764_v14  ;;  %v6492_v39 = vld [vmem:[%s9291_s11 + $0x428] sm:$0xf]  ;;  %v6893_v34 = vor.u32 %v8240_v18, %v6892_v17  ;;  %v8204_v47 = vld [vmem:[%s9291_s11 + $0x634] sm:$0xf0] }
 0x249   : > { %5453 = vmatpush.bf16.msrb.mxu1 %v6685_v37  ;;  %v8140_v37 = vld [vmem:[%s9291_s11 + $0x434] sm:$0xf0]  ;;  %v6876_v57 = vld [vmem:[%s9291_s11 + $0x728] sm:$0xf] }
 0x24a   : > { %5466 = vmatpush.bf16.msrb.mxu2 %v6813_v40  ;;  %v6620_v40 = vld [vmem:[%s9291_s11 + $0x528] sm:$0xf]  ;;  %v8236_v49 = vld [vmem:[%s9291_s11 + $0x734] sm:$0xf0]  ;;  %v6493_v50 = vor.u32 %v8140_v37, %v6492_v39 }
 0x24b   : > { %5479 = vmatpush.bf16.msrb.mxu3 %v6941_v46  ;;  %v6748_v46 = vld [vmem:[%s9291_s11 + $0x628] sm:$0xf]  ;;  %v6621_v55 = vor.u32 %v8172_v45, %v6620_v40  ;;  %v8168_v59 = vld [vmem:[%s9291_s11 + $0x514] sm:$0xf0]  ;;  %v6877_v24 = vor.u32 %v8236_v49, %v6876_v57 }
 0x24c   : > { %5441 = vmatpush.bf16.msrb.mxu0 %v6541_v54  ;;  %v6476_v52 = vld [vmem:[%s9291_s11 + $0x408] sm:$0xf]  ;;  %v8136_v54 = vld [vmem:[%s9291_s11 + $0x414] sm:$0xf0]  ;;  %v5215_v48 = vpop.f32.mrf.mxu2 }
 0x24d   : > { %5454 = vmatpush.bf16.msrb.mxu1 %v6669_v60  ;;  %v6749_v60 = vor.u32 %v8204_v47, %v6748_v46  ;;  %v6732_v58 = vld [vmem:[%s9291_s11 + $0x608] sm:$0xf]  ;;  %v8200_v61 = vld [vmem:[%s9291_s11 + $0x614] sm:$0xf0]  ;;  %v5228_v1 = vpop.f32.mrf.mxu3  ;;  %v6477_v7 = vor.u32 %v8136_v54, %v6476_v52 }
 0x24e   : > { %5467 = vmatpush.bf16.msrb.mxu2 %v6797_v56  ;;  %v6604_v56 = vld [vmem:[%s9291_s11 + $0x508] sm:$0xf]  ;;  %v8232_v0 = vld [vmem:[%s9291_s11 + $0x714] sm:$0xf0]  ;;  %v6733_v11 = vor.u32 %v8200_v61, %v6732_v58 }
 0x24f   : > { %5480 = vmatpush.bf16.msrb.mxu3 %v6925_v63  ;;  %v6860_v63 = vld [vmem:[%s9291_s11 + $0x708] sm:$0xf]  ;;  %v8292_v3 = vld [vmem:[%s9291_s11 + $0x8f4] sm:$0xf0]  ;;  %v6605_v10 = vor.u32 %v8168_v59, %v6604_v56 }
 0x250   : > { %5442 = vmatpush.bf16.msrb.mxu0 %v6525_v62  ;;  %v7100_v2 = vld [vmem:[%s9291_s11 + $0x8e8] sm:$0xf]  ;;  %v8324_v62 = vld [vmem:[%s9291_s11 + $0x9f4] sm:$0xf0] }
 0x251   : > { %5455 = vmatpush.bf16.msrb.mxu1 %v6653_v8  ;;  %v7228_v5 = vld [vmem:[%s9291_s11 + $0x9e8] sm:$0xf]  ;;  %v8388_v22 = vld [vmem:[%s9291_s11 + $0xbf4] sm:$0xf0]  ;;  %v7101_v51 = vor.u32 %v8292_v3, %v7100_v2 }
 0x252   : > { %5468 = vmatpush.bf16.msrb.mxu2 %v6781_v9  ;;  %v7356_v8 = vld [vmem:[%s9291_s11 + $0xae8] sm:$0xf]  ;;  %v8356_v9 = vld [vmem:[%s9291_s11 + $0xaf4] sm:$0xf0]  ;;  %v7229_v14 = vor.u32 %v8324_v62, %v7228_v5 }
 0x253   : > { %5481 = vmatpush.bf16.msrb.mxu3 %v6909_v53  ;;  %v7484_v12 = vld [vmem:[%s9291_s11 + $0xbe8] sm:$0xf]  ;;  %v6861_v53 = vor.u32 %v8232_v0, %v6860_v63  ;;  %v7357_v36 = vor.u32 %v8356_v9, %v7356_v8  ;;  %v8288_v16 = vld [vmem:[%s9291_s11 + $0x8d4] sm:$0xf0] }
 0x254   : > { %5443 = vmatpush.bf16.msrb.mxu0 %v6509_v19  ;;  %v7084_v13 = vld [vmem:[%s9291_s11 + $0x8c8] sm:$0xf]  ;;  %v7485_v18 = vor.u32 %v8388_v22, %v7484_v12  ;;  %v8320_v19 = vld [vmem:[%s9291_s11 + $0x9d4] sm:$0xf0] }
 0x255   : > { %5456 = vmatpush.bf16.msrb.mxu1 %v6637_v32  ;;  %v7212_v17 = vld [vmem:[%s9291_s11 + $0x9c8] sm:$0xf]  ;;  %v8352_v32 = vld [vmem:[%s9291_s11 + $0xad4] sm:$0xf0]  ;;  %v7085_v37 = vor.u32 %v8288_v16, %v7084_v13 }
 0x256   : > { %5469 = vmatpush.bf16.msrb.mxu2 %v6765_v15  ;;  %v7340_v27 = vld [vmem:[%s9291_s11 + $0xac8] sm:$0xf]  ;;  %v8384_v39 = vld [vmem:[%s9291_s11 + $0xbd4] sm:$0xf0]  ;;  %v7213_v40 = vor.u32 %v8320_v19, %v7212_v17 }
 0x257   : > { %5482 = vmatpush.bf16.msrb.mxu3 %v6893_v34  ;;  %v7468_v15 = vld [vmem:[%s9291_s11 + $0xbc8] sm:$0xf]  ;;  %v7341_v43 = vor.u32 %v8352_v32, %v7340_v27  ;;  %v8284_v45 = vld [vmem:[%s9291_s11 + $0x8b4] sm:$0xf0] }
 0x258   : > { %5444 = vmatpush.bf16.msrb.mxu0 %v6493_v50  ;;  %v7068_v34 = vld [vmem:[%s9291_s11 + $0x8a8] sm:$0xf]  ;;  %v7469_v47 = vor.u32 %v8384_v39, %v7468_v15  ;;  %v8316_v57 = vld [vmem:[%s9291_s11 + $0x9b4] sm:$0xf0] }
 0x259   : > { %5457 = vmatpush.bf16.msrb.mxu1 %v6621_v55  ;;  %v7196_v46 = vld [vmem:[%s9291_s11 + $0x9a8] sm:$0xf]  ;;  %v8348_v50 = vld [vmem:[%s9291_s11 + $0xab4] sm:$0xf0]  ;;  %v7069_v55 = vor.u32 %v8284_v45, %v7068_v34 }
 0x25a   : > { %5470 = vmatpush.bf16.msrb.mxu2 %v6749_v60  ;;  %v7324_v49 = vld [vmem:[%s9291_s11 + $0xaa8] sm:$0xf]  ;;  %v8380_v54 = vld [vmem:[%s9291_s11 + $0xbb4] sm:$0xf0]  ;;  %v7197_v60 = vor.u32 %v8316_v57, %v7196_v46 }
 0x25b   : > { %5483 = vmatpush.bf16.msrb.mxu3 %v6877_v24  ;;  %v7452_v52 = vld [vmem:[%s9291_s11 + $0xba8] sm:$0xf]  ;;  %v7325_v56 = vor.u32 %v8348_v50, %v7324_v49  ;;  %v8280_v58 = vld [vmem:[%s9291_s11 + $0x894] sm:$0xf0] }
 0x25c   : > { %5445 = vmatpush.bf16.msrb.mxu0 %v6477_v7  ;;  %v7052_v59 = vld [vmem:[%s9291_s11 + $0x888] sm:$0xf]  ;;  %v7453_v24 = vor.u32 %v8380_v54, %v7452_v52  ;;  %v8312_v61 = vld [vmem:[%s9291_s11 + $0x994] sm:$0xf0]  ;;  %v10130_v5 = vpop.f32.mrf.mxu0 }
 0x25d   : > { %5458 = vmatpush.bf16.msrb.mxu1 %v6605_v10  ;;  %v7180_v48 = vld [vmem:[%s9291_s11 + $0x988] sm:$0xf]  ;;  %v8344_v0 = vld [vmem:[%s9291_s11 + $0xa94] sm:$0xf0]  ;;  %v7053_v3 = vor.u32 %v8280_v58, %v7052_v59 }
 0x25e   : > { %5471 = vmatpush.bf16.msrb.mxu2 %v6733_v11  ;;  %v7308_v63 = vld [vmem:[%s9291_s11 + $0xa88] sm:$0xf]  ;;  %v8376_v2 = vld [vmem:[%s9291_s11 + $0xb94] sm:$0xf0]  ;;  %v7181_v7 = vor.u32 %v8312_v61, %v7180_v48  ;;  %v10135_v11 = vpop.f32.mrf.mxu1 }
 0x25f   : > { %5484 = vmatpush.bf16.msrb.mxu3 %v6861_v53  ;;  %5446 = vmatmul.bf16.vlgmr.msrb.gmra.mxu0 %v9463_v41  ;;  %v7436_v1 = vld [vmem:[%s9291_s11 + $0xb88] sm:$0xf]  ;;  %v7309_v62 = vor.u32 %v8344_v0, %v7308_v63  ;;  %v8276_v9 = vld [vmem:[%s9291_s11 + $0x874] sm:$0xf0] }
 0x260   : > { %5490 = vmatpush.bf16.msra.mxu0 %v7101_v51  ;;  %5459 = vmatmul.bf16.vlgmr.msrb.gmra.mxu1 %v9467_v44  ;;  %v7036_v8 = vld [vmem:[%s9291_s11 + $0x868] sm:$0xf]  ;;  %v7437_v12 = vor.u32 %v8376_v2, %v7436_v1  ;;  %v8308_v22 = vld [vmem:[%s9291_s11 + $0x974] sm:$0xf0] }
 0x261   : > { %5503 = vmatpush.bf16.msra.mxu1 %v7229_v14  ;;  %5472 = vmatmul.bf16.vlgmr.msrb.gmra.mxu2 %v9459_v38  ;;  %v7164_v10 = vld [vmem:[%s9291_s11 + $0x968] sm:$0xf]  ;;  %v8340_v51 = vld [vmem:[%s9291_s11 + $0xa74] sm:$0xf0]  ;;  %v7037_v13 = vor.u32 %v8276_v9, %v7036_v8 }
 0x262   : > { %5516 = vmatpush.bf16.msra.mxu2 %v7357_v36  ;;  %5485 = vmatmul.bf16.vlgmr.msrb.gmra.mxu3 %v9465_v42  ;;  %v7292_v53 = vld [vmem:[%s9291_s11 + $0xa68] sm:$0xf]  ;;  %v8372_v36 = vld [vmem:[%s9291_s11 + $0xb74] sm:$0xf0]  ;;  %v7165_v16 = vor.u32 %v8308_v22, %v7164_v10 }
 0x263   : > { %5529 = vmatpush.bf16.msra.mxu3 %v7485_v18  ;;  %v7420_v14 = vld [vmem:[%s9291_s11 + $0xb68] sm:$0xf]  ;;  %v7293_v17 = vor.u32 %v8340_v51, %v7292_v53  ;;  %v8272_v19 = vld [vmem:[%s9291_s11 + $0x854] sm:$0xf0] }
 0x264   : > { %5491 = vmatpush.bf16.msra.mxu0 %v7085_v37  ;;  %v7020_v18 = vld [vmem:[%s9291_s11 + $0x848] sm:$0xf]  ;;  %v10145_v32 = vpop.f32.mrf.mxu2  ;;  %v7421_v15 = vor.u32 %v8372_v36, %v7420_v14  ;;  %v8304_v39 = vld [vmem:[%s9291_s11 + $0x954] sm:$0xf0] }
 0x265   : > { %5504 = vmatpush.bf16.msra.mxu1 %v7213_v40  ;;  %v7148_v27 = vld [vmem:[%s9291_s11 + $0x948] sm:$0xf]  ;;  %v8336_v40 = vld [vmem:[%s9291_s11 + $0xa54] sm:$0xf0]  ;;  %v7021_v46 = vor.u32 %v8272_v19, %v7020_v18 }
 0x266   : > { %5517 = vmatpush.bf16.msra.mxu2 %v7341_v43  ;;  %v7276_v37 = vld [vmem:[%s9291_s11 + $0xa48] sm:$0xf]  ;;  %v10150_v43 = vpop.f32.mrf.mxu3  ;;  %v8368_v45 = vld [vmem:[%s9291_s11 + $0xb54] sm:$0xf0]  ;;  %v7149_v57 = vor.u32 %v8304_v39, %v7148_v27 }
 0x267   : > { %5530 = vmatpush.bf16.msra.mxu3 %v7469_v47  ;;  %v7404_v34 = vld [vmem:[%s9291_s11 + $0xb48] sm:$0xf]  ;;  %v5241_v47 = vpop.f32.mrf.mxu0  ;;  %v7277_v49 = vor.u32 %v8336_v40, %v7276_v37  ;;  %v8268_v52 = vld [vmem:[%s9291_s11 + $0x834] sm:$0xf0] }
 0x268   : > { %5492 = vmatpush.bf16.msra.mxu0 %v7069_v55  ;;  %v7004_v50 = vld [vmem:[%s9291_s11 + $0x828] sm:$0xf]  ;;  %v5254_v55 = vpop.f32.mrf.mxu1  ;;  %v8332_v58 = vld [vmem:[%s9291_s11 + $0xa34] sm:$0xf0] }
 0x269   : > { %5505 = vmatpush.bf16.msra.mxu1 %v7197_v60  ;;  %v7132_v54 = vld [vmem:[%s9291_s11 + $0x928] sm:$0xf]  ;;  %v7405_v60 = vor.u32 %v8368_v45, %v7404_v34  ;;  %v7005_v61 = vor.u32 %v8268_v52, %v7004_v50  ;;  %v8264_v0 = vld [vmem:[%s9291_s11 + $0x814] sm:$0xf0] }
 0x26a   : > { %5518 = vmatpush.bf16.msra.mxu2 %v7325_v56  ;;  %v8300_v56 = vld [vmem:[%s9291_s11 + $0x934] sm:$0xf0]  ;;  %v7260_v59 = vld [vmem:[%s9291_s11 + $0xa28] sm:$0xf] }
 0x26b   : > { %5531 = vmatpush.bf16.msra.mxu3 %v7453_v24  ;;  %v7388_v48 = vld [vmem:[%s9291_s11 + $0xb28] sm:$0xf]  ;;  %v8364_v24 = vld [vmem:[%s9291_s11 + $0xb34] sm:$0xf0]  ;;  %v7133_v1 = vor.u32 %v8300_v56, %v7132_v54  ;;  %v7261_v2 = vor.u32 %v8332_v58, %v7260_v59 }
 0x26c   : > { %5493 = vmatpush.bf16.msra.mxu0 %v7053_v3  ;;  %v6988_v63 = vld [vmem:[%s9291_s11 + $0x808] sm:$0xf]  ;;  %v5267_v8 = vpop.f32.mrf.mxu2  ;;  %v7389_v9 = vor.u32 %v8364_v24, %v7388_v48  ;;  %v8328_v10 = vld [vmem:[%s9291_s11 + $0xa14] sm:$0xf0] }
 0x26d   : > { %5506 = vmatpush.bf16.msra.mxu1 %v7181_v7  ;;  %v7116_v3 = vld [vmem:[%s9291_s11 + $0x908] sm:$0xf]  ;;  %v8296_v7 = vld [vmem:[%s9291_s11 + $0x914] sm:$0xf0] }
 0x26e   : > { %5519 = vmatpush.bf16.msra.mxu2 %v7309_v62  ;;  %v7244_v62 = vld [vmem:[%s9291_s11 + $0xa08] sm:$0xf]  ;;  %v8360_v22 = vld [vmem:[%s9291_s11 + $0xb14] sm:$0xf0]  ;;  %v5280_v53 = vpop.f32.mrf.mxu3  ;;  %v7117_v19 = vor.u32 %v8296_v7, %v7116_v3 }
 0x26f   : > { %5532 = vmatpush.bf16.msra.mxu3 %v7437_v12  ;;  %v7372_v12 = vld [vmem:[%s9291_s11 + $0xb08] sm:$0xf]  ;;  %v8420_v14 = vld [vmem:[%s9291_s11 + $0xcf4] sm:$0xf0]  ;;  %v7245_v27 = vor.u32 %v8328_v10, %v7244_v62 }
 0x270   : > { %5494 = vmatpush.bf16.msra.mxu0 %v7037_v13  ;;  %v7612_v51 = vld [vmem:[%s9291_s11 + $0xce8] sm:$0xf]  ;;  %v6989_v13 = vor.u32 %v8264_v0, %v6988_v63  ;;  %v8484_v18 = vld [vmem:[%s9291_s11 + $0xef4] sm:$0xf0]  ;;  %v7373_v37 = vor.u32 %v8360_v22, %v7372_v12 }
 0x271   : > { %5507 = vmatpush.bf16.msra.mxu1 %v7165_v16  ;;  %v7740_v36 = vld [vmem:[%s9291_s11 + $0xde8] sm:$0xf]  ;;  %v8452_v16 = vld [vmem:[%s9291_s11 + $0xdf4] sm:$0xf0]  ;;  %v7613_v40 = vor.u32 %v8420_v14, %v7612_v51 }
 0x272   : > { %5520 = vmatpush.bf16.msra.mxu2 %v7293_v17  ;;  %v7868_v17 = vld [vmem:[%s9291_s11 + $0xee8] sm:$0xf]  ;;  %v8516_v39 = vld [vmem:[%s9291_s11 + $0xff4] sm:$0xf0]  ;;  %v7741_v34 = vor.u32 %v8452_v16, %v7740_v36 }
 0x273   : > { %5533 = vmatpush.bf16.msra.mxu3 %v7421_v15  ;;  %v7996_v15 = vld [vmem:[%s9291_s11 + $0xfe8] sm:$0xf]  ;;  %v7869_v45 = vor.u32 %v8484_v18, %v7868_v17  ;;  %v8416_v47 = vld [vmem:[%s9291_s11 + $0xcd4] sm:$0xf0] }
 0x274   : > { %5495 = vmatpush.bf16.msra.mxu0 %v7021_v46  ;;  %v7596_v46 = vld [vmem:[%s9291_s11 + $0xcc8] sm:$0xf]  ;;  %v8448_v50 = vld [vmem:[%s9291_s11 + $0xdd4] sm:$0xf0] }
 0x275   : > { %5508 = vmatpush.bf16.msra.mxu1 %v7149_v57  ;;  %v7724_v57 = vld [vmem:[%s9291_s11 + $0xdc8] sm:$0xf]  ;;  %v8480_v54 = vld [vmem:[%s9291_s11 + $0xed4] sm:$0xf0]  ;;  %v7597_v56 = vor.u32 %v8416_v47, %v7596_v46 }
 0x276   : > { %5521 = vmatpush.bf16.msra.mxu2 %v7277_v49  ;;  %v7997_v49 = vor.u32 %v8516_v39, %v7996_v15  ;;  %v7852_v52 = vld [vmem:[%s9291_s11 + $0xec8] sm:$0xf]  ;;  %v7725_v59 = vor.u32 %v8448_v50, %v7724_v57  ;;  %v8412_v24 = vld [vmem:[%s9291_s11 + $0xcb4] sm:$0xf0] }
 0x277   : > { %5534 = vmatpush.bf16.msra.mxu3 %v7405_v60  ;;  %v7980_v55 = vld [vmem:[%s9291_s11 + $0xfc8] sm:$0xf]  ;;  %v8512_v60 = vld [vmem:[%s9291_s11 + $0xfd4] sm:$0xf0]  ;;  %v7853_v58 = vor.u32 %v8480_v54, %v7852_v52  ;;  %v5240_v52 = vadd.f32 %v10130_v5, %v10076_v26 }
 0x278   : > { %5496 = vmatpush.bf16.msra.mxu0 %v7005_v61  ;;  %v7580_v48 = vld [vmem:[%s9291_s11 + $0xca8] sm:$0xf]  ;;  %v7981_v63 = vor.u32 %v8512_v60, %v7980_v55  ;;  %v8444_v0 = vld [vmem:[%s9291_s11 + $0xdb4] sm:$0xf0] }
 0x279   : > { %5509 = vmatpush.bf16.msra.mxu1 %v7133_v1  ;;  %v7708_v61 = vld [vmem:[%s9291_s11 + $0xda8] sm:$0xf]  ;;  %v8508_v7 = vld [vmem:[%s9291_s11 + $0xfb4] sm:$0xf0]  ;;  %v7581_v62 = vor.u32 %v8412_v24, %v7580_v48 }
 0x27a   : > { %5522 = vmatpush.bf16.msra.mxu2 %v7261_v2  ;;  %v7836_v1 = vld [vmem:[%s9291_s11 + $0xea8] sm:$0xf]  ;;  %v8476_v2 = vld [vmem:[%s9291_s11 + $0xeb4] sm:$0xf0]  ;;  %v7709_v8 = vor.u32 %v8444_v0, %v7708_v61 }
 0x27b   : > { %5535 = vmatpush.bf16.msra.mxu3 %v7389_v9  ;;  %v7964_v3 = vld [vmem:[%s9291_s11 + $0xfa8] sm:$0xf]  ;;  %v7837_v9 = vor.u32 %v8476_v2, %v7836_v1  ;;  %v8408_v12 = vld [vmem:[%s9291_s11 + $0xc94] sm:$0xf0] }
 0x27c   : > { %5497 = vmatpush.bf16.msra.mxu0 %v6989_v13  ;;  %v7564_v10 = vld [vmem:[%s9291_s11 + $0xc88] sm:$0xf]  ;;  %v7965_v53 = vor.u32 %v8508_v7, %v7964_v3  ;;  %v8440_v51 = vld [vmem:[%s9291_s11 + $0xd94] sm:$0xf0]  ;;  %v10204_v13 = vpop.f32.mrf.mxu0  ;;  %v5253_v7 = vadd.f32 %v10135_v11, %v5240_v52  ;;  %v8066_v52 = vld [vmem:[%s9291_s11 + $0x1ec] sm:$0xf] }
 0x27d   : > { %5510 = vmatpush.bf16.msra.mxu1 %v7117_v19  ;;  %v7692_v22 = vld [vmem:[%s9291_s11 + $0xd88] sm:$0xf]  ;;  %v8472_v36 = vld [vmem:[%s9291_s11 + $0xe94] sm:$0xf0]  ;;  %v7565_v18 = vor.u32 %v8408_v12, %v7564_v10  ;;  %v10208_v19 = vpop.f32.mrf.mxu1 }
 0x27e   : > { %5523 = vmatpush.bf16.msra.mxu2 %v7245_v27  ;;  %v7820_v14 = vld [vmem:[%s9291_s11 + $0xe88] sm:$0xf]  ;;  %v8504_v17 = vld [vmem:[%s9291_s11 + $0xf94] sm:$0xf0]  ;;  %v7693_v27 = vor.u32 %v8440_v51, %v7692_v22 }
 0x27f   : > { %5536 = vmatpush.bf16.msra.mxu3 %v7373_v37  ;;  %5498 = vmatmul.bf16.vlgmr.msra.gmra.mxu0 %v9538_v25  ;;  %v7948_v16 = vld [vmem:[%s9291_s11 + $0xf88] sm:$0xf]  ;;  %v7821_v15 = vor.u32 %v8472_v36, %v7820_v14  ;;  %v8404_v37 = vld [vmem:[%s9291_s11 + $0xc74] sm:$0xf0] }
 0x280   : > { %5542 = vmatpush.bf16.msrb.mxu0 %v7613_v40  ;;  %5511 = vmatmul.bf16.vlgmr.msra.gmra.mxu1 %v9545_v30  ;;  %v7548_v39 = vld [vmem:[%s9291_s11 + $0xc68] sm:$0xf]  ;;  %v8468_v47 = vld [vmem:[%s9291_s11 + $0xe74] sm:$0xf0] }
 0x281   : > { %5555 = vmatpush.bf16.msrb.mxu1 %v7741_v34  ;;  %5524 = vmatmul.bf16.vlgmr.msra.gmra.mxu2 %v9543_v29  ;;  %v7676_v40 = vld [vmem:[%s9291_s11 + $0xd68] sm:$0xf]  ;;  %v7949_v34 = vor.u32 %v8504_v17, %v7948_v16  ;;  %v7549_v50 = vor.u32 %v8404_v37, %v7548_v39  ;;  %v8432_v24 = vld [vmem:[%s9291_s11 + $0xd54] sm:$0xf0] }
 0x282   : > { %5568 = vmatpush.bf16.msrb.mxu2 %v7869_v45  ;;  %5537 = vmatmul.bf16.vlgmr.msra.gmra.mxu3 %v9549_v33  ;;  %v8436_v45 = vld [vmem:[%s9291_s11 + $0xd74] sm:$0xf0]  ;;  %v7804_v46 = vld [vmem:[%s9291_s11 + $0xe68] sm:$0xf] }
 0x283   : > { %5581 = vmatpush.bf16.msrb.mxu3 %v7997_v49  ;;  %v7932_v57 = vld [vmem:[%s9291_s11 + $0xf68] sm:$0xf]  ;;  %v8500_v49 = vld [vmem:[%s9291_s11 + $0xf74] sm:$0xf0]  ;;  %v7677_v54 = vor.u32 %v8436_v45, %v7676_v40  ;;  %v7805_v55 = vor.u32 %v8468_v47, %v7804_v46 }
 0x284   : > { %5543 = vmatpush.bf16.msrb.mxu0 %v7597_v56  ;;  %v7532_v60 = vld [vmem:[%s9291_s11 + $0xc48] sm:$0xf]  ;;  %v8400_v56 = vld [vmem:[%s9291_s11 + $0xc54] sm:$0xf0]  ;;  %v10223_v48 = vpop.f32.mrf.mxu2  ;;  %v5293_v1 = vpop.f32.mrf.mxu0 }
 0x285   : > { %5556 = vmatpush.bf16.msrb.mxu1 %v7725_v59  ;;  %v7660_v59 = vld [vmem:[%s9291_s11 + $0xd48] sm:$0xf]  ;;  %v10228_v0 = vpop.f32.mrf.mxu3  ;;  %v8496_v5 = vld [vmem:[%s9291_s11 + $0xf54] sm:$0xf0]  ;;  %v7533_v2 = vor.u32 %v8400_v56, %v7532_v60  ;;  %v5306_v3 = vpop.f32.mrf.mxu1  ;;  %v6206_v60 = vld [vmem:[%s9291_s11 + $0x1f8] sm:$0xf0] }
 0x286   : > { %5569 = vmatpush.bf16.msrb.mxu2 %v7853_v58  ;;  %v7933_v58 = vor.u32 %v8500_v49, %v7932_v57  ;;  %v7788_v61 = vld [vmem:[%s9291_s11 + $0xe48] sm:$0xf]  ;;  %v8396_v10 = vld [vmem:[%s9291_s11 + $0xc34] sm:$0xf0]  ;;  %v8098_v56 = vld [vmem:[%s9291_s11 + $0x2ec] sm:$0xf]  ;;  %v6209_v3 = vor.u32 %v8066_v52, %v6206_v60 }
 0x287   : > { %5582 = vmatpush.bf16.msrb.mxu3 %v7981_v63  ;;  %v8464_v63 = vld [vmem:[%s9291_s11 + $0xe54] sm:$0xf0]  ;;  %v7916_v26 = vld [vmem:[%s9291_s11 + $0xf48] sm:$0xf]  ;;  %v8086_v52 = vld [vmem:[%s9291_s11 + $0x28c] sm:$0xf] }
 0x288   : > { %5544 = vmatpush.bf16.msrb.mxu0 %v7581_v62  ;;  %v7661_v62 = vor.u32 %v8432_v24, %v7660_v59  ;;  %v7644_v12 = vld [vmem:[%s9291_s11 + $0xd28] sm:$0xf]  ;;  %v7917_v22 = vor.u32 %v8496_v5, %v7916_v26  ;;  %v8460_v14 = vld [vmem:[%s9291_s11 + $0xe34] sm:$0xf0]  ;;  %v6334_v59 = vld [vmem:[%s9291_s11 + $0x2f8] sm:$0xf0] }
 0x289   : > { %5557 = vmatpush.bf16.msrb.mxu1 %v7709_v8  ;;  %v7789_v8 = vor.u32 %v8464_v63, %v7788_v61  ;;  %v7772_v51 = vld [vmem:[%s9291_s11 + $0xe28] sm:$0xf]  ;;  %v8492_v11 = vld [vmem:[%s9291_s11 + $0xf34] sm:$0xf0]  ;;  %v8130_v63 = vld [vmem:[%s9291_s11 + $0x3ec] sm:$0xf] }
 0x28a   : > { %5570 = vmatpush.bf16.msrb.mxu2 %v7837_v9  ;;  %v7516_v9 = vld [vmem:[%s9291_s11 + $0xc28] sm:$0xf]  ;;  %v7773_v39 = vor.u32 %v8460_v14, %v7772_v51  ;;  %v8424_v40 = vld [vmem:[%s9291_s11 + $0xd14] sm:$0xf0]  ;;  %v6462_v26 = vld [vmem:[%s9291_s11 + $0x3f8] sm:$0xf0] }
 0x28b   : > { %5583 = vmatpush.bf16.msrb.mxu3 %v7965_v53  ;;  %v8428_v53 = vld [vmem:[%s9291_s11 + $0xd34] sm:$0xf0]  ;;  %v7900_v36 = vld [vmem:[%s9291_s11 + $0xf28] sm:$0xf]  ;;  %v7517_v16 = vor.u32 %v8396_v10, %v7516_v9  ;;  %v6465_v9 = vor.u32 %v8130_v63, %v6462_v26  ;;  %v6190_v10 = vld [vmem:[%s9291_s11 + $0x1d8] sm:$0xf0] }
 0x28c   : > { %5545 = vmatpush.bf16.msrb.mxu0 %v7565_v18  ;;  %v7500_v17 = vld [vmem:[%s9291_s11 + $0xc08] sm:$0xf]  ;;  %v8392_v18 = vld [vmem:[%s9291_s11 + $0xc14] sm:$0xf0]  ;;  %v7901_v45 = vor.u32 %v8492_v11, %v7900_v36  ;;  %v5319_v49 = vpop.f32.mrf.mxu2  ;;  %v6446_v51 = vld [vmem:[%s9291_s11 + $0x3d8] sm:$0xf0] }
 0x28d   : > { %5558 = vmatpush.bf16.msrb.mxu1 %v7693_v27  ;;  %v5266_v27 = vadd.f32 %v10145_v32, %v5253_v7  ;;  %v7628_v37 = vld [vmem:[%s9291_s11 + $0xd08] sm:$0xf]  ;;  %v8456_v46 = vld [vmem:[%s9291_s11 + $0xe14] sm:$0xf0]  ;;  %v8034_v32 = vld [vmem:[%s9291_s11 + $0xec] sm:$0xf]  ;;  %v6337_v7 = vor.u32 %v8098_v56, %v6334_v59 }
 0x28e   : > { %5571 = vmatpush.bf16.msrb.mxu2 %v7821_v15  ;;  %v7645_v15 = vor.u32 %v8428_v53, %v7644_v12  ;;  %v7884_v47 = vld [vmem:[%s9291_s11 + $0xf08] sm:$0xf]  ;;  %v8488_v57 = vld [vmem:[%s9291_s11 + $0xf14] sm:$0xf0]  ;;  %v7629_v24 = vor.u32 %v8424_v40, %v7628_v37  ;;  %v8094_v12 = vld [vmem:[%s9291_s11 + $0x2cc] sm:$0xf] }
 0x28f   : > { %5584 = vmatpush.bf16.msrb.mxu3 %v7949_v34  ;;  %v7756_v34 = vld [vmem:[%s9291_s11 + $0xe08] sm:$0xf]  ;;  %v7885_v5 = vor.u32 %v8488_v57, %v7884_v47  ;;  %v8126_v53 = vld [vmem:[%s9291_s11 + $0x3cc] sm:$0xf]  ;;  %v6302_v37 = vld [vmem:[%s9291_s11 + $0x2b8] sm:$0xf0] }
 0x290   : > { %5546 = vmatpush.bf16.msrb.mxu0 %v7549_v50  ;;  %v6078_v50 = vld [vmem:[%s9291_s11 + $0xf8] sm:$0xf0]  ;;  %v7757_v61 = vor.u32 %v8456_v46, %v7756_v34  ;;  %v8122_v40 = vld [vmem:[%s9291_s11 + $0x3ac] sm:$0xf] }
 0x291   : > { %5559 = vmatpush.bf16.msrb.mxu1 %v7677_v54  ;;  %v5332_v54 = vpop.f32.mrf.mxu3  ;;  %v6081_v1 = vor.u32 %v8034_v32, %v6078_v50  ;;  %v6430_v34 = vld [vmem:[%s9291_s11 + $0x3b8] sm:$0xf0]  ;;  %v8054_v49 = vld [vmem:[%s9291_s11 + $0x18c] sm:$0xf] }
 0x292   : > { %5572 = vmatpush.bf16.msrb.mxu2 %v7805_v55  ;;  %v7501_v55 = vor.u32 %v8392_v18, %v7500_v17  ;;  %v6046_v17 = vld [vmem:[%s9291_s11 + $0xb8] sm:$0xf0]  ;;  %v8058_v18 = vld [vmem:[%s9291_s11 + $0x1ac] sm:$0xf]  ;;  %v6433_v32 = vor.u32 %v8122_v40, %v6430_v34 }
 0x293   : > { %5585 = vmatpush.bf16.msrb.mxu3 %v7933_v58  ;;  %v5279_v58 = vadd.f32 %v10150_v43, %v5266_v27  ;;  %v6062_v43 = vld [vmem:[%s9291_s11 + $0xd8] sm:$0xf0]  ;;  %v6449_v27 = vor.u32 %v8126_v53, %v6446_v51  ;;  %v8118_v56 = vld [vmem:[%s9291_s11 + $0x38c] sm:$0xf] }
 0x294   : > { %5547 = vmatpush.bf16.msrb.mxu0 %v7533_v2  ;;  %v6030_v57 = vld [vmem:[%s9291_s11 + $0x98] sm:$0xf0]  ;;  %v8014_v53 = vld [vmem:[%s9291_s11 + $0x4c] sm:$0xf] }
 0x295   : > { %5560 = vmatpush.bf16.msrb.mxu1 %v7661_v62  ;;  %v5292_v2 = vadd.f32 %v10204_v13, %v5279_v58  ;;  %v8030_v62 = vld [vmem:[%s9291_s11 + $0xcc] sm:$0xf]  ;;  %v6158_v50 = vld [vmem:[%s9291_s11 + $0x198] sm:$0xf0] }
 0x296   : > { %5573 = vmatpush.bf16.msrb.mxu2 %v7789_v8  ;;  %v8062_v8 = vld [vmem:[%s9291_s11 + $0x1cc] sm:$0xf]  ;;  %v6065_v13 = vor.u32 %v8030_v62, %v6062_v43  ;;  %v6286_v54 = vld [vmem:[%s9291_s11 + $0x298] sm:$0xf0]  ;;  %v6161_v63 = vor.u32 %v8054_v49, %v6158_v50 }
 0x297   : > { %5586 = vmatpush.bf16.msrb.mxu3 %v7917_v22  ;;  %v6318_v22 = vld [vmem:[%s9291_s11 + $0x2d8] sm:$0xf0]  ;;  %v5305_v14 = vadd.f32 %v10208_v19, %v5292_v2  ;;  %v6193_v36 = vor.u32 %v8062_v8, %v6190_v10  ;;  %v6289_v26 = vor.u32 %v8086_v52, %v6286_v54  ;;  %v8114_v43 = vld [vmem:[%s9291_s11 + $0x36c] sm:$0xf] }
 0x298   : > { %5548 = vmatpush.bf16.msrb.mxu0 %v7517_v16  ;;  %v6321_v11 = vor.u32 %v8094_v12, %v6318_v22  ;;  %v8026_v16 = vld [vmem:[%s9291_s11 + $0xac] sm:$0xf]  ;;  %v6414_v59 = vld [vmem:[%s9291_s11 + $0x398] sm:$0xf0] }
 0x299   : > { %5561 = vmatpush.bf16.msrb.mxu1 %v7645_v15  ;;  %v6174_v15 = vld [vmem:[%s9291_s11 + $0x1b8] sm:$0xf0]  ;;  %v5318_v19 = vadd.f32 %v10223_v48, %v5305_v14  ;;  %v8022_v48 = vld [vmem:[%s9291_s11 + $0x8c] sm:$0xf]  ;;  %v6417_v2 = vor.u32 %v8118_v56, %v6414_v59 }
 0x29a   : > { %5574 = vmatpush.bf16.msrb.mxu2 %v7773_v39  ;;  %v8090_v39 = vld [vmem:[%s9291_s11 + $0x2ac] sm:$0xf]  ;;  %v6177_v46 = vor.u32 %v8058_v18, %v6174_v15  ;;  %v6033_v58 = vor.u32 %v8022_v48, %v6030_v57  ;;  %v6270_v62 = vld [vmem:[%s9291_s11 + $0x278] sm:$0xf0] }
 0x29b   : > { %5587 = vmatpush.bf16.msrb.mxu3 %v7901_v45  ;;  %v6049_v45 = vor.u32 %v8026_v16, %v6046_v17  ;;  %v6305_v47 = vor.u32 %v8090_v39, %v6302_v37  ;;  %v6398_v8 = vld [vmem:[%s9291_s11 + $0x378] sm:$0xf0]  ;;  %v8078_v16 = vld [vmem:[%s9291_s11 + $0x24c] sm:$0xf] }
 0x29c   : > { %5549 = vmatpush.bf16.msrb.mxu0 %v7501_v55  ;;  %v5331_v55 = vadd.f32 %v10228_v0, %v5318_v19  ;;  %v5343_v60 = vpop.f32.mrf.mxu0  ;;  %v8050_v0 = vld [vmem:[%s9291_s11 + $0x16c] sm:$0xf]  ;;  %v5998_v51 = vld [vmem:[%s9291_s11 + $0x58] sm:$0xf0]  ;;  %v6401_v14 = vor.u32 %v8114_v43, %v6398_v8 }
 0x29d   : > { %5562 = vmatpush.bf16.msrb.mxu1 %v7629_v24  ;;  %v5356_v24 = vpop.f32.mrf.mxu1  ;;  %v6254_v17 = vld [vmem:[%s9291_s11 + $0x258] sm:$0xf0]  ;;  %v8110_v15 = vld [vmem:[%s9291_s11 + $0x34c] sm:$0xf]  ;;  %v6001_v19 = vor.u32 %v8014_v53, %v5998_v51 }
 0x29e   : > { %5575 = vmatpush.bf16.msrb.mxu2 %v7757_v61  ;;  %v5344_v61 = vadd.f32 %v5343_v60, %v5331_v55  ;;  %v6382_v39 = vld [vmem:[%s9291_s11 + $0x358] sm:$0xf0]  ;;  %v8042_v57 = vld [vmem:[%s9291_s11 + $0x12c] sm:$0xf] }
 0x29f   : > { %5588 = vmatpush.bf16.msrb.mxu3 %v7885_v5  ;;  %5550 = vmatmul.bf16.vlgmr.msrb.gmra.mxu0 %v9620_v23  ;;  %v8018_v5 = vld [vmem:[%s9291_s11 + $0x6c] sm:$0xf]  ;;  %v5982_v48 = vld [vmem:[%s9291_s11 + $0x38] sm:$0xf0]  ;;  %v6385_v49 = vor.u32 %v8110_v15, %v6382_v39 }
 0x2a0   : > { %5594 = vmatpush.bf16.msra.mxu0 %v6081_v1  ;;  %5563 = vmatmul.bf16.vlgmr.msrb.gmra.mxu1 %v9627_v31  ;;  %v6014_v1 = vld [vmem:[%s9291_s11 + $0x78] sm:$0xf0]  ;;  %v5357_v10 = vadd.f32 %v5356_v24, %v5344_v61  ;;  %v8074_v50 = vld [vmem:[%s9291_s11 + $0x22c] sm:$0xf] }
 0x2a1   : > { %5607 = vmatpush.bf16.msra.mxu1 %v6209_v3  ;;  %5576 = vmatmul.bf16.vlgmr.msrb.gmra.mxu2 %v9625_v28  ;;  %v6142_v3 = vld [vmem:[%s9291_s11 + $0x178] sm:$0xf0]  ;;  %v8106_v55 = vld [vmem:[%s9291_s11 + $0x32c] sm:$0xf] }
 0x2a2   : > { %5620 = vmatpush.bf16.msra.mxu2 %v6337_v7  ;;  %5589 = vmatmul.bf16.vlgmr.msrb.gmra.mxu3 %v9631_v35  ;;  %v8082_v7 = vld [vmem:[%s9291_s11 + $0x26c] sm:$0xf]  ;;  %v6145_v12 = vor.u32 %v8050_v0, %v6142_v3  ;;  %v6238_v52 = vld [vmem:[%s9291_s11 + $0x238] sm:$0xf0] }
 0x2a3   : > { %5633 = vmatpush.bf16.msra.mxu3 %v6465_v9  ;;  %v6017_v9 = vor.u32 %v8018_v5, %v6014_v1  ;;  %v6273_v22 = vor.u32 %v8082_v7, %v6270_v62  ;;  %v6366_v60 = vld [vmem:[%s9291_s11 + $0x338] sm:$0xf0]  ;;  %v8006_v59 = vld [vmem:[%s9291_s11 + $0xc] sm:$0xf] }
 0x2a4   : > { %5595 = vmatpush.bf16.msra.mxu0 %v6065_v13  ;;  %v8046_v13 = vld [vmem:[%s9291_s11 + $0x14c] sm:$0xf]  ;;  %v5345_v37 = vpop.f32.mrf.mxu0  ;;  %v6369_v1 = vor.u32 %v8106_v55, %v6366_v60  ;;  %v6222_v0 = vld [vmem:[%s9291_s11 + $0x218] sm:$0xf0] }
 0x2a5   : > { %5608 = vmatpush.bf16.msra.mxu1 %v6193_v36  ;;  %v5369_v36 = vpop.f32.mrf.mxu2  ;;  %v5358_v40 = vpop.f32.mrf.mxu1  ;;  %v8038_v24 = vld [vmem:[%s9291_s11 + $0x10c] sm:$0xf]  ;;  %v6350_v3 = vld [vmem:[%s9291_s11 + $0x318] sm:$0xf0] }
 0x2a6   : > { %5621 = vmatpush.bf16.msra.mxu2 %v6321_v11  ;;  %v6126_v11 = vld [vmem:[%s9291_s11 + $0x158] sm:$0xf0]  ;;  %v5370_v18 = vadd.f32 %v5369_v36, %v5357_v10  ;;  %v8070_v5 = vld [vmem:[%s9291_s11 + $0x20c] sm:$0xf] }
 0x2a7   : > { %5634 = vmatpush.bf16.msra.mxu3 %v6449_v27  ;;  %v5382_v27 = vpop.f32.mrf.mxu3  ;;  %v8162_v62 = vld [vmem:[%s9291_s11 + $0x4ec] sm:$0xf]  ;;  %v6590_v43 = vld [vmem:[%s9291_s11 + $0x4f8] sm:$0xf0] }
 0x2a8   : > { %5596 = vmatpush.bf16.msra.mxu0 %v6049_v45  ;;  %v5383_v34 = vadd.f32 %v5382_v27, %v5370_v18  ;;  %v6129_v45 = vor.u32 %v8046_v13, %v6126_v11  ;;  %v8194_v8 = vld [vmem:[%s9291_s11 + $0x5ec] sm:$0xf]  ;;  %v6846_v53 = vld [vmem:[%s9291_s11 + $0x6f8] sm:$0xf0]  ;;  %v6225_v13 = vor.u32 %v8070_v5, %v6222_v0  ;;  %v10356_v5 = vld [vmem:[%s9826_s10] sm:$0xf] }
 0x2a9   : > { %5609 = vmatpush.bf16.msra.mxu1 %v6177_v46  ;;  %v6257_v46 = vor.u32 %v8078_v16, %v6254_v17  ;;  %v6974_v36 = vld [vmem:[%s9291_s11 + $0x7f8] sm:$0xf0]  ;;  %v6593_v16 = vor.u32 %v8162_v62, %v6590_v43  ;;  %v8158_v27 = vld [vmem:[%s9291_s11 + $0x4cc] sm:$0xf] }
 0x2aa   : > { %5622 = vmatpush.bf16.msra.mxu2 %v6305_v47  ;;  %v8010_v47 = vld [vmem:[%s9291_s11 + $0x2c] sm:$0xf]  ;;  %v5803_v54 = vmax.f32 %v5383_v34, 0.0  ;;  %v6574_v15 = vld [vmem:[%s9291_s11 + $0x4d8] sm:$0xf0] }
 0x2ab   : > { %5635 = vmatpush.bf16.msra.mxu3 %v6433_v32  ;;  %v6110_v32 = vld [vmem:[%s9291_s11 + $0x138] sm:$0xf0]  ;;  %v5985_v56 = vor.u32 %v8010_v47, %v5982_v48  ;;  %v8190_v39 = vld [vmem:[%s9291_s11 + $0x5cc] sm:$0xf]  ;;  %v6577_v47 = vor.u32 %v8158_v27, %v6574_v15 }
 0x2ac   : > { %5597 = vmatpush.bf16.msra.mxu0 %v6033_v58  ;;  %v5966_v58 = vld [vmem:[%s9291_s11 + $0x18] sm:$0xf0]  ;;  %5807 = vst [vmem:[%s10007_s21 + $0x8] sm:$0xff] %v5803_v54  ;;  %v6113_v61 = vor.u32 %v8042_v57, %v6110_v32  ;;  %v8222_v40 = vld [vmem:[%s9291_s11 + $0x6cc] sm:$0xf] }
 0x2ad   : > { %5610 = vmatpush.bf16.msra.mxu1 %v6161_v63  ;;  %v6241_v63 = vor.u32 %v8074_v50, %v6238_v52  ;;  %v5371_v7 = vpop.f32.mrf.mxu2  ;;  %v5969_v10 = vor.u32 %v8006_v59, %v5966_v58  ;;  %v6830_v34 = vld [vmem:[%s9291_s11 + $0x6d8] sm:$0xf0]  ;;  %v8186_v50 = vld [vmem:[%s9291_s11 + $0x5ac] sm:$0xf] }
 0x2ae   : > { %5623 = vmatpush.bf16.msra.mxu2 %v6289_v26  ;;  %v6094_v26 = vld [vmem:[%s9291_s11 + $0x118] sm:$0xf0]  ;;  %v6833_v57 = vor.u32 %v8222_v40, %v6830_v34  ;;  %v8218_v55 = vld [vmem:[%s9291_s11 + $0x6ac] sm:$0xf] }
 0x2af   : > { %5636 = vmatpush.bf16.msra.mxu3 %v6417_v2  ;;  %v8102_v2 = vld [vmem:[%s9291_s11 + $0x30c] sm:$0xf]  ;;  %v6097_v51 = vor.u32 %v8038_v24, %v6094_v26  ;;  %v6558_v32 = vld [vmem:[%s9291_s11 + $0x4b8] sm:$0xf0] }
 0x2b0   : > { %5598 = vmatpush.bf16.msra.mxu0 %v6017_v9  ;;  %v5384_v9 = vpop.f32.mrf.mxu3  ;;  %v6353_v11 = vor.u32 %v8102_v2, %v6350_v3  ;;  %v6686_v54 = vld [vmem:[%s9291_s11 + $0x5b8] sm:$0xf0]  ;;  %v8150_v24 = vld [vmem:[%s9291_s11 + $0x48c] sm:$0xf] }
 0x2b1   : > { %5611 = vmatpush.bf16.msra.mxu1 %v6145_v12  ;;  %v6718_v12 = vld [vmem:[%s9291_s11 + $0x5f8] sm:$0xf0]  ;;  %v8182_v26 = vld [vmem:[%s9291_s11 + $0x58c] sm:$0xf] }
 0x2b2   : > { %5624 = vmatpush.bf16.msra.mxu2 %v6273_v22  ;;  %v8226_v22 = vld [vmem:[%s9291_s11 + $0x6ec] sm:$0xf]  ;;  %v6721_v17 = vor.u32 %v8194_v8, %v6718_v12  ;;  %v6814_v60 = vld [vmem:[%s9291_s11 + $0x6b8] sm:$0xf0] }
 0x2b3   : > { %5637 = vmatpush.bf16.msra.mxu3 %v6401_v14  ;;  %v8258_v14 = vld [vmem:[%s9291_s11 + $0x7ec] sm:$0xf]  ;;  %v6849_v18 = vor.u32 %v8226_v22, %v6846_v53  ;;  %v6942_v59 = vld [vmem:[%s9291_s11 + $0x7b8] sm:$0xf0] }
 0x2b4   : > { %5599 = vmatpush.bf16.msra.mxu0 %v6001_v19  ;;  %v6977_v37 = vor.u32 %v8258_v14, %v6974_v36  ;;  %v6702_v19 = vld [vmem:[%s9291_s11 + $0x5d8] sm:$0xf0]  ;;  %v8214_v0 = vld [vmem:[%s9291_s11 + $0x68c] sm:$0xf] }
 0x2b5   : > { %5612 = vmatpush.bf16.msra.mxu1 %v6129_v45  ;;  %v8254_v45 = vld [vmem:[%s9291_s11 + $0x7cc] sm:$0xf]  ;;  %v6705_v48 = vor.u32 %v8190_v39, %v6702_v19  ;;  %v6798_v2 = vld [vmem:[%s9291_s11 + $0x698] sm:$0xf0] }
 0x2b6   : > { %5625 = vmatpush.bf16.msra.mxu2 %v6257_v46  ;;  %v6958_v46 = vld [vmem:[%s9291_s11 + $0x7d8] sm:$0xf0]  ;;  %v8246_v3 = vld [vmem:[%s9291_s11 + $0x78c] sm:$0xf]  ;;  %v6801_v8 = vor.u32 %v8214_v0, %v6798_v2 }
 0x2b7   : > { %5638 = vmatpush.bf16.msra.mxu3 %v6385_v49  ;;  %v8154_v49 = vld [vmem:[%s9291_s11 + $0x4ac] sm:$0xf]  ;;  %v6961_v52 = vor.u32 %v8254_v45, %v6958_v46  ;;  %v6782_v36 = vld [vmem:[%s9291_s11 + $0x678] sm:$0xf0] }
 0x2b8   : > { %5600 = vmatpush.bf16.msra.mxu0 %v5985_v56  ;;  %v8250_v56 = vld [vmem:[%s9291_s11 + $0x7ac] sm:$0xf]  ;;  %v6561_v58 = vor.u32 %v8154_v49, %v6558_v32  ;;  %v6638_v45 = vld [vmem:[%s9291_s11 + $0x558] sm:$0xf0] }
 0x2b9   : > { %5613 = vmatpush.bf16.msra.mxu1 %v6113_v61  ;;  %v6689_v61 = vor.u32 %v8186_v50, %v6686_v54  ;;  %v8146_v9 = vld [vmem:[%s9291_s11 + $0x46c] sm:$0xf]  ;;  %v6894_v32 = vld [vmem:[%s9291_s11 + $0x758] sm:$0xf0] }
 0x2ba   : > { %5626 = vmatpush.bf16.msra.mxu2 %v6241_v63  ;;  %v6542_v63 = vld [vmem:[%s9291_s11 + $0x498] sm:$0xf0]  ;;  %v8178_v12 = vld [vmem:[%s9291_s11 + $0x56c] sm:$0xf] }
 0x2bb   : > { %5639 = vmatpush.bf16.msra.mxu3 %v6369_v1  ;;  %v6670_v1 = vld [vmem:[%s9291_s11 + $0x598] sm:$0xf0]  ;;  %v6545_v7 = vor.u32 %v8150_v24, %v6542_v63  ;;  %v8210_v14 = vld [vmem:[%s9291_s11 + $0x66c] sm:$0xf] }
 0x2bc   : > { %5601 = vmatpush.bf16.msra.mxu0 %v5969_v10  ;;  %v5395_v62 = vpop.f32.mrf.mxu0  ;;  %v6673_v43 = vor.u32 %v8182_v26, %v6670_v1  ;;  %v6526_v10 = vld [vmem:[%s9291_s11 + $0x478] sm:$0xf0]  ;;  %v6785_v15 = vor.u32 %v8210_v14, %v6782_v36  ;;  %v8142_v39 = vld [vmem:[%s9291_s11 + $0x44c] sm:$0xf] }
 0x2bd   : > { %5614 = vmatpush.bf16.msra.mxu1 %v6097_v51  ;;  %v5408_v53 = vpop.f32.mrf.mxu1  ;;  %v8174_v19 = vld [vmem:[%s9291_s11 + $0x54c] sm:$0xf]  ;;  %v6750_v26 = vld [vmem:[%s9291_s11 + $0x638] sm:$0xf0] }
 0x2be   : > { %5627 = vmatpush.bf16.msra.mxu2 %v6225_v13  ;;  %v6654_v13 = vld [vmem:[%s9291_s11 + $0x578] sm:$0xf0]  ;;  %v8206_v46 = vld [vmem:[%s9291_s11 + $0x64c] sm:$0xf] }
 0x2bf   : > { %5640 = vmatpush.bf16.msra.mxu3 %v6353_v11  ;;  %5602 = vmatmul.bf16.vlgmr.msra.gmra.mxu0 %v9400_v20  ;;  %v6945_v20 = vor.u32 %v8250_v56, %v6942_v59  ;;  %v8242_v11 = vld [vmem:[%s9291_s11 + $0x76c] sm:$0xf]  ;;  %v6657_v27 = vor.u32 %v8178_v12, %v6654_v13  ;;  %v6494_v59 = vld [vmem:[%s9291_s11 + $0x438] sm:$0xf0] }
 0x2c0   : > { %5646 = vmatpush.bf16.msrb.mxu0 %v6593_v16  ;;  %5615 = vmatmul.bf16.vlgmr.msra.gmra.mxu1 %v9403_v21  ;;  %v6926_v21 = vld [vmem:[%s9291_s11 + $0x798] sm:$0xf0]  ;;  %v8238_v49 = vld [vmem:[%s9291_s11 + $0x74c] sm:$0xf] }
 0x2c1   : > { %5659 = vmatpush.bf16.msrb.mxu1 %v6721_v17  ;;  %5628 = vmatmul.bf16.vlgmr.msra.gmra.mxu2 %v9384_v4  ;;  %v6817_v4 = vor.u32 %v8218_v55, %v6814_v60  ;;  %v6929_v51 = vor.u32 %v8246_v3, %v6926_v21  ;;  %v6910_v16 = vld [vmem:[%s9291_s11 + $0x778] sm:$0xf0]  ;;  %v6641_v55 = vor.u32 %v8174_v19, %v6638_v45  ;;  %v8138_v56 = vld [vmem:[%s9291_s11 + $0x42c] sm:$0xf] }
 0x2c2   : > { %5672 = vmatpush.bf16.msrb.mxu2 %v6849_v18  ;;  %5641 = vmatmul.bf16.vlgmr.msra.gmra.mxu3 %v9389_v6  ;;  %v2348_v6 = vperm.slane %v10356_v5, 2  ;;  %v6529_v18 = vor.u32 %v8146_v9, %v6526_v10  ;;  %v6913_v34 = vor.u32 %v8242_v11, %v6910_v16  ;;  %v8202_v63 = vld [vmem:[%s9291_s11 + $0x62c] sm:$0xf]  ;;  %v6497_v1 = vor.u32 %v8138_v56, %v6494_v59  ;;  %v6478_v2 = vld [vmem:[%s9291_s11 + $0x418] sm:$0xf0] }
 0x2c3   : > { %5685 = vmatpush.bf16.msrb.mxu3 %v6977_v37  ;;  %v6510_v37 = vld [vmem:[%s9291_s11 + $0x458] sm:$0xf0]  ;;  %v8134_v0 = vld [vmem:[%s9291_s11 + $0x40c] sm:$0xf]  ;;  %v6753_v21 = vor.u32 %v8202_v63, %v6750_v26 }
 0x2c4   : > { %5647 = vmatpush.bf16.msrb.mxu0 %v6577_v47  ;;  %v5396_v22 = vadd.f32 %v5395_v62, %v2348_v6  ;;  %v5421_v40 = vpop.f32.mrf.mxu2  ;;  %v6766_v47 = vld [vmem:[%s9291_s11 + $0x658] sm:$0xf0]  ;;  %v6513_v50 = vor.u32 %v8142_v39, %v6510_v37  ;;  %v5397_v54 = vpop.f32.mrf.mxu0  ;;  %v8234_v6 = vld [vmem:[%s9291_s11 + $0x72c] sm:$0xf]  ;;  %v6481_v36 = vor.u32 %v8134_v0, %v6478_v2 }
 0x2c5   : > { %5660 = vmatpush.bf16.msrb.mxu1 %v6705_v48  ;;  %v6769_v60 = vor.u32 %v8206_v46, %v6766_v47  ;;  %v5410_v24 = vpop.f32.mrf.mxu1  ;;  %v6606_v62 = vld [vmem:[%s9291_s11 + $0x518] sm:$0xf0]  ;;  %v8230_v12 = vld [vmem:[%s9291_s11 + $0x70c] sm:$0xf] }
 0x2c6   : > { %5673 = vmatpush.bf16.msrb.mxu2 %v6833_v57  ;;  %v5409_v17 = vadd.f32 %v5408_v53, %v5396_v22  ;;  %v5434_v57 = vpop.f32.mrf.mxu3  ;;  %v6734_v10 = vld [vmem:[%s9291_s11 + $0x618] sm:$0xf0]  ;;  %v8322_v14 = vld [vmem:[%s9291_s11 + $0x9ec] sm:$0xf] }
 0x2c7   : > { %5686 = vmatpush.bf16.msrb.mxu3 %v6961_v52  ;;  %v6862_v22 = vld [vmem:[%s9291_s11 + $0x718] sm:$0xf0]  ;;  %v8354_v16 = vld [vmem:[%s9291_s11 + $0xaec] sm:$0xf] }
 0x2c8   : > { %5648 = vmatpush.bf16.msrb.mxu0 %v6561_v58  ;;  %v5422_v48 = vadd.f32 %v5421_v40, %v5409_v17  ;;  %v8170_v58 = vld [vmem:[%s9291_s11 + $0x52c] sm:$0xf]  ;;  %v7102_v13 = vld [vmem:[%s9291_s11 + $0x8f8] sm:$0xf0]  ;;  %v6865_v37 = vor.u32 %v8230_v12, %v6862_v22 }
 0x2c9   : > { %5661 = vmatpush.bf16.msrb.mxu1 %v6689_v61  ;;  %v6897_v61 = vor.u32 %v8238_v49, %v6894_v32  ;;  %v7230_v11 = vld [vmem:[%s9291_s11 + $0x9f8] sm:$0xf0]  ;;  %v8286_v45 = vld [vmem:[%s9291_s11 + $0x8cc] sm:$0xf] }
 0x2ca   : > { %5674 = vmatpush.bf16.msrb.mxu2 %v6817_v4  ;;  %v10380_v52 = vadd.f32 %v5434_v57, %v5422_v48  ;;  %v6622_v4 = vld [vmem:[%s9291_s11 + $0x538] sm:$0xf0]  ;;  %v7233_v40 = vor.u32 %v8322_v14, %v7230_v11  ;;  %v8318_v47 = vld [vmem:[%s9291_s11 + $0x9cc] sm:$0xf] }
 0x2cb   : > { %5687 = vmatpush.bf16.msrb.mxu3 %v6945_v20  ;;  %v6878_v20 = vld [vmem:[%s9291_s11 + $0x738] sm:$0xf0]  ;;  %v6625_v3 = vor.u32 %v8170_v58, %v6622_v4  ;;  %v8350_v49 = vld [vmem:[%s9291_s11 + $0xacc] sm:$0xf] }
 0x2cc   : > { %5649 = vmatpush.bf16.msrb.mxu0 %v6545_v7  ;;  %v8166_v7 = vld [vmem:[%s9291_s11 + $0x50c] sm:$0xf]  ;;  %v6881_v9 = vor.u32 %v8234_v6, %v6878_v20  ;;  %v7358_v17 = vld [vmem:[%s9291_s11 + $0xaf8] sm:$0xf0] }
 0x2cd   : > { %5662 = vmatpush.bf16.msrb.mxu1 %v6673_v43  ;;  %v8198_v43 = vld [vmem:[%s9291_s11 + $0x60c] sm:$0xf]  ;;  %v7486_v39 = vld [vmem:[%s9291_s11 + $0xbf8] sm:$0xf0] }
 0x2ce   : > { %5675 = vmatpush.bf16.msrb.mxu2 %v6801_v8  ;;  %v5423_v8 = vpop.f32.mrf.mxu2  ;;  %v5436_v53 = vpop.f32.mrf.mxu3  ;;  %v7086_v46 = vld [vmem:[%s9291_s11 + $0x8d8] sm:$0xf0]  ;;  %v8282_v59 = vld [vmem:[%s9291_s11 + $0x8ac] sm:$0xf] }
 0x2cf   : > { %5688 = vmatpush.bf16.msrb.mxu3 %v6929_v51  ;;  %v8290_v51 = vld [vmem:[%s9291_s11 + $0x8ec] sm:$0xf]  ;;  %v7214_v57 = vld [vmem:[%s9291_s11 + $0x9d8] sm:$0xf0] }
 0x2d0   : > { %5650 = vmatpush.bf16.msrb.mxu0 %v6529_v18  ;;  %v6609_v18 = vor.u32 %v8166_v7, %v6606_v62  ;;  %v7105_v19 = vor.u32 %v8290_v51, %v7102_v13  ;;  %v7342_v32 = vld [vmem:[%s9291_s11 + $0xad8] sm:$0xf0]  ;;  %v8314_v24 = vld [vmem:[%s9291_s11 + $0x9ac] sm:$0xf] }
 0x2d1   : > { %5663 = vmatpush.bf16.msrb.mxu1 %v6657_v27  ;;  %v6737_v27 = vor.u32 %v8198_v43, %v6734_v10  ;;  %v7470_v54 = vld [vmem:[%s9291_s11 + $0xbd8] sm:$0xf0]  ;;  %v7345_v56 = vor.u32 %v8350_v49, %v7342_v32  ;;  %v8346_v63 = vld [vmem:[%s9291_s11 + $0xaac] sm:$0xf] }
 0x2d2   : > { %5676 = vmatpush.bf16.msrb.mxu2 %v6785_v15  ;;  %v8386_v15 = vld [vmem:[%s9291_s11 + $0xbec] sm:$0xf]  ;;  %v7070_v58 = vld [vmem:[%s9291_s11 + $0x8b8] sm:$0xf0] }
 0x2d3   : > { %5689 = vmatpush.bf16.msrb.mxu3 %v6913_v34  ;;  %v7361_v34 = vor.u32 %v8354_v16, %v7358_v17  ;;  %v7489_v48 = vor.u32 %v8386_v15, %v7486_v39  ;;  %v7198_v4 = vld [vmem:[%s9291_s11 + $0x9b8] sm:$0xf0]  ;;  %v8378_v6 = vld [vmem:[%s9291_s11 + $0xbac] sm:$0xf] }
 0x2d4   : > { %5651 = vmatpush.bf16.msrb.mxu0 %v6513_v50  ;;  %v8382_v50 = vld [vmem:[%s9291_s11 + $0xbcc] sm:$0xf]  ;;  %v7326_v26 = vld [vmem:[%s9291_s11 + $0xab8] sm:$0xf0] }
 0x2d5   : > { %5664 = vmatpush.bf16.msrb.mxu1 %v6641_v55  ;;  %v7089_v55 = vor.u32 %v8286_v45, %v7086_v46  ;;  %v7454_v20 = vld [vmem:[%s9291_s11 + $0xbb8] sm:$0xf0]  ;;  %v7329_v0 = vor.u32 %v8346_v63, %v7326_v26  ;;  %v8278_v2 = vld [vmem:[%s9291_s11 + $0x88c] sm:$0xf] }
 0x2d6   : > { %5677 = vmatpush.bf16.msrb.mxu2 %v6769_v60  ;;  %v7217_v60 = vor.u32 %v8318_v47, %v7214_v57  ;;  %v8342_v7 = vld [vmem:[%s9291_s11 + $0xa8c] sm:$0xf]  ;;  %v7310_v62 = vld [vmem:[%s9291_s11 + $0xa98] sm:$0xf0] }
 0x2d7   : > { %5690 = vmatpush.bf16.msrb.mxu3 %v6897_v61  ;;  %v7473_v61 = vor.u32 %v8382_v50, %v7470_v54  ;;  %v8374_v43 = vld [vmem:[%s9291_s11 + $0xb8c] sm:$0xf]  ;;  %v7438_v8 = vld [vmem:[%s9291_s11 + $0xb98] sm:$0xf0]  ;;  %v7313_v12 = vor.u32 %v8342_v7, %v7310_v62 }
 0x2d8   : > { %5652 = vmatpush.bf16.msrb.mxu0 %v6497_v1  ;;  %v7073_v1 = vor.u32 %v8282_v59, %v7070_v58  ;;  %v8274_v22 = vld [vmem:[%s9291_s11 + $0x86c] sm:$0xf]  ;;  %v7038_v53 = vld [vmem:[%s9291_s11 + $0x878] sm:$0xf0]  ;;  %v7441_v14 = vor.u32 %v8374_v43, %v7438_v8 }
 0x2d9   : > { %5665 = vmatpush.bf16.msrb.mxu1 %v6625_v3  ;;  %v7054_v3 = vld [vmem:[%s9291_s11 + $0x898] sm:$0xf0]  ;;  %v8306_v51 = vld [vmem:[%s9291_s11 + $0x96c] sm:$0xf] }
 0x2da   : > { %5678 = vmatpush.bf16.msrb.mxu2 %v6753_v21  ;;  %v7182_v21 = vld [vmem:[%s9291_s11 + $0x998] sm:$0xf0]  ;;  %v8338_v11 = vld [vmem:[%s9291_s11 + $0xa6c] sm:$0xf] }
 0x2db   : > { %5691 = vmatpush.bf16.msrb.mxu3 %v6881_v9  ;;  %v7294_v16 = vld [vmem:[%s9291_s11 + $0xa78] sm:$0xf0]  ;;  %v8370_v17 = vld [vmem:[%s9291_s11 + $0xb6c] sm:$0xf] }
 0x2dc   : > { %5653 = vmatpush.bf16.msrb.mxu0 %v6481_v36  ;;  %v10434_v9 = vpop.f32.mrf.mxu0  ;;  %v7166_v36 = vld [vmem:[%s9291_s11 + $0x978] sm:$0xf0]  ;;  %v7297_v39 = vor.u32 %v8338_v11, %v7294_v16  ;;  %v8334_v47 = vld [vmem:[%s9291_s11 + $0xa4c] sm:$0xf] }
 0x2dd   : > { %5666 = vmatpush.bf16.msrb.mxu1 %v6609_v18  ;;  %v10439_v13 = vpop.f32.mrf.mxu1  ;;  %v7422_v18 = vld [vmem:[%s9291_s11 + $0xb78] sm:$0xf0]  ;;  %v7169_v15 = vor.u32 %v8306_v51, %v7166_v36  ;;  %v8366_v49 = vld [vmem:[%s9291_s11 + $0xb4c] sm:$0xf] }
 0x2de   : > { %5679 = vmatpush.bf16.msrb.mxu2 %v6737_v27  ;;  %v7041_v27 = vor.u32 %v8274_v22, %v7038_v53  ;;  %v7425_v45 = vor.u32 %v8370_v17, %v7422_v18  ;;  %v7150_v46 = vld [vmem:[%s9291_s11 + $0x958] sm:$0xf0]  ;;  %v8298_v58 = vld [vmem:[%s9291_s11 + $0x92c] sm:$0xf] }
 0x2df   : > { %5692 = vmatpush.bf16.msrb.mxu3 %v6865_v37  ;;  %5654 = vmatmul.bf16.vlgmr.msrb.gmra.mxu0 %v9463_v41  ;;  %v8310_v41 = vld [vmem:[%s9291_s11 + $0x98c] sm:$0xf]  ;;  %v7406_v32 = vld [vmem:[%s9291_s11 + $0xb58] sm:$0xf0] }
 0x2e0   : > { %5698 = vmatpush.bf16.msra.mxu0 %v7105_v19  ;;  %5667 = vmatmul.bf16.vlgmr.msrb.gmra.mxu1 %v9467_v44  ;;  %v7057_v44 = vor.u32 %v8278_v2, %v7054_v3  ;;  %v7185_v10 = vor.u32 %v8310_v41, %v7182_v21  ;;  %v8270_v37 = vld [vmem:[%s9291_s11 + $0x84c] sm:$0xf]  ;;  %v7022_v19 = vld [vmem:[%s9291_s11 + $0x858] sm:$0xf0] }
 0x2e1   : > { %5711 = vmatpush.bf16.msra.mxu1 %v7233_v40  ;;  %5680 = vmatmul.bf16.vlgmr.msrb.gmra.mxu2 %v9459_v38  ;;  %v7201_v38 = vor.u32 %v8314_v24, %v7198_v4  ;;  %v8302_v40 = vld [vmem:[%s9291_s11 + $0x94c] sm:$0xf]  ;;  %v7025_v50 = vor.u32 %v8270_v37, %v7022_v19  ;;  %v7006_v59 = vld [vmem:[%s9291_s11 + $0x838] sm:$0xf0] }
 0x2e2   : > { %5724 = vmatpush.bf16.msra.mxu2 %v7361_v34  ;;  %5693 = vmatmul.bf16.vlgmr.msrb.gmra.mxu3 %v9465_v42  ;;  %v7457_v42 = vor.u32 %v8378_v6, %v7454_v20  ;;  %v7134_v4 = vld [vmem:[%s9291_s11 + $0x938] sm:$0xf0]  ;;  %v8330_v63 = vld [vmem:[%s9291_s11 + $0xa2c] sm:$0xf] }
 0x2e3   : > { %5737 = vmatpush.bf16.msra.mxu3 %v7489_v48  ;;  %v7278_v48 = vld [vmem:[%s9291_s11 + $0xa58] sm:$0xf0]  ;;  %v8362_v6 = vld [vmem:[%s9291_s11 + $0xb2c] sm:$0xf]  ;;  %v7137_v2 = vor.u32 %v8298_v58, %v7134_v4 }
 0x2e4   : > { %5699 = vmatpush.bf16.msra.mxu0 %v7089_v55  ;;  %v10449_v34 = vpop.f32.mrf.mxu2  ;;  %v5449_v54 = vpop.f32.mrf.mxu0  ;;  %v7153_v55 = vor.u32 %v8302_v40, %v7150_v46  ;;  %v7262_v26 = vld [vmem:[%s9291_s11 + $0xa38] sm:$0xf0]  ;;  %v8294_v41 = vld [vmem:[%s9291_s11 + $0x90c] sm:$0xf] }
 0x2e5   : > { %5712 = vmatpush.bf16.msra.mxu1 %v7217_v60  ;;  %v10454_v57 = vpop.f32.mrf.mxu3  ;;  %v7281_v60 = vor.u32 %v8334_v47, %v7278_v48  ;;  %v5462_v24 = vpop.f32.mrf.mxu1  ;;  %v7390_v20 = vld [vmem:[%s9291_s11 + $0xb38] sm:$0xf0]  ;;  %v7265_v3 = vor.u32 %v8330_v63, %v7262_v26  ;;  %v8326_v21 = vld [vmem:[%s9291_s11 + $0xa0c] sm:$0xf] }
 0x2e6   : > { %5725 = vmatpush.bf16.msra.mxu2 %v7345_v56  ;;  %v8266_v56 = vld [vmem:[%s9291_s11 + $0x82c] sm:$0xf]  ;;  %v7393_v62 = vor.u32 %v8362_v6, %v7390_v20  ;;  %v7246_v43 = vld [vmem:[%s9291_s11 + $0xa18] sm:$0xf0] }
 0x2e7   : > { %5738 = vmatpush.bf16.msra.mxu3 %v7473_v61  ;;  %v7409_v61 = vor.u32 %v8366_v49, %v7406_v32  ;;  %v8358_v8 = vld [vmem:[%s9291_s11 + $0xb0c] sm:$0xf]  ;;  %v7614_v22 = vld [vmem:[%s9291_s11 + $0xcf8] sm:$0xf0]  ;;  %v7249_v17 = vor.u32 %v8326_v21, %v7246_v43 }
 0x2e8   : > { %5700 = vmatpush.bf16.msra.mxu0 %v7073_v1  ;;  %v7009_v1 = vor.u32 %v8266_v56, %v7006_v59  ;;  %v8450_v53 = vld [vmem:[%s9291_s11 + $0xdec] sm:$0xf]  ;;  %v7870_v11 = vld [vmem:[%s9291_s11 + $0xef8] sm:$0xf0] }
 0x2e9   : > { %5713 = vmatpush.bf16.msra.mxu1 %v7201_v38  ;;  %v8262_v38 = vld [vmem:[%s9291_s11 + $0x80c] sm:$0xf]  ;;  %v7726_v48 = vld [vmem:[%s9291_s11 + $0xdd8] sm:$0xf0] }
 0x2ea   : > { %5726 = vmatpush.bf16.msra.mxu2 %v7329_v0  ;;  %v6990_v0 = vld [vmem:[%s9291_s11 + $0x818] sm:$0xf0]  ;;  %v8482_v36 = vld [vmem:[%s9291_s11 + $0xeec] sm:$0xf] }
 0x2eb   : > { %5739 = vmatpush.bf16.msra.mxu3 %v7457_v42  ;;  %v7118_v42 = vld [vmem:[%s9291_s11 + $0x918] sm:$0xf0]  ;;  %v6993_v51 = vor.u32 %v8262_v38, %v6990_v0  ;;  %v8514_v18 = vld [vmem:[%s9291_s11 + $0xfec] sm:$0xf]  ;;  %v7873_v19 = vor.u32 %v8482_v36, %v7870_v11 }
 0x2ec   : > { %5701 = vmatpush.bf16.msra.mxu0 %v7057_v44  ;;  %v5475_v7 = vpop.f32.mrf.mxu2  ;;  %v7374_v44 = vld [vmem:[%s9291_s11 + $0xb18] sm:$0xf0]  ;;  %v7121_v16 = vor.u32 %v8294_v41, %v7118_v42  ;;  %v8414_v40 = vld [vmem:[%s9291_s11 + $0xccc] sm:$0xf] }
 0x2ed   : > { %5714 = vmatpush.bf16.msra.mxu1 %v7185_v10  ;;  %v5488_v10 = vpop.f32.mrf.mxu3  ;;  %v8446_v46 = vld [vmem:[%s9291_s11 + $0xdcc] sm:$0xf]  ;;  %v7854_v32 = vld [vmem:[%s9291_s11 + $0xed8] sm:$0xf0] }
 0x2ee   : > { %5727 = vmatpush.bf16.msra.mxu2 %v7313_v12  ;;  %v8418_v12 = vld [vmem:[%s9291_s11 + $0xcec] sm:$0xf]  ;;  %v7982_v54 = vld [vmem:[%s9291_s11 + $0xfd8] sm:$0xf0] }
 0x2ef   : > { %5740 = vmatpush.bf16.msra.mxu3 %v7441_v14  ;;  %v7742_v14 = vld [vmem:[%s9291_s11 + $0xdf8] sm:$0xf0]  ;;  %v8478_v49 = vld [vmem:[%s9291_s11 + $0xecc] sm:$0xf] }
 0x2f0   : > { %5702 = vmatpush.bf16.msra.mxu0 %v7041_v27  ;;  %v7998_v27 = vld [vmem:[%s9291_s11 + $0xff8] sm:$0xf0]  ;;  %v7745_v37 = vor.u32 %v8450_v53, %v7742_v14  ;;  %v7857_v56 = vor.u32 %v8478_v49, %v7854_v32  ;;  %v8410_v59 = vld [vmem:[%s9291_s11 + $0xcac] sm:$0xf] }
 0x2f1   : > { %5715 = vmatpush.bf16.msra.mxu1 %v7169_v15  ;;  %v7377_v15 = vor.u32 %v8358_v8, %v7374_v44  ;;  %v8001_v47 = vor.u32 %v8514_v18, %v7998_v27  ;;  %v7582_v58 = vld [vmem:[%s9291_s11 + $0xcb8] sm:$0xf0]  ;;  %v8442_v24 = vld [vmem:[%s9291_s11 + $0xdac] sm:$0xf]  ;;  %v5448_v18 = vadd.f32 %v10434_v9, %v10380_v52 }
 0x2f2   : > { %5728 = vmatpush.bf16.msra.mxu2 %v7297_v39  ;;  %v7617_v39 = vor.u32 %v8418_v12, %v7614_v22  ;;  %v7710_v4 = vld [vmem:[%s9291_s11 + $0xdb8] sm:$0xf0]  ;;  %v8474_v63 = vld [vmem:[%s9291_s11 + $0xeac] sm:$0xf] }
 0x2f3   : > { %5741 = vmatpush.bf16.msra.mxu3 %v7425_v45  ;;  %v7598_v45 = vld [vmem:[%s9291_s11 + $0xcd8] sm:$0xf0]  ;;  %v8506_v6 = vld [vmem:[%s9291_s11 + $0xfac] sm:$0xf] }
 0x2f4   : > { %5703 = vmatpush.bf16.msra.mxu0 %v7025_v50  ;;  %v8510_v50 = vld [vmem:[%s9291_s11 + $0xfcc] sm:$0xf]  ;;  %v7838_v26 = vld [vmem:[%s9291_s11 + $0xeb8] sm:$0xf0] }
 0x2f5   : > { %5716 = vmatpush.bf16.msra.mxu1 %v7153_v55  ;;  %v7601_v55 = vor.u32 %v8414_v40, %v7598_v45  ;;  %v7966_v20 = vld [vmem:[%s9291_s11 + $0xfb8] sm:$0xf0]  ;;  %v7841_v38 = vor.u32 %v8474_v63, %v7838_v26  ;;  %v8406_v0 = vld [vmem:[%s9291_s11 + $0xc8c] sm:$0xf] }
 0x2f6   : > { %5729 = vmatpush.bf16.msra.mxu2 %v7281_v60  ;;  %v7729_v60 = vor.u32 %v8446_v46, %v7726_v48  ;;  %v8470_v41 = vld [vmem:[%s9291_s11 + $0xe8c] sm:$0xf]  ;;  %v7822_v42 = vld [vmem:[%s9291_s11 + $0xe98] sm:$0xf0] }
 0x2f7   : > { %5742 = vmatpush.bf16.msra.mxu3 %v7409_v61  ;;  %v7985_v61 = vor.u32 %v8510_v50, %v7982_v54  ;;  %v8502_v21 = vld [vmem:[%s9291_s11 + $0xf8c] sm:$0xf]  ;;  %v7950_v7 = vld [vmem:[%s9291_s11 + $0xf98] sm:$0xf0]  ;;  %v7825_v44 = vor.u32 %v8470_v41, %v7822_v42 }
 0x2f8   : > { %5704 = vmatpush.bf16.msra.mxu0 %v7009_v1  ;;  %v7713_v1 = vor.u32 %v8442_v24, %v7710_v4  ;;  %v8402_v10 = vld [vmem:[%s9291_s11 + $0xc6c] sm:$0xf]  ;;  %v7550_v12 = vld [vmem:[%s9291_s11 + $0xc78] sm:$0xf0]  ;;  %v7953_v53 = vor.u32 %v8502_v21, %v7950_v7 }
 0x2f9   : > { %5717 = vmatpush.bf16.msra.mxu1 %v7137_v2  ;;  %v7566_v2 = vld [vmem:[%s9291_s11 + $0xc98] sm:$0xf0]  ;;  %v8434_v22 = vld [vmem:[%s9291_s11 + $0xd6c] sm:$0xf] }
 0x2fa   : > { %5730 = vmatpush.bf16.msra.mxu2 %v7265_v3  ;;  %v7694_v3 = vld [vmem:[%s9291_s11 + $0xd98] sm:$0xf0]  ;;  %v8466_v14 = vld [vmem:[%s9291_s11 + $0xe6c] sm:$0xf] }
 0x2fb   : > { %5743 = vmatpush.bf16.msra.mxu3 %v7393_v62  ;;  %v7569_v62 = vor.u32 %v8406_v0, %v7566_v2  ;;  %v7806_v36 = vld [vmem:[%s9291_s11 + $0xe78] sm:$0xf0]  ;;  %v8498_v11 = vld [vmem:[%s9291_s11 + $0xf6c] sm:$0xf] }
 0x2fc   : > { %5705 = vmatpush.bf16.msra.mxu0 %v6993_v51  ;;  %v7678_v51 = vld [vmem:[%s9291_s11 + $0xd78] sm:$0xf0]  ;;  %v8494_v52 = vld [vmem:[%s9291_s11 + $0xf4c] sm:$0xf] }
 0x2fd   : > { %5718 = vmatpush.bf16.msra.mxu1 %v7121_v16  ;;  %v10512_v43 = vpop.f32.mrf.mxu1  ;;  %v7934_v16 = vld [vmem:[%s9291_s11 + $0xf78] sm:$0xf0]  ;;  %v7681_v27 = vor.u32 %v8434_v22, %v7678_v51  ;;  %v8426_v24 = vld [vmem:[%s9291_s11 + $0xd2c] sm:$0xf] }
 0x2fe   : > { %5731 = vmatpush.bf16.msra.mxu2 %v7249_v17  ;;  %v7553_v17 = vor.u32 %v8402_v10, %v7550_v12  ;;  %v7937_v40 = vor.u32 %v8498_v11, %v7934_v16  ;;  %v7662_v46 = vld [vmem:[%s9291_s11 + $0xd58] sm:$0xf0]  ;;  %v8458_v63 = vld [vmem:[%s9291_s11 + $0xe2c] sm:$0xf] }
 0x2ff   : > { %5744 = vmatpush.bf16.msra.mxu3 %v7377_v15  ;;  %5706 = vmatmul.bf16.vlgmr.msra.gmra.mxu0 %v9538_v25  ;;  %v7585_v25 = vor.u32 %v8410_v59, %v7582_v58  ;;  %v7809_v15 = vor.u32 %v8466_v14, %v7806_v36  ;;  %v7790_v48 = vld [vmem:[%s9291_s11 + $0xe58] sm:$0xf0]  ;;  %v8394_v59 = vld [vmem:[%s9291_s11 + $0xc2c] sm:$0xf] }
 0x300   : > { %5750 = vmatpush.bf16.msrb.mxu0 %v7617_v39  ;;  %5719 = vmatmul.bf16.vlgmr.msra.gmra.mxu1 %v9545_v30  ;;  %v7969_v30 = vor.u32 %v8506_v6, %v7966_v20  ;;  %v8398_v39 = vld [vmem:[%s9291_s11 + $0xc4c] sm:$0xf]  ;;  %v7918_v9 = vld [vmem:[%s9291_s11 + $0xf58] sm:$0xf0] }
 0x301   : > { %5763 = vmatpush.bf16.msrb.mxu1 %v7745_v37  ;;  %5732 = vmatmul.bf16.vlgmr.msra.gmra.mxu2 %v9543_v29  ;;  %v8438_v29 = vld [vmem:[%s9291_s11 + $0xd8c] sm:$0xf]  ;;  %v7534_v37 = vld [vmem:[%s9291_s11 + $0xc58] sm:$0xf0] }
 0x302   : > { %5776 = vmatpush.bf16.msrb.mxu2 %v7873_v19  ;;  %5745 = vmatmul.bf16.vlgmr.msra.gmra.mxu3 %v9549_v33  ;;  %v10508_v33 = vpop.f32.mrf.mxu0  ;;  %v7697_v8 = vor.u32 %v8438_v29, %v7694_v3  ;;  %v8430_v19 = vld [vmem:[%s9291_s11 + $0xd4c] sm:$0xf]  ;;  %v7537_v50 = vor.u32 %v8398_v39, %v7534_v37  ;;  %v7518_v58 = vld [vmem:[%s9291_s11 + $0xc38] sm:$0xf0] }
 0x303   : > { %5789 = vmatpush.bf16.msrb.mxu3 %v8001_v47  ;;  %v8462_v47 = vld [vmem:[%s9291_s11 + $0xe4c] sm:$0xf]  ;;  %v7646_v4 = vld [vmem:[%s9291_s11 + $0xd38] sm:$0xf0]  ;;  %v7521_v20 = vor.u32 %v8394_v59, %v7518_v58 }
 0x304   : > { %5751 = vmatpush.bf16.msrb.mxu0 %v7601_v55  ;;  %v10527_v45 = vpop.f32.mrf.mxu2  ;;  %v5461_v55 = vadd.f32 %v10439_v13, %v5448_v18  ;;  %v7774_v26 = vld [vmem:[%s9291_s11 + $0xe38] sm:$0xf0]  ;;  %v8490_v6 = vld [vmem:[%s9291_s11 + $0xf2c] sm:$0xf] }
 0x305   : > { %5764 = vmatpush.bf16.msrb.mxu1 %v7729_v60  ;;  %v5538_v49 = vpop.f32.mrf.mxu3  ;;  %v5514_v54 = vpop.f32.mrf.mxu1  ;;  %v7665_v60 = vor.u32 %v8430_v19, %v7662_v46  ;;  %v7902_v13 = vld [vmem:[%s9291_s11 + $0xf38] sm:$0xf0]  ;;  %v8390_v0 = vld [vmem:[%s9291_s11 + $0xc0c] sm:$0xf] }
 0x306   : > { %5777 = vmatpush.bf16.msrb.mxu2 %v7857_v56  ;;  %v7793_v56 = vor.u32 %v8462_v47, %v7790_v48  ;;  %v7502_v2 = vld [vmem:[%s9291_s11 + $0xc18] sm:$0xf0]  ;;  %v8422_v29 = vld [vmem:[%s9291_s11 + $0xd0c] sm:$0xf] }
 0x307   : > { %5790 = vmatpush.bf16.msrb.mxu3 %v7985_v61  ;;  %v7921_v61 = vor.u32 %v8494_v52, %v7918_v9  ;;  %v7630_v3 = vld [vmem:[%s9291_s11 + $0xd18] sm:$0xf0]  ;;  %v8454_v41 = vld [vmem:[%s9291_s11 + $0xe0c] sm:$0xf] }
 0x308   : > { %5752 = vmatpush.bf16.msrb.mxu0 %v7585_v25  ;;  %v5474_v25 = vadd.f32 %v10449_v34, %v5461_v55  ;;  %v7758_v42 = vld [vmem:[%s9291_s11 + $0xe18] sm:$0xf0]  ;;  %v8486_v7 = vld [vmem:[%s9291_s11 + $0xf0c] sm:$0xf]  ;;  %v7633_v10 = vor.u32 %v8422_v29, %v7630_v3 }
 0x309   : > { %5765 = vmatpush.bf16.msrb.mxu1 %v7713_v1  ;;  %v7649_v1 = vor.u32 %v8426_v24, %v7646_v4  ;;  %v7761_v12 = vor.u32 %v8454_v41, %v7758_v42 }
 0x30a   : > { %5778 = vmatpush.bf16.msrb.mxu2 %v7841_v38  ;;  %v5501_v32 = vpop.f32.mrf.mxu0  ;;  %v7777_v38 = vor.u32 %v8458_v63, %v7774_v26  ;;  %v5487_v34 = vadd.f32 %v10454_v57, %v5474_v25 }
 0x30b   : > { %5791 = vmatpush.bf16.msrb.mxu3 %v7969_v30  ;;  %v7905_v30 = vor.u32 %v8490_v6, %v7902_v13 }
 0x30c   : > { %5753 = vmatpush.bf16.msrb.mxu0 %v7569_v62  ;;  %v5527_v21 = vpop.f32.mrf.mxu2  ;;  %v7886_v62 = vld [vmem:[%s9291_s11 + $0xf18] sm:$0xf0] }
 0x30d   : > { %5766 = vmatpush.bf16.msrb.mxu1 %v7697_v8  ;;  %v5540_v8 = vpop.f32.mrf.mxu3  ;;  %v7889_v22 = vor.u32 %v8486_v7, %v7886_v62 }
 0x30e   : > { %5779 = vmatpush.bf16.msrb.mxu2 %v7825_v44  ;;  %v7505_v44 = vor.u32 %v8390_v0, %v7502_v2 }
 0x30f   : > { %5792 = vmatpush.bf16.msrb.mxu3 %v7953_v53  ;;  %v5500_v53 = vadd.f32 %v10508_v33, %v5487_v34 }
 0x310   : > { %5754 = vmatpush.bf16.msrb.mxu0 %v7553_v17 }
 0x311   : > { %5767 = vmatpush.bf16.msrb.mxu1 %v7681_v27  ;;  %v5513_v51 = vadd.f32 %v10512_v43, %v5500_v53 }
 0x312   : > { %5780 = vmatpush.bf16.msrb.mxu2 %v7809_v15 }
 0x313   : > { %5793 = vmatpush.bf16.msrb.mxu3 %v7937_v40  ;;  %v5526_v57 = vadd.f32 %v10527_v45, %v5513_v51 }
 0x314   : > { %5755 = vmatpush.bf16.msrb.mxu0 %v7537_v50 }
 0x315   : > { %5768 = vmatpush.bf16.msrb.mxu1 %v7665_v60  ;;  %v5539_v14 = vadd.f32 %v5538_v49, %v5526_v57 }
 0x316   : > { %5781 = vmatpush.bf16.msrb.mxu2 %v7793_v56 }
 0x317   : > { %5794 = vmatpush.bf16.msrb.mxu3 %v7921_v61 }
 0x318   : > { %5756 = vmatpush.bf16.msrb.mxu0 %v7521_v20 }
 0x319   : > { %5769 = vmatpush.bf16.msrb.mxu1 %v7649_v1 }
 0x31a   : > { %5782 = vmatpush.bf16.msrb.mxu2 %v7777_v38 }
 0x31b   : > { %5795 = vmatpush.bf16.msrb.mxu3 %v7905_v30 }
 0x31c   : > { %5757 = vmatpush.bf16.msrb.mxu0 %v7505_v44  ;;  %v5551_v36 = vpop.f32.mrf.mxu0 }
 0x31d   : > { %5770 = vmatpush.bf16.msrb.mxu1 %v7633_v10  ;;  %v5564_v33 = vpop.f32.mrf.mxu1  ;;  %v5552_v11 = vadd.f32 %v5551_v36, %v5539_v14 }
 0x31e   : > { %5783 = vmatpush.bf16.msrb.mxu2 %v7761_v12 }
 0x31f   : > { %5796 = vmatpush.bf16.msrb.mxu3 %v7889_v22  ;;  %5758 = vmatmul.bf16.vlgmr.msrb.gmra.mxu0 %v9620_v23  ;;  %v5565_v16 = vadd.f32 %v5564_v33, %v5552_v11 }
 0x320   : > { %5771 = vmatmul.bf16.vlgmr.msrb.gmra.mxu1 %v9627_v31 }
 0x321   : > { %5784 = vmatmul.bf16.vlgmr.msrb.gmra.mxu2 %v9625_v28  ;;  %v2349_v28 = vperm.slane %v10356_v5, 3 }
 0x322   : > { %5797 = vmatmul.bf16.vlgmr.msrb.gmra.mxu3 %v9631_v35 }
 0x324   : > { %v5577_v17 = vpop.f32.mrf.mxu2  ;;  %v5553_v43 = vpop.f32.mrf.mxu0 }
 0x325   : > { %v5578_v18 = vadd.f32 %v5577_v17, %v5565_v16  ;;  %v5590_v27 = vpop.f32.mrf.mxu3  ;;  %v5566_v15 = vpop.f32.mrf.mxu1 }
 0x327   : > { %v5591_v23 = vadd.f32 %v5590_v27, %v5578_v18 }
 0x329   : > { %v5804_v39 = vmax.f32 %v5591_v23, 0.0 }
 0x32b   : > { %5808 = vst [vmem:[%s10007_s21 + $0x10] sm:$0xff] %v5804_v39 }
 0x32c   : > { %v5579_v31 = vpop.f32.mrf.mxu2 }
 0x32d   : > { %v5592_v37 = vpop.f32.mrf.mxu3 }
 0x33c   : > { %v5603_v19 = vpop.f32.mrf.mxu0 }
 0x33d   : > { %v5604_v40 = vadd.f32 %v5603_v19, %v2349_v28  ;;  %v5616_v35 = vpop.f32.mrf.mxu1 }
 0x33f   : > { %v5617_v45 = vadd.f32 %v5616_v35, %v5604_v40 }
 0x344   : > { %v5629_v46 = vpop.f32.mrf.mxu2  ;;  %v5605_v52 = vpop.f32.mrf.mxu0 }
 0x345   : > { %v5630_v47 = vadd.f32 %v5629_v46, %v5617_v45  ;;  %v5642_v48 = vpop.f32.mrf.mxu3  ;;  %v5618_v9 = vpop.f32.mrf.mxu1 }
 0x347   : > { %v5643_v49 = vadd.f32 %v5642_v48, %v5630_v47 }
 0x34c   : > { %v5631_v32 = vpop.f32.mrf.mxu2 }
 0x34d   : > { %v5644_v50 = vpop.f32.mrf.mxu3 }
 0x35c   : > { %v5655_v54 = vpop.f32.mrf.mxu0 }
 0x35d   : > { %v5668_v55 = vpop.f32.mrf.mxu1  ;;  %v5656_v63 = vadd.f32 %v5655_v54, %v5643_v49 }
 0x35f   : > { %v5669_v20 = vadd.f32 %v5668_v55, %v5656_v63 }
 0x364   : > { %v5681_v60 = vpop.f32.mrf.mxu2  ;;  %v5657_v59 = vpop.f32.mrf.mxu0 }
 0x365   : > { %v5694_v56 = vpop.f32.mrf.mxu3  ;;  %v5670_v58 = vpop.f32.mrf.mxu1  ;;  %v5682_v1 = vadd.f32 %v5681_v60, %v5669_v20 }
 0x367   : > { %v5695_v2 = vadd.f32 %v5694_v56, %v5682_v1 }
 0x36c   : > { %v5683_v24 = vpop.f32.mrf.mxu2 }
 0x36d   : > { %v5696_v5 = vpop.f32.mrf.mxu3 }
 0x37c   : > { %v5707_v61 = vpop.f32.mrf.mxu0 }
 0x37d   : > { %v5720_v4 = vpop.f32.mrf.mxu1  ;;  %v5708_v29 = vadd.f32 %v5707_v61, %v5695_v2 }
 0x37f   : > { %v5721_v30 = vadd.f32 %v5720_v4, %v5708_v29 }
 0x384   : > { %v5733_v26 = vpop.f32.mrf.mxu2  ;;  %v5709_v13 = vpop.f32.mrf.mxu0 }
 0x385   : > { %v5746_v6 = vpop.f32.mrf.mxu3  ;;  %v5722_v25 = vpop.f32.mrf.mxu1  ;;  %v5734_v3 = vadd.f32 %v5733_v26, %v5721_v30 }
 0x387   : > { %v5747_v41 = vadd.f32 %v5746_v6, %v5734_v3 }
 0x38c   : > { %v5735_v38 = vpop.f32.mrf.mxu2 }
 0x38d   : > { %v5748_v0 = vpop.f32.mrf.mxu3 }
 0x39c   : > { %v5759_v42 = vpop.f32.mrf.mxu0 }
 0x39d   : > { %v5772_v21 = vpop.f32.mrf.mxu1  ;;  %v5760_v7 = vadd.f32 %v5759_v42, %v5747_v41 }
 0x39f   : > { %v5773_v62 = vadd.f32 %v5772_v21, %v5760_v7 }
 0x3a4   : > { %v5785_v8 = vpop.f32.mrf.mxu2  ;;  %v5761_v10 = vpop.f32.mrf.mxu0 }
 0x3a5   : > { %v5786_v44 = vadd.f32 %v5785_v8, %v5773_v62  ;;  %v5798_v34 = vpop.f32.mrf.mxu3  ;;  %v5774_v12 = vpop.f32.mrf.mxu1 }
 0x3a7   : > { %v5799_v22 = vadd.f32 %v5798_v34, %v5786_v44 }
 0x3a9   : > { %v5805_v53 = vmax.f32 %v5799_v22, 0.0 }
 0x3ab   : > { %5809 = vst [vmem:[%s10007_s21 + $0x18] sm:$0xff] %v5805_v53 }
 0x3ac   : > { %v5787_v51 = vpop.f32.mrf.mxu2 }
 0x3ad   : > { %v5800_v57 = vpop.f32.mrf.mxu3 }
 0x3ae PF: > { %s13_s16 = sadd.s32 1, %s8644_s16   ;;  %s10588_s12 = smov %s8632_s13 }
 0x3af   : > { %p10_p12 = scmp.ge.s32.totalorder %s13_s16, 6   ;;  %s10589_s13 = smov %s8717_s20 }
 0x3b0   : > { %s10590_s14 = smov %s8640_s15  ;;  %s10591_s15 = smov %s10593_s17 }
 0x3b1   :  { %12 = sbr.rel (!%p10_p12) target bundleno = 3 (0x3), region = 123 }

</bundles_post_ra>
